<compile_context>
chip_gen: v6e
topology: v6e:2x2x1
jax: 0.10.0
libtpu: 0.0.40
codegen_flags: <defaults>
</compile_context>

<pallas_src>
import functools
import math

import jax
import jax.numpy as jnp
from jax.experimental import pallas as pl
from jax.experimental.pallas import tpu as pltpu

TM_MAX = 512                      # max row tile (rows of M = N*Ho*Wo)
ROW_ALIGN = 16                    # bf16 sublane packing granule
VMEM_LIMIT_BYTES = 32 * 1024 * 1024   # explicit scoped-VMEM budget (v7x physical = 64 MiB)


def _cdiv(a, b):
    return -(-a // b)


def _round_up(x, m):
    return _cdiv(x, m) * m


def _row_tiling(m):
    """Pick (row_tile, padded_rows).

    Single block (grid=(1,)) whenever M fits one <= TM_MAX tile.  Otherwise split into
    128-row-aligned tiles of ~TM_MAX (every block >= 256 rows), which both saturates
    v5e's 4x128 MXU granule and gives a 2-TensorCore chip (v7x) meaningful per-core work.
    """
    if m <= TM_MAX:
        tm = _round_up(m, ROW_ALIGN)
        return tm, tm
    nblk = _cdiv(m, TM_MAX)
    tm = _round_up(_cdiv(m, nblk), 128)
    return tm, _round_up(m, tm)


# ---------------------------------------------------------------------------
# Pallas kernels (bf16 MXU matmul + BN bias [+ residual] + ReLU, maxpool)
# ---------------------------------------------------------------------------
def _conv_bn_kernel(x_ref, w_ref, b_ref, o_ref, *, relu):
    # bf16 x bf16 -> f32 accumulate on the MXU; bias/relu in f32 on the VPU.
    acc = jnp.dot(x_ref[...], w_ref[...], preferred_element_type=jnp.float32)
    acc = acc + b_ref[...]
    if relu:
        acc = jnp.maximum(acc, 0.0)
    o_ref[...] = acc.astype(o_ref.dtype)


def _conv_bn_res_kernel(x_ref, w_ref, b_ref, r_ref, o_ref):
    acc = jnp.dot(x_ref[...], w_ref[...], preferred_element_type=jnp.float32)
    acc = acc + b_ref[...] + r_ref[...].astype(jnp.float32)
    o_ref[...] = jnp.maximum(acc, 0.0).astype(o_ref.dtype)


def _conv_bn_dual_kernel(x_ref, w1_ref, b1_ref, wd_ref, bd_ref, h_ref, id_ref, *, ds_col):
    # conv1 (3x3, BN+ReLU) and the block's 1x1 downsample projection in one call.
    x = x_ref[...]
    acc = jnp.dot(x, w1_ref[...], preferred_element_type=jnp.float32) + b1_ref[...]
    h_ref[...] = jnp.maximum(acc, 0.0).astype(h_ref.dtype)
    cin = wd_ref.shape[0]
    # Centre-tap columns of the 3x3/pad-1 im2col block == the (strided) 1x1-conv input,
    # so the projection reuses the activation block already resident in VMEM.
    xd = x[:, ds_col:ds_col + cin]
    idn = jnp.dot(xd, wd_ref[...], preferred_element_type=jnp.float32) + bd_ref[...]
    id_ref[...] = idn.astype(id_ref.dtype)


def _maxpool_kernel(x_ref, o_ref, *, taps):
    # tap-major layout: every x_ref[j] is a [tm, C] tile with identical layout, so the
    # unrolled maximum chain stays on the VPU (no cross-sublane reduce).
    m = x_ref[0]
    for j in range(1, taps):
        m = jnp.maximum(m, x_ref[j])
    o_ref[...] = m


# ---------------------------------------------------------------------------
# Wrappers around pallas_call
# ---------------------------------------------------------------------------
def fused_matmul(patches, w, b, residual=None, relu=True):
    """patches: [M, K] bf16, w: [K, C] f32 (BN scale folded), b: [C] f32 (folded bias)."""
    M0, K0 = patches.shape
    C0 = w.shape[1]

    # Lane-dense output packing for narrow (C < 128) layers: pair adjacent M rows via a
    # free row-major reshape and use a block-diagonal weight, so stores are unmasked
    # full-128-lane slabs.  The 2x MXU work on these tiny-K layers is in the slack.
    pack = 2 if (2 * C0 <= 128 and M0 % 2 == 0) else 1
    if pack == 2:
        patches = patches.reshape(M0 // 2, 2 * K0)
        w = jnp.kron(jnp.eye(pack, dtype=w.dtype), w)   # [2K, 2C] block-diagonal
        b = jnp.tile(b, pack)
        if residual is not None:
            residual = residual.reshape(M0 // 2, 2 * C0)

    M, K = patches.shape
    C = C0 * pack
    tm, Mp = _row_tiling(M)
    nblk = Mp // tm

    x = patches if Mp == M else jnp.pad(patches, ((0, Mp - M), (0, 0)))
    bp = b.reshape(1, C).astype(jnp.float32)
    wq = w.astype(jnp.bfloat16)   # constant-folded under jit

    # Deeper pipelining on the activation stream for low-arithmetic-intensity layers,
    # only once the grid actually has several row blocks (large-M deployments).
    if nblk >= 3 and C <= 128:
        x_spec = pl.BlockSpec((tm, K), lambda i: (i, 0), pipeline_mode=pl.Buffered(3))
    else:
        x_spec = pl.BlockSpec((tm, K), lambda i: (i, 0))

    cparams = pltpu.CompilerParams(
        dimension_semantics=("parallel",) if nblk > 1 else ("arbitrary",),
        vmem_limit_bytes=VMEM_LIMIT_BYTES)

    bytes_res = 0 if residual is None else M * C * residual.dtype.itemsize
    cost = pl.CostEstimate(
        flops=2 * M * K * C,
        transcendentals=0,
        bytes_accessed=M * K * 2 + K * C * 2 + C * 4 + M * C * 2 + bytes_res)

    if residual is None:
        out = pl.pallas_call(
            functools.partial(_conv_bn_kernel, relu=relu),
            out_shape=jax.ShapeDtypeStruct((Mp, C), jnp.bfloat16),
            grid=(nblk,),
            in_specs=[
                x_spec,
                pl.BlockSpec((K, C), lambda i: (0, 0)),
                pl.BlockSpec((1, C), lambda i: (0, 0)),
            ],
            out_specs=pl.BlockSpec((tm, C), lambda i: (i, 0)),
            compiler_params=cparams,
            cost_estimate=cost,
        )(x, wq, bp)
    else:
        r = residual if Mp == M else jnp.pad(residual, ((0, Mp - M), (0, 0)))
        out = pl.pallas_call(
            _conv_bn_res_kernel,
            out_shape=jax.ShapeDtypeStruct((Mp, C), jnp.bfloat16),
            grid=(nblk,),
            in_specs=[
                x_spec,
                pl.BlockSpec((K, C), lambda i: (0, 0)),
                pl.BlockSpec((1, C), lambda i: (0, 0)),
                pl.BlockSpec((tm, C), lambda i: (i, 0)),
            ],
            out_specs=pl.BlockSpec((tm, C), lambda i: (i, 0)),
            compiler_params=cparams,
            cost_estimate=cost,
        )(x, wq, bp, r)

    if Mp != M:
        out = out[:M]
    if pack == 2:
        out = out.reshape(M0, C0)   # free row-major un-pairing
    return out


def _extract_patches(x, kh, kw, stride, padding, pad_value=0.0):
    """im2col glue (data movement only, bf16). x: [N,H,W,C] -> [N,Ho,Wo,kh*kw*C]."""
    N, H, W, C = x.shape
    xpad = jnp.pad(
        x, ((0, 0), (padding, padding), (padding, padding), (0, 0)),
        constant_values=pad_value)
    Hp, Wp = H + 2 * padding, W + 2 * padding
    Ho = (Hp - kh) // stride + 1
    Wo = (Wp - kw) // stride + 1
    cols = []
    for dy in range(kh):
        for dx in range(kw):
            ys = slice(dy, dy + stride * (Ho - 1) + 1, stride)
            xs = slice(dx, dx + stride * (Wo - 1) + 1, stride)
            cols.append(xpad[:, ys, xs, :])
    patches = jnp.concatenate(cols, axis=-1)  # (dy, dx, cin) ordering along K
    return patches, Ho, Wo


def conv_bn(x, w, b, stride, padding, relu=True, residual=None):
    """x: [N,H,W,Cin] NHWC bf16.  w: [kh,kw,Cin,Cout] f32 (BN scale folded), b: folded bias."""
    kh, kw, cin, cout = w.shape
    N = x.shape[0]
    if kh == 1 and kw == 1 and padding == 0:
        # 1x1 conv: no im2col needed, just a (strided) channel matmul.
        xs = x if stride == 1 else x[:, ::stride, ::stride, :]
        _, Ho, Wo, _ = xs.shape
        P = xs.reshape(N * Ho * Wo, cin)
    else:
        patches, Ho, Wo = _extract_patches(x, kh, kw, stride, padding)
        P = patches.reshape(N * Ho * Wo, kh * kw * cin)
    wm = w.reshape(kh * kw * cin, cout)
    out = fused_matmul(P, wm, b, residual=residual, relu=relu)
    return out.reshape(N, Ho, Wo, cout)


def conv_bn_dual(x, conv1_params, down_params, stride):
    """Fused conv1 (3x3, BN, ReLU) + 1x1 downsample projection of a residual block.

    Returns (h: [N,Ho,Wo,Cmid] bf16, identity: [M, Cd] bf16 flat).
    """
    w1, b1 = conv1_params
    wd, bd = down_params
    kh, kw, cin, cmid = w1.shape
    assert (kh, kw) == (3, 3) and wd.shape[0] == 1 and wd.shape[1] == 1
    cd = wd.shape[-1]
    N = x.shape[0]

    patches, Ho, Wo = _extract_patches(x, 3, 3, stride, 1)
    M = N * Ho * Wo
    K = 9 * cin
    P = patches.reshape(M, K)
    ds_col = 4 * cin   # tap (dy=1, dx=1): x[n, s*i, s*j, :]

    tm, Mp = _row_tiling(M)
    nblk = Mp // tm
    Pq = P if Mp == M else jnp.pad(P, ((0, Mp - M), (0, 0)))
    w1m = w1.reshape(K, cmid).astype(jnp.bfloat16)
    wdm = wd.reshape(cin, cd).astype(jnp.bfloat16)
    b1p = b1.reshape(1, cmid).astype(jnp.float32)
    bdp = bd.reshape(1, cd).astype(jnp.float32)

    cparams = pltpu.CompilerParams(
        dimension_semantics=("parallel",) if nblk > 1 else ("arbitrary",),
        vmem_limit_bytes=VMEM_LIMIT_BYTES)
    cost = pl.CostEstimate(
        flops=2 * M * K * cmid + 2 * M * cin * cd,
        transcendentals=0,
        bytes_accessed=(M * K * 2 + K * cmid * 2 + cin * cd * 2
                        + (cmid + cd) * 4 + M * (cmid + cd) * 2))

    h, idn = pl.pallas_call(
        functools.partial(_conv_bn_dual_kernel, ds_col=ds_col),
        out_shape=[jax.ShapeDtypeStruct((Mp, cmid), jnp.bfloat16),
                   jax.ShapeDtypeStruct((Mp, cd), jnp.bfloat16)],
        grid=(nblk,),
        in_specs=[
            pl.BlockSpec((tm, K), lambda i: (i, 0)),
            pl.BlockSpec((K, cmid), lambda i: (0, 0)),
            pl.BlockSpec((1, cmid), lambda i: (0, 0)),
            pl.BlockSpec((cin, cd), lambda i: (0, 0)),
            pl.BlockSpec((1, cd), lambda i: (0, 0)),
        ],
        out_specs=[pl.BlockSpec((tm, cmid), lambda i: (i, 0)),
                   pl.BlockSpec((tm, cd), lambda i: (i, 0))],
        compiler_params=cparams,
        cost_estimate=cost,
    )(Pq, w1m, b1p, wdm, bdp)

    if Mp != M:
        h, idn = h[:M], idn[:M]
    return h.reshape(N, Ho, Wo, cmid), idn


def maxpool2d(x, k=3, stride=2, padding=1):
    N, H, W, C = x.shape
    xpad = jnp.pad(
        x, ((0, 0), (padding, padding), (padding, padding), (0, 0)),
        constant_values=-jnp.inf)
    Hp, Wp = H + 2 * padding, W + 2 * padding
    Ho = (Hp - k) // stride + 1
    Wo = (Wp - k) // stride + 1
    M = N * Ho * Wo
    taps = k * k

    # pack row pairs into the lane dim when C < 128 so loads/stores are lane-dense
    pack = 2 if (2 * C <= 128 and M % 2 == 0) else 1
    Mq, Cq = M // pack, C * pack

    cols = []
    for dy in range(k):
        for dx in range(k):
            ys = slice(dy, dy + stride * (Ho - 1) + 1, stride)
            xs = slice(dx, dx + stride * (Wo - 1) + 1, stride)
            cols.append(xpad[:, ys, xs, :].reshape(Mq, Cq))
    stacked = jnp.stack(cols, axis=0)  # [taps, Mq, Cq], tap-major

    tm, Mqp = _row_tiling(Mq)
    nblk = Mqp // tm
    if Mqp != Mq:
        stacked = jnp.pad(stacked, ((0, 0), (0, Mqp - Mq), (0, 0)))
    cost = pl.CostEstimate(
        flops=taps * Mq * Cq, transcendentals=0,
        bytes_accessed=(taps + 1) * Mq * Cq * x.dtype.itemsize)
    out = pl.pallas_call(
        functools.partial(_maxpool_kernel, taps=taps),
        out_shape=jax.ShapeDtypeStruct((Mqp, Cq), x.dtype),
        grid=(nblk,),
        in_specs=[pl.BlockSpec((taps, tm, Cq), lambda i: (0, i, 0))],
        out_specs=pl.BlockSpec((tm, Cq), lambda i: (i, 0)),
        compiler_params=pltpu.CompilerParams(
            dimension_semantics=("parallel",) if nblk > 1 else ("arbitrary",),
            vmem_limit_bytes=VMEM_LIMIT_BYTES),
        cost_estimate=cost,
    )(stacked)
    if Mqp != Mq:
        out = out[:Mq]
    return out.reshape(N, Ho, Wo, C)


# ---------------------------------------------------------------------------
# Deterministic synthetic parameters (conv + folded eval-mode BatchNorm)
# ---------------------------------------------------------------------------
def _init_conv_bn(key, kh, kw, cin, cout):
    kw_, kg, kb, km, kv = jax.random.split(key, 5)
    fan_in = kh * kw * cin
    W = jax.random.normal(kw_, (kh, kw, cin, cout), jnp.float32) * math.sqrt(2.0 / fan_in)
    gamma = 1.0 + 0.1 * jax.random.normal(kg, (cout,), jnp.float32)
    beta = 0.1 * jax.random.normal(kb, (cout,), jnp.float32)
    mean = 0.1 * jax.random.normal(km, (cout,), jnp.float32)
    var = jax.random.uniform(kv, (cout,), jnp.float32, minval=0.5, maxval=1.5)
    scale = gamma / jnp.sqrt(var + 1e-5)
    Wf = W * scale            # fold BN scale into conv weight (per out-channel)
    bf = beta - mean * scale  # folded BN bias
    return Wf, bf


def init_params(key):
    keys = iter(jax.random.split(key, 64))
    params = {"stem": _init_conv_bn(next(keys), 7, 7, 3, 64)}

    def make_stage(n_blocks, cin, cout, stride_first, downsample_first):
        blocks = []
        for bidx in range(n_blocks):
            ci = cin if bidx == 0 else cout
            st = stride_first if bidx == 0 else 1
            blk = {
                "conv1": _init_conv_bn(next(keys), 3, 3, ci, cout),
                "conv2": _init_conv_bn(next(keys), 3, 3, cout, cout),
                "stride": st,
            }
            if bidx == 0 and downsample_first:
                blk["down"] = _init_conv_bn(next(keys), 1, 1, ci, cout)
            blocks.append(blk)
        return blocks

    params["layer1"] = make_stage(3, 64, 64, 1, False)    # resnet34.layer1
    params["layer2"] = make_stage(4, 64, 128, 2, True)    # resnet34.layer2
    # resnet34.layer3 with conv1/downsample stride modified 2 -> 1 (SSD _ModifyBlock)
    params["layer3"] = make_stage(6, 128, 256, 1, True)
    return params


# ---------------------------------------------------------------------------
# Forward pass (matches ResNet34.forward: returns [layer2_activation])
# ---------------------------------------------------------------------------
def basic_block(x, blk):
    st = blk["stride"]
    if "down" in blk:
        # conv1 + 1x1 projection share one pallas_call; identity comes back flat [M, Cout].
        h, identity_flat = conv_bn_dual(x, blk["conv1"], blk["down"], st)
    else:
        h = conv_bn(x, blk["conv1"][0], blk["conv1"][1], st, 1, relu=True)
        identity_flat = x.reshape(-1, x.shape[-1])
    # out = relu(bn2(conv2(h)) + identity)  -- residual + relu fused in the kernel.
    # Note: identity is rounded to bf16 before the add (small tolerance vs f32 torch ref).
    out = conv_bn(h, blk["conv2"][0], blk["conv2"][1], 1, 1, relu=True,
                  residual=identity_flat)
    return out


def resnet34_forward(params, data_nchw):
    x = jnp.transpose(data_nchw, (0, 2, 3, 1)).astype(jnp.bfloat16)  # NCHW -> NHWC, bf16
    x = conv_bn(x, params["stem"][0], params["stem"][1], 2, 3, relu=True)
    x = maxpool2d(x, k=3, stride=2, padding=1)
    for blk in params["layer1"]:
        x = basic_block(x, blk)
    for blk in params["layer2"]:
        x = basic_block(x, blk)
    layer2_activation = x
    for blk in params["layer3"]:
        layer2_activation = basic_block(layer2_activation, blk)
    out = jnp.transpose(layer2_activation, (0, 3, 1, 2)).astype(jnp.float32)  # NHWC -> NCHW
    return [out]


if __name__ == "__main__":
    key = jax.random.PRNGKey(0)
    pkey, dkey = jax.random.split(key)
    params = init_params(pkey)

    # Small input consistent with the module: NCHW RGB image batch.
    data = jax.random.normal(dkey, (2, 3, 32, 32), jnp.float32)

    fwd = jax.jit(lambda d: resnet34_forward(params, d))
    out = fwd(data)
    jax.block_until_ready(out)

    # 32 -> conv s2 -> 16 -> maxpool s2 -> 8 -> layer2 s2 -> 4 -> layer3 (stride modified to 1) -> 4
    assert out[0].shape == (2, 256, 4, 4), out[0].shape
    assert out[0].dtype == jnp.float32
    assert bool(jnp.isfinite(out[0]).all())
    print("KERNEL_OK")
</pallas_src>

<mosaic_0001>
module attributes {stable_mosaic.version = 11 : i64} {
  func.func @_conv_bn_kernel(%arg0: i32, %arg1: memref<256x294xbf16, #tpu.memory_space<vmem>>, %arg2: memref<294x128xbf16, #tpu.memory_space<vmem>>, %arg3: memref<1x128xf32, #tpu.memory_space<vmem>>, %arg4: memref<256x128xbf16, #tpu.memory_space<vmem>>) attributes {dimension_semantics = [#tpu.dimension_semantics<arbitrary>], iteration_bounds = array<i64: 1>, scalar_prefetch = 0 : i64, scratch_operands = 0 : i64, tpu.core_type = #tpu.core_type<tc>, window_params = [{transform_indices = @transform_0, window_bounds = array<i64: 256, 294>}, {pipeline_mode = #tpu.pipeline_mode<synchronous>, transform_indices = @transform_1, window_bounds = array<i64: 294, 128>}, {pipeline_mode = #tpu.pipeline_mode<synchronous>, transform_indices = @transform_2, window_bounds = array<i64: 1, 128>}, {transform_indices = @transform_3, window_bounds = array<i64: 256, 128>}]} {
    %c0 = arith.constant 0 : index
    %c0_0 = arith.constant 0 : index
    %0 = vector.load %arg1[%c0, %c0_0] : memref<256x294xbf16, #tpu.memory_space<vmem>>, vector<256x294xbf16>
    %c0_1 = arith.constant 0 : index
    %c0_2 = arith.constant 0 : index
    %1 = vector.load %arg2[%c0_1, %c0_2] : memref<294x128xbf16, #tpu.memory_space<vmem>>, vector<294x128xbf16>
    %cst = arith.constant dense<0.000000e+00> : vector<256x128xf32>
    %2 = tpu.matmul %0, %1, %cst {dimension_numbers = #tpu.dot_dimension_numbers<[1], [0], [0], [1], [0, 0, 1, 1], [], []>} : vector<256x294xbf16>, vector<294x128xbf16>, vector<256x128xf32> -> vector<256x128xf32>
    %c0_3 = arith.constant 0 : index
    %c0_4 = arith.constant 0 : index
    %3 = vector.load %arg3[%c0_3, %c0_4] : memref<1x128xf32, #tpu.memory_space<vmem>>, vector<1x128xf32>
    %4 = vector.broadcast %3 : vector<1x128xf32> to vector<256x128xf32>
    %5 = arith.addf %2, %4 : vector<256x128xf32>
    %cst_5 = arith.constant 0.000000e+00 : f32
    %6 = vector.broadcast %cst_5 : f32 to vector<256x128xf32>
    %7 = arith.maximumf %5, %6 : vector<256x128xf32>
    %8 = arith.truncf %7 : vector<256x128xf32> to vector<256x128xbf16>
    %c0_6 = arith.constant 0 : index
    %c0_7 = arith.constant 0 : index
    %9 = vector.load %arg4[%c0_6, %c0_7] : memref<256x128xbf16, #tpu.memory_space<vmem>>, vector<256x128xbf16>
    tpu.vector_store %arg4[%c0_6, %c0_7], %8 {strides = array<i32>} : memref<256x128xbf16, #tpu.memory_space<vmem>>, vector<256x128xbf16>,
    return
  }
  func.func @transform_0(%arg0: i32) -> (i32, i32) {
    %c0_i32 = arith.constant 0 : i32
    %c0_i32_0 = arith.constant 0 : i32
    return %arg0, %c0_i32 : i32, i32
  }
  func.func @transform_1(%arg0: i32) -> (i32, i32) {
    %c0_i32 = arith.constant 0 : i32
    %c0_i32_0 = arith.constant 0 : i32
    %c0_i32_1 = arith.constant 0 : i32
    return %c0_i32, %c0_i32_0 : i32, i32
  }
  func.func @transform_2(%arg0: i32) -> (i32, i32) {
    %c0_i32 = arith.constant 0 : i32
    %c0_i32_0 = arith.constant 0 : i32
    %c0_i32_1 = arith.constant 0 : i32
    return %c0_i32, %c0_i32_0 : i32, i32
  }
  func.func @transform_3(%arg0: i32) -> (i32, i32) {
    %c0_i32 = arith.constant 0 : i32
    %c0_i32_0 = arith.constant 0 : i32
    return %arg0, %c0_i32 : i32, i32
  }
}

module attributes {stable_mosaic.version = 11 : i64} {
  func.func @_maxpool_kernel(%arg0: i32, %arg1: memref<9x64x128xbf16, #tpu.memory_space<vmem>>, %arg2: memref<64x128xbf16, #tpu.memory_space<vmem>>) attributes {dimension_semantics = [#tpu.dimension_semantics<arbitrary>], iteration_bounds = array<i64: 1>, scalar_prefetch = 0 : i64, scratch_operands = 0 : i64, tpu.core_type = #tpu.core_type<tc>, window_params = [{transform_indices = @transform_0, window_bounds = array<i64: 9, 64, 128>}, {transform_indices = @transform_1, window_bounds = array<i64: 64, 128>}]} {
    %c0 = arith.constant 0 : index
    %c0_0 = arith.constant 0 : index
    %c0_1 = arith.constant 0 : index
    %0 = vector.load %arg1[%c0, %c0_0, %c0_1] : memref<9x64x128xbf16, #tpu.memory_space<vmem>>, vector<1x64x128xbf16>
    %1 = vector.shape_cast %0 : vector<1x64x128xbf16> to vector<64x128xbf16>
    %c1 = arith.constant 1 : index
    %c0_2 = arith.constant 0 : index
    %c0_3 = arith.constant 0 : index
    %2 = vector.load %arg1[%c1, %c0_2, %c0_3] : memref<9x64x128xbf16, #tpu.memory_space<vmem>>, vector<1x64x128xbf16>
    %3 = vector.shape_cast %2 : vector<1x64x128xbf16> to vector<64x128xbf16>
    %4 = arith.maximumf %1, %3 : vector<64x128xbf16>
    %c2 = arith.constant 2 : index
    %c0_4 = arith.constant 0 : index
    %c0_5 = arith.constant 0 : index
    %5 = vector.load %arg1[%c2, %c0_4, %c0_5] : memref<9x64x128xbf16, #tpu.memory_space<vmem>>, vector<1x64x128xbf16>
    %6 = vector.shape_cast %5 : vector<1x64x128xbf16> to vector<64x128xbf16>
    %7 = arith.maximumf %4, %6 : vector<64x128xbf16>
    %c3 = arith.constant 3 : index
    %c0_6 = arith.constant 0 : index
    %c0_7 = arith.constant 0 : index
    %8 = vector.load %arg1[%c3, %c0_6, %c0_7] : memref<9x64x128xbf16, #tpu.memory_space<vmem>>, vector<1x64x128xbf16>
    %9 = vector.shape_cast %8 : vector<1x64x128xbf16> to vector<64x128xbf16>
    %10 = arith.maximumf %7, %9 : vector<64x128xbf16>
    %c4 = arith.constant 4 : index
    %c0_8 = arith.constant 0 : index
    %c0_9 = arith.constant 0 : index
    %11 = vector.load %arg1[%c4, %c0_8, %c0_9] : memref<9x64x128xbf16, #tpu.memory_space<vmem>>, vector<1x64x128xbf16>
    %12 = vector.shape_cast %11 : vector<1x64x128xbf16> to vector<64x128xbf16>
    %13 = arith.maximumf %10, %12 : vector<64x128xbf16>
    %c5 = arith.constant 5 : index
    %c0_10 = arith.constant 0 : index
    %c0_11 = arith.constant 0 : index
    %14 = vector.load %arg1[%c5, %c0_10, %c0_11] : memref<9x64x128xbf16, #tpu.memory_space<vmem>>, vector<1x64x128xbf16>
    %15 = vector.shape_cast %14 : vector<1x64x128xbf16> to vector<64x128xbf16>
    %16 = arith.maximumf %13, %15 : vector<64x128xbf16>
    %c6 = arith.constant 6 : index
    %c0_12 = arith.constant 0 : index
    %c0_13 = arith.constant 0 : index
    %17 = vector.load %arg1[%c6, %c0_12, %c0_13] : memref<9x64x128xbf16, #tpu.memory_space<vmem>>, vector<1x64x128xbf16>
    %18 = vector.shape_cast %17 : vector<1x64x128xbf16> to vector<64x128xbf16>
    %19 = arith.maximumf %16, %18 : vector<64x128xbf16>
    %c7 = arith.constant 7 : index
    %c0_14 = arith.constant 0 : index
    %c0_15 = arith.constant 0 : index
    %20 = vector.load %arg1[%c7, %c0_14, %c0_15] : memref<9x64x128xbf16, #tpu.memory_space<vmem>>, vector<1x64x128xbf16>
    %21 = vector.shape_cast %20 : vector<1x64x128xbf16> to vector<64x128xbf16>
    %22 = arith.maximumf %19, %21 : vector<64x128xbf16>
    %c8 = arith.constant 8 : index
    %c0_16 = arith.constant 0 : index
    %c0_17 = arith.constant 0 : index
    %23 = vector.load %arg1[%c8, %c0_16, %c0_17] : memref<9x64x128xbf16, #tpu.memory_space<vmem>>, vector<1x64x128xbf16>
    %24 = vector.shape_cast %23 : vector<1x64x128xbf16> to vector<64x128xbf16>
    %25 = arith.maximumf %22, %24 : vector<64x128xbf16>
    %c0_18 = arith.constant 0 : index
    %c0_19 = arith.constant 0 : index
    %26 = vector.load %arg2[%c0_18, %c0_19] : memref<64x128xbf16, #tpu.memory_space<vmem>>, vector<64x128xbf16>
    tpu.vector_store %arg2[%c0_18, %c0_19], %25 {strides = array<i32>} : memref<64x128xbf16, #tpu.memory_space<vmem>>, vector<64x128xbf16>,
    return
  }
  func.func @transform_0(%arg0: i32) -> (i32, i32, i32) {
    %c0_i32 = arith.constant 0 : i32
    %c0_i32_0 = arith.constant 0 : i32
    %c0_i32_1 = arith.constant 0 : i32
    return %c0_i32, %arg0, %c0_i32_0 : i32, i32, i32
  }
  func.func @transform_1(%arg0: i32) -> (i32, i32) {
    %c0_i32 = arith.constant 0 : i32
    %c0_i32_0 = arith.constant 0 : i32
    return %arg0, %c0_i32 : i32, i32
  }
}

module attributes {stable_mosaic.version = 11 : i64} {
  func.func @_conv_bn_kernel(%arg0: i32, %arg1: memref<64x1152xbf16, #tpu.memory_space<vmem>>, %arg2: memref<1152x128xbf16, #tpu.memory_space<vmem>>, %arg3: memref<1x128xf32, #tpu.memory_space<vmem>>, %arg4: memref<64x128xbf16, #tpu.memory_space<vmem>>) attributes {dimension_semantics = [#tpu.dimension_semantics<arbitrary>], iteration_bounds = array<i64: 1>, scalar_prefetch = 0 : i64, scratch_operands = 0 : i64, tpu.core_type = #tpu.core_type<tc>, window_params = [{transform_indices = @transform_0, window_bounds = array<i64: 64, 1152>}, {pipeline_mode = #tpu.pipeline_mode<synchronous>, transform_indices = @transform_1, window_bounds = array<i64: 1152, 128>}, {pipeline_mode = #tpu.pipeline_mode<synchronous>, transform_indices = @transform_2, window_bounds = array<i64: 1, 128>}, {transform_indices = @transform_3, window_bounds = array<i64: 64, 128>}]} {
    %c0 = arith.constant 0 : index
    %c0_0 = arith.constant 0 : index
    %0 = vector.load %arg1[%c0, %c0_0] : memref<64x1152xbf16, #tpu.memory_space<vmem>>, vector<64x1152xbf16>
    %c0_1 = arith.constant 0 : index
    %c0_2 = arith.constant 0 : index
    %1 = vector.load %arg2[%c0_1, %c0_2] : memref<1152x128xbf16, #tpu.memory_space<vmem>>, vector<1152x128xbf16>
    %cst = arith.constant dense<0.000000e+00> : vector<64x128xf32>
    %2 = tpu.matmul %0, %1, %cst {dimension_numbers = #tpu.dot_dimension_numbers<[1], [0], [0], [1], [0, 0, 1, 1], [], []>} : vector<64x1152xbf16>, vector<1152x128xbf16>, vector<64x128xf32> -> vector<64x128xf32>
    %c0_3 = arith.constant 0 : index
    %c0_4 = arith.constant 0 : index
    %3 = vector.load %arg3[%c0_3, %c0_4] : memref<1x128xf32, #tpu.memory_space<vmem>>, vector<1x128xf32>
    %4 = vector.broadcast %3 : vector<1x128xf32> to vector<64x128xf32>
    %5 = arith.addf %2, %4 : vector<64x128xf32>
    %cst_5 = arith.constant 0.000000e+00 : f32
    %6 = vector.broadcast %cst_5 : f32 to vector<64x128xf32>
    %7 = arith.maximumf %5, %6 : vector<64x128xf32>
    %8 = arith.truncf %7 : vector<64x128xf32> to vector<64x128xbf16>
    %c0_6 = arith.constant 0 : index
    %c0_7 = arith.constant 0 : index
    %9 = vector.load %arg4[%c0_6, %c0_7] : memref<64x128xbf16, #tpu.memory_space<vmem>>, vector<64x128xbf16>
    tpu.vector_store %arg4[%c0_6, %c0_7], %8 {strides = array<i32>} : memref<64x128xbf16, #tpu.memory_space<vmem>>, vector<64x128xbf16>,
    return
  }
  func.func @transform_0(%arg0: i32) -> (i32, i32) {
    %c0_i32 = arith.constant 0 : i32
    %c0_i32_0 = arith.constant 0 : i32
    return %arg0, %c0_i32 : i32, i32
  }
  func.func @transform_1(%arg0: i32) -> (i32, i32) {
    %c0_i32 = arith.constant 0 : i32
    %c0_i32_0 = arith.constant 0 : i32
    %c0_i32_1 = arith.constant 0 : i32
    return %c0_i32, %c0_i32_0 : i32, i32
  }
  func.func @transform_2(%arg0: i32) -> (i32, i32) {
    %c0_i32 = arith.constant 0 : i32
    %c0_i32_0 = arith.constant 0 : i32
    %c0_i32_1 = arith.constant 0 : i32
    return %c0_i32, %c0_i32_0 : i32, i32
  }
  func.func @transform_3(%arg0: i32) -> (i32, i32) {
    %c0_i32 = arith.constant 0 : i32
    %c0_i32_0 = arith.constant 0 : i32
    return %arg0, %c0_i32 : i32, i32
  }
}

module attributes {stable_mosaic.version = 11 : i64} {
  func.func @_conv_bn_res_kernel(%arg0: i32, %arg1: memref<64x1152xbf16, #tpu.memory_space<vmem>>, %arg2: memref<1152x128xbf16, #tpu.memory_space<vmem>>, %arg3: memref<1x128xf32, #tpu.memory_space<vmem>>, %arg4: memref<64x128xbf16, #tpu.memory_space<vmem>>, %arg5: memref<64x128xbf16, #tpu.memory_space<vmem>>) attributes {dimension_semantics = [#tpu.dimension_semantics<arbitrary>], iteration_bounds = array<i64: 1>, scalar_prefetch = 0 : i64, scratch_operands = 0 : i64, tpu.core_type = #tpu.core_type<tc>, window_params = [{transform_indices = @transform_0, window_bounds = array<i64: 64, 1152>}, {pipeline_mode = #tpu.pipeline_mode<synchronous>, transform_indices = @transform_1, window_bounds = array<i64: 1152, 128>}, {pipeline_mode = #tpu.pipeline_mode<synchronous>, transform_indices = @transform_2, window_bounds = array<i64: 1, 128>}, {transform_indices = @transform_3, window_bounds = array<i64: 64, 128>}, {transform_indices = @transform_4, window_bounds = array<i64: 64, 128>}]} {
    %c0 = arith.constant 0 : index
    %c0_0 = arith.constant 0 : index
    %0 = vector.load %arg1[%c0, %c0_0] : memref<64x1152xbf16, #tpu.memory_space<vmem>>, vector<64x1152xbf16>
    %c0_1 = arith.constant 0 : index
    %c0_2 = arith.constant 0 : index
    %1 = vector.load %arg2[%c0_1, %c0_2] : memref<1152x128xbf16, #tpu.memory_space<vmem>>, vector<1152x128xbf16>
    %cst = arith.constant dense<0.000000e+00> : vector<64x128xf32>
    %2 = tpu.matmul %0, %1, %cst {dimension_numbers = #tpu.dot_dimension_numbers<[1], [0], [0], [1], [0, 0, 1, 1], [], []>} : vector<64x1152xbf16>, vector<1152x128xbf16>, vector<64x128xf32> -> vector<64x128xf32>
    %c0_3 = arith.constant 0 : index
    %c0_4 = arith.constant 0 : index
    %3 = vector.load %arg3[%c0_3, %c0_4] : memref<1x128xf32, #tpu.memory_space<vmem>>, vector<1x128xf32>
    %4 = vector.broadcast %3 : vector<1x128xf32> to vector<64x128xf32>
    %5 = arith.addf %2, %4 : vector<64x128xf32>
    %c0_5 = arith.constant 0 : index
    %c0_6 = arith.constant 0 : index
    %6 = vector.load %arg4[%c0_5, %c0_6] : memref<64x128xbf16, #tpu.memory_space<vmem>>, vector<64x128xbf16>
    %7 = arith.extf %6 : vector<64x128xbf16> to vector<64x128xf32>
    %8 = arith.addf %5, %7 : vector<64x128xf32>
    %cst_7 = arith.constant 0.000000e+00 : f32
    %9 = vector.broadcast %cst_7 : f32 to vector<64x128xf32>
    %10 = arith.maximumf %8, %9 : vector<64x128xf32>
    %11 = arith.truncf %10 : vector<64x128xf32> to vector<64x128xbf16>
    %c0_8 = arith.constant 0 : index
    %c0_9 = arith.constant 0 : index
    %12 = vector.load %arg5[%c0_8, %c0_9] : memref<64x128xbf16, #tpu.memory_space<vmem>>, vector<64x128xbf16>
    tpu.vector_store %arg5[%c0_8, %c0_9], %11 {strides = array<i32>} : memref<64x128xbf16, #tpu.memory_space<vmem>>, vector<64x128xbf16>,
    return
  }
  func.func @transform_0(%arg0: i32) -> (i32, i32) {
    %c0_i32 = arith.constant 0 : i32
    %c0_i32_0 = arith.constant 0 : i32
    return %arg0, %c0_i32 : i32, i32
  }
  func.func @transform_1(%arg0: i32) -> (i32, i32) {
    %c0_i32 = arith.constant 0 : i32
    %c0_i32_0 = arith.constant 0 : i32
    %c0_i32_1 = arith.constant 0 : i32
    return %c0_i32, %c0_i32_0 : i32, i32
  }
  func.func @transform_2(%arg0: i32) -> (i32, i32) {
    %c0_i32 = arith.constant 0 : i32
    %c0_i32_0 = arith.constant 0 : i32
    %c0_i32_1 = arith.constant 0 : i32
    return %c0_i32, %c0_i32_0 : i32, i32
  }
  func.func @transform_3(%arg0: i32) -> (i32, i32) {
    %c0_i32 = arith.constant 0 : i32
    %c0_i32_0 = arith.constant 0 : i32
    return %arg0, %c0_i32 : i32, i32
  }
  func.func @transform_4(%arg0: i32) -> (i32, i32) {
    %c0_i32 = arith.constant 0 : i32
    %c0_i32_0 = arith.constant 0 : i32
    return %arg0, %c0_i32 : i32, i32
  }
}

module attributes {stable_mosaic.version = 11 : i64} {
  func.func @_conv_bn_dual_kernel(%arg0: i32, %arg1: memref<32x576xbf16, #tpu.memory_space<vmem>>, %arg2: memref<576x128xbf16, #tpu.memory_space<vmem>>, %arg3: memref<1x128xf32, #tpu.memory_space<vmem>>, %arg4: memref<64x128xbf16, #tpu.memory_space<vmem>>, %arg5: memref<1x128xf32, #tpu.memory_space<vmem>>, %arg6: memref<32x128xbf16, #tpu.memory_space<vmem>>, %arg7: memref<32x128xbf16, #tpu.memory_space<vmem>>) attributes {dimension_semantics = [#tpu.dimension_semantics<arbitrary>], iteration_bounds = array<i64: 1>, scalar_prefetch = 0 : i64, scratch_operands = 0 : i64, tpu.core_type = #tpu.core_type<tc>, window_params = [{transform_indices = @transform_0, window_bounds = array<i64: 32, 576>}, {pipeline_mode = #tpu.pipeline_mode<synchronous>, transform_indices = @transform_1, window_bounds = array<i64: 576, 128>}, {pipeline_mode = #tpu.pipeline_mode<synchronous>, transform_indices = @transform_2, window_bounds = array<i64: 1, 128>}, {pipeline_mode = #tpu.pipeline_mode<synchronous>, transform_indices = @transform_3, window_bounds = array<i64: 64, 128>}, {pipeline_mode = #tpu.pipeline_mode<synchronous>, transform_indices = @transform_4, window_bounds = array<i64: 1, 128>}, {transform_indices = @transform_5, window_bounds = array<i64: 32, 128>}, {transform_indices = @transform_6, window_bounds = array<i64: 32, 128>}]} {
    %c0 = arith.constant 0 : index
    %c0_0 = arith.constant 0 : index
    %0 = vector.load %arg1[%c0, %c0_0] : memref<32x576xbf16, #tpu.memory_space<vmem>>, vector<32x576xbf16>
    %c0_1 = arith.constant 0 : index
    %c0_2 = arith.constant 0 : index
    %1 = vector.load %arg2[%c0_1, %c0_2] : memref<576x128xbf16, #tpu.memory_space<vmem>>, vector<576x128xbf16>
    %cst = arith.constant dense<0.000000e+00> : vector<32x128xf32>
    %2 = tpu.matmul %0, %1, %cst {dimension_numbers = #tpu.dot_dimension_numbers<[1], [0], [0], [1], [0, 0, 1, 1], [], []>} : vector<32x576xbf16>, vector<576x128xbf16>, vector<32x128xf32> -> vector<32x128xf32>
    %c0_3 = arith.constant 0 : index
    %c0_4 = arith.constant 0 : index
    %3 = vector.load %arg3[%c0_3, %c0_4] : memref<1x128xf32, #tpu.memory_space<vmem>>, vector<1x128xf32>
    %4 = vector.broadcast %3 : vector<1x128xf32> to vector<32x128xf32>
    %5 = arith.addf %2, %4 : vector<32x128xf32>
    %cst_5 = arith.constant 0.000000e+00 : f32
    %6 = vector.broadcast %cst_5 : f32 to vector<32x128xf32>
    %7 = arith.maximumf %5, %6 : vector<32x128xf32>
    %8 = arith.truncf %7 : vector<32x128xf32> to vector<32x128xbf16>
    %c0_6 = arith.constant 0 : index
    %c0_7 = arith.constant 0 : index
    %9 = vector.load %arg6[%c0_6, %c0_7] : memref<32x128xbf16, #tpu.memory_space<vmem>>, vector<32x128xbf16>
    tpu.vector_store %arg6[%c0_6, %c0_7], %8 {strides = array<i32>} : memref<32x128xbf16, #tpu.memory_space<vmem>>, vector<32x128xbf16>,
    %10 = vector.extract_strided_slice %0 {offsets = [0, 256], sizes = [32, 64], strides = [1, 1]} : vector<32x576xbf16> to vector<32x64xbf16>
    %c0_8 = arith.constant 0 : index
    %c0_9 = arith.constant 0 : index
    %11 = vector.load %arg4[%c0_8, %c0_9] : memref<64x128xbf16, #tpu.memory_space<vmem>>, vector<64x128xbf16>
    %cst_10 = arith.constant dense<0.000000e+00> : vector<32x128xf32>
    %12 = tpu.matmul %10, %11, %cst_10 {dimension_numbers = #tpu.dot_dimension_numbers<[1], [0], [0], [1], [0, 0, 1, 1], [], []>} : vector<32x64xbf16>, vector<64x128xbf16>, vector<32x128xf32> -> vector<32x128xf32>
    %c0_11 = arith.constant 0 : index
    %c0_12 = arith.constant 0 : index
    %13 = vector.load %arg5[%c0_11, %c0_12] : memref<1x128xf32, #tpu.memory_space<vmem>>, vector<1x128xf32>
    %14 = vector.broadcast %13 : vector<1x128xf32> to vector<32x128xf32>
    %15 = arith.addf %12, %14 : vector<32x128xf32>
    %16 = arith.truncf %15 : vector<32x128xf32> to vector<32x128xbf16>
    %c0_13 = arith.constant 0 : index
    %c0_14 = arith.constant 0 : index
    %17 = vector.load %arg7[%c0_13, %c0_14] : memref<32x128xbf16, #tpu.memory_space<vmem>>, vector<32x128xbf16>
    tpu.vector_store %arg7[%c0_13, %c0_14], %16 {strides = array<i32>} : memref<32x128xbf16, #tpu.memory_space<vmem>>, vector<32x128xbf16>,
    return
  }
  func.func @transform_0(%arg0: i32) -> (i32, i32) {
    %c0_i32 = arith.constant 0 : i32
    %c0_i32_0 = arith.constant 0 : i32
    return %arg0, %c0_i32 : i32, i32
  }
  func.func @transform_1(%arg0: i32) -> (i32, i32) {
    %c0_i32 = arith.constant 0 : i32
    %c0_i32_0 = arith.constant 0 : i32
    %c0_i32_1 = arith.constant 0 : i32
    return %c0_i32, %c0_i32_0 : i32, i32
  }
  func.func @transform_2(%arg0: i32) -> (i32, i32) {
    %c0_i32 = arith.constant 0 : i32
    %c0_i32_0 = arith.constant 0 : i32
    %c0_i32_1 = arith.constant 0 : i32
    return %c0_i32, %c0_i32_0 : i32, i32
  }
  func.func @transform_3(%arg0: i32) -> (i32, i32) {
    %c0_i32 = arith.constant 0 : i32
    %c0_i32_0 = arith.constant 0 : i32
    %c0_i32_1 = arith.constant 0 : i32
    return %c0_i32, %c0_i32_0 : i32, i32
  }
  func.func @transform_4(%arg0: i32) -> (i32, i32) {
    %c0_i32 = arith.constant 0 : i32
    %c0_i32_0 = arith.constant 0 : i32
    %c0_i32_1 = arith.constant 0 : i32
    return %c0_i32, %c0_i32_0 : i32, i32
  }
  func.func @transform_5(%arg0: i32) -> (i32, i32) {
    %c0_i32 = arith.constant 0 : i32
    %c0_i32_0 = arith.constant 0 : i32
    return %arg0, %c0_i32 : i32, i32
  }
  func.func @transform_6(%arg0: i32) -> (i32, i32) {
    %c0_i32 = arith.constant 0 : i32
    %c0_i32_0 = arith.constant 0 : i32
    return %arg0, %c0_i32 : i32, i32
  }
}

module attributes {stable_mosaic.version = 11 : i64} {
  func.func @_conv_bn_res_kernel(%arg0: i32, %arg1: memref<32x1152xbf16, #tpu.memory_space<vmem>>, %arg2: memref<1152x128xbf16, #tpu.memory_space<vmem>>, %arg3: memref<1x128xf32, #tpu.memory_space<vmem>>, %arg4: memref<32x128xbf16, #tpu.memory_space<vmem>>, %arg5: memref<32x128xbf16, #tpu.memory_space<vmem>>) attributes {dimension_semantics = [#tpu.dimension_semantics<arbitrary>], iteration_bounds = array<i64: 1>, scalar_prefetch = 0 : i64, scratch_operands = 0 : i64, tpu.core_type = #tpu.core_type<tc>, window_params = [{transform_indices = @transform_0, window_bounds = array<i64: 32, 1152>}, {pipeline_mode = #tpu.pipeline_mode<synchronous>, transform_indices = @transform_1, window_bounds = array<i64: 1152, 128>}, {pipeline_mode = #tpu.pipeline_mode<synchronous>, transform_indices = @transform_2, window_bounds = array<i64: 1, 128>}, {transform_indices = @transform_3, window_bounds = array<i64: 32, 128>}, {transform_indices = @transform_4, window_bounds = array<i64: 32, 128>}]} {
    %c0 = arith.constant 0 : index
    %c0_0 = arith.constant 0 : index
    %0 = vector.load %arg1[%c0, %c0_0] : memref<32x1152xbf16, #tpu.memory_space<vmem>>, vector<32x1152xbf16>
    %c0_1 = arith.constant 0 : index
    %c0_2 = arith.constant 0 : index
    %1 = vector.load %arg2[%c0_1, %c0_2] : memref<1152x128xbf16, #tpu.memory_space<vmem>>, vector<1152x128xbf16>
    %cst = arith.constant dense<0.000000e+00> : vector<32x128xf32>
    %2 = tpu.matmul %0, %1, %cst {dimension_numbers = #tpu.dot_dimension_numbers<[1], [0], [0], [1], [0, 0, 1, 1], [], []>} : vector<32x1152xbf16>, vector<1152x128xbf16>, vector<32x128xf32> -> vector<32x128xf32>
    %c0_3 = arith.constant 0 : index
    %c0_4 = arith.constant 0 : index
    %3 = vector.load %arg3[%c0_3, %c0_4] : memref<1x128xf32, #tpu.memory_space<vmem>>, vector<1x128xf32>
    %4 = vector.broadcast %3 : vector<1x128xf32> to vector<32x128xf32>
    %5 = arith.addf %2, %4 : vector<32x128xf32>
    %c0_5 = arith.constant 0 : index
    %c0_6 = arith.constant 0 : index
    %6 = vector.load %arg4[%c0_5, %c0_6] : memref<32x128xbf16, #tpu.memory_space<vmem>>, vector<32x128xbf16>
    %7 = arith.extf %6 : vector<32x128xbf16> to vector<32x128xf32>
    %8 = arith.addf %5, %7 : vector<32x128xf32>
    %cst_7 = arith.constant 0.000000e+00 : f32
    %9 = vector.broadcast %cst_7 : f32 to vector<32x128xf32>
    %10 = arith.maximumf %8, %9 : vector<32x128xf32>
    %11 = arith.truncf %10 : vector<32x128xf32> to vector<32x128xbf16>
    %c0_8 = arith.constant 0 : index
    %c0_9 = arith.constant 0 : index
    %12 = vector.load %arg5[%c0_8, %c0_9] : memref<32x128xbf16, #tpu.memory_space<vmem>>, vector<32x128xbf16>
    tpu.vector_store %arg5[%c0_8, %c0_9], %11 {strides = array<i32>} : memref<32x128xbf16, #tpu.memory_space<vmem>>, vector<32x128xbf16>,
    return
  }
  func.func @transform_0(%arg0: i32) -> (i32, i32) {
    %c0_i32 = arith.constant 0 : i32
    %c0_i32_0 = arith.constant 0 : i32
    return %arg0, %c0_i32 : i32, i32
  }
  func.func @transform_1(%arg0: i32) -> (i32, i32) {
    %c0_i32 = arith.constant 0 : i32
    %c0_i32_0 = arith.constant 0 : i32
    %c0_i32_1 = arith.constant 0 : i32
    return %c0_i32, %c0_i32_0 : i32, i32
  }
  func.func @transform_2(%arg0: i32) -> (i32, i32) {
    %c0_i32 = arith.constant 0 : i32
    %c0_i32_0 = arith.constant 0 : i32
    %c0_i32_1 = arith.constant 0 : i32
    return %c0_i32, %c0_i32_0 : i32, i32
  }
  func.func @transform_3(%arg0: i32) -> (i32, i32) {
    %c0_i32 = arith.constant 0 : i32
    %c0_i32_0 = arith.constant 0 : i32
    return %arg0, %c0_i32 : i32, i32
  }
  func.func @transform_4(%arg0: i32) -> (i32, i32) {
    %c0_i32 = arith.constant 0 : i32
    %c0_i32_0 = arith.constant 0 : i32
    return %arg0, %c0_i32 : i32, i32
  }
}

module attributes {stable_mosaic.version = 11 : i64} {
  func.func @_conv_bn_kernel(%arg0: i32, %arg1: memref<32x1152xbf16, #tpu.memory_space<vmem>>, %arg2: memref<1152x128xbf16, #tpu.memory_space<vmem>>, %arg3: memref<1x128xf32, #tpu.memory_space<vmem>>, %arg4: memref<32x128xbf16, #tpu.memory_space<vmem>>) attributes {dimension_semantics = [#tpu.dimension_semantics<arbitrary>], iteration_bounds = array<i64: 1>, scalar_prefetch = 0 : i64, scratch_operands = 0 : i64, tpu.core_type = #tpu.core_type<tc>, window_params = [{transform_indices = @transform_0, window_bounds = array<i64: 32, 1152>}, {pipeline_mode = #tpu.pipeline_mode<synchronous>, transform_indices = @transform_1, window_bounds = array<i64: 1152, 128>}, {pipeline_mode = #tpu.pipeline_mode<synchronous>, transform_indices = @transform_2, window_bounds = array<i64: 1, 128>}, {transform_indices = @transform_3, window_bounds = array<i64: 32, 128>}]} {
    %c0 = arith.constant 0 : index
    %c0_0 = arith.constant 0 : index
    %0 = vector.load %arg1[%c0, %c0_0] : memref<32x1152xbf16, #tpu.memory_space<vmem>>, vector<32x1152xbf16>
    %c0_1 = arith.constant 0 : index
    %c0_2 = arith.constant 0 : index
    %1 = vector.load %arg2[%c0_1, %c0_2] : memref<1152x128xbf16, #tpu.memory_space<vmem>>, vector<1152x128xbf16>
    %cst = arith.constant dense<0.000000e+00> : vector<32x128xf32>
    %2 = tpu.matmul %0, %1, %cst {dimension_numbers = #tpu.dot_dimension_numbers<[1], [0], [0], [1], [0, 0, 1, 1], [], []>} : vector<32x1152xbf16>, vector<1152x128xbf16>, vector<32x128xf32> -> vector<32x128xf32>
    %c0_3 = arith.constant 0 : index
    %c0_4 = arith.constant 0 : index
    %3 = vector.load %arg3[%c0_3, %c0_4] : memref<1x128xf32, #tpu.memory_space<vmem>>, vector<1x128xf32>
    %4 = vector.broadcast %3 : vector<1x128xf32> to vector<32x128xf32>
    %5 = arith.addf %2, %4 : vector<32x128xf32>
    %cst_5 = arith.constant 0.000000e+00 : f32
    %6 = vector.broadcast %cst_5 : f32 to vector<32x128xf32>
    %7 = arith.maximumf %5, %6 : vector<32x128xf32>
    %8 = arith.truncf %7 : vector<32x128xf32> to vector<32x128xbf16>
    %c0_6 = arith.constant 0 : index
    %c0_7 = arith.constant 0 : index
    %9 = vector.load %arg4[%c0_6, %c0_7] : memref<32x128xbf16, #tpu.memory_space<vmem>>, vector<32x128xbf16>
    tpu.vector_store %arg4[%c0_6, %c0_7], %8 {strides = array<i32>} : memref<32x128xbf16, #tpu.memory_space<vmem>>, vector<32x128xbf16>,
    return
  }
  func.func @transform_0(%arg0: i32) -> (i32, i32) {
    %c0_i32 = arith.constant 0 : i32
    %c0_i32_0 = arith.constant 0 : i32
    return %arg0, %c0_i32 : i32, i32
  }
  func.func @transform_1(%arg0: i32) -> (i32, i32) {
    %c0_i32 = arith.constant 0 : i32
    %c0_i32_0 = arith.constant 0 : i32
    %c0_i32_1 = arith.constant 0 : i32
    return %c0_i32, %c0_i32_0 : i32, i32
  }
  func.func @transform_2(%arg0: i32) -> (i32, i32) {
    %c0_i32 = arith.constant 0 : i32
    %c0_i32_0 = arith.constant 0 : i32
    %c0_i32_1 = arith.constant 0 : i32
    return %c0_i32, %c0_i32_0 : i32, i32
  }
  func.func @transform_3(%arg0: i32) -> (i32, i32) {
    %c0_i32 = arith.constant 0 : i32
    %c0_i32_0 = arith.constant 0 : i32
    return %arg0, %c0_i32 : i32, i32
  }
}

module attributes {stable_mosaic.version = 11 : i64} {
  func.func @_conv_bn_dual_kernel(%arg0: i32, %arg1: memref<32x1152xbf16, #tpu.memory_space<vmem>>, %arg2: memref<1152x256xbf16, #tpu.memory_space<vmem>>, %arg3: memref<1x256xf32, #tpu.memory_space<vmem>>, %arg4: memref<128x256xbf16, #tpu.memory_space<vmem>>, %arg5: memref<1x256xf32, #tpu.memory_space<vmem>>, %arg6: memref<32x256xbf16, #tpu.memory_space<vmem>>, %arg7: memref<32x256xbf16, #tpu.memory_space<vmem>>) attributes {dimension_semantics = [#tpu.dimension_semantics<arbitrary>], iteration_bounds = array<i64: 1>, scalar_prefetch = 0 : i64, scratch_operands = 0 : i64, tpu.core_type = #tpu.core_type<tc>, window_params = [{transform_indices = @transform_0, window_bounds = array<i64: 32, 1152>}, {pipeline_mode = #tpu.pipeline_mode<synchronous>, transform_indices = @transform_1, window_bounds = array<i64: 1152, 256>}, {pipeline_mode = #tpu.pipeline_mode<synchronous>, transform_indices = @transform_2, window_bounds = array<i64: 1, 256>}, {pipeline_mode = #tpu.pipeline_mode<synchronous>, transform_indices = @transform_3, window_bounds = array<i64: 128, 256>}, {pipeline_mode = #tpu.pipeline_mode<synchronous>, transform_indices = @transform_4, window_bounds = array<i64: 1, 256>}, {transform_indices = @transform_5, window_bounds = array<i64: 32, 256>}, {transform_indices = @transform_6, window_bounds = array<i64: 32, 256>}]} {
    %c0 = arith.constant 0 : index
    %c0_0 = arith.constant 0 : index
    %0 = vector.load %arg1[%c0, %c0_0] : memref<32x1152xbf16, #tpu.memory_space<vmem>>, vector<32x1152xbf16>
    %c0_1 = arith.constant 0 : index
    %c0_2 = arith.constant 0 : index
    %1 = vector.load %arg2[%c0_1, %c0_2] : memref<1152x256xbf16, #tpu.memory_space<vmem>>, vector<1152x256xbf16>
    %cst = arith.constant dense<0.000000e+00> : vector<32x256xf32>
    %2 = tpu.matmul %0, %1, %cst {dimension_numbers = #tpu.dot_dimension_numbers<[1], [0], [0], [1], [0, 0, 1, 1], [], []>} : vector<32x1152xbf16>, vector<1152x256xbf16>, vector<32x256xf32> -> vector<32x256xf32>
    %c0_3 = arith.constant 0 : index
    %c0_4 = arith.constant 0 : index
    %3 = vector.load %arg3[%c0_3, %c0_4] : memref<1x256xf32, #tpu.memory_space<vmem>>, vector<1x256xf32>
    %4 = vector.broadcast %3 : vector<1x256xf32> to vector<32x256xf32>
    %5 = arith.addf %2, %4 : vector<32x256xf32>
    %cst_5 = arith.constant 0.000000e+00 : f32
    %6 = vector.broadcast %cst_5 : f32 to vector<32x256xf32>
    %7 = arith.maximumf %5, %6 : vector<32x256xf32>
    %8 = arith.truncf %7 : vector<32x256xf32> to vector<32x256xbf16>
    %c0_6 = arith.constant 0 : index
    %c0_7 = arith.constant 0 : index
    %9 = vector.load %arg6[%c0_6, %c0_7] : memref<32x256xbf16, #tpu.memory_space<vmem>>, vector<32x256xbf16>
    tpu.vector_store %arg6[%c0_6, %c0_7], %8 {strides = array<i32>} : memref<32x256xbf16, #tpu.memory_space<vmem>>, vector<32x256xbf16>,
    %10 = vector.extract_strided_slice %0 {offsets = [0, 512], sizes = [32, 128], strides = [1, 1]} : vector<32x1152xbf16> to vector<32x128xbf16>
    %c0_8 = arith.constant 0 : index
    %c0_9 = arith.constant 0 : index
    %11 = vector.load %arg4[%c0_8, %c0_9] : memref<128x256xbf16, #tpu.memory_space<vmem>>, vector<128x256xbf16>
    %cst_10 = arith.constant dense<0.000000e+00> : vector<32x256xf32>
    %12 = tpu.matmul %10, %11, %cst_10 {dimension_numbers = #tpu.dot_dimension_numbers<[1], [0], [0], [1], [0, 0, 1, 1], [], []>} : vector<32x128xbf16>, vector<128x256xbf16>, vector<32x256xf32> -> vector<32x256xf32>
    %c0_11 = arith.constant 0 : index
    %c0_12 = arith.constant 0 : index
    %13 = vector.load %arg5[%c0_11, %c0_12] : memref<1x256xf32, #tpu.memory_space<vmem>>, vector<1x256xf32>
    %14 = vector.broadcast %13 : vector<1x256xf32> to vector<32x256xf32>
    %15 = arith.addf %12, %14 : vector<32x256xf32>
    %16 = arith.truncf %15 : vector<32x256xf32> to vector<32x256xbf16>
    %c0_13 = arith.constant 0 : index
    %c0_14 = arith.constant 0 : index
    %17 = vector.load %arg7[%c0_13, %c0_14] : memref<32x256xbf16, #tpu.memory_space<vmem>>, vector<32x256xbf16>
    tpu.vector_store %arg7[%c0_13, %c0_14], %16 {strides = array<i32>} : memref<32x256xbf16, #tpu.memory_space<vmem>>, vector<32x256xbf16>,
    return
  }
  func.func @transform_0(%arg0: i32) -> (i32, i32) {
    %c0_i32 = arith.constant 0 : i32
    %c0_i32_0 = arith.constant 0 : i32
    return %arg0, %c0_i32 : i32, i32
  }
  func.func @transform_1(%arg0: i32) -> (i32, i32) {
    %c0_i32 = arith.constant 0 : i32
    %c0_i32_0 = arith.constant 0 : i32
    %c0_i32_1 = arith.constant 0 : i32
    return %c0_i32, %c0_i32_0 : i32, i32
  }
  func.func @transform_2(%arg0: i32) -> (i32, i32) {
    %c0_i32 = arith.constant 0 : i32
    %c0_i32_0 = arith.constant 0 : i32
    %c0_i32_1 = arith.constant 0 : i32
    return %c0_i32, %c0_i32_0 : i32, i32
  }
  func.func @transform_3(%arg0: i32) -> (i32, i32) {
    %c0_i32 = arith.constant 0 : i32
    %c0_i32_0 = arith.constant 0 : i32
    %c0_i32_1 = arith.constant 0 : i32
    return %c0_i32, %c0_i32_0 : i32, i32
  }
  func.func @transform_4(%arg0: i32) -> (i32, i32) {
    %c0_i32 = arith.constant 0 : i32
    %c0_i32_0 = arith.constant 0 : i32
    %c0_i32_1 = arith.constant 0 : i32
    return %c0_i32, %c0_i32_0 : i32, i32
  }
  func.func @transform_5(%arg0: i32) -> (i32, i32) {
    %c0_i32 = arith.constant 0 : i32
    %c0_i32_0 = arith.constant 0 : i32
    return %arg0, %c0_i32 : i32, i32
  }
  func.func @transform_6(%arg0: i32) -> (i32, i32) {
    %c0_i32 = arith.constant 0 : i32
    %c0_i32_0 = arith.constant 0 : i32
    return %arg0, %c0_i32 : i32, i32
  }
}

module attributes {stable_mosaic.version = 11 : i64} {
  func.func @_conv_bn_res_kernel(%arg0: i32, %arg1: memref<32x2304xbf16, #tpu.memory_space<vmem>>, %arg2: memref<2304x256xbf16, #tpu.memory_space<vmem>>, %arg3: memref<1x256xf32, #tpu.memory_space<vmem>>, %arg4: memref<32x256xbf16, #tpu.memory_space<vmem>>, %arg5: memref<32x256xbf16, #tpu.memory_space<vmem>>) attributes {dimension_semantics = [#tpu.dimension_semantics<arbitrary>], iteration_bounds = array<i64: 1>, scalar_prefetch = 0 : i64, scratch_operands = 0 : i64, tpu.core_type = #tpu.core_type<tc>, window_params = [{transform_indices = @transform_0, window_bounds = array<i64: 32, 2304>}, {pipeline_mode = #tpu.pipeline_mode<synchronous>, transform_indices = @transform_1, window_bounds = array<i64: 2304, 256>}, {pipeline_mode = #tpu.pipeline_mode<synchronous>, transform_indices = @transform_2, window_bounds = array<i64: 1, 256>}, {transform_indices = @transform_3, window_bounds = array<i64: 32, 256>}, {transform_indices = @transform_4, window_bounds = array<i64: 32, 256>}]} {
    %c0 = arith.constant 0 : index
    %c0_0 = arith.constant 0 : index
    %0 = vector.load %arg1[%c0, %c0_0] : memref<32x2304xbf16, #tpu.memory_space<vmem>>, vector<32x2304xbf16>
    %c0_1 = arith.constant 0 : index
    %c0_2 = arith.constant 0 : index
    %1 = vector.load %arg2[%c0_1, %c0_2] : memref<2304x256xbf16, #tpu.memory_space<vmem>>, vector<2304x256xbf16>
    %cst = arith.constant dense<0.000000e+00> : vector<32x256xf32>
    %2 = tpu.matmul %0, %1, %cst {dimension_numbers = #tpu.dot_dimension_numbers<[1], [0], [0], [1], [0, 0, 1, 1], [], []>} : vector<32x2304xbf16>, vector<2304x256xbf16>, vector<32x256xf32> -> vector<32x256xf32>
    %c0_3 = arith.constant 0 : index
    %c0_4 = arith.constant 0 : index
    %3 = vector.load %arg3[%c0_3, %c0_4] : memref<1x256xf32, #tpu.memory_space<vmem>>, vector<1x256xf32>
    %4 = vector.broadcast %3 : vector<1x256xf32> to vector<32x256xf32>
    %5 = arith.addf %2, %4 : vector<32x256xf32>
    %c0_5 = arith.constant 0 : index
    %c0_6 = arith.constant 0 : index
    %6 = vector.load %arg4[%c0_5, %c0_6] : memref<32x256xbf16, #tpu.memory_space<vmem>>, vector<32x256xbf16>
    %7 = arith.extf %6 : vector<32x256xbf16> to vector<32x256xf32>
    %8 = arith.addf %5, %7 : vector<32x256xf32>
    %cst_7 = arith.constant 0.000000e+00 : f32
    %9 = vector.broadcast %cst_7 : f32 to vector<32x256xf32>
    %10 = arith.maximumf %8, %9 : vector<32x256xf32>
    %11 = arith.truncf %10 : vector<32x256xf32> to vector<32x256xbf16>
    %c0_8 = arith.constant 0 : index
    %c0_9 = arith.constant 0 : index
    %12 = vector.load %arg5[%c0_8, %c0_9] : memref<32x256xbf16, #tpu.memory_space<vmem>>, vector<32x256xbf16>
    tpu.vector_store %arg5[%c0_8, %c0_9], %11 {strides = array<i32>} : memref<32x256xbf16, #tpu.memory_space<vmem>>, vector<32x256xbf16>,
    return
  }
  func.func @transform_0(%arg0: i32) -> (i32, i32) {
    %c0_i32 = arith.constant 0 : i32
    %c0_i32_0 = arith.constant 0 : i32
    return %arg0, %c0_i32 : i32, i32
  }
  func.func @transform_1(%arg0: i32) -> (i32, i32) {
    %c0_i32 = arith.constant 0 : i32
    %c0_i32_0 = arith.constant 0 : i32
    %c0_i32_1 = arith.constant 0 : i32
    return %c0_i32, %c0_i32_0 : i32, i32
  }
  func.func @transform_2(%arg0: i32) -> (i32, i32) {
    %c0_i32 = arith.constant 0 : i32
    %c0_i32_0 = arith.constant 0 : i32
    %c0_i32_1 = arith.constant 0 : i32
    return %c0_i32, %c0_i32_0 : i32, i32
  }
  func.func @transform_3(%arg0: i32) -> (i32, i32) {
    %c0_i32 = arith.constant 0 : i32
    %c0_i32_0 = arith.constant 0 : i32
    return %arg0, %c0_i32 : i32, i32
  }
  func.func @transform_4(%arg0: i32) -> (i32, i32) {
    %c0_i32 = arith.constant 0 : i32
    %c0_i32_0 = arith.constant 0 : i32
    return %arg0, %c0_i32 : i32, i32
  }
}

module attributes {stable_mosaic.version = 11 : i64} {
  func.func @_conv_bn_kernel(%arg0: i32, %arg1: memref<32x2304xbf16, #tpu.memory_space<vmem>>, %arg2: memref<2304x256xbf16, #tpu.memory_space<vmem>>, %arg3: memref<1x256xf32, #tpu.memory_space<vmem>>, %arg4: memref<32x256xbf16, #tpu.memory_space<vmem>>) attributes {dimension_semantics = [#tpu.dimension_semantics<arbitrary>], iteration_bounds = array<i64: 1>, scalar_prefetch = 0 : i64, scratch_operands = 0 : i64, tpu.core_type = #tpu.core_type<tc>, window_params = [{transform_indices = @transform_0, window_bounds = array<i64: 32, 2304>}, {pipeline_mode = #tpu.pipeline_mode<synchronous>, transform_indices = @transform_1, window_bounds = array<i64: 2304, 256>}, {pipeline_mode = #tpu.pipeline_mode<synchronous>, transform_indices = @transform_2, window_bounds = array<i64: 1, 256>}, {transform_indices = @transform_3, window_bounds = array<i64: 32, 256>}]} {
    %c0 = arith.constant 0 : index
    %c0_0 = arith.constant 0 : index
    %0 = vector.load %arg1[%c0, %c0_0] : memref<32x2304xbf16, #tpu.memory_space<vmem>>, vector<32x2304xbf16>
    %c0_1 = arith.constant 0 : index
    %c0_2 = arith.constant 0 : index
    %1 = vector.load %arg2[%c0_1, %c0_2] : memref<2304x256xbf16, #tpu.memory_space<vmem>>, vector<2304x256xbf16>
    %cst = arith.constant dense<0.000000e+00> : vector<32x256xf32>
    %2 = tpu.matmul %0, %1, %cst {dimension_numbers = #tpu.dot_dimension_numbers<[1], [0], [0], [1], [0, 0, 1, 1], [], []>} : vector<32x2304xbf16>, vector<2304x256xbf16>, vector<32x256xf32> -> vector<32x256xf32>
    %c0_3 = arith.constant 0 : index
    %c0_4 = arith.constant 0 : index
    %3 = vector.load %arg3[%c0_3, %c0_4] : memref<1x256xf32, #tpu.memory_space<vmem>>, vector<1x256xf32>
    %4 = vector.broadcast %3 : vector<1x256xf32> to vector<32x256xf32>
    %5 = arith.addf %2, %4 : vector<32x256xf32>
    %cst_5 = arith.constant 0.000000e+00 : f32
    %6 = vector.broadcast %cst_5 : f32 to vector<32x256xf32>
    %7 = arith.maximumf %5, %6 : vector<32x256xf32>
    %8 = arith.truncf %7 : vector<32x256xf32> to vector<32x256xbf16>
    %c0_6 = arith.constant 0 : index
    %c0_7 = arith.constant 0 : index
    %9 = vector.load %arg4[%c0_6, %c0_7] : memref<32x256xbf16, #tpu.memory_space<vmem>>, vector<32x256xbf16>
    tpu.vector_store %arg4[%c0_6, %c0_7], %8 {strides = array<i32>} : memref<32x256xbf16, #tpu.memory_space<vmem>>, vector<32x256xbf16>,
    return
  }
  func.func @transform_0(%arg0: i32) -> (i32, i32) {
    %c0_i32 = arith.constant 0 : i32
    %c0_i32_0 = arith.constant 0 : i32
    return %arg0, %c0_i32 : i32, i32
  }
  func.func @transform_1(%arg0: i32) -> (i32, i32) {
    %c0_i32 = arith.constant 0 : i32
    %c0_i32_0 = arith.constant 0 : i32
    %c0_i32_1 = arith.constant 0 : i32
    return %c0_i32, %c0_i32_0 : i32, i32
  }
  func.func @transform_2(%arg0: i32) -> (i32, i32) {
    %c0_i32 = arith.constant 0 : i32
    %c0_i32_0 = arith.constant 0 : i32
    %c0_i32_1 = arith.constant 0 : i32
    return %c0_i32, %c0_i32_0 : i32, i32
  }
  func.func @transform_3(%arg0: i32) -> (i32, i32) {
    %c0_i32 = arith.constant 0 : i32
    %c0_i32_0 = arith.constant 0 : i32
    return %arg0, %c0_i32 : i32, i32
  }
}

</mosaic_0001>

<bundles_post_ra>
// kernel: tile.30
= control target key start
LH: loop header
LB: loop body
LE: loop exit
PB: predicated region body
PF: predicated region fallthrough
CT: control target
= control target key end

     0   :  { %s22_s0 = inlined_call_operand.vmem [shape: f32[64], index: 0, kind: input, shape index: {}]   ;;  %s23_s1 = inlined_call_operand.vmem [shape: f32[2,64], index: 1, kind: output, shape index: {}]  }
   0x1   :  { %v4_v0 = vld [vmem:[%s22_s0] ss:$0 sm:$0xff] }
   0x2   :  { %5 = vst [vmem:[%s23_s1] sm:$0x3] %v4_v0 }

// kernel: tile.31
= control target key start
LH: loop header
LB: loop body
LE: loop exit
PB: predicated region body
PF: predicated region fallthrough
CT: control target
= control target key end

     0   :  { %vm8_vm0 = vcmask 523264   ;;  %vm14_vm1 = vcmask 1048064   ;;  %s42_s0 = inlined_call_operand.vmem [shape: f32[2,64], index: 0, kind: input, shape index: {}]   ;;  %s43_s1 = inlined_call_operand.vmem [shape: f32[1,128], index: 1, kind: output, shape index: {}]  }
   0x1   :  { %v5_v0 = vld [vmem:[%s42_s0] sm:$0x3]  ;;  %s25_s0 = smov 64  }
   0x2   :  { %6 = vst [vmem:[#allocation1] sm:$0x3] %v5_v0 }
   0x9   :  { %v11_v1 = vld [vmem:[#allocation1 + $0x1] sm:$0x1]   ;;  %v7_v2 = vld [vmem:[#allocation1] sm:$0x1]  }
   0xa   :  { %12 = vrot.lane.b32.xlu0 %v11_v1, %s25_s0  ;;  %9 = vst.msk [vmem:[#allocation0] sm:$0x1] %vm8_vm0, %v7_v2  }
  0x7c   :  { %v13_v3 = vpop.permute.xlu0 %12  }
  0x7d   :  { %15 = vst.msk [vmem:[#allocation0] sm:$0x1] %vm14_vm1, %v13_v3  }
  0x84   :  { %v20_v4 = vld [vmem:[#allocation0] sm:$0x1] }
  0x85   :  { %23 = vst [vmem:[%s43_s1] sm:$0x1] %v20_v4 }

// kernel: _lambda_.28
= control target key start
LH: loop header
LB: loop body
LE: loop exit
PB: predicated region body
PF: predicated region fallthrough
CT: control target
= control target key end

     0   :  { %vm523_vm0 = vcmask 1042432   ;;  %vm474_vm1 = vcmask 310272   ;;  %s1915_s1 = inlined_call_operand.vmem [shape: bf16[294,128], index: 1, kind: input, shape index: {}]   ;;  %s1916_s0 = inlined_call_operand.vmem [shape: bf16[256,294], index: 0, kind: input, shape index: {}]   ;;  %s1917_s2 = inlined_call_operand.vmem [shape: f32[1,128], index: 2, kind: input, shape index: {}]   ;;  %s1918_s3 = inlined_call_operand.vmem [shape: bf16[256,128], index: 3, kind: output, shape index: {}]  }
   0x1   :  { %v1474_v0 = vld [vmem:[%s1915_s1 + $0x78] sm:$0xff]   ;;  %v1476_v2 = vld [vmem:[%s1915_s1 + $0x70] sm:$0xff]   ;;  %v1478_v4 = vld [vmem:[%s1915_s1 + $0x68] sm:$0xff]  }
   0x2   :  { %v1475_v1 = vld [vmem:[%s1915_s1 + $0x38] sm:$0xff]   ;;  %1288 = vmatprep.subr.bf16.mxu0 %v1474_v0  ;;  %1457 = vmatprep.subr.bf16.mxu1 %v1474_v0  ;;  %v1477_v3 = vld [vmem:[%s1915_s1 + $0x30] sm:$0xff]   ;;  %v1479_v5 = vld [vmem:[%s1915_s1 + $0x28] sm:$0xff]  }
   0x3   :  { %1289 = vmatpush3.bf16.msra.mxu0 %v1475_v1  ;;  %1465 = vmatpush3.bf16.msra.mxu1 %v1475_v1  ;;  %v1480_v6 = vld [vmem:[%s1915_s1 + $0x60] sm:$0xff]   ;;  %v1482_v8 = vld [vmem:[%s1915_s1 + $0x58] sm:$0xff]   ;;  %v1484_v10 = vld [vmem:[%s1915_s1 + $0x50] sm:$0xff]  }
   0x4   :  { %1290 = vmatprep.subr.bf16.mxu0 %v1476_v2  ;;  %1458 = vmatprep.subr.bf16.mxu1 %v1476_v2  ;;  %v1481_v7 = vld [vmem:[%s1915_s1 + $0x20] sm:$0xff]   ;;  %v1483_v9 = vld [vmem:[%s1915_s1 + $0x18] sm:$0xff]   ;;  %v1485_v13 = vld [vmem:[%s1915_s1 + $0x10] sm:$0xff]  }
   0x5   :  { %v1492_v11 = vld [vmem:[%s1916_s0 + $0x4] ss:$12 sps:$4 sm:$0xff]   ;;  %v1486_v14 = vld [vmem:[%s1915_s1 + $0x48] sm:$0xff]   ;;  %v1504_v28 = vld [vmem:[%s1916_s0 + $0x34] ss:$12 sps:$4 sm:$0xff]  }
   0x6   :  { %v1495_v12 = vld [vmem:[%s1916_s0 + $0x124] ss:$12 sps:$4 sm:$0xff]   ;;  %559 = vmatprep.mubr.bf16.mxu0 %v1492_v11  ;;  %v1487_v15 = vld [vmem:[%s1915_s1 + $0x8] sm:$0xff]   ;;  %v1506_v29 = vld [vmem:[%s1916_s0 + $0x154] ss:$12 sps:$4 sm:$0xff]  }
   0x7   :  { %1291 = vmatpush3.bf16.msra.mxu0 %v1477_v3  ;;  %1466 = vmatpush3.bf16.msra.mxu1 %v1477_v3  ;;  %v1488_v16 = vld [vmem:[%s1915_s1 + $0x40] sm:$0xff]   ;;  %v1496_v18 = vld [vmem:[%s1915_s1 + $0x90] ss:$0 sps:$4 sm:$0x77]   ;;  %v1497_v21 = vld [vmem:[%s1916_s0 + $0x1c] ss:$12 sps:$4 sm:$0xff]  }
   0x8   :  { %1292 = vmatprep.subr.bf16.mxu0 %v1478_v4  ;;  %1459 = vmatprep.subr.bf16.mxu1 %v1478_v4  ;;  %v1489_v17 = vld [vmem:[%s1915_s1] sm:$0xff]   ;;  %v1499_v22 = vld [vmem:[%s1916_s0 + $0x13c] ss:$12 sps:$4 sm:$0xff]   ;;  %v525_v23 = vsel %vm523_vm0, %v1496_v18, 0  ;;  %v1510_v32 = vld [vmem:[%s1916_s0 + $0x4c] ss:$12 sps:$4 sm:$0xff]  }
   0x9   :  { %655 = vmatprep.mubr.bf16.mxu1 %v1495_v12  ;;  %v1490_v19 = vld [vmem:[%s1916_s0] ss:$12 sps:$4 sm:$0xff]   ;;  %v1501_v25 = vld [vmem:[%s1916_s0 + $0x18] ss:$12 sps:$4 sm:$0xff]   ;;  %v1508_v30 = vld [vmem:[%s1916_s0 + $0x30] ss:$12 sps:$4 sm:$0xff]  }
   0xa   :  { %v1493_v20 = vld [vmem:[%s1916_s0 + $0x120] ss:$12 sps:$4 sm:$0xff]   ;;  %v1502_v27 = vld [vmem:[%s1916_s0 + $0x138] ss:$12 sps:$4 sm:$0xff]   ;;  %v1509_v31 = vld [vmem:[%s1916_s0 + $0x150] ss:$12 sps:$4 sm:$0xff]  }
   0xb   :  { %1293 = vmatpush3.bf16.msra.mxu0 %v1479_v5  ;;  %1467 = vmatpush3.bf16.msra.mxu1 %v1479_v5  ;;  %v1503_v24 = vld [vmem:[%s1915_s1 + $0x88] sm:$0xff]   ;;  %v1516_v26 = vld [vmem:[%s1915_s1 + $0x80] sm:$0xff]   ;;  %v1526_v43 = vld [vmem:[%s1916_s0 + $0x50] ss:$12 sps:$4 sm:$0xff]  }
   0xc   :  { %1294 = vmatprep.subr.bf16.mxu0 %v1480_v6  ;;  %1460 = vmatprep.subr.bf16.mxu1 %v1480_v6  ;;  %v1512_v33 = vld [vmem:[%s1916_s0 + $0x16c] ss:$12 sps:$4 sm:$0xff]   ;;  %v1514_v34 = vld [vmem:[%s1916_s0 + $0x48] ss:$12 sps:$4 sm:$0xff]   ;;  %v1517_v36 = vld [vmem:[%s1916_s0 + $0x64] ss:$12 sps:$4 sm:$0xff]  }
   0xd   :  { %v1515_v35 = vld [vmem:[%s1916_s0 + $0x168] ss:$12 sps:$4 sm:$0xff]   ;;  %v1520_v38 = vld [vmem:[%s1916_s0 + $0x60] ss:$12 sps:$4 sm:$0xff]   ;;  %v1524_v41 = vld [vmem:[%s1916_s0 + $0x38] ss:$12 sps:$4 sm:$0xff]  }
   0xe   :  { %v1519_v37 = vld [vmem:[%s1916_s0 + $0x8] ss:$12 sps:$4 sm:$0xff]   ;;  %v1521_v39 = vld [vmem:[%s1916_s0 + $0x20] ss:$12 sps:$4 sm:$0xff]   ;;  %v1525_v42 = vld [vmem:[%s1916_s0 + $0x78] ss:$12 sps:$4 sm:$0xff]  }
   0xf   :  { %1295 = vmatpush3.bf16.msra.mxu0 %v1481_v7  ;;  %1468 = vmatpush3.bf16.msra.mxu1 %v1481_v7  ;;  %v1522_v40 = vld [vmem:[%s1916_s0 + $0x7c] ss:$12 sps:$4 sm:$0xff]   ;;  %v1527_v44 = vld [vmem:[%s1916_s0 + $0x94] ss:$12 sps:$4 sm:$0xff]   ;;  %v1532_v48 = vld [vmem:[%s1916_s0 + $0xac] ss:$12 sps:$4 sm:$0xff]  }
  0x10   :  { %1296 = vmatprep.subr.bf16.mxu0 %v1482_v8  ;;  %1461 = vmatprep.subr.bf16.mxu1 %v1482_v8  ;;  %v1529_v45 = vld [vmem:[%s1916_s0 + $0x68] ss:$12 sps:$4 sm:$0xff]   ;;  %v1530_v46 = vld [vmem:[%s1916_s0 + $0x90] ss:$12 sps:$4 sm:$0xff]   ;;  %v1531_v47 = vld [vmem:[%s1916_s0 + $0x80] ss:$12 sps:$4 sm:$0xff]  }
  0x11   :  { %v1534_v49 = vld [vmem:[%s1916_s0 + $0x98] ss:$12 sps:$4 sm:$0xff]   ;;  %v1535_v50 = vld [vmem:[%s1916_s0 + $0xa8] ss:$12 sps:$4 sm:$0xff]   ;;  %v1536_v51 = vld [vmem:[%s1916_s0 + $0xb0] ss:$12 sps:$4 sm:$0xff]  }
  0x12   :  { %v1537_v52 = vld [vmem:[%s1916_s0 + $0xc4] ss:$12 sps:$4 sm:$0xff]   ;;  %v1539_v53 = vld [vmem:[%s1916_s0 + $0xc8] ss:$12 sps:$4 sm:$0xff]   ;;  %v1540_v54 = vld [vmem:[%s1916_s0 + $0xc0] ss:$12 sps:$4 sm:$0xff]  }
  0x13   :  { %1297 = vmatpush3.bf16.msra.mxu0 %v1483_v9  ;;  %1469 = vmatpush3.bf16.msra.mxu1 %v1483_v9  ;;  %v1541_v55 = vld [vmem:[%s1916_s0 + $0xe0] ss:$12 sps:$4 sm:$0xff]   ;;  %v1542_v56 = vld [vmem:[%s1916_s0 + $0xdc] ss:$12 sps:$4 sm:$0xff]   ;;  %v1544_v57 = vld [vmem:[%s1916_s0 + $0xf8] ss:$12 sps:$4 sm:$0xff]  }
  0x14   :  { %1298 = vmatprep.subr.bf16.mxu0 %v1484_v10  ;;  %1462 = vmatprep.subr.bf16.mxu1 %v1484_v10  ;;  %v1545_v58 = vld [vmem:[%s1916_s0 + $0xd8] ss:$12 sps:$4 sm:$0xff]   ;;  %v1546_v59 = vld [vmem:[%s1916_s0 + $0x110] ss:$12 sps:$4 sm:$0xff]   ;;  %v1547_v60 = vld [vmem:[%s1916_s0 + $0xf4] ss:$12 sps:$4 sm:$0xff]  }
  0x15   :  { %v1549_v61 = vld [vmem:[%s1916_s0 + $0x128] ss:$12 sps:$4 sm:$0xff]   ;;  %v1550_v62 = vld [vmem:[%s1916_s0 + $0xf0] ss:$12 sps:$4 sm:$0xff]   ;;  %v1551_v63 = vld [vmem:[%s1916_s0 + $0x140] ss:$12 sps:$4 sm:$0xff]  }
  0x16   :  { %v1552_v0 = vld [vmem:[%s1916_s0 + $0x10c] ss:$12 sps:$4 sm:$0xff]   ;;  %v1555_v2 = vld [vmem:[%s1916_s0 + $0x108] ss:$12 sps:$4 sm:$0xff]   ;;  %v1556_v3 = vld [vmem:[%s1916_s0 + $0x170] ss:$12 sps:$4 sm:$0xff]  }
  0x17   :  { %1299 = vmatpush3.bf16.msra.mxu0 %v1485_v13  ;;  %1470 = vmatpush3.bf16.msra.mxu1 %v1485_v13  ;;  %v1554_v1 = vld [vmem:[%s1916_s0 + $0x158] ss:$12 sps:$4 sm:$0xff]  }
  0x18   :  { %1300 = vmatprep.subr.bf16.mxu0 %v1486_v14  ;;  %1463 = vmatprep.subr.bf16.mxu1 %v1486_v14 }
  0x1b   :  { %1301 = vmatpush3.bf16.msra.mxu0 %v1487_v15  ;;  %1471 = vmatpush3.bf16.msra.mxu1 %v1487_v15 }
  0x1c   :  { %1302 = vmatprep.subr.bf16.mxu0 %v1488_v16  ;;  %1464 = vmatprep.subr.bf16.mxu1 %v1488_v16 }
  0x1f   :  { %1303 = vmatpush3.bf16.msra.mxu0 %v1489_v17  ;;  %1472 = vmatpush3.bf16.msra.mxu1 %v1489_v17 }
  0x20   :  { %1473 = vmatprep.subr.msk.bf16.mxu1 %vm523_vm0, %v1496_v18 }
  0x22   :  { %560 = vmatmul.mubr.bf16.vlgmr.msra.gmra.mxu0 %v1490_v19  ;;  %656 = vmatmul.mubr.bf16.vlgmr.msra.gmra.mxu1 %v1493_v20 }
  0x23   :  { %1420 = vmatpush3.bf16.msra.mxu1 %v525_v23  ;;  %567 = vmatprep.mubr.bf16.mxu0 %v1497_v21 }
  0x24   :  { %663 = vmatprep.mubr.bf16.mxu1 %v1499_v22  ;;  %1421 = vmatprep.subr.bf16.mxu1 %v1503_v24 }
  0x27   :  { %1422 = vmatpush3.bf16.msra.mxu1 %v1503_v24 }
  0x28   :  { %1423 = vmatprep.subr.bf16.mxu1 %v1516_v26 }
  0x2a   :  { %568 = vmatmul.mubr.bf16.gmra.mxu0 %v1501_v25  ;;  %664 = vmatmul.mubr.bf16.gmra.mxu1 %v1502_v27 }
  0x2b   :  { %575 = vmatprep.mubr.bf16.mxu0 %v1504_v28  ;;  %671 = vmatprep.mubr.bf16.mxu1 %v1506_v29 }
  0x2c   :  { %1424 = vmatpush3.bf16.msra.mxu1 %v1516_v26 }
  0x32   :  { %576 = vmatmul.mubr.bf16.gmra.mxu0 %v1508_v30  ;;  %672 = vmatmul.mubr.bf16.gmra.mxu1 %v1509_v31 }
  0x33   :  { %583 = vmatprep.mubr.bf16.mxu0 %v1510_v32  ;;  %679 = vmatprep.mubr.bf16.mxu1 %v1512_v33 }
  0x3a   :  { %584 = vmatmul.mubr.bf16.gmra.mxu0 %v1514_v34  ;;  %680 = vmatmul.mubr.bf16.gmra.mxu1 %v1515_v35 }
  0x3b   :  { %591 = vmatprep.mubr.bf16.mxu0 %v1517_v36  ;;  %1425 = vmatprep.mubr.msk.bf16.mxu1 %vm474_vm1, %v1519_v37 }
  0x42   :  { %592 = vmatmul.mubr.bf16.gmra.mxu0 %v1520_v38  ;;  %1426 = vmatmul.mubr.msk.bf16.vlgmr.msra.gmra.mxu1 %vm474_vm1, %v1521_v39 }
  0x43   :  { %599 = vmatprep.mubr.bf16.mxu0 %v1522_v40  ;;  %1429 = vmatprep.mubr.msk.bf16.mxu1 %vm474_vm1, %v1524_v41 }
  0x4a   :  { %600 = vmatmul.mubr.bf16.gmra.mxu0 %v1525_v42  ;;  %1430 = vmatmul.mubr.msk.bf16.gmra.mxu1 %vm474_vm1, %v1526_v43 }
  0x4b   :  { %607 = vmatprep.mubr.bf16.mxu0 %v1527_v44  ;;  %1433 = vmatprep.mubr.msk.bf16.mxu1 %vm474_vm1, %v1529_v45 }
  0x52   :  { %608 = vmatmul.mubr.bf16.gmra.mxu0 %v1530_v46  ;;  %1434 = vmatmul.mubr.msk.bf16.gmra.mxu1 %vm474_vm1, %v1531_v47  ;;  %v1817_v46 = vld [vmem:[%s1917_s2] ss:$0 sm:$0xff] }
  0x53   :  { %615 = vmatprep.mubr.bf16.mxu0 %v1532_v48  ;;  %1437 = vmatprep.mubr.msk.bf16.mxu1 %vm474_vm1, %v1534_v49 }
  0x5a   :  { %616 = vmatmul.mubr.bf16.gmra.mxu0 %v1535_v50  ;;  %1438 = vmatmul.mubr.msk.bf16.gmra.mxu1 %vm474_vm1, %v1536_v51 }
  0x5b   :  { %623 = vmatprep.mubr.bf16.mxu0 %v1537_v52  ;;  %1441 = vmatprep.mubr.msk.bf16.mxu1 %vm474_vm1, %v1539_v53 }
  0x62   :  { %624 = vmatmul.mubr.bf16.gmra.mxu0 %v1540_v54  ;;  %1442 = vmatmul.mubr.msk.bf16.gmra.mxu1 %vm474_vm1, %v1541_v55 }
  0x63   :  { %631 = vmatprep.mubr.bf16.mxu0 %v1542_v56  ;;  %1445 = vmatprep.mubr.msk.bf16.mxu1 %vm474_vm1, %v1544_v57 }
  0x6a   :  { %632 = vmatmul.mubr.bf16.gmra.mxu0 %v1545_v58  ;;  %1446 = vmatmul.mubr.msk.bf16.gmra.mxu1 %vm474_vm1, %v1546_v59 }
  0x6b   :  { %639 = vmatprep.mubr.bf16.mxu0 %v1547_v60  ;;  %1449 = vmatprep.mubr.msk.bf16.mxu1 %vm474_vm1, %v1549_v61 }
  0x72   :  { %640 = vmatmul.mubr.bf16.gmra.mxu0 %v1550_v62  ;;  %1450 = vmatmul.mubr.msk.bf16.gmra.mxu1 %vm474_vm1, %v1551_v63 }
  0x73   :  { %647 = vmatprep.mubr.bf16.mxu0 %v1552_v0  ;;  %1453 = vmatprep.mubr.msk.bf16.mxu1 %vm474_vm1, %v1554_v1 }
  0x7a   :  { %648 = vmatmul.mubr.bf16.gmra.mxu0 %v1555_v2  ;;  %1454 = vmatmul.mubr.msk.bf16.gmra.mxu1 %vm474_vm1, %v1556_v3 }
  0xe2   :  { %v1304_v4 = vpop.f32.mrf.mxu0  ;;  %v1376_v5 = vpop.f32.mrf.mxu1 }
  0xe4   :  { %v1305_v6 = vpop.f32.mrf.mxu0  ;;  %v1377_v7 = vpop.f32.mrf.mxu1 }
  0xe5   :  { %v1794_v8 = vadd.f32 %v1377_v7, %v1376_v5  ;;  %v1306_v43 = vadd.f32 %v1305_v6, %v1304_v4 }
  0xe6   :  { %v1307_v9 = vpop.f32.mrf.mxu0  ;;  %v1379_v10 = vpop.f32.mrf.mxu1 }
  0xe7   :  { %v562_v53 = vadd.f32 %v1306_v43, %v1817_v46 }
  0xe8   :  { %v1308_v11 = vpop.f32.mrf.mxu0  ;;  %v1380_v12 = vpop.f32.mrf.mxu1 }
  0xe9   :  { %v1796_v13 = vadd.f32 %v1380_v12, %v1379_v10  ;;  %v1309_v48 = vadd.f32 %v1308_v11, %v1307_v9 }
  0xea   :  { %v1310_v14 = vpop.f32.mrf.mxu0  ;;  %v1382_v15 = vpop.f32.mrf.mxu1 }
  0xeb   :  { %v565_v60 = vadd.f32 %v1309_v48, %v1817_v46 }
  0xec   :  { %v1311_v16 = vpop.f32.mrf.mxu0  ;;  %v1383_v17 = vpop.f32.mrf.mxu1 }
  0xed   :  { %v1798_v18 = vadd.f32 %v1383_v17, %v1382_v15  ;;  %v1312_v40 = vadd.f32 %v1311_v16, %v1310_v14 }
  0xee   :  { %v1313_v19 = vpop.f32.mrf.mxu0  ;;  %v1385_v20 = vpop.f32.mrf.mxu1 }
  0xef   :  { %v570_v49 = vadd.f32 %v1312_v40, %v1817_v46 }
  0xf0   :  { %v1314_v21 = vpop.f32.mrf.mxu0  ;;  %v1386_v22 = vpop.f32.mrf.mxu1 }
  0xf1   :  { %v1800_v23 = vadd.f32 %v1386_v22, %v1385_v20  ;;  %v1315_v44 = vadd.f32 %v1314_v21, %v1313_v19 }
  0xf2   :  { %v1316_v24 = vpop.f32.mrf.mxu0  ;;  %v1388_v25 = vpop.f32.mrf.mxu1 }
  0xf3   :  { %v573_v54 = vadd.f32 %v1315_v44, %v1817_v46 }
  0xf4   :  { %v1317_v26 = vpop.f32.mrf.mxu0  ;;  %v1389_v27 = vpop.f32.mrf.mxu1 }
  0xf5   :  { %v1802_v28 = vadd.f32 %v1389_v27, %v1388_v25  ;;  %v1318_v61 = vadd.f32 %v1317_v26, %v1316_v24 }
  0xf6   :  { %v1319_v29 = vpop.f32.mrf.mxu0  ;;  %v1391_v30 = vpop.f32.mrf.mxu1 }
  0xf7   :  { %v578_v17 = vadd.f32 %v1318_v61, %v1817_v46 }
  0xf8   :  { %v1320_v31 = vpop.f32.mrf.mxu0  ;;  %v1392_v32 = vpop.f32.mrf.mxu1 }
  0xf9   :  { %v1804_v33 = vadd.f32 %v1392_v32, %v1391_v30  ;;  %v1321_v4 = vadd.f32 %v1320_v31, %v1319_v29 }
  0xfa   :  { %v1322_v34 = vpop.f32.mrf.mxu0  ;;  %v1806_v35 = vpop.f32.mrf.mxu1 }
  0xfb   :  { %v581_v26 = vadd.f32 %v1321_v4, %v1817_v46 }
  0xfc   :  { %v1323_v36 = vpop.f32.mrf.mxu0  ;;  %v1808_v37 = vpop.f32.mrf.mxu1 }
  0xfd   :  { %v1324_v57 = vadd.f32 %v1323_v36, %v1322_v34 }
  0xfe   :  { %v1325_v38 = vpop.f32.mrf.mxu0  ;;  %v1810_v39 = vpop.f32.mrf.mxu1 }
  0xff   :  { %v586_v11 = vadd.f32 %v1324_v57, %v1817_v46 }
 0x100   :  { %v1326_v41 = vpop.f32.mrf.mxu0  ;;  %v1812_v42 = vpop.f32.mrf.mxu1 }
 0x101   :  { %v1327_v0 = vadd.f32 %v1326_v41, %v1325_v38 }
 0x102   :  { %v1328_v45 = vpop.f32.mrf.mxu0  ;;  %v1427_v47 = vpop.f32.mrf.mxu1 }
 0x103   :  { %v731_v52 = vadd.f32 %v1427_v47, %v570_v49  ;;  %v589_v19 = vadd.f32 %v1327_v0, %v1817_v46 }
 0x104   :  { %v1329_v50 = vpop.f32.mrf.mxu0  ;;  %v722_v51 = vpop.f32.mrf.mxu1 }
 0x105   :  { %v723_v58 = vadd.f32 %v722_v51, %v562_v53  ;;  %v851_v1 = vmax.f32 %v731_v52, 0.0  ;;  %v1330_v27 = vadd.f32 %v1329_v50, %v1328_v45 }
 0x106   :  { %v1331_v55 = vpop.f32.mrf.mxu0  ;;  %v1428_v56 = vpop.f32.mrf.mxu1 }
 0x107   :  { %v734_v59 = vadd.f32 %v1428_v56, %v573_v54  ;;  %v849_v7 = vmax.f32 %v723_v58, 0.0  ;;  %v594_v52 = vadd.f32 %v1330_v27, %v1817_v46 }
 0x108   :  { %v1332_v62 = vpop.f32.mrf.mxu0  ;;  %v725_v63 = vpop.f32.mrf.mxu1 }
 0x109   :  { %v852_v2 = vmax.f32 %v734_v59, 0.0  ;;  %v726_v3 = vadd.f32 %v725_v63, %v565_v60  ;;  %v1333_v38 = vadd.f32 %v1332_v62, %v1331_v55 }
 0x10a   :  { %v1334_v5 = vpop.f32.mrf.mxu0  ;;  %v1431_v6 = vpop.f32.mrf.mxu1 }
 0x10b   :  { %v1201_v9 = vpack.c.bf16 %v852_v2, %v851_v1  ;;  %v850_v10 = vmax.f32 %v726_v3, 0.0  ;;  %v747_v16 = vadd.f32 %v1431_v6, %v586_v11  ;;  %v597_v58 = vadd.f32 %v1333_v38, %v1817_v46 }
 0x10c   :  { %v1335_v12 = vpop.f32.mrf.mxu0  ;;  %v738_v14 = vpop.f32.mrf.mxu1 }
 0x10d   :  { %1273 = vst [vmem:[%s1918_s3 + $0x8] sm:$0xff] %v1201_v9   ;;  %v1196_v15 = vpack.c.bf16 %v850_v10, %v849_v7  ;;  %v1336_v22 = vadd.f32 %v1335_v12, %v1334_v5  ;;  %v739_v24 = vadd.f32 %v738_v14, %v578_v17  ;;  %v855_v31 = vmax.f32 %v747_v16, 0.0 }
 0x10e   :  { %v1337_v20 = vpop.f32.mrf.mxu0  ;;  %v1432_v21 = vpop.f32.mrf.mxu1 }
 0x10f   :  { %1197 = vst [vmem:[%s1918_s3] sm:$0xff] %v1196_v15   ;;  %v750_v25 = vadd.f32 %v1432_v21, %v589_v19  ;;  %v853_v43 = vmax.f32 %v739_v24, 0.0  ;;  %v602_v48 = vadd.f32 %v1336_v22, %v1817_v46 }
 0x110   :  { %v1338_v29 = vpop.f32.mrf.mxu0  ;;  %v741_v30 = vpop.f32.mrf.mxu1 }
 0x111   :  { %v856_v32 = vmax.f32 %v750_v25, 0.0  ;;  %v1339_v34 = vadd.f32 %v1338_v29, %v1337_v20  ;;  %v742_v36 = vadd.f32 %v741_v30, %v581_v26 }
 0x112   :  { %v1340_v40 = vpop.f32.mrf.mxu0  ;;  %v1435_v41 = vpop.f32.mrf.mxu1 }
 0x113   :  { %v1211_v44 = vpack.c.bf16 %v856_v32, %v855_v31  ;;  %v854_v47 = vmax.f32 %v742_v36, 0.0  ;;  %v763_v50 = vadd.f32 %v1435_v41, %v602_v48  ;;  %v605_v53 = vadd.f32 %v1339_v34, %v1817_v46 }
 0x114   :  { %v1341_v49 = vpop.f32.mrf.mxu0  ;;  %v754_v51 = vpop.f32.mrf.mxu1 }
 0x115   :  { %1275 = vst [vmem:[%s1918_s3 + $0x18] sm:$0xff] %v1211_v44   ;;  %v1206_v45 = vpack.c.bf16 %v854_v47, %v853_v43  ;;  %v755_v56 = vadd.f32 %v754_v51, %v594_v52  ;;  %v859_v61 = vmax.f32 %v763_v50, 0.0  ;;  %v1342_v62 = vadd.f32 %v1341_v49, %v1340_v40 }
 0x116   :  { %v1343_v54 = vpop.f32.mrf.mxu0  ;;  %v1436_v55 = vpop.f32.mrf.mxu1 }
 0x117   :  { %1274 = vst [vmem:[%s1918_s3 + $0x10] sm:$0xff] %v1206_v45   ;;  %v766_v57 = vadd.f32 %v1436_v55, %v605_v53  ;;  %v857_v3 = vmax.f32 %v755_v56, 0.0  ;;  %v610_v12 = vadd.f32 %v1342_v62, %v1817_v46 }
 0x118   :  { %v1344_v59 = vpop.f32.mrf.mxu0  ;;  %v757_v60 = vpop.f32.mrf.mxu1 }
 0x119   :  { %v860_v63 = vmax.f32 %v766_v57, 0.0  ;;  %v758_v0 = vadd.f32 %v757_v60, %v597_v58  ;;  %v1345_v5 = vadd.f32 %v1344_v59, %v1343_v54 }
 0x11a   :  { %v1346_v1 = vpop.f32.mrf.mxu0  ;;  %v1439_v2 = vpop.f32.mrf.mxu1 }
 0x11b   :  { %v1221_v4 = vpack.c.bf16 %v860_v63, %v859_v61  ;;  %v858_v6 = vmax.f32 %v758_v0, 0.0  ;;  %v613_v19 = vadd.f32 %v1345_v5, %v1817_v46 }
 0x11c   :  { %v1347_v7 = vpop.f32.mrf.mxu0  ;;  %v770_v9 = vpop.f32.mrf.mxu1 }
 0x11d   :  { %1277 = vst [vmem:[%s1918_s3 + $0x28] sm:$0xff] %v1221_v4   ;;  %v1216_v10 = vpack.c.bf16 %v858_v6, %v857_v3  ;;  %v1348_v11 = vadd.f32 %v1347_v7, %v1346_v1  ;;  %v771_v17 = vadd.f32 %v770_v9, %v610_v12 }
 0x11e   :  { %v1349_v14 = vpop.f32.mrf.mxu0  ;;  %v1440_v15 = vpop.f32.mrf.mxu1 }
 0x11f   :  { %1276 = vst [vmem:[%s1918_s3 + $0x20] sm:$0xff] %v1216_v10   ;;  %v618_v16 = vadd.f32 %v1348_v11, %v1817_v46  ;;  %v861_v29 = vmax.f32 %v771_v17, 0.0  ;;  %v666_v10 = vadd.f32 %v1798_v18, %v1817_v46  ;;  %v669_v17 = vadd.f32 %v1800_v23, %v1817_v46 }
 0x120   :  { %v1350_v20 = vpop.f32.mrf.mxu0  ;;  %v773_v21 = vpop.f32.mrf.mxu1  ;;  %v661_v23 = vadd.f32 %v1796_v13, %v1817_v46 }
 0x121   :  { %v1351_v22 = vadd.f32 %v1350_v20, %v1349_v14  ;;  %v774_v24 = vadd.f32 %v773_v21, %v613_v19  ;;  %v779_v27 = vadd.f32 %v1439_v2, %v618_v16  ;;  %v1396_v19 = vadd.f32 %v1808_v37, %v1806_v35 }
 0x122   :  { %v1352_v25 = vpop.f32.mrf.mxu0  ;;  %v1443_v26 = vpop.f32.mrf.mxu1  ;;  %v658_v20 = vadd.f32 %v1794_v8, %v1817_v46 }
 0x123   :  { %v621_v30 = vadd.f32 %v1351_v22, %v1817_v46  ;;  %v862_v31 = vmax.f32 %v774_v24, 0.0  ;;  %v863_v44 = vmax.f32 %v779_v27, 0.0  ;;  %v1399_v27 = vadd.f32 %v1812_v42, %v1810_v39 }
 0x124   :  { %v1353_v32 = vpop.f32.mrf.mxu0  ;;  %v786_v34 = vpop.f32.mrf.mxu1  ;;  %v682_v42 = vadd.f32 %v1396_v19, %v1817_v46 }
 0x125   :  { %v782_v36 = vadd.f32 %v1440_v15, %v621_v30  ;;  %v1226_v38 = vpack.c.bf16 %v862_v31, %v861_v29  ;;  %v1354_v40 = vadd.f32 %v1353_v32, %v1352_v25 }
 0x126   :  { %v1355_v41 = vpop.f32.mrf.mxu0  ;;  %v1444_v43 = vpop.f32.mrf.mxu1 }
 0x127   :  { %v864_v47 = vmax.f32 %v782_v36, 0.0  ;;  %1278 = vst [vmem:[%s1918_s3 + $0x30] sm:$0xff] %v1226_v38   ;;  %v626_v48 = vadd.f32 %v1354_v40, %v1817_v46 }
 0x128   :  { %v1356_v49 = vpop.f32.mrf.mxu0  ;;  %v789_v51 = vpop.f32.mrf.mxu1 }
 0x129   :  { %v1231_v45 = vpack.c.bf16 %v864_v47, %v863_v44  ;;  %v1357_v50 = vadd.f32 %v1356_v49, %v1355_v41  ;;  %v787_v54 = vadd.f32 %v786_v34, %v626_v48 }
 0x12a   :  { %v1358_v52 = vpop.f32.mrf.mxu0  ;;  %v1857_v53 = vpop.f32.mrf.mxu1 }
 0x12b   :  { %1279 = vst [vmem:[%s1918_s3 + $0x38] sm:$0xff] %v1231_v45   ;;  %v629_v55 = vadd.f32 %v1357_v50, %v1817_v46  ;;  %v865_v62 = vmax.f32 %v787_v54, 0.0  ;;  %v685_v45 = vadd.f32 %v1399_v27, %v1817_v46 }
 0x12c   :  { %v1359_v56 = vpop.f32.mrf.mxu0  ;;  %v802_v57 = vpop.f32.mrf.mxu1 }
 0x12d   :  { %v790_v58 = vadd.f32 %v789_v51, %v629_v55  ;;  %v1360_v59 = vadd.f32 %v1359_v56, %v1358_v52  ;;  %v674_v52 = vadd.f32 %v1802_v28, %v1817_v46 }
 0x12e   :  { %v1361_v60 = vpop.f32.mrf.mxu0  ;;  %v1863_v61 = vpop.f32.mrf.mxu1 }
 0x12f   :  { %v866_v63 = vmax.f32 %v790_v58, 0.0  ;;  %v634_v0 = vadd.f32 %v1360_v59, %v1817_v46 }
 0x130   :  { %v1362_v1 = vpop.f32.mrf.mxu0  ;;  %v805_v2 = vpop.f32.mrf.mxu1 }
 0x131   :  { %v1236_v3 = vpack.c.bf16 %v866_v63, %v865_v62  ;;  %v1363_v4 = vadd.f32 %v1362_v1, %v1361_v60  ;;  %v795_v7 = vadd.f32 %v1443_v26, %v634_v0  ;;  %v677_v63 = vadd.f32 %v1804_v33, %v1817_v46 }
 0x132   :  { %v1364_v5 = vpop.f32.mrf.mxu0  ;;  %v1451_v6 = vpop.f32.mrf.mxu1 }
 0x133   :  { %1280 = vst [vmem:[%s1918_s3 + $0x40] sm:$0xff] %v1236_v3   ;;  %v637_v9 = vadd.f32 %v1363_v4, %v1817_v46  ;;  %v827_v15 = vadd.f32 %v1451_v6, %v666_v10  ;;  %v867_v24 = vmax.f32 %v795_v7, 0.0 }
 0x134   :  { %v1365_v11 = vpop.f32.mrf.mxu0  ;;  %v818_v12 = vpop.f32.mrf.mxu1 }
 0x135   :  { %v798_v14 = vadd.f32 %v1444_v43, %v637_v9  ;;  %v1366_v16 = vadd.f32 %v1365_v11, %v1364_v5  ;;  %v819_v29 = vadd.f32 %v818_v12, %v658_v20  ;;  %v875_v37 = vmax.f32 %v827_v15, 0.0 }
 0x136   :  { %v1367_v21 = vpop.f32.mrf.mxu0  ;;  %v1452_v22 = vpop.f32.mrf.mxu1 }
 0x137   :  { %v868_v25 = vmax.f32 %v798_v14, 0.0  ;;  %v642_v18 = vadd.f32 %v1366_v16, %v1817_v46  ;;  %v830_v26 = vadd.f32 %v1452_v22, %v669_v17  ;;  %v873_v43 = vmax.f32 %v819_v29, 0.0 }
 0x138   :  { %v1368_v30 = vpop.f32.mrf.mxu0  ;;  %v821_v31 = vpop.f32.mrf.mxu1 }
 0x139   :  { %v1241_v35 = vpack.c.bf16 %v868_v25, %v867_v24  ;;  %v876_v32 = vmax.f32 %v830_v26, 0.0  ;;  %v1369_v8 = vadd.f32 %v1368_v30, %v1367_v21  ;;  %v822_v34 = vadd.f32 %v821_v31, %v661_v23 }
 0x13a   :  { %v1370_v36 = vpop.f32.mrf.mxu0  ;;  %v1455_v38 = vpop.f32.mrf.mxu1  ;;  %v803_v40 = vadd.f32 %v802_v57, %v642_v18 }
 0x13b   :  { %1281 = vst [vmem:[%s1918_s3 + $0x48] sm:$0xff] %v1241_v35   ;;  %v1261_v41 = vpack.c.bf16 %v876_v32, %v875_v37  ;;  %v645_v39 = vadd.f32 %v1369_v8, %v1817_v46  ;;  %v874_v13 = vmax.f32 %v822_v34, 0.0  ;;  %v843_v49 = vadd.f32 %v1455_v38, %v682_v42 }
 0x13c   :  { %v1371_v44 = vpop.f32.mrf.mxu0  ;;  %v834_v47 = vpop.f32.mrf.mxu1  ;;  %v869_v56 = vmax.f32 %v803_v40, 0.0 }
 0x13d   :  { %1285 = vst [vmem:[%s1918_s3 + $0x68] sm:$0xff] %v1261_v41   ;;  %v806_v48 = vadd.f32 %v805_v2, %v645_v39  ;;  %v1372_v51 = vadd.f32 %v1371_v44, %v1370_v36  ;;  %v1256_v50 = vpack.c.bf16 %v874_v13, %v873_v43  ;;  %v835_v60 = vadd.f32 %v834_v47, %v674_v52 }
 0x13e   :  { %v1373_v54 = vpop.f32.mrf.mxu0  ;;  %v1456_v55 = vpop.f32.mrf.mxu1  ;;  %v879_v2 = vmax.f32 %v843_v49, 0.0 }
 0x13f   :  { %v870_v57 = vmax.f32 %v806_v48, 0.0  ;;  %v650_v58 = vadd.f32 %v1372_v51, %v1817_v46  ;;  %v846_v59 = vadd.f32 %v1456_v55, %v685_v45  ;;  %1284 = vst [vmem:[%s1918_s3 + $0x60] sm:$0xff] %v1256_v50   ;;  %v877_v9 = vmax.f32 %v835_v60, 0.0 }
 0x140   :  { %v1374_v62 = vpop.f32.mrf.mxu0  ;;  %v837_v0 = vpop.f32.mrf.mxu1 }
 0x141   :  { %v1246_v1 = vpack.c.bf16 %v870_v57, %v869_v56  ;;  %v880_v28 = vmax.f32 %v846_v59, 0.0  ;;  %v1375_v3 = vadd.f32 %v1374_v62, %v1373_v54  ;;  %v838_v4 = vadd.f32 %v837_v0, %v677_v63 }
 0x142   :  { %v811_v5 = vadd.f32 %v1857_v53, %v650_v58 }
 0x143   :  { %1282 = vst [vmem:[%s1918_s3 + $0x50] sm:$0xff] %v1246_v1   ;;  %v1271_v6 = vpack.c.bf16 %v880_v28, %v879_v2  ;;  %v653_v7 = vadd.f32 %v1375_v3, %v1817_v46  ;;  %v878_v10 = vmax.f32 %v838_v4, 0.0 }
 0x144   :  { %v871_v12 = vmax.f32 %v811_v5, 0.0 }
 0x145   :  { %1287 = vst [vmem:[%s1918_s3 + $0x78] sm:$0xff] %v1271_v6   ;;  %v814_v33 = vadd.f32 %v1863_v61, %v653_v7  ;;  %v1266_v11 = vpack.c.bf16 %v878_v10, %v877_v9 }
 0x147   :  { %v872_v14 = vmax.f32 %v814_v33, 0.0  ;;  %1286 = vst [vmem:[%s1918_s3 + $0x70] sm:$0xff] %v1266_v11  }
 0x149   :  { %v1251_v15 = vpack.c.bf16 %v872_v14, %v871_v12 }
 0x14b   :  { %1283 = vst [vmem:[%s1918_s3 + $0x58] sm:$0xff] %v1251_v15  }

// kernel: _lambda_.29
= control target key start
LH: loop header
LB: loop body
LE: loop exit
PB: predicated region body
PF: predicated region fallthrough
CT: control target
= control target key end

     0   :  { %s493_s0 = inlined_call_operand.vmem [shape: bf16[9,64,128], index: 0, kind: input, shape index: {}]   ;;  %s494_s1 = inlined_call_operand.vmem [shape: bf16[64,128], index: 1, kind: output, shape index: {}]  }
   0x1   :  { %v8_v0 = vld [vmem:[%s493_s0] sm:$0xf]  ;;  %v9_v1 = vld [vmem:[%s493_s0 + $0x4] sm:$0xf]  ;;  %v10_v18 = vld [vmem:[%s493_s0 + $0x8] sm:$0xf] }
   0x2   :  { %v164_v2 = vld [vmem:[%s493_s0 + $0x20] sm:$0xf]  ;;  %v165_v3 = vld [vmem:[%s493_s0 + $0x24] sm:$0xf]  ;;  %v11_v19 = vld [vmem:[%s493_s0 + $0xc] sm:$0xf] }
   0x3   :  { %v25_v4 = vmax.bf16 %v164_v2, %v8_v0  ;;  %v172_v5 = vld [vmem:[%s493_s0 + $0x40] sm:$0xf]  ;;  %v173_v6 = vld [vmem:[%s493_s0 + $0x44] sm:$0xf]  ;;  %v26_v7 = vmax.bf16 %v165_v3, %v9_v1  ;;  %v166_v20 = vld [vmem:[%s493_s0 + $0x28] sm:$0xf] }
   0x4   :  { %v180_v8 = vld [vmem:[%s493_s0 + $0x60] sm:$0xf]  ;;  %v181_v10 = vld [vmem:[%s493_s0 + $0x64] sm:$0xf]  ;;  %v167_v22 = vld [vmem:[%s493_s0 + $0x2c] sm:$0xf]  ;;  %v27_v23 = vmax.bf16 %v166_v20, %v10_v18 }
   0x5   :  { %v42_v9 = vmax.bf16 %v172_v5, %v25_v4  ;;  %v43_v11 = vmax.bf16 %v173_v6, %v26_v7  ;;  %v188_v12 = vld [vmem:[%s493_s0 + $0x80] sm:$0xf]  ;;  %v189_v14 = vld [vmem:[%s493_s0 + $0x84] sm:$0xf]  ;;  %v174_v24 = vld [vmem:[%s493_s0 + $0x48] sm:$0xf]  ;;  %v28_v28 = vmax.bf16 %v167_v22, %v11_v19 }
   0x6   :  { %v196_v15 = vld [vmem:[%s493_s0 + $0xa0] sm:$0xf]  ;;  %v197_v16 = vld [vmem:[%s493_s0 + $0xa4] sm:$0xf]  ;;  %v175_v25 = vld [vmem:[%s493_s0 + $0x4c] sm:$0xf]  ;;  %v44_v33 = vmax.bf16 %v174_v24, %v27_v23 }
   0x7   :  { %v59_v13 = vmax.bf16 %v180_v8, %v42_v9  ;;  %v60_v17 = vmax.bf16 %v181_v10, %v43_v11  ;;  %v204_v27 = vld [vmem:[%s493_s0 + $0xc0] sm:$0xf]  ;;  %v182_v29 = vld [vmem:[%s493_s0 + $0x68] sm:$0xf]  ;;  %v205_v31 = vld [vmem:[%s493_s0 + $0xc4] sm:$0xf]  ;;  %v45_v38 = vmax.bf16 %v175_v25, %v28_v28 }
   0x8   :  { %v212_v32 = vld [vmem:[%s493_s0 + $0xe0] sm:$0xf]  ;;  %v183_v34 = vld [vmem:[%s493_s0 + $0x6c] sm:$0xf]  ;;  %v213_v36 = vld [vmem:[%s493_s0 + $0xe4] sm:$0xf]  ;;  %v61_v42 = vmax.bf16 %v182_v29, %v44_v33 }
   0x9   :  { %v76_v21 = vmax.bf16 %v188_v12, %v59_v13  ;;  %v77_v26 = vmax.bf16 %v189_v14, %v60_v17  ;;  %v220_v37 = vld [vmem:[%s493_s0 + $0x100] sm:$0xf]  ;;  %v190_v39 = vld [vmem:[%s493_s0 + $0x88] sm:$0xf]  ;;  %v221_v41 = vld [vmem:[%s493_s0 + $0x104] sm:$0xf]  ;;  %v62_v47 = vmax.bf16 %v183_v34, %v45_v38 }
   0xa   :  { %v191_v43 = vld [vmem:[%s493_s0 + $0x8c] sm:$0xf]  ;;  %v198_v44 = vld [vmem:[%s493_s0 + $0xa8] sm:$0xf]  ;;  %v12_v48 = vld [vmem:[%s493_s0 + $0x10] sm:$0xf]  ;;  %v78_v52 = vmax.bf16 %v190_v39, %v61_v42 }
   0xb   :  { %v93_v30 = vmax.bf16 %v196_v15, %v76_v21  ;;  %v94_v35 = vmax.bf16 %v197_v16, %v77_v26  ;;  %v199_v45 = vld [vmem:[%s493_s0 + $0xac] sm:$0xf]  ;;  %v13_v49 = vld [vmem:[%s493_s0 + $0x14] sm:$0xf]  ;;  %v168_v50 = vld [vmem:[%s493_s0 + $0x30] sm:$0xf]  ;;  %v79_v58 = vmax.bf16 %v191_v43, %v62_v47 }
   0xc   :  { %v169_v53 = vld [vmem:[%s493_s0 + $0x34] sm:$0xf]  ;;  %v29_v54 = vmax.bf16 %v168_v50, %v12_v48  ;;  %v176_v55 = vld [vmem:[%s493_s0 + $0x50] sm:$0xf]  ;;  %v206_v59 = vld [vmem:[%s493_s0 + $0xc8] sm:$0xf]  ;;  %v95_v63 = vmax.bf16 %v198_v44, %v78_v52 }
   0xd   :  { %v110_v40 = vmax.bf16 %v204_v27, %v93_v30  ;;  %v111_v46 = vmax.bf16 %v205_v31, %v94_v35  ;;  %v177_v56 = vld [vmem:[%s493_s0 + $0x54] sm:$0xf]  ;;  %v30_v60 = vmax.bf16 %v169_v53, %v13_v49  ;;  %v184_v61 = vld [vmem:[%s493_s0 + $0x70] sm:$0xf]  ;;  %v207_v0 = vld [vmem:[%s493_s0 + $0xcc] sm:$0xf]  ;;  %v96_v5 = vmax.bf16 %v199_v45, %v79_v58 }
   0xe   :  { %v214_v1 = vld [vmem:[%s493_s0 + $0xe8] sm:$0xf]  ;;  %v46_v2 = vmax.bf16 %v176_v55, %v29_v54  ;;  %v185_v3 = vld [vmem:[%s493_s0 + $0x74] sm:$0xf]  ;;  %v215_v6 = vld [vmem:[%s493_s0 + $0xec] sm:$0xf]  ;;  %v112_v10 = vmax.bf16 %v206_v59, %v95_v63 }
   0xf   :  { %v127_v51 = vmax.bf16 %v212_v32, %v110_v40  ;;  %v128_v57 = vmax.bf16 %v213_v36, %v111_v46  ;;  %v222_v7 = vld [vmem:[%s493_s0 + $0x108] sm:$0xf]  ;;  %v47_v8 = vmax.bf16 %v177_v56, %v30_v60  ;;  %v192_v9 = vld [vmem:[%s493_s0 + $0x90] sm:$0xf]  ;;  %v223_v11 = vld [vmem:[%s493_s0 + $0x10c] sm:$0xf]  ;;  %v113_v17 = vmax.bf16 %v207_v0, %v96_v5 }
  0x10   :  { %v63_v12 = vmax.bf16 %v184_v61, %v46_v2  ;;  %v193_v13 = vld [vmem:[%s493_s0 + $0x94] sm:$0xf]  ;;  %v200_v14 = vld [vmem:[%s493_s0 + $0xb0] sm:$0xf]  ;;  %v14_v19 = vld [vmem:[%s493_s0 + $0x18] sm:$0xf]  ;;  %v129_v22 = vmax.bf16 %v214_v1, %v112_v10 }
  0x11   :  { %v144_v62 = vmax.bf16 %v220_v37, %v127_v51  ;;  %v145_v4 = vmax.bf16 %v221_v41, %v128_v57  ;;  %v201_v15 = vld [vmem:[%s493_s0 + $0xb4] sm:$0xf]  ;;  %v64_v18 = vmax.bf16 %v185_v3, %v47_v8  ;;  %v15_v20 = vld [vmem:[%s493_s0 + $0x1c] sm:$0xf]  ;;  %v170_v21 = vld [vmem:[%s493_s0 + $0x38] sm:$0xf]  ;;  %v130_v28 = vmax.bf16 %v215_v6, %v113_v17 }
  0x12   :  { %v80_v23 = vmax.bf16 %v192_v9, %v63_v12  ;;  %v171_v24 = vld [vmem:[%s493_s0 + $0x3c] sm:$0xf]  ;;  %v31_v25 = vmax.bf16 %v170_v21, %v14_v19  ;;  %v178_v26 = vld [vmem:[%s493_s0 + $0x58] sm:$0xf]  ;;  %v208_v30 = vld [vmem:[%s493_s0 + $0xd0] sm:$0xf]  ;;  %v146_v33 = vmax.bf16 %v222_v7, %v129_v22 }
  0x13   :  { %v248_v16 = vcombine.low %v144_v62, %v145_v4  ;;  %v179_v27 = vld [vmem:[%s493_s0 + $0x5c] sm:$0xf]  ;;  %v81_v29 = vmax.bf16 %v193_v13, %v64_v18  ;;  %v32_v31 = vmax.bf16 %v171_v24, %v15_v20  ;;  %v186_v32 = vld [vmem:[%s493_s0 + $0x78] sm:$0xf]  ;;  %v209_v35 = vld [vmem:[%s493_s0 + $0xd4] sm:$0xf]  ;;  %v147_v38 = vmax.bf16 %v223_v11, %v130_v28 }
  0x14   :  { %v97_v34 = vmax.bf16 %v200_v14, %v80_v23  ;;  %v48_v36 = vmax.bf16 %v178_v26, %v31_v25  ;;  %v187_v37 = vld [vmem:[%s493_s0 + $0x7c] sm:$0xf]  ;;  %v216_v40 = vld [vmem:[%s493_s0 + $0xf0] sm:$0xf]  ;;  %v194_v42 = vld [vmem:[%s493_s0 + $0x98] sm:$0xf] }
  0x15   :  { %232 = vst [vmem:[%s494_s1] sm:$0xff] %v248_v16   ;;  %v98_v39 = vmax.bf16 %v201_v15, %v81_v29  ;;  %v49_v41 = vmax.bf16 %v179_v27, %v32_v31  ;;  %v217_v44 = vld [vmem:[%s493_s0 + $0xf4] sm:$0xf]  ;;  %v195_v46 = vld [vmem:[%s493_s0 + $0x9c] sm:$0xf]  ;;  %v249_v47 = vcombine.low %v146_v33, %v147_v38  ;;  %v224_v49 = vld [vmem:[%s493_s0 + $0x110] sm:$0xf] }
  0x16   :  { %v114_v43 = vmax.bf16 %v208_v30, %v97_v34  ;;  %v65_v45 = vmax.bf16 %v186_v32, %v48_v36  ;;  %v202_v51 = vld [vmem:[%s493_s0 + $0xb8] sm:$0xf]  ;;  %v225_v53 = vld [vmem:[%s493_s0 + $0x114] sm:$0xf]  ;;  %v203_v55 = vld [vmem:[%s493_s0 + $0xbc] sm:$0xf] }
  0x17   :  { %v115_v48 = vmax.bf16 %v209_v35, %v98_v39  ;;  %v66_v50 = vmax.bf16 %v187_v37, %v49_v41  ;;  %250 = vst [vmem:[%s494_s1 + $0x8] sm:$0xff] %v249_v47   ;;  %v210_v58 = vld [vmem:[%s493_s0 + $0xd8] sm:$0xf]  ;;  %v211_v61 = vld [vmem:[%s493_s0 + $0xdc] sm:$0xf] }
  0x18   :  { %v131_v52 = vmax.bf16 %v216_v40, %v114_v43  ;;  %v82_v54 = vmax.bf16 %v194_v42, %v65_v45  ;;  %v218_v0 = vld [vmem:[%s493_s0 + $0xf8] sm:$0xf]  ;;  %v219_v2 = vld [vmem:[%s493_s0 + $0xfc] sm:$0xf] }
  0x19   :  { %v132_v56 = vmax.bf16 %v217_v44, %v115_v48  ;;  %v83_v57 = vmax.bf16 %v195_v46, %v66_v50  ;;  %v226_v5 = vld [vmem:[%s493_s0 + $0x118] sm:$0xf]  ;;  %v227_v7 = vld [vmem:[%s493_s0 + $0x11c] sm:$0xf] }
  0x1a   :  { %v148_v59 = vmax.bf16 %v224_v49, %v131_v52  ;;  %v99_v60 = vmax.bf16 %v202_v51, %v82_v54 }
  0x1b   :  { %v149_v62 = vmax.bf16 %v225_v53, %v132_v56  ;;  %v100_v63 = vmax.bf16 %v203_v55, %v83_v57 }
  0x1c   :  { %v116_v1 = vmax.bf16 %v210_v58, %v99_v60 }
  0x1d   :  { %v251_v3 = vcombine.low %v148_v59, %v149_v62  ;;  %v117_v4 = vmax.bf16 %v211_v61, %v100_v63 }
  0x1e   :  { %v133_v6 = vmax.bf16 %v218_v0, %v116_v1 }
  0x1f   :  { %252 = vst [vmem:[%s494_s1 + $0x10] sm:$0xff] %v251_v3   ;;  %v134_v8 = vmax.bf16 %v219_v2, %v117_v4 }
  0x20   :  { %v150_v9 = vmax.bf16 %v226_v5, %v133_v6 }
  0x21   :  { %v151_v10 = vmax.bf16 %v227_v7, %v134_v8 }
  0x23   :  { %v253_v11 = vcombine.low %v150_v9, %v151_v10 }
  0x25   :  { %254 = vst [vmem:[%s494_s1 + $0x18] sm:$0xff] %v253_v11  }

// kernel: _lambda_.30
= control target key start
LH: loop header
LB: loop body
LE: loop exit
PB: predicated region body
PF: predicated region fallthrough
CT: control target
= control target key end

     0   :  { %s2108_s1 = inlined_call_operand.vmem [shape: bf16[1152,128], index: 1, kind: input, shape index: {}]   ;;  %s2109_s0 = inlined_call_operand.vmem [shape: bf16[64,1152], index: 0, kind: input, shape index: {}]   ;;  %s2110_s2 = inlined_call_operand.vmem [shape: f32[1,128], index: 2, kind: input, shape index: {}]   ;;  %s2111_s3 = inlined_call_operand.vmem [shape: bf16[64,128], index: 3, kind: output, shape index: {}]  }
   0x1   :  { %v1559_v0 = vld [vmem:[%s2108_s1 + $0x78] sm:$0xff]   ;;  %v1563_v4 = vld [vmem:[%s2108_s1 + $0x70] sm:$0xff]   ;;  %v1567_v8 = vld [vmem:[%s2108_s1 + $0x68] sm:$0xff]  }
   0x2   :  { %v1560_v1 = vld [vmem:[%s2108_s1 + $0xf8] sm:$0xff]   ;;  %1347 = vmatprep.subr.bf16.mxu0 %v1559_v0  ;;  %v1564_v5 = vld [vmem:[%s2108_s1 + $0xf0] sm:$0xff]   ;;  %v1568_v9 = vld [vmem:[%s2108_s1 + $0xe8] sm:$0xff]  }
   0x3   :  { %v1561_v2 = vld [vmem:[%s2108_s1 + $0x38] sm:$0xff]   ;;  %1387 = vmatprep.subr.bf16.mxu1 %v1560_v1  ;;  %v1565_v6 = vld [vmem:[%s2108_s1 + $0x30] sm:$0xff]   ;;  %v1569_v10 = vld [vmem:[%s2108_s1 + $0x28] sm:$0xff]  }
   0x4   :  { %v1562_v3 = vld [vmem:[%s2108_s1 + $0xb8] sm:$0xff]   ;;  %1348 = vmatpush3.bf16.msra.mxu0 %v1561_v2  ;;  %v1566_v7 = vld [vmem:[%s2108_s1 + $0xb0] sm:$0xff]   ;;  %v1570_v11 = vld [vmem:[%s2108_s1 + $0xa8] sm:$0xff]  }
   0x5   :  { %1388 = vmatpush3.bf16.msra.mxu1 %v1562_v3  ;;  %1349 = vmatprep.subr.bf16.mxu0 %v1563_v4  ;;  %v1571_v12 = vld [vmem:[%s2108_s1 + $0x60] sm:$0xff]   ;;  %v1575_v16 = vld [vmem:[%s2108_s1 + $0x58] sm:$0xff]   ;;  %v1579_v20 = vld [vmem:[%s2108_s1 + $0x50] sm:$0xff]  }
   0x6   :  { %1389 = vmatprep.subr.bf16.mxu1 %v1564_v5  ;;  %v1572_v13 = vld [vmem:[%s2108_s1 + $0xe0] sm:$0xff]   ;;  %v1576_v17 = vld [vmem:[%s2108_s1 + $0xd8] sm:$0xff]   ;;  %v1580_v21 = vld [vmem:[%s2108_s1 + $0xd0] sm:$0xff]  }
   0x7   :  { %v1573_v14 = vld [vmem:[%s2108_s1 + $0x20] sm:$0xff]   ;;  %v1577_v18 = vld [vmem:[%s2108_s1 + $0x18] sm:$0xff]   ;;  %v1581_v22 = vld [vmem:[%s2108_s1 + $0x10] sm:$0xff]  }
   0x8   :  { %1350 = vmatpush3.bf16.msra.mxu0 %v1565_v6  ;;  %v1574_v15 = vld [vmem:[%s2108_s1 + $0xa0] sm:$0xff]   ;;  %v1578_v19 = vld [vmem:[%s2108_s1 + $0x98] sm:$0xff]   ;;  %v1582_v23 = vld [vmem:[%s2108_s1 + $0x90] sm:$0xff]  }
   0x9   :  { %1390 = vmatpush3.bf16.msra.mxu1 %v1566_v7  ;;  %1351 = vmatprep.subr.bf16.mxu0 %v1567_v8  ;;  %v1583_v24 = vld [vmem:[%s2108_s1 + $0x48] sm:$0xff]   ;;  %v1587_v28 = vld [vmem:[%s2108_s1 + $0x40] sm:$0xff]   ;;  %v1597_v36 = vld [vmem:[%s2108_s1 + $0x178] sm:$0xff]  }
   0xa   :  { %1391 = vmatprep.subr.bf16.mxu1 %v1568_v9  ;;  %v1584_v25 = vld [vmem:[%s2108_s1 + $0xc8] sm:$0xff]   ;;  %v1588_v29 = vld [vmem:[%s2108_s1 + $0xc0] sm:$0xff]   ;;  %v1598_v37 = vld [vmem:[%s2108_s1 + $0x1f8] sm:$0xff]  }
   0xb   :  { %v1585_v26 = vld [vmem:[%s2108_s1 + $0x8] sm:$0xff]   ;;  %v1589_v30 = vld [vmem:[%s2108_s1] sm:$0xff]   ;;  %v1599_v38 = vld [vmem:[%s2108_s1 + $0x138] sm:$0xff]  }
   0xc   :  { %1352 = vmatpush3.bf16.msra.mxu0 %v1569_v10  ;;  %v1586_v27 = vld [vmem:[%s2108_s1 + $0x88] sm:$0xff]   ;;  %v1590_v31 = vld [vmem:[%s2108_s1 + $0x80] sm:$0xff]   ;;  %v1600_v39 = vld [vmem:[%s2108_s1 + $0x1b8] sm:$0xff]  }
   0xd   :  { %1392 = vmatpush3.bf16.msra.mxu1 %v1570_v11  ;;  %1353 = vmatprep.subr.bf16.mxu0 %v1571_v12  ;;  %v1591_v32 = vld [vmem:[%s2109_s0] ss:$36 sps:$4 sm:$0xff]   ;;  %v1594_v34 = vld [vmem:[%s2109_s0 + $0x8] ss:$36 sps:$4 sm:$0xff]   ;;  %v1601_v40 = vld [vmem:[%s2108_s1 + $0x170] sm:$0xff]  }
   0xe   :  { %1393 = vmatprep.subr.bf16.mxu1 %v1572_v13  ;;  %v1593_v33 = vld [vmem:[%s2109_s0 + $0x4] ss:$36 sps:$4 sm:$0xff]   ;;  %v1596_v35 = vld [vmem:[%s2109_s0 + $0xc] ss:$36 sps:$4 sm:$0xff]   ;;  %v1607_v45 = vld [vmem:[%s2109_s0 + $0x54] ss:$36 sps:$4 sm:$0xff]  }
   0xf   :  { %854 = vmatprep.mubr.bf16.mxu0 %v1593_v33  ;;  %919 = vmatprep.mubr.bf16.mxu1 %v1596_v35  ;;  %v1602_v41 = vld [vmem:[%s2108_s1 + $0x1f0] sm:$0xff]   ;;  %v1609_v46 = vld [vmem:[%s2109_s0 + $0x48] ss:$36 sps:$4 sm:$0xff]   ;;  %v1615_v52 = vld [vmem:[%s2108_s1 + $0x160] sm:$0xff]  }
  0x10   :  { %1354 = vmatpush3.bf16.msra.mxu0 %v1573_v14  ;;  %v1603_v42 = vld [vmem:[%s2108_s1 + $0x130] sm:$0xff]   ;;  %v1611_v48 = vld [vmem:[%s2108_s1 + $0x168] sm:$0xff]   ;;  %v1616_v53 = vld [vmem:[%s2108_s1 + $0x1e0] sm:$0xff]  }
  0x11   :  { %1394 = vmatpush3.bf16.msra.mxu1 %v1574_v15  ;;  %1355 = vmatprep.subr.bf16.mxu0 %v1575_v16  ;;  %v1604_v43 = vld [vmem:[%s2108_s1 + $0x1b0] sm:$0xff]   ;;  %v1612_v49 = vld [vmem:[%s2108_s1 + $0x1e8] sm:$0xff]   ;;  %v1617_v54 = vld [vmem:[%s2108_s1 + $0x120] sm:$0xff]  }
  0x12   :  { %1395 = vmatprep.subr.bf16.mxu1 %v1576_v17  ;;  %v1605_v44 = vld [vmem:[%s2109_s0 + $0x4c] ss:$36 sps:$4 sm:$0xff]   ;;  %v1618_v55 = vld [vmem:[%s2108_s1 + $0x1a0] sm:$0xff]   ;;  %v1619_v56 = vld [vmem:[%s2109_s0 + $0x94] ss:$36 sps:$4 sm:$0xff]  }
  0x13   :  { %v1610_v47 = vld [vmem:[%s2109_s0 + $0x50] ss:$36 sps:$4 sm:$0xff]   ;;  %v1613_v50 = vld [vmem:[%s2108_s1 + $0x128] sm:$0xff]   ;;  %v1621_v57 = vld [vmem:[%s2109_s0 + $0x9c] ss:$36 sps:$4 sm:$0xff]  }
  0x14   :  { %1356 = vmatpush3.bf16.msra.mxu0 %v1577_v18  ;;  %v1614_v51 = vld [vmem:[%s2108_s1 + $0x1a8] sm:$0xff]   ;;  %v1623_v58 = vld [vmem:[%s2109_s0 + $0x90] ss:$36 sps:$4 sm:$0xff]   ;;  %v1624_v59 = vld [vmem:[%s2109_s0 + $0x98] ss:$36 sps:$4 sm:$0xff]  }
  0x15   :  { %1396 = vmatpush3.bf16.msra.mxu1 %v1578_v19  ;;  %1357 = vmatprep.subr.bf16.mxu0 %v1579_v20  ;;  %v1625_v60 = vld [vmem:[%s2108_s1 + $0x158] sm:$0xff]   ;;  %v1629_v0 = vld [vmem:[%s2108_s1 + $0x150] sm:$0xff]   ;;  %v1635_v5 = vld [vmem:[%s2109_s0 + $0xe4] ss:$36 sps:$4 sm:$0xff]  }
  0x16   :  { %1397 = vmatprep.subr.bf16.mxu1 %v1580_v21  ;;  %v1626_v61 = vld [vmem:[%s2108_s1 + $0x1d8] sm:$0xff]   ;;  %v1630_v1 = vld [vmem:[%s2108_s1 + $0x1d0] sm:$0xff]   ;;  %v1638_v7 = vld [vmem:[%s2109_s0 + $0xe0] ss:$36 sps:$4 sm:$0xff]  }
  0x17   :  { %v1627_v62 = vld [vmem:[%s2108_s1 + $0x118] sm:$0xff]   ;;  %v1631_v2 = vld [vmem:[%s2108_s1 + $0x110] sm:$0xff]   ;;  %v1639_v8 = vld [vmem:[%s2108_s1 + $0x148] sm:$0xff]  }
  0x18   :  { %1358 = vmatpush3.bf16.msra.mxu0 %v1581_v22  ;;  %v1628_v63 = vld [vmem:[%s2108_s1 + $0x198] sm:$0xff]   ;;  %v1632_v3 = vld [vmem:[%s2108_s1 + $0x190] sm:$0xff]   ;;  %v1640_v9 = vld [vmem:[%s2108_s1 + $0x1c8] sm:$0xff]  }
  0x19   :  { %1398 = vmatpush3.bf16.msra.mxu1 %v1582_v23  ;;  %1359 = vmatprep.subr.bf16.mxu0 %v1583_v24  ;;  %v1633_v4 = vld [vmem:[%s2109_s0 + $0xdc] ss:$36 sps:$4 sm:$0xff]   ;;  %v1641_v10 = vld [vmem:[%s2108_s1 + $0x108] sm:$0xff]   ;;  %v1647_v16 = vld [vmem:[%s2109_s0 + $0x10] ss:$36 sps:$4 sm:$0xff]  }
  0x1a   :  { %1399 = vmatprep.subr.bf16.mxu1 %v1584_v25  ;;  %v1637_v6 = vld [vmem:[%s2109_s0 + $0xd8] ss:$36 sps:$4 sm:$0xff]   ;;  %v1642_v11 = vld [vmem:[%s2108_s1 + $0x188] sm:$0xff]   ;;  %v1643_v12 = vld [vmem:[%s2108_s1 + $0x140] sm:$0xff]  }
  0x1b   :  { %v1644_v13 = vld [vmem:[%s2108_s1 + $0x1c0] sm:$0xff]   ;;  %v1649_v17 = vld [vmem:[%s2109_s0 + $0x14] ss:$36 sps:$4 sm:$0xff]   ;;  %v1671_v33 = vld [vmem:[%s2109_s0 + $0xec] ss:$36 sps:$4 sm:$0xff]  }
  0x1c   :  { %1360 = vmatpush3.bf16.msra.mxu0 %v1585_v26  ;;  %v1645_v14 = vld [vmem:[%s2108_s1 + $0x100] sm:$0xff]   ;;  %v1650_v18 = vld [vmem:[%s2109_s0 + $0x18] ss:$36 sps:$4 sm:$0xff]   ;;  %v1654_v21 = vld [vmem:[%s2108_s1 + $0x230] sm:$0xff]  }
  0x1d   :  { %1400 = vmatpush3.bf16.msra.mxu1 %v1586_v27  ;;  %1361 = vmatprep.subr.bf16.mxu0 %v1587_v28  ;;  %v1646_v15 = vld [vmem:[%s2108_s1 + $0x180] sm:$0xff]   ;;  %v1653_v20 = vld [vmem:[%s2108_s1 + $0x238] sm:$0xff]   ;;  %v1661_v26 = vld [vmem:[%s2108_s1 + $0x228] sm:$0xff]  }
  0x1e   :  { %1401 = vmatprep.subr.bf16.mxu1 %v1588_v29  ;;  %v1652_v19 = vld [vmem:[%s2109_s0 + $0x1c] ss:$36 sps:$4 sm:$0xff]   ;;  %v1657_v23 = vld [vmem:[%s2109_s0 + $0x64] ss:$36 sps:$4 sm:$0xff]   ;;  %v1665_v28 = vld [vmem:[%s2109_s0 + $0xac] ss:$36 sps:$4 sm:$0xff]  }
  0x1f   :  { %v1655_v22 = vld [vmem:[%s2109_s0 + $0x5c] ss:$36 sps:$4 sm:$0xff]   ;;  %v1663_v27 = vld [vmem:[%s2109_s0 + $0xa4] ss:$36 sps:$4 sm:$0xff]   ;;  %v1670_v35 = vld [vmem:[%s2108_s1 + $0x210] sm:$0xff]  }
  0x20   :  { %1362 = vmatpush3.bf16.msra.mxu0 %v1589_v30  ;;  %v1659_v24 = vld [vmem:[%s2109_s0 + $0x58] ss:$36 sps:$4 sm:$0xff]   ;;  %v1660_v25 = vld [vmem:[%s2109_s0 + $0x60] ss:$36 sps:$4 sm:$0xff]  }
  0x21   :  { %1402 = vmatpush3.bf16.msra.mxu1 %v1590_v31  ;;  %1427 = vmatprep.subr.bf16.mxu0 %v1597_v36  ;;  %v1662_v29 = vld [vmem:[%s2108_s1 + $0x220] sm:$0xff]   ;;  %v1668_v31 = vld [vmem:[%s2109_s0 + $0xa8] ss:$36 sps:$4 sm:$0xff]  }
  0x22   :  { %1467 = vmatprep.subr.bf16.mxu1 %v1598_v37  ;;  %v1667_v30 = vld [vmem:[%s2109_s0 + $0xa0] ss:$36 sps:$4 sm:$0xff]   ;;  %v1675_v36 = vld [vmem:[%s2109_s0 + $0xe8] ss:$36 sps:$4 sm:$0xff]  }
  0x23   :  { %855 = vmatmul.mubr.bf16.vlgmr.msra.gmra.mxu0 %v1591_v32  ;;  %v1669_v32 = vld [vmem:[%s2108_s1 + $0x218] sm:$0xff]   ;;  %v1677_v37 = vld [vmem:[%s2108_s1 + $0x208] sm:$0xff]  }
  0x24   :  { %920 = vmatmul.mubr.bf16.vlgmr.msra.gmra.mxu1 %v1594_v34  ;;  %1428 = vmatpush3.bf16.msra.mxu0 %v1599_v38  ;;  %v1673_v34 = vld [vmem:[%s2109_s0 + $0xf4] ss:$36 sps:$4 sm:$0xff]  }
  0x25   :  { %1468 = vmatpush3.bf16.msra.mxu1 %v1600_v39  ;;  %1429 = vmatprep.subr.bf16.mxu0 %v1601_v40  ;;  %v1676_v38 = vld [vmem:[%s2109_s0 + $0xf0] ss:$36 sps:$4 sm:$0xff]   ;;  %v1679_v39 = vld [vmem:[%s2109_s0 + $0x20] ss:$36 sps:$4 sm:$0xff]  }
  0x26   :  { %1469 = vmatprep.subr.bf16.mxu1 %v1602_v41  ;;  %862 = vmatprep.mubr.bf16.mxu0 %v1605_v44  ;;  %v1680_v40 = vld [vmem:[%s2109_s0 + $0xb0] ss:$36 sps:$4 sm:$0xff]   ;;  %v1678_v41 = vld [vmem:[%s2108_s1 + $0x200] sm:$0xff]  }
  0x27   :  { %927 = vmatprep.mubr.bf16.mxu1 %v1607_v45 }
  0x28   :  { %1430 = vmatpush3.bf16.msra.mxu0 %v1603_v42  ;;  %v1681_v42 = vld [vmem:[%s2109_s0 + $0x68] ss:$36 sps:$4 sm:$0xff]  }
  0x29   :  { %1470 = vmatpush3.bf16.msra.mxu1 %v1604_v43  ;;  %1431 = vmatprep.subr.bf16.mxu0 %v1611_v48  ;;  %v1682_v43 = vld [vmem:[%s2109_s0 + $0xf8] ss:$36 sps:$4 sm:$0xff]  }
  0x2a   :  { %1471 = vmatprep.subr.bf16.mxu1 %v1612_v49 }
  0x2b   :  { %863 = vmatmul.mubr.bf16.gmra.mxu0 %v1609_v46 }
  0x2c   :  { %928 = vmatmul.mubr.bf16.gmra.mxu1 %v1610_v47  ;;  %1432 = vmatpush3.bf16.msra.mxu0 %v1613_v50 }
  0x2d   :  { %1472 = vmatpush3.bf16.msra.mxu1 %v1614_v51  ;;  %1433 = vmatprep.subr.bf16.mxu0 %v1615_v52 }
  0x2e   :  { %1473 = vmatprep.subr.bf16.mxu1 %v1616_v53  ;;  %870 = vmatprep.mubr.bf16.mxu0 %v1619_v56 }
  0x2f   :  { %935 = vmatprep.mubr.bf16.mxu1 %v1621_v57 }
  0x30   :  { %1434 = vmatpush3.bf16.msra.mxu0 %v1617_v54 }
  0x31   :  { %1474 = vmatpush3.bf16.msra.mxu1 %v1618_v55  ;;  %1435 = vmatprep.subr.bf16.mxu0 %v1625_v60 }
  0x32   :  { %1475 = vmatprep.subr.bf16.mxu1 %v1626_v61 }
  0x33   :  { %871 = vmatmul.mubr.bf16.gmra.mxu0 %v1623_v58 }
  0x34   :  { %936 = vmatmul.mubr.bf16.gmra.mxu1 %v1624_v59  ;;  %1436 = vmatpush3.bf16.msra.mxu0 %v1627_v62 }
  0x35   :  { %1476 = vmatpush3.bf16.msra.mxu1 %v1628_v63  ;;  %1437 = vmatprep.subr.bf16.mxu0 %v1629_v0 }
  0x36   :  { %1477 = vmatprep.subr.bf16.mxu1 %v1630_v1  ;;  %878 = vmatprep.mubr.bf16.mxu0 %v1633_v4 }
  0x37   :  { %943 = vmatprep.mubr.bf16.mxu1 %v1635_v5 }
  0x38   :  { %1438 = vmatpush3.bf16.msra.mxu0 %v1631_v2 }
  0x39   :  { %1478 = vmatpush3.bf16.msra.mxu1 %v1632_v3  ;;  %1439 = vmatprep.subr.bf16.mxu0 %v1639_v8 }
  0x3a   :  { %1479 = vmatprep.subr.bf16.mxu1 %v1640_v9 }
  0x3b   :  { %879 = vmatmul.mubr.bf16.gmra.mxu0 %v1637_v6 }
  0x3c   :  { %944 = vmatmul.mubr.bf16.gmra.mxu1 %v1638_v7  ;;  %1440 = vmatpush3.bf16.msra.mxu0 %v1641_v10 }
  0x3d   :  { %1480 = vmatpush3.bf16.msra.mxu1 %v1642_v11  ;;  %1441 = vmatprep.subr.bf16.mxu0 %v1643_v12 }
  0x3e   :  { %1481 = vmatprep.subr.bf16.mxu1 %v1644_v13  ;;  %984 = vmatprep.mubr.bf16.mxu0 %v1649_v17 }
  0x3f   :  { %1049 = vmatprep.mubr.bf16.mxu1 %v1652_v19 }
  0x40   :  { %1442 = vmatpush3.bf16.msra.mxu0 %v1645_v14 }
  0x41   :  { %1482 = vmatpush3.bf16.msra.mxu1 %v1646_v15  ;;  %1519 = vmatprep.subr.bf16.mxu0 %v1653_v20 }
  0x42   :  { %1543 = vmatprep.subr.bf16.mxu1 %v1653_v20 }
  0x43   :  { %985 = vmatmul.mubr.bf16.vlgmr.msra.gmra.mxu0 %v1647_v16 }
  0x44   :  { %1050 = vmatmul.mubr.bf16.vlgmr.msra.gmra.mxu1 %v1650_v18  ;;  %1520 = vmatpush3.bf16.msra.mxu0 %v1653_v20 }
  0x45   :  { %1551 = vmatpush3.bf16.msra.mxu1 %v1653_v20  ;;  %1521 = vmatprep.subr.bf16.mxu0 %v1654_v21 }
  0x46   :  { %1544 = vmatprep.subr.bf16.mxu1 %v1654_v21  ;;  %992 = vmatprep.mubr.bf16.mxu0 %v1655_v22 }
  0x47   :  { %1057 = vmatprep.mubr.bf16.mxu1 %v1657_v23 }
  0x48   :  { %1522 = vmatpush3.bf16.msra.mxu0 %v1654_v21 }
  0x49   :  { %1552 = vmatpush3.bf16.msra.mxu1 %v1654_v21  ;;  %1523 = vmatprep.subr.bf16.mxu0 %v1661_v26 }
  0x4a   :  { %1545 = vmatprep.subr.bf16.mxu1 %v1661_v26 }
  0x4b   :  { %993 = vmatmul.mubr.bf16.gmra.mxu0 %v1659_v24 }
  0x4c   :  { %1058 = vmatmul.mubr.bf16.gmra.mxu1 %v1660_v25  ;;  %1000 = vmatprep.mubr.bf16.mxu0 %v1663_v27 }
  0x4d   :  { %1524 = vmatpush3.bf16.msra.mxu0 %v1661_v26  ;;  %1065 = vmatprep.mubr.bf16.mxu1 %v1665_v28 }
  0x4e   :  { %1553 = vmatpush3.bf16.msra.mxu1 %v1661_v26  ;;  %1525 = vmatprep.subr.bf16.mxu0 %v1662_v29 }
  0x4f   :  { %1546 = vmatprep.subr.bf16.mxu1 %v1662_v29 }
  0x51   :  { %1526 = vmatpush3.bf16.msra.mxu0 %v1662_v29 }
  0x52   :  { %1554 = vmatpush3.bf16.msra.mxu1 %v1662_v29  ;;  %1527 = vmatprep.subr.bf16.mxu0 %v1669_v32 }
  0x53   :  { %1001 = vmatmul.mubr.bf16.gmra.mxu0 %v1667_v30  ;;  %1547 = vmatprep.subr.bf16.mxu1 %v1669_v32  ;;  %v1199_v30 = vld [vmem:[%s2110_s2] ss:$0 sm:$0xff] }
  0x54   :  { %1066 = vmatmul.mubr.bf16.gmra.mxu1 %v1668_v31  ;;  %1008 = vmatprep.mubr.bf16.mxu0 %v1671_v33 }
  0x55   :  { %1528 = vmatpush3.bf16.msra.mxu0 %v1669_v32  ;;  %1073 = vmatprep.mubr.bf16.mxu1 %v1673_v34 }
  0x56   :  { %1555 = vmatpush3.bf16.msra.mxu1 %v1669_v32  ;;  %1529 = vmatprep.subr.bf16.mxu0 %v1670_v35 }
  0x57   :  { %1548 = vmatprep.subr.bf16.mxu1 %v1670_v35 }
  0x59   :  { %1530 = vmatpush3.bf16.msra.mxu0 %v1670_v35 }
  0x5a   :  { %1556 = vmatpush3.bf16.msra.mxu1 %v1670_v35  ;;  %1531 = vmatprep.subr.bf16.mxu0 %v1677_v37 }
  0x5b   :  { %1009 = vmatmul.mubr.bf16.gmra.mxu0 %v1675_v36  ;;  %1549 = vmatprep.subr.bf16.mxu1 %v1677_v37 }
  0x5c   :  { %1074 = vmatmul.mubr.bf16.gmra.mxu1 %v1676_v38  ;;  %1535 = vmatprep.mubr.bf16.mxu0 %v1679_v39 }
  0x5d   :  { %1532 = vmatpush3.bf16.msra.mxu0 %v1677_v37  ;;  %1539 = vmatprep.mubr.bf16.mxu1 %v1680_v40 }
  0x5e   :  { %1557 = vmatpush3.bf16.msra.mxu1 %v1677_v37  ;;  %1533 = vmatprep.subr.bf16.mxu0 %v1678_v41 }
  0x5f   :  { %1550 = vmatprep.subr.bf16.mxu1 %v1678_v41 }
  0x61   :  { %1534 = vmatpush3.bf16.msra.mxu0 %v1678_v41 }
  0x62   :  { %1558 = vmatpush3.bf16.msra.mxu1 %v1678_v41 }
  0x64   :  { %1536 = vmatmul.mubr.bf16.vlgmr.msra.gmra.mxu0 %v1681_v42 }
  0x65   :  { %1540 = vmatmul.mubr.bf16.vlgmr.msra.gmra.mxu1 %v1682_v43 }
  0xe3   :  { %v1363_v44 = vpop.f32.mrf.mxu0 }
  0xe4   :  { %v1403_v45 = vpop.f32.mrf.mxu1 }
  0xe5   :  { %v1364_v46 = vpop.f32.mrf.mxu0 }
  0xe6   :  { %v1404_v47 = vpop.f32.mrf.mxu1  ;;  %v1365_v29 = vadd.f32 %v1364_v46, %v1363_v44 }
  0xe7   :  { %v1366_v48 = vpop.f32.mrf.mxu0  ;;  %v1405_v42 = vadd.f32 %v1404_v47, %v1403_v45 }
  0xe8   :  { %v2027_v49 = vpop.f32.mrf.mxu1  ;;  %v857_v38 = vadd.f32 %v1365_v29, %v1199_v30 }
  0xe9   :  { %v1367_v50 = vpop.f32.mrf.mxu0 }
  0xea   :  { %v2029_v51 = vpop.f32.mrf.mxu1  ;;  %v1368_v33 = vadd.f32 %v1367_v50, %v1366_v48 }
  0xeb   :  { %v1369_v52 = vpop.f32.mrf.mxu0  ;;  %v1408_v50 = vadd.f32 %v2029_v51, %v2027_v49 }
  0xec   :  { %v2031_v53 = vpop.f32.mrf.mxu1  ;;  %v860_v44 = vadd.f32 %v1368_v33, %v1199_v30 }
  0xed   :  { %v1370_v54 = vpop.f32.mrf.mxu0 }
  0xee   :  { %v2033_v55 = vpop.f32.mrf.mxu1  ;;  %v1371_v34 = vadd.f32 %v1370_v54, %v1369_v52 }
  0xef   :  { %v1372_v56 = vpop.f32.mrf.mxu0  ;;  %v1411_v52 = vadd.f32 %v2033_v55, %v2031_v53 }
  0xf0   :  { %v2035_v57 = vpop.f32.mrf.mxu1  ;;  %v865_v46 = vadd.f32 %v1371_v34, %v1199_v30 }
  0xf1   :  { %v1373_v58 = vpop.f32.mrf.mxu0 }
  0xf2   :  { %v2037_v59 = vpop.f32.mrf.mxu1  ;;  %v1374_v39 = vadd.f32 %v1373_v58, %v1372_v56 }
  0xf3   :  { %v1375_v60 = vpop.f32.mrf.mxu0  ;;  %v1414_v45 = vadd.f32 %v2037_v59, %v2035_v57 }
  0xf4   :  { %v2039_v61 = vpop.f32.mrf.mxu1  ;;  %v868_v48 = vadd.f32 %v1374_v39, %v1199_v30 }
  0xf5   :  { %v1376_v62 = vpop.f32.mrf.mxu0 }
  0xf6   :  { %v2041_v63 = vpop.f32.mrf.mxu1  ;;  %v933_v49 = vadd.f32 %v1414_v45, %v868_v48 }
  0xf7   :  { %v1378_v0 = vpop.f32.mrf.mxu0  ;;  %v1417_v55 = vadd.f32 %v2041_v63, %v2039_v61 }
  0xf8   :  { %v2043_v1 = vpop.f32.mrf.mxu1 }
  0xf9   :  { %v1379_v2 = vpop.f32.mrf.mxu0 }
  0xfa   :  { %v2045_v3 = vpop.f32.mrf.mxu1  ;;  %v1380_v54 = vadd.f32 %v1379_v2, %v1378_v0 }
  0xfb   :  { %v1381_v4 = vpop.f32.mrf.mxu0 }
  0xfc   :  { %v1421_v5 = vpop.f32.mrf.mxu1  ;;  %v876_v0 = vadd.f32 %v1380_v54, %v1199_v30 }
  0xfd   :  { %v1382_v6 = vpop.f32.mrf.mxu0 }
  0xfe   :  { %v1422_v7 = vpop.f32.mrf.mxu1  ;;  %v1383_v35 = vadd.f32 %v1382_v6, %v1381_v4  ;;  %v925_v6 = vadd.f32 %v1408_v50, %v860_v44 }
  0xff   :  { %v1384_v8 = vpop.f32.mrf.mxu0  ;;  %v1423_v56 = vadd.f32 %v1422_v7, %v1421_v5 }
 0x100   :  { %v1424_v9 = vpop.f32.mrf.mxu1 }
 0x101   :  { %v1385_v10 = vpop.f32.mrf.mxu0 }
 0x102   :  { %v1425_v11 = vpop.f32.mrf.mxu1  ;;  %v1386_v43 = vadd.f32 %v1385_v10, %v1384_v8  ;;  %v930_v8 = vadd.f32 %v1411_v52, %v865_v46 }
 0x103   :  { %v1443_v12 = vpop.f32.mrf.mxu0  ;;  %v1426_v51 = vadd.f32 %v1425_v11, %v1424_v9 }
 0x104   :  { %v2047_v13 = vpop.f32.mrf.mxu1  ;;  %v884_v47 = vadd.f32 %v1386_v43, %v1199_v30 }
 0x105   :  { %v1444_v14 = vpop.f32.mrf.mxu0 }
 0x106   :  { %v2049_v15 = vpop.f32.mrf.mxu1  ;;  %v949_v7 = vadd.f32 %v1426_v51, %v884_v47 }
 0x107   :  { %v2051_v16 = vpop.f32.mrf.mxu0 }
 0x108   :  { %v2053_v17 = vpop.f32.mrf.mxu1 }
 0x109   :  { %2112 = vst [vmem:[#allocation2_spill] sm:$0xff] %v2053_v17  ;;  %v1447_v18 = vpop.f32.mrf.mxu0  ;;  %v881_v17 = vadd.f32 %v1383_v35, %v1199_v30  ;;  %v1445_v35 = vadd.f32 %v1444_v14, %v1443_v12 }
 0x10a   :  { %v2055_v19 = vpop.f32.mrf.mxu1 }
 0x10b   :  { %2113 = vst [vmem:[#allocation3_spill] sm:$0xff] %v2055_v19  ;;  %v1449_v20 = vpop.f32.mrf.mxu0  ;;  %v1377_v19 = vadd.f32 %v1376_v62, %v1375_v60  ;;  %v946_v29 = vadd.f32 %v1423_v56, %v881_v17 }
 0x10c   :  { %v2057_v21 = vpop.f32.mrf.mxu1 }
 0x10d   :  { %v1450_v22 = vpop.f32.mrf.mxu0  ;;  %v873_v10 = vadd.f32 %v1377_v19, %v1199_v30 }
 0x10e   :  { %v2059_v23 = vpop.f32.mrf.mxu1  ;;  %v1451_v60 = vadd.f32 %v1450_v22, %v1449_v20  ;;  %v1448_v20 = vadd.f32 %v1447_v18, %v2051_v16  ;;  %v1485_v18 = vadd.f32 %v2049_v15, %v2047_v13 }
 0x10f   :  { %v1452_v24 = vpop.f32.mrf.mxu0  ;;  %v938_v17 = vadd.f32 %v1417_v55, %v873_v10  ;;  %v1491_v61 = vadd.f32 %v2059_v23, %v2057_v21 }
 0x110   :  { %v2061_v25 = vpop.f32.mrf.mxu1  ;;  %v995_v22 = vadd.f32 %v1451_v60, %v930_v8  ;;  %v2120_v44 = vld [vmem:[#allocation2_spill] sm:$0xff] }
 0x111   :  { %2114 = vst [vmem:[#allocation4_spill] sm:$0xff] %v2061_v25  ;;  %v1453_v26 = vpop.f32.mrf.mxu0  ;;  %v922_v25 = vadd.f32 %v1405_v42, %v857_v38  ;;  %v990_v38 = vadd.f32 %v1448_v20, %v925_v6 }
 0x112   :  { %v2063_v27 = vpop.f32.mrf.mxu1  ;;  %v1454_v53 = vadd.f32 %v1453_v26, %v1452_v24  ;;  %v2121_v46 = vld [vmem:[#allocation3_spill] sm:$0xff] }
 0x113   :  { %2115 = vst [vmem:[#allocation5_spill] sm:$0xff] %v2063_v27  ;;  %v1455_v28 = vpop.f32.mrf.mxu0  ;;  %v987_v14 = vadd.f32 %v1445_v35, %v922_v25  ;;  %v1488_v48 = vadd.f32 %v2121_v46, %v2120_v44 }
 0x114   :  { %v2068_v31 = vpop.f32.mrf.mxu1  ;;  %v998_v63 = vadd.f32 %v1454_v53, %v933_v49 }
 0x115   :  { %2116 = vst [vmem:[#allocation6_spill] sm:$0xff] %v2068_v31  ;;  %v1456_v32 = vpop.f32.mrf.mxu0  ;;  %v1052_v52 = vadd.f32 %v1485_v18, %v987_v14 }
 0x116   :  { %v2070_v36 = vpop.f32.mrf.mxu1  ;;  %v1457_v2 = vadd.f32 %v1456_v32, %v1455_v28 }
 0x117   :  { %v1458_v37 = vpop.f32.mrf.mxu0 }
 0x118   :  { %v2072_v40 = vpop.f32.mrf.mxu1  ;;  %v1003_v28 = vadd.f32 %v1457_v2, %v938_v17  ;;  %v2117_v39 = vld [vmem:[#allocation4_spill] sm:$0xff] }
 0x119   :  { %v1459_v41 = vpop.f32.mrf.mxu0 }
 0x11a   :  { %v1499_v27 = vpop.f32.mrf.mxu1  ;;  %v1460_v9 = vadd.f32 %v1459_v41, %v1458_v37  ;;  %v1060_v37 = vadd.f32 %v1491_v61, %v995_v22 }
 0x11b   :  { %v1461_v31 = vpop.f32.mrf.mxu0  ;;  %v1500_v13 = vadd.f32 %v1499_v27, %v2072_v40 }
 0x11c   :  { %v1501_v58 = vpop.f32.mrf.mxu1  ;;  %v2119_v25 = vld [vmem:[#allocation6_spill] sm:$0xff] }
 0x11d   :  { %v1462_v4 = vpop.f32.mrf.mxu0  ;;  %v1497_v42 = vadd.f32 %v2070_v36, %v2119_v25 }
 0x11e   :  { %v1463_v62 = vadd.f32 %v1462_v4, %v1461_v31  ;;  %v1502_v33 = vpop.f32.mrf.mxu1  ;;  %v1420_v31 = vadd.f32 %v2045_v3, %v2043_v1  ;;  %v2118_v1 = vld [vmem:[#allocation5_spill] sm:$0xff] }
 0x11f   :  { %v1464_v34 = vpop.f32.mrf.mxu0  ;;  %v1503_v11 = vadd.f32 %v1502_v33, %v1501_v58  ;;  %v1494_v3 = vadd.f32 %v2118_v1, %v2117_v39  ;;  %v1068_v58 = vadd.f32 %v1497_v42, %v1003_v28 }
 0x120   :  { %v1011_v5 = vadd.f32 %v1463_v62, %v946_v29  ;;  %v1504_v57 = vpop.f32.mrf.mxu1  ;;  %v941_v26 = vadd.f32 %v1420_v31, %v876_v0  ;;  %v1055_v62 = vadd.f32 %v1488_v48, %v990_v38 }
 0x121   :  { %v1465_v59 = vpop.f32.mrf.mxu0  ;;  %v1063_v56 = vadd.f32 %v1494_v3, %v998_v63 }
 0x122   :  { %v1466_v19 = vadd.f32 %v1465_v59, %v1464_v34  ;;  %v1505_v12 = vpop.f32.mrf.mxu1  ;;  %v1076_v16 = vadd.f32 %v1503_v11, %v1011_v5  ;;  %v1006_v21 = vadd.f32 %v1460_v9, %v941_v26 }
 0x123   :  { %v1506_v30 = vadd.f32 %v1505_v12, %v1504_v57 }
 0x124   :  { %v1014_v24 = vadd.f32 %v1466_v19, %v949_v7  ;;  %v1537_v32 = vpop.f32.mrf.mxu0  ;;  %v1071_v10 = vadd.f32 %v1500_v13, %v1006_v21 }
 0x125   :  { %v1541_v41 = vpop.f32.mrf.mxu1  ;;  %v1125_v50 = vadd.f32 %v1537_v32, %v1060_v37 }
 0x126   :  { %v1116_v23 = vpop.f32.mrf.mxu0  ;;  %v1079_v43 = vadd.f32 %v1506_v30, %v1014_v24  ;;  %v1141_v15 = vadd.f32 %v1541_v41, %v1076_v16 }
 0x127   :  { %v1132_v54 = vpop.f32.mrf.mxu1  ;;  %v1117_v45 = vadd.f32 %v1116_v23, %v1052_v52  ;;  %v1149_v29 = vmax.f32 %v1125_v50, 0.0 }
 0x128   :  { %v1538_v4 = vpop.f32.mrf.mxu0  ;;  %v1133_v36 = vadd.f32 %v1132_v54, %v1068_v58  ;;  %v1153_v51 = vmax.f32 %v1141_v15, 0.0 }
 0x129   :  { %v1128_v47 = vadd.f32 %v1538_v4, %v1063_v56  ;;  %v1542_v60 = vpop.f32.mrf.mxu1  ;;  %v1147_v55 = vmax.f32 %v1117_v45, 0.0 }
 0x12a   :  { %v1144_v6 = vadd.f32 %v1542_v60, %v1079_v43  ;;  %v1119_v8 = vpop.f32.mrf.mxu0  ;;  %v1151_v0 = vmax.f32 %v1133_v36, 0.0 }
 0x12b   :  { %v1150_v33 = vmax.f32 %v1128_v47, 0.0  ;;  %v1120_v34 = vadd.f32 %v1119_v8, %v1055_v62  ;;  %v1135_v49 = vpop.f32.mrf.mxu1 }
 0x12c   :  { %v1154_v35 = vmax.f32 %v1144_v6, 0.0  ;;  %v1136_v53 = vadd.f32 %v1135_v49, %v1071_v10 }
 0x12d   :  { %v1332_v27 = vpack.c.bf16 %v1150_v33, %v1149_v29  ;;  %v1148_v40 = vmax.f32 %v1120_v34, 0.0 }
 0x12e   :  { %v1342_v2 = vpack.c.bf16 %v1154_v35, %v1153_v51  ;;  %v1152_v5 = vmax.f32 %v1136_v53, 0.0 }
 0x12f   :  { %1344 = vst [vmem:[%s2111_s3 + $0x8] sm:$0xff] %v1332_v27   ;;  %v1327_v57 = vpack.c.bf16 %v1148_v40, %v1147_v55 }
 0x130   :  { %1346 = vst [vmem:[%s2111_s3 + $0x18] sm:$0xff] %v1342_v2   ;;  %v1337_v59 = vpack.c.bf16 %v1152_v5, %v1151_v0 }
 0x131   :  { %1328 = vst [vmem:[%s2111_s3] sm:$0xff] %v1327_v57  }
 0x132   :  { %1345 = vst [vmem:[%s2111_s3 + $0x10] sm:$0xff] %v1337_v59  }

// kernel: _lambda_.31
= control target key start
LH: loop header
LB: loop body
LE: loop exit
PB: predicated region body
PF: predicated region fallthrough
CT: control target
= control target key end

     0   :  { %s2201_s1 = inlined_call_operand.vmem [shape: bf16[1152,128], index: 1, kind: input, shape index: {}]   ;;  %s2202_s0 = inlined_call_operand.vmem [shape: bf16[64,1152], index: 0, kind: input, shape index: {}]   ;;  %s2203_s2 = inlined_call_operand.vmem [shape: f32[1,128], index: 2, kind: input, shape index: {}]   ;;  %s2204_s3 = inlined_call_operand.vmem [shape: bf16[64,128], index: 3, kind: input, shape index: {}]   ;;  %s2205_s4 = inlined_call_operand.vmem [shape: bf16[64,128], index: 4, kind: output, shape index: {}]  }
   0x1   :  { %v1605_v0 = vld [vmem:[%s2201_s1 + $0x78] sm:$0xff]   ;;  %v1609_v4 = vld [vmem:[%s2201_s1 + $0x70] sm:$0xff]   ;;  %v1613_v8 = vld [vmem:[%s2201_s1 + $0x68] sm:$0xff]  }
   0x2   :  { %v1606_v1 = vld [vmem:[%s2201_s1 + $0xf8] sm:$0xff]   ;;  %1393 = vmatprep.subr.bf16.mxu0 %v1605_v0  ;;  %v1610_v5 = vld [vmem:[%s2201_s1 + $0xf0] sm:$0xff]   ;;  %v1614_v9 = vld [vmem:[%s2201_s1 + $0xe8] sm:$0xff]  }
   0x3   :  { %v1607_v2 = vld [vmem:[%s2201_s1 + $0x38] sm:$0xff]   ;;  %1433 = vmatprep.subr.bf16.mxu1 %v1606_v1  ;;  %v1611_v6 = vld [vmem:[%s2201_s1 + $0x30] sm:$0xff]   ;;  %v1615_v10 = vld [vmem:[%s2201_s1 + $0x28] sm:$0xff]  }
   0x4   :  { %v1608_v3 = vld [vmem:[%s2201_s1 + $0xb8] sm:$0xff]   ;;  %1394 = vmatpush3.bf16.msra.mxu0 %v1607_v2  ;;  %v1612_v7 = vld [vmem:[%s2201_s1 + $0xb0] sm:$0xff]   ;;  %v1616_v11 = vld [vmem:[%s2201_s1 + $0xa8] sm:$0xff]  }
   0x5   :  { %1434 = vmatpush3.bf16.msra.mxu1 %v1608_v3  ;;  %1395 = vmatprep.subr.bf16.mxu0 %v1609_v4  ;;  %v1617_v12 = vld [vmem:[%s2201_s1 + $0x60] sm:$0xff]   ;;  %v1621_v16 = vld [vmem:[%s2201_s1 + $0x58] sm:$0xff]   ;;  %v1625_v20 = vld [vmem:[%s2201_s1 + $0x50] sm:$0xff]  }
   0x6   :  { %1435 = vmatprep.subr.bf16.mxu1 %v1610_v5  ;;  %v1618_v13 = vld [vmem:[%s2201_s1 + $0xe0] sm:$0xff]   ;;  %v1622_v17 = vld [vmem:[%s2201_s1 + $0xd8] sm:$0xff]   ;;  %v1626_v21 = vld [vmem:[%s2201_s1 + $0xd0] sm:$0xff]  }
   0x7   :  { %v1619_v14 = vld [vmem:[%s2201_s1 + $0x20] sm:$0xff]   ;;  %v1623_v18 = vld [vmem:[%s2201_s1 + $0x18] sm:$0xff]   ;;  %v1627_v22 = vld [vmem:[%s2201_s1 + $0x10] sm:$0xff]  }
   0x8   :  { %1396 = vmatpush3.bf16.msra.mxu0 %v1611_v6  ;;  %v1620_v15 = vld [vmem:[%s2201_s1 + $0xa0] sm:$0xff]   ;;  %v1624_v19 = vld [vmem:[%s2201_s1 + $0x98] sm:$0xff]   ;;  %v1628_v23 = vld [vmem:[%s2201_s1 + $0x90] sm:$0xff]  }
   0x9   :  { %1436 = vmatpush3.bf16.msra.mxu1 %v1612_v7  ;;  %1397 = vmatprep.subr.bf16.mxu0 %v1613_v8  ;;  %v1629_v24 = vld [vmem:[%s2201_s1 + $0x48] sm:$0xff]   ;;  %v1633_v28 = vld [vmem:[%s2201_s1 + $0x40] sm:$0xff]   ;;  %v1643_v36 = vld [vmem:[%s2201_s1 + $0x178] sm:$0xff]  }
   0xa   :  { %1437 = vmatprep.subr.bf16.mxu1 %v1614_v9  ;;  %v1630_v25 = vld [vmem:[%s2201_s1 + $0xc8] sm:$0xff]   ;;  %v1634_v29 = vld [vmem:[%s2201_s1 + $0xc0] sm:$0xff]   ;;  %v1644_v37 = vld [vmem:[%s2201_s1 + $0x1f8] sm:$0xff]  }
   0xb   :  { %v1631_v26 = vld [vmem:[%s2201_s1 + $0x8] sm:$0xff]   ;;  %v1635_v30 = vld [vmem:[%s2201_s1] sm:$0xff]   ;;  %v1645_v38 = vld [vmem:[%s2201_s1 + $0x138] sm:$0xff]  }
   0xc   :  { %1398 = vmatpush3.bf16.msra.mxu0 %v1615_v10  ;;  %v1632_v27 = vld [vmem:[%s2201_s1 + $0x88] sm:$0xff]   ;;  %v1636_v31 = vld [vmem:[%s2201_s1 + $0x80] sm:$0xff]   ;;  %v1646_v39 = vld [vmem:[%s2201_s1 + $0x1b8] sm:$0xff]  }
   0xd   :  { %1438 = vmatpush3.bf16.msra.mxu1 %v1616_v11  ;;  %1399 = vmatprep.subr.bf16.mxu0 %v1617_v12  ;;  %v1637_v32 = vld [vmem:[%s2202_s0] ss:$36 sps:$4 sm:$0xff]   ;;  %v1640_v34 = vld [vmem:[%s2202_s0 + $0x8] ss:$36 sps:$4 sm:$0xff]   ;;  %v1647_v40 = vld [vmem:[%s2201_s1 + $0x170] sm:$0xff]  }
   0xe   :  { %1439 = vmatprep.subr.bf16.mxu1 %v1618_v13  ;;  %v1639_v33 = vld [vmem:[%s2202_s0 + $0x4] ss:$36 sps:$4 sm:$0xff]   ;;  %v1642_v35 = vld [vmem:[%s2202_s0 + $0xc] ss:$36 sps:$4 sm:$0xff]   ;;  %v1653_v45 = vld [vmem:[%s2202_s0 + $0x54] ss:$36 sps:$4 sm:$0xff]  }
   0xf   :  { %857 = vmatprep.mubr.bf16.mxu0 %v1639_v33  ;;  %922 = vmatprep.mubr.bf16.mxu1 %v1642_v35  ;;  %v1648_v41 = vld [vmem:[%s2201_s1 + $0x1f0] sm:$0xff]   ;;  %v1655_v46 = vld [vmem:[%s2202_s0 + $0x48] ss:$36 sps:$4 sm:$0xff]   ;;  %v1661_v52 = vld [vmem:[%s2201_s1 + $0x160] sm:$0xff]  }
  0x10   :  { %1400 = vmatpush3.bf16.msra.mxu0 %v1619_v14  ;;  %v1649_v42 = vld [vmem:[%s2201_s1 + $0x130] sm:$0xff]   ;;  %v1657_v48 = vld [vmem:[%s2201_s1 + $0x168] sm:$0xff]   ;;  %v1662_v53 = vld [vmem:[%s2201_s1 + $0x1e0] sm:$0xff]  }
  0x11   :  { %1440 = vmatpush3.bf16.msra.mxu1 %v1620_v15  ;;  %1401 = vmatprep.subr.bf16.mxu0 %v1621_v16  ;;  %v1650_v43 = vld [vmem:[%s2201_s1 + $0x1b0] sm:$0xff]   ;;  %v1658_v49 = vld [vmem:[%s2201_s1 + $0x1e8] sm:$0xff]   ;;  %v1663_v54 = vld [vmem:[%s2201_s1 + $0x120] sm:$0xff]  }
  0x12   :  { %1441 = vmatprep.subr.bf16.mxu1 %v1622_v17  ;;  %v1651_v44 = vld [vmem:[%s2202_s0 + $0x4c] ss:$36 sps:$4 sm:$0xff]   ;;  %v1664_v55 = vld [vmem:[%s2201_s1 + $0x1a0] sm:$0xff]   ;;  %v1665_v56 = vld [vmem:[%s2202_s0 + $0x94] ss:$36 sps:$4 sm:$0xff]  }
  0x13   :  { %v1656_v47 = vld [vmem:[%s2202_s0 + $0x50] ss:$36 sps:$4 sm:$0xff]   ;;  %v1659_v50 = vld [vmem:[%s2201_s1 + $0x128] sm:$0xff]   ;;  %v1667_v57 = vld [vmem:[%s2202_s0 + $0x9c] ss:$36 sps:$4 sm:$0xff]  }
  0x14   :  { %1402 = vmatpush3.bf16.msra.mxu0 %v1623_v18  ;;  %v1660_v51 = vld [vmem:[%s2201_s1 + $0x1a8] sm:$0xff]   ;;  %v1669_v58 = vld [vmem:[%s2202_s0 + $0x90] ss:$36 sps:$4 sm:$0xff]   ;;  %v1670_v59 = vld [vmem:[%s2202_s0 + $0x98] ss:$36 sps:$4 sm:$0xff]  }
  0x15   :  { %1442 = vmatpush3.bf16.msra.mxu1 %v1624_v19  ;;  %1403 = vmatprep.subr.bf16.mxu0 %v1625_v20  ;;  %v1671_v60 = vld [vmem:[%s2201_s1 + $0x158] sm:$0xff]   ;;  %v1675_v0 = vld [vmem:[%s2201_s1 + $0x150] sm:$0xff]   ;;  %v1681_v5 = vld [vmem:[%s2202_s0 + $0xe4] ss:$36 sps:$4 sm:$0xff]  }
  0x16   :  { %1443 = vmatprep.subr.bf16.mxu1 %v1626_v21  ;;  %v1672_v61 = vld [vmem:[%s2201_s1 + $0x1d8] sm:$0xff]   ;;  %v1676_v1 = vld [vmem:[%s2201_s1 + $0x1d0] sm:$0xff]   ;;  %v1684_v7 = vld [vmem:[%s2202_s0 + $0xe0] ss:$36 sps:$4 sm:$0xff]  }
  0x17   :  { %v1673_v62 = vld [vmem:[%s2201_s1 + $0x118] sm:$0xff]   ;;  %v1677_v2 = vld [vmem:[%s2201_s1 + $0x110] sm:$0xff]   ;;  %v1685_v8 = vld [vmem:[%s2201_s1 + $0x148] sm:$0xff]  }
  0x18   :  { %1404 = vmatpush3.bf16.msra.mxu0 %v1627_v22  ;;  %v1674_v63 = vld [vmem:[%s2201_s1 + $0x198] sm:$0xff]   ;;  %v1678_v3 = vld [vmem:[%s2201_s1 + $0x190] sm:$0xff]   ;;  %v1686_v9 = vld [vmem:[%s2201_s1 + $0x1c8] sm:$0xff]  }
  0x19   :  { %1444 = vmatpush3.bf16.msra.mxu1 %v1628_v23  ;;  %1405 = vmatprep.subr.bf16.mxu0 %v1629_v24  ;;  %v1679_v4 = vld [vmem:[%s2202_s0 + $0xdc] ss:$36 sps:$4 sm:$0xff]   ;;  %v1687_v10 = vld [vmem:[%s2201_s1 + $0x108] sm:$0xff]   ;;  %v1693_v16 = vld [vmem:[%s2202_s0 + $0x10] ss:$36 sps:$4 sm:$0xff]  }
  0x1a   :  { %1445 = vmatprep.subr.bf16.mxu1 %v1630_v25  ;;  %v1683_v6 = vld [vmem:[%s2202_s0 + $0xd8] ss:$36 sps:$4 sm:$0xff]   ;;  %v1688_v11 = vld [vmem:[%s2201_s1 + $0x188] sm:$0xff]   ;;  %v1689_v12 = vld [vmem:[%s2201_s1 + $0x140] sm:$0xff]  }
  0x1b   :  { %v1690_v13 = vld [vmem:[%s2201_s1 + $0x1c0] sm:$0xff]   ;;  %v1695_v17 = vld [vmem:[%s2202_s0 + $0x14] ss:$36 sps:$4 sm:$0xff]   ;;  %v1717_v33 = vld [vmem:[%s2202_s0 + $0xec] ss:$36 sps:$4 sm:$0xff]  }
  0x1c   :  { %1406 = vmatpush3.bf16.msra.mxu0 %v1631_v26  ;;  %v1691_v14 = vld [vmem:[%s2201_s1 + $0x100] sm:$0xff]   ;;  %v1696_v18 = vld [vmem:[%s2202_s0 + $0x18] ss:$36 sps:$4 sm:$0xff]   ;;  %v1700_v21 = vld [vmem:[%s2201_s1 + $0x230] sm:$0xff]  }
  0x1d   :  { %1446 = vmatpush3.bf16.msra.mxu1 %v1632_v27  ;;  %1407 = vmatprep.subr.bf16.mxu0 %v1633_v28  ;;  %v1692_v15 = vld [vmem:[%s2201_s1 + $0x180] sm:$0xff]   ;;  %v1699_v20 = vld [vmem:[%s2201_s1 + $0x238] sm:$0xff]   ;;  %v1707_v26 = vld [vmem:[%s2201_s1 + $0x228] sm:$0xff]  }
  0x1e   :  { %1447 = vmatprep.subr.bf16.mxu1 %v1634_v29  ;;  %v1698_v19 = vld [vmem:[%s2202_s0 + $0x1c] ss:$36 sps:$4 sm:$0xff]   ;;  %v1703_v23 = vld [vmem:[%s2202_s0 + $0x64] ss:$36 sps:$4 sm:$0xff]   ;;  %v1711_v28 = vld [vmem:[%s2202_s0 + $0xac] ss:$36 sps:$4 sm:$0xff]  }
  0x1f   :  { %v1701_v22 = vld [vmem:[%s2202_s0 + $0x5c] ss:$36 sps:$4 sm:$0xff]   ;;  %v1709_v27 = vld [vmem:[%s2202_s0 + $0xa4] ss:$36 sps:$4 sm:$0xff]   ;;  %v1716_v35 = vld [vmem:[%s2201_s1 + $0x210] sm:$0xff]  }
  0x20   :  { %1408 = vmatpush3.bf16.msra.mxu0 %v1635_v30  ;;  %v1705_v24 = vld [vmem:[%s2202_s0 + $0x58] ss:$36 sps:$4 sm:$0xff]   ;;  %v1706_v25 = vld [vmem:[%s2202_s0 + $0x60] ss:$36 sps:$4 sm:$0xff]  }
  0x21   :  { %1448 = vmatpush3.bf16.msra.mxu1 %v1636_v31  ;;  %1473 = vmatprep.subr.bf16.mxu0 %v1643_v36  ;;  %v1708_v29 = vld [vmem:[%s2201_s1 + $0x220] sm:$0xff]   ;;  %v1714_v31 = vld [vmem:[%s2202_s0 + $0xa8] ss:$36 sps:$4 sm:$0xff]  }
  0x22   :  { %1513 = vmatprep.subr.bf16.mxu1 %v1644_v37  ;;  %v1713_v30 = vld [vmem:[%s2202_s0 + $0xa0] ss:$36 sps:$4 sm:$0xff]   ;;  %v1721_v36 = vld [vmem:[%s2202_s0 + $0xe8] ss:$36 sps:$4 sm:$0xff]  }
  0x23   :  { %858 = vmatmul.mubr.bf16.vlgmr.msra.gmra.mxu0 %v1637_v32  ;;  %v1715_v32 = vld [vmem:[%s2201_s1 + $0x218] sm:$0xff]   ;;  %v1723_v37 = vld [vmem:[%s2201_s1 + $0x208] sm:$0xff]  }
  0x24   :  { %923 = vmatmul.mubr.bf16.vlgmr.msra.gmra.mxu1 %v1640_v34  ;;  %1474 = vmatpush3.bf16.msra.mxu0 %v1645_v38  ;;  %v1719_v34 = vld [vmem:[%s2202_s0 + $0xf4] ss:$36 sps:$4 sm:$0xff]  }
  0x25   :  { %1514 = vmatpush3.bf16.msra.mxu1 %v1646_v39  ;;  %1475 = vmatprep.subr.bf16.mxu0 %v1647_v40  ;;  %v1722_v38 = vld [vmem:[%s2202_s0 + $0xf0] ss:$36 sps:$4 sm:$0xff]   ;;  %v1725_v39 = vld [vmem:[%s2202_s0 + $0x20] ss:$36 sps:$4 sm:$0xff]  }
  0x26   :  { %1515 = vmatprep.subr.bf16.mxu1 %v1648_v41  ;;  %865 = vmatprep.mubr.bf16.mxu0 %v1651_v44  ;;  %v1726_v40 = vld [vmem:[%s2202_s0 + $0xb0] ss:$36 sps:$4 sm:$0xff]   ;;  %v1724_v41 = vld [vmem:[%s2201_s1 + $0x200] sm:$0xff]  }
  0x27   :  { %930 = vmatprep.mubr.bf16.mxu1 %v1653_v45 }
  0x28   :  { %1476 = vmatpush3.bf16.msra.mxu0 %v1649_v42  ;;  %v1727_v42 = vld [vmem:[%s2202_s0 + $0x68] ss:$36 sps:$4 sm:$0xff]  }
  0x29   :  { %1516 = vmatpush3.bf16.msra.mxu1 %v1650_v43  ;;  %1477 = vmatprep.subr.bf16.mxu0 %v1657_v48  ;;  %v1728_v43 = vld [vmem:[%s2202_s0 + $0xf8] ss:$36 sps:$4 sm:$0xff]  }
  0x2a   :  { %1517 = vmatprep.subr.bf16.mxu1 %v1658_v49 }
  0x2b   :  { %866 = vmatmul.mubr.bf16.gmra.mxu0 %v1655_v46 }
  0x2c   :  { %931 = vmatmul.mubr.bf16.gmra.mxu1 %v1656_v47  ;;  %1478 = vmatpush3.bf16.msra.mxu0 %v1659_v50 }
  0x2d   :  { %1518 = vmatpush3.bf16.msra.mxu1 %v1660_v51  ;;  %1479 = vmatprep.subr.bf16.mxu0 %v1661_v52 }
  0x2e   :  { %1519 = vmatprep.subr.bf16.mxu1 %v1662_v53  ;;  %873 = vmatprep.mubr.bf16.mxu0 %v1665_v56 }
  0x2f   :  { %938 = vmatprep.mubr.bf16.mxu1 %v1667_v57 }
  0x30   :  { %1480 = vmatpush3.bf16.msra.mxu0 %v1663_v54 }
  0x31   :  { %1520 = vmatpush3.bf16.msra.mxu1 %v1664_v55  ;;  %1481 = vmatprep.subr.bf16.mxu0 %v1671_v60 }
  0x32   :  { %1521 = vmatprep.subr.bf16.mxu1 %v1672_v61 }
  0x33   :  { %874 = vmatmul.mubr.bf16.gmra.mxu0 %v1669_v58 }
  0x34   :  { %939 = vmatmul.mubr.bf16.gmra.mxu1 %v1670_v59  ;;  %1482 = vmatpush3.bf16.msra.mxu0 %v1673_v62 }
  0x35   :  { %1522 = vmatpush3.bf16.msra.mxu1 %v1674_v63  ;;  %1483 = vmatprep.subr.bf16.mxu0 %v1675_v0 }
  0x36   :  { %1523 = vmatprep.subr.bf16.mxu1 %v1676_v1  ;;  %881 = vmatprep.mubr.bf16.mxu0 %v1679_v4 }
  0x37   :  { %946 = vmatprep.mubr.bf16.mxu1 %v1681_v5 }
  0x38   :  { %1484 = vmatpush3.bf16.msra.mxu0 %v1677_v2 }
  0x39   :  { %1524 = vmatpush3.bf16.msra.mxu1 %v1678_v3  ;;  %1485 = vmatprep.subr.bf16.mxu0 %v1685_v8 }
  0x3a   :  { %1525 = vmatprep.subr.bf16.mxu1 %v1686_v9 }
  0x3b   :  { %882 = vmatmul.mubr.bf16.gmra.mxu0 %v1683_v6 }
  0x3c   :  { %947 = vmatmul.mubr.bf16.gmra.mxu1 %v1684_v7  ;;  %1486 = vmatpush3.bf16.msra.mxu0 %v1687_v10 }
  0x3d   :  { %1526 = vmatpush3.bf16.msra.mxu1 %v1688_v11  ;;  %1487 = vmatprep.subr.bf16.mxu0 %v1689_v12 }
  0x3e   :  { %1527 = vmatprep.subr.bf16.mxu1 %v1690_v13  ;;  %987 = vmatprep.mubr.bf16.mxu0 %v1695_v17 }
  0x3f   :  { %1052 = vmatprep.mubr.bf16.mxu1 %v1698_v19 }
  0x40   :  { %1488 = vmatpush3.bf16.msra.mxu0 %v1691_v14 }
  0x41   :  { %1528 = vmatpush3.bf16.msra.mxu1 %v1692_v15  ;;  %1565 = vmatprep.subr.bf16.mxu0 %v1699_v20 }
  0x42   :  { %1589 = vmatprep.subr.bf16.mxu1 %v1699_v20 }
  0x43   :  { %988 = vmatmul.mubr.bf16.vlgmr.msra.gmra.mxu0 %v1693_v16 }
  0x44   :  { %1053 = vmatmul.mubr.bf16.vlgmr.msra.gmra.mxu1 %v1696_v18  ;;  %1566 = vmatpush3.bf16.msra.mxu0 %v1699_v20 }
  0x45   :  { %1597 = vmatpush3.bf16.msra.mxu1 %v1699_v20  ;;  %1567 = vmatprep.subr.bf16.mxu0 %v1700_v21 }
  0x46   :  { %1590 = vmatprep.subr.bf16.mxu1 %v1700_v21  ;;  %995 = vmatprep.mubr.bf16.mxu0 %v1701_v22 }
  0x47   :  { %1060 = vmatprep.mubr.bf16.mxu1 %v1703_v23 }
  0x48   :  { %1568 = vmatpush3.bf16.msra.mxu0 %v1700_v21 }
  0x49   :  { %1598 = vmatpush3.bf16.msra.mxu1 %v1700_v21  ;;  %1569 = vmatprep.subr.bf16.mxu0 %v1707_v26 }
  0x4a   :  { %1591 = vmatprep.subr.bf16.mxu1 %v1707_v26 }
  0x4b   :  { %996 = vmatmul.mubr.bf16.gmra.mxu0 %v1705_v24 }
  0x4c   :  { %1061 = vmatmul.mubr.bf16.gmra.mxu1 %v1706_v25  ;;  %1003 = vmatprep.mubr.bf16.mxu0 %v1709_v27 }
  0x4d   :  { %1570 = vmatpush3.bf16.msra.mxu0 %v1707_v26  ;;  %1068 = vmatprep.mubr.bf16.mxu1 %v1711_v28 }
  0x4e   :  { %1599 = vmatpush3.bf16.msra.mxu1 %v1707_v26  ;;  %1571 = vmatprep.subr.bf16.mxu0 %v1708_v29 }
  0x4f   :  { %1592 = vmatprep.subr.bf16.mxu1 %v1708_v29 }
  0x51   :  { %1572 = vmatpush3.bf16.msra.mxu0 %v1708_v29 }
  0x52   :  { %1600 = vmatpush3.bf16.msra.mxu1 %v1708_v29  ;;  %1573 = vmatprep.subr.bf16.mxu0 %v1715_v32 }
  0x53   :  { %1004 = vmatmul.mubr.bf16.gmra.mxu0 %v1713_v30  ;;  %1593 = vmatprep.subr.bf16.mxu1 %v1715_v32  ;;  %v1226_v30 = vld [vmem:[%s2203_s2] ss:$0 sm:$0xff] }
  0x54   :  { %1069 = vmatmul.mubr.bf16.gmra.mxu1 %v1714_v31  ;;  %1011 = vmatprep.mubr.bf16.mxu0 %v1717_v33 }
  0x55   :  { %1574 = vmatpush3.bf16.msra.mxu0 %v1715_v32  ;;  %1076 = vmatprep.mubr.bf16.mxu1 %v1719_v34 }
  0x56   :  { %1601 = vmatpush3.bf16.msra.mxu1 %v1715_v32  ;;  %1575 = vmatprep.subr.bf16.mxu0 %v1716_v35 }
  0x57   :  { %1594 = vmatprep.subr.bf16.mxu1 %v1716_v35 }
  0x59   :  { %1576 = vmatpush3.bf16.msra.mxu0 %v1716_v35 }
  0x5a   :  { %1602 = vmatpush3.bf16.msra.mxu1 %v1716_v35  ;;  %1577 = vmatprep.subr.bf16.mxu0 %v1723_v37 }
  0x5b   :  { %1012 = vmatmul.mubr.bf16.gmra.mxu0 %v1721_v36  ;;  %1595 = vmatprep.subr.bf16.mxu1 %v1723_v37 }
  0x5c   :  { %1077 = vmatmul.mubr.bf16.gmra.mxu1 %v1722_v38  ;;  %1581 = vmatprep.mubr.bf16.mxu0 %v1725_v39  ;;  %v2136_v39 = vld [vmem:[%s2204_s3 + $0x8] sm:$0xff]  }
  0x5d   :  { %1578 = vmatpush3.bf16.msra.mxu0 %v1723_v37  ;;  %1585 = vmatprep.mubr.bf16.mxu1 %v1726_v40 }
  0x5e   :  { %1603 = vmatpush3.bf16.msra.mxu1 %v1723_v37  ;;  %1579 = vmatprep.subr.bf16.mxu0 %v1724_v41 }
  0x5f   :  { %1596 = vmatprep.subr.bf16.mxu1 %v1724_v41 }
  0x61   :  { %1580 = vmatpush3.bf16.msra.mxu0 %v1724_v41 }
  0x62   :  { %1604 = vmatpush3.bf16.msra.mxu1 %v1724_v41  ;;  %v2141_v41 = vld [vmem:[%s2204_s3 + $0x18] sm:$0xff]  }
  0x64   :  { %1582 = vmatmul.mubr.bf16.vlgmr.msra.gmra.mxu0 %v1727_v42 }
  0x65   :  { %1586 = vmatmul.mubr.bf16.vlgmr.msra.gmra.mxu1 %v1728_v43 }
  0xe3   :  { %v1409_v44 = vpop.f32.mrf.mxu0 }
  0xe4   :  { %v2078_v45 = vpop.f32.mrf.mxu1 }
  0xe5   :  { %v1410_v46 = vpop.f32.mrf.mxu0 }
  0xe6   :  { %v1450_v47 = vpop.f32.mrf.mxu1  ;;  %v1411_v27 = vadd.f32 %v1410_v46, %v1409_v44 }
  0xe7   :  { %v1412_v48 = vpop.f32.mrf.mxu0  ;;  %v1451_v42 = vadd.f32 %v1450_v47, %v2078_v45 }
  0xe8   :  { %v2080_v49 = vpop.f32.mrf.mxu1  ;;  %v860_v35 = vadd.f32 %v1411_v27, %v1226_v30 }
  0xe9   :  { %v1413_v50 = vpop.f32.mrf.mxu0 }
  0xea   :  { %v2082_v51 = vpop.f32.mrf.mxu1  ;;  %v1414_v36 = vadd.f32 %v1413_v50, %v1412_v48 }
  0xeb   :  { %v1415_v52 = vpop.f32.mrf.mxu0  ;;  %v1454_v45 = vadd.f32 %v2082_v51, %v2080_v49 }
  0xec   :  { %v2084_v53 = vpop.f32.mrf.mxu1 }
  0xed   :  { %v1416_v54 = vpop.f32.mrf.mxu0 }
  0xee   :  { %v2086_v55 = vpop.f32.mrf.mxu1  ;;  %v1417_v31 = vadd.f32 %v1416_v54, %v1415_v52 }
  0xef   :  { %v1418_v56 = vpop.f32.mrf.mxu0 }
  0xf0   :  { %v2088_v57 = vpop.f32.mrf.mxu1  ;;  %v868_v43 = vadd.f32 %v1417_v31, %v1226_v30 }
  0xf1   :  { %v1419_v58 = vpop.f32.mrf.mxu0 }
  0xf2   :  { %v2090_v59 = vpop.f32.mrf.mxu1  ;;  %v1420_v40 = vadd.f32 %v1419_v58, %v1418_v56  ;;  %v1457_v56 = vadd.f32 %v2086_v55, %v2084_v53 }
  0xf3   :  { %v1421_v60 = vpop.f32.mrf.mxu0  ;;  %v1460_v53 = vadd.f32 %v2090_v59, %v2088_v57 }
  0xf4   :  { %v2092_v61 = vpop.f32.mrf.mxu1  ;;  %v871_v47 = vadd.f32 %v1420_v40, %v1226_v30 }
  0xf5   :  { %v1422_v62 = vpop.f32.mrf.mxu0 }
  0xf6   :  { %v2094_v63 = vpop.f32.mrf.mxu1  ;;  %v1423_v44 = vadd.f32 %v1422_v62, %v1421_v60 }
  0xf7   :  { %v2096_v0 = vpop.f32.mrf.mxu0  ;;  %v1463_v49 = vadd.f32 %v2094_v63, %v2092_v61 }
  0xf8   :  { %v2098_v1 = vpop.f32.mrf.mxu1 }
  0xf9   :  { %v1425_v2 = vpop.f32.mrf.mxu0 }
  0xfa   :  { %v2100_v3 = vpop.f32.mrf.mxu1  ;;  %v1426_v31 = vadd.f32 %v1425_v2, %v2096_v0  ;;  %v936_v0 = vadd.f32 %v1460_v53, %v871_v47  ;;  %v2208_v53 = vunpack.c.l.bf16 %v2136_v39 }
  0xfb   :  { %v1427_v4 = vpop.f32.mrf.mxu0 }
  0xfc   :  { %v1467_v5 = vpop.f32.mrf.mxu1 }
  0xfd   :  { %v1428_v6 = vpop.f32.mrf.mxu0 }
  0xfe   :  { %v1468_v7 = vpop.f32.mrf.mxu1  ;;  %v1429_v34 = vadd.f32 %v1428_v6, %v1427_v4  ;;  %v925_v4 = vadd.f32 %v1451_v42, %v860_v35  ;;  %v863_v6 = vadd.f32 %v1414_v36, %v1226_v30 }
  0xff   :  { %v1430_v8 = vpop.f32.mrf.mxu0  ;;  %v1469_v60 = vadd.f32 %v1468_v7, %v1467_v5 }
 0x100   :  { %v2102_v9 = vpop.f32.mrf.mxu1  ;;  %v884_v52 = vadd.f32 %v1429_v34, %v1226_v30 }
 0x101   :  { %v1431_v10 = vpop.f32.mrf.mxu0 }
 0x102   :  { %v2104_v11 = vpop.f32.mrf.mxu1  ;;  %v1432_v46 = vadd.f32 %v1431_v10, %v1430_v8  ;;  %v933_v8 = vadd.f32 %v1457_v56, %v868_v43  ;;  %v876_v10 = vadd.f32 %v1423_v44, %v1226_v30  ;;  %v949_v55 = vadd.f32 %v1469_v60, %v884_v52 }
 0x103   :  { %v1489_v12 = vpop.f32.mrf.mxu0  ;;  %v1472_v51 = vadd.f32 %v2104_v11, %v2102_v9  ;;  %v879_v44 = vadd.f32 %v1426_v31, %v1226_v30  ;;  %v1352_v11 = vld [vmem:[%s2204_s3] sm:$0xff]  }
 0x104   :  { %v2106_v13 = vpop.f32.mrf.mxu1  ;;  %v887_v34 = vadd.f32 %v1432_v46, %v1226_v30  ;;  %v941_v43 = vadd.f32 %v1463_v49, %v876_v10  ;;  %v1353_v56 = vunpack.c.l.bf16 %v1352_v11 }
 0x105   :  { %v1490_v14 = vpop.f32.mrf.mxu0 }
 0x106   :  { %v2108_v15 = vpop.f32.mrf.mxu1  ;;  %v1491_v42 = vadd.f32 %v1490_v14, %v1489_v12  ;;  %v952_v57 = vadd.f32 %v1472_v51, %v887_v34 }
 0x107   :  { %v2110_v16 = vpop.f32.mrf.mxu0  ;;  %v1531_v52 = vadd.f32 %v2108_v15, %v2106_v13  ;;  %v1388_v13 = vld [vmem:[%s2204_s3 + $0x10] sm:$0xff]  }
 0x108   :  { %v2112_v17 = vpop.f32.mrf.mxu1  ;;  %v990_v46 = vadd.f32 %v1491_v42, %v925_v4  ;;  %v1361_v34 = vunpack.c.l.bf16 %v1388_v13 }
 0x109   :  { %v2114_v18 = vpop.f32.mrf.mxu0 }
 0x10a   :  { %v2116_v19 = vpop.f32.mrf.mxu1  ;;  %v1494_v61 = vadd.f32 %v2114_v18, %v2110_v16 }
 0x10b   :  { %2206 = vst [vmem:[#allocation2_spill] sm:$0xff] %v2116_v19  ;;  %v1495_v20 = vpop.f32.mrf.mxu0  ;;  %v928_v19 = vadd.f32 %v1454_v45, %v863_v6 }
 0x10c   :  { %v2118_v21 = vpop.f32.mrf.mxu1 }
 0x10d   :  { %v1496_v22 = vpop.f32.mrf.mxu0 }
 0x10e   :  { %v2120_v23 = vpop.f32.mrf.mxu1  ;;  %v1497_v62 = vadd.f32 %v1496_v22, %v1495_v20 }
 0x10f   :  { %v1498_v24 = vpop.f32.mrf.mxu0  ;;  %v1537_v63 = vadd.f32 %v2120_v23, %v2118_v21 }
 0x110   :  { %v2122_v25 = vpop.f32.mrf.mxu1  ;;  %v998_v2 = vadd.f32 %v1497_v62, %v933_v8 }
 0x111   :  { %v1499_v26 = vpop.f32.mrf.mxu0 }
 0x112   :  { %v2124_v28 = vpop.f32.mrf.mxu1  ;;  %v1500_v22 = vadd.f32 %v1499_v26, %v1498_v24  ;;  %v1466_v24 = vadd.f32 %v2100_v3, %v2098_v1  ;;  %v1063_v18 = vadd.f32 %v1537_v63, %v998_v2 }
 0x113   :  { %v1501_v29 = vpop.f32.mrf.mxu0  ;;  %v1540_v1 = vadd.f32 %v2124_v28, %v2122_v25  ;;  %v1358_v25 = vunpack.c.h.bf16 %v2136_v39 }
 0x114   :  { %v2129_v32 = vpop.f32.mrf.mxu1  ;;  %v944_v4 = vadd.f32 %v1466_v24, %v879_v44 }
 0x115   :  { %v1502_v33 = vpop.f32.mrf.mxu0 }
 0x116   :  { %v2131_v37 = vpop.f32.mrf.mxu1  ;;  %v1503_v5 = vadd.f32 %v1502_v33, %v1501_v29 }
 0x117   :  { %v1504_v38 = vpop.f32.mrf.mxu0  ;;  %v1543_v21 = vadd.f32 %v2131_v37, %v2129_v32  ;;  %v2207_v32 = vld [vmem:[#allocation2_spill] sm:$0xff] }
 0x118   :  { %v2144_v48 = vpop.f32.mrf.mxu1  ;;  %v1006_v26 = vadd.f32 %v1503_v5, %v941_v43  ;;  %v1534_v37 = vadd.f32 %v2207_v32, %v2112_v17  ;;  %v1354_v17 = vunpack.c.h.bf16 %v1352_v11  ;;  %v2209_v5 = vunpack.c.l.bf16 %v2141_v41 }
 0x119   :  { %v1505_v50 = vpop.f32.mrf.mxu0 }
 0x11a   :  { %v2149_v58 = vpop.f32.mrf.mxu1  ;;  %v1506_v29 = vadd.f32 %v1505_v50, %v1504_v38  ;;  %v1055_v50 = vadd.f32 %v1531_v52, %v990_v46  ;;  %v1071_v60 = vadd.f32 %v1543_v21, %v1006_v26 }
 0x11b   :  { %v1507_v27 = vpop.f32.mrf.mxu0  ;;  %v1546_v28 = vadd.f32 %v2149_v58, %v2144_v48 }
 0x11c   :  { %v1547_v35 = vpop.f32.mrf.mxu1  ;;  %v1009_v15 = vadd.f32 %v1506_v29, %v944_v4 }
 0x11d   :  { %v1508_v36 = vpop.f32.mrf.mxu0 }
 0x11e   :  { %v1509_v54 = vadd.f32 %v1508_v36, %v1507_v27  ;;  %v1548_v7 = vpop.f32.mrf.mxu1  ;;  %v993_v27 = vadd.f32 %v1494_v61, %v928_v19  ;;  %v1366_v36 = vunpack.c.h.bf16 %v2141_v41  ;;  %v1074_v2 = vadd.f32 %v1546_v28, %v1009_v15 }
 0x11f   :  { %v1510_v20 = vpop.f32.mrf.mxu0  ;;  %v1549_v59 = vadd.f32 %v1548_v7, %v1547_v35 }
 0x120   :  { %v1014_v40 = vadd.f32 %v1509_v54, %v949_v55  ;;  %v1550_v12 = vpop.f32.mrf.mxu1  ;;  %v1001_v54 = vadd.f32 %v1500_v22, %v936_v0  ;;  %v1058_v51 = vadd.f32 %v1534_v37, %v993_v27  ;;  %v1362_v22 = vunpack.c.h.bf16 %v1388_v13 }
 0x121   :  { %v1511_v14 = vpop.f32.mrf.mxu0 }
 0x122   :  { %v1512_v9 = vadd.f32 %v1511_v14, %v1510_v20  ;;  %v1551_v30 = vpop.f32.mrf.mxu1  ;;  %v1079_v33 = vadd.f32 %v1549_v59, %v1014_v40  ;;  %v1066_v10 = vadd.f32 %v1540_v1, %v1001_v54 }
 0x123   :  { %v1552_v23 = vadd.f32 %v1551_v30, %v1550_v12 }
 0x124   :  { %v1017_v16 = vadd.f32 %v1512_v9, %v952_v57  ;;  %v1583_v6 = vpop.f32.mrf.mxu0 }
 0x125   :  { %v1128_v3 = vadd.f32 %v1583_v6, %v1063_v18  ;;  %v1587_v38 = vpop.f32.mrf.mxu1 }
 0x126   :  { %v1144_v45 = vadd.f32 %v1587_v38, %v1079_v33  ;;  %v1119_v47 = vpop.f32.mrf.mxu0  ;;  %v1082_v62 = vadd.f32 %v1552_v23, %v1017_v16 }
 0x127   :  { %v1120_v8 = vadd.f32 %v1119_v47, %v1055_v50  ;;  %v1135_v19 = vpop.f32.mrf.mxu1  ;;  %v1168_v55 = vadd.f32 %v2208_v53, %v1128_v3 }
 0x128   :  { %v1136_v31 = vadd.f32 %v1135_v19, %v1071_v60  ;;  %v1584_v35 = vpop.f32.mrf.mxu0  ;;  %v1172_v7 = vadd.f32 %v2209_v5, %v1144_v45 }
 0x129   :  { %v1131_v42 = vadd.f32 %v1584_v35, %v1066_v10  ;;  %v1588_v49 = vpop.f32.mrf.mxu1  ;;  %v1166_v48 = vadd.f32 %v1353_v56, %v1120_v8  ;;  %v1176_v39 = vmax.f32 %v1168_v55, 0.0 }
 0x12a   :  { %v1147_v20 = vadd.f32 %v1588_v49, %v1082_v62  ;;  %v1122_v0 = vpop.f32.mrf.mxu0  ;;  %v1170_v44 = vadd.f32 %v1361_v34, %v1136_v31  ;;  %v1180_v46 = vmax.f32 %v1172_v7, 0.0 }
 0x12b   :  { %v1169_v58 = vadd.f32 %v1358_v25, %v1131_v42  ;;  %v1123_v40 = vadd.f32 %v1122_v0, %v1058_v51  ;;  %v1138_v43 = vpop.f32.mrf.mxu1  ;;  %v1174_v9 = vmax.f32 %v1166_v48, 0.0 }
 0x12c   :  { %v1173_v57 = vadd.f32 %v1366_v36, %v1147_v20  ;;  %v1139_v59 = vadd.f32 %v1138_v43, %v1074_v2  ;;  %v1178_v24 = vmax.f32 %v1170_v44, 0.0 }
 0x12d   :  { %v1177_v12 = vmax.f32 %v1169_v58, 0.0  ;;  %v1167_v14 = vadd.f32 %v1354_v17, %v1123_v40 }
 0x12e   :  { %v1181_v61 = vmax.f32 %v1173_v57, 0.0  ;;  %v1171_v63 = vadd.f32 %v1362_v22, %v1139_v59 }
 0x12f   :  { %v1375_v41 = vpack.c.bf16 %v1177_v12, %v1176_v39  ;;  %v1175_v11 = vmax.f32 %v1167_v14, 0.0 }
 0x130   :  { %v1385_v26 = vpack.c.bf16 %v1181_v61, %v1180_v46  ;;  %v1179_v29 = vmax.f32 %v1171_v63, 0.0 }
 0x131   :  { %1390 = vst [vmem:[%s2205_s4 + $0x8] sm:$0xff] %v1375_v41   ;;  %v1370_v30 = vpack.c.bf16 %v1175_v11, %v1174_v9 }
 0x132   :  { %1392 = vst [vmem:[%s2205_s4 + $0x18] sm:$0xff] %v1385_v26   ;;  %v1380_v33 = vpack.c.bf16 %v1179_v29, %v1178_v24 }
 0x133   :  { %1371 = vst [vmem:[%s2205_s4] sm:$0xff] %v1370_v30  }
 0x134   :  { %1391 = vst [vmem:[%s2205_s4 + $0x10] sm:$0xff] %v1380_v33  }

// kernel: _lambda_.36
= control target key start
LH: loop header
LB: loop body
LE: loop exit
PB: predicated region body
PF: predicated region fallthrough
CT: control target
= control target key end

     0   :  { %vm380_vm0 = vcmask 523264   ;;  %s1127_s1 = inlined_call_operand.vmem [shape: bf16[576,128], index: 1, kind: input, shape index: {}]   ;;  %s1128_s0 = inlined_call_operand.vmem [shape: bf16[32,576], index: 0, kind: input, shape index: {}]   ;;  %s1129_s3 = inlined_call_operand.vmem [shape: bf16[64,128], index: 3, kind: input, shape index: {}]   ;;  %s1130_s2 = inlined_call_operand.vmem [shape: f32[1,128], index: 2, kind: input, shape index: {}]   ;;  %s1131_s4 = inlined_call_operand.vmem [shape: f32[1,128], index: 4, kind: input, shape index: {}]   ;;  %s1132_s6 = inlined_call_operand.vmem [shape: bf16[32,128], index: 6, kind: output, shape index: {1}]   ;;  %s1133_s5 = inlined_call_operand.vmem [shape: bf16[32,128], index: 5, kind: output, shape index: {0}]  }
   0x1   :  { %v866_v0 = vld [vmem:[%s1127_s1 + $0x78] sm:$0xff]   ;;  %v870_v4 = vld [vmem:[%s1127_s1 + $0x70] sm:$0xff]   ;;  %v874_v8 = vld [vmem:[%s1127_s1 + $0x68] sm:$0xff]  }
   0x2   :  { %v867_v1 = vld [vmem:[%s1127_s1 + $0xf8] sm:$0xff]   ;;  %774 = vmatprep.subr.bf16.mxu0 %v866_v0  ;;  %v871_v5 = vld [vmem:[%s1127_s1 + $0xf0] sm:$0xff]   ;;  %v875_v9 = vld [vmem:[%s1127_s1 + $0xe8] sm:$0xff]  }
   0x3   :  { %v868_v2 = vld [vmem:[%s1127_s1 + $0x38] sm:$0xff]   ;;  %802 = vmatprep.subr.bf16.mxu1 %v867_v1  ;;  %v872_v6 = vld [vmem:[%s1127_s1 + $0x30] sm:$0xff]   ;;  %v876_v10 = vld [vmem:[%s1127_s1 + $0x28] sm:$0xff]  }
   0x4   :  { %v869_v3 = vld [vmem:[%s1127_s1 + $0xb8] sm:$0xff]   ;;  %775 = vmatpush3.bf16.msra.mxu0 %v868_v2  ;;  %v873_v7 = vld [vmem:[%s1127_s1 + $0xb0] sm:$0xff]   ;;  %v877_v11 = vld [vmem:[%s1127_s1 + $0xa8] sm:$0xff]  }
   0x5   :  { %803 = vmatpush3.bf16.msra.mxu1 %v869_v3  ;;  %776 = vmatprep.subr.bf16.mxu0 %v870_v4  ;;  %v878_v12 = vld [vmem:[%s1127_s1 + $0x60] sm:$0xff]   ;;  %v882_v16 = vld [vmem:[%s1127_s1 + $0x58] sm:$0xff]   ;;  %v886_v20 = vld [vmem:[%s1127_s1 + $0x50] sm:$0xff]  }
   0x6   :  { %804 = vmatprep.subr.bf16.mxu1 %v871_v5  ;;  %v879_v13 = vld [vmem:[%s1127_s1 + $0xe0] sm:$0xff]   ;;  %v883_v17 = vld [vmem:[%s1127_s1 + $0xd8] sm:$0xff]   ;;  %v887_v21 = vld [vmem:[%s1127_s1 + $0xd0] sm:$0xff]  }
   0x7   :  { %v880_v14 = vld [vmem:[%s1127_s1 + $0x20] sm:$0xff]   ;;  %v884_v18 = vld [vmem:[%s1127_s1 + $0x18] sm:$0xff]   ;;  %v888_v22 = vld [vmem:[%s1127_s1 + $0x10] sm:$0xff]  }
   0x8   :  { %777 = vmatpush3.bf16.msra.mxu0 %v872_v6  ;;  %v881_v15 = vld [vmem:[%s1127_s1 + $0xa0] sm:$0xff]   ;;  %v885_v19 = vld [vmem:[%s1127_s1 + $0x98] sm:$0xff]   ;;  %v889_v23 = vld [vmem:[%s1127_s1 + $0x90] sm:$0xff]  }
   0x9   :  { %805 = vmatpush3.bf16.msra.mxu1 %v873_v7  ;;  %778 = vmatprep.subr.bf16.mxu0 %v874_v8  ;;  %v890_v24 = vld [vmem:[%s1127_s1 + $0x48] sm:$0xff]   ;;  %v894_v28 = vld [vmem:[%s1127_s1 + $0x40] sm:$0xff]   ;;  %v904_v36 = vld [vmem:[%s1127_s1 + $0x118] sm:$0xff]  }
   0xa   :  { %806 = vmatprep.subr.bf16.mxu1 %v875_v9  ;;  %v891_v25 = vld [vmem:[%s1127_s1 + $0xc8] sm:$0xff]   ;;  %v895_v29 = vld [vmem:[%s1127_s1 + $0xc0] sm:$0xff]   ;;  %v905_v37 = vld [vmem:[%s1129_s3 + $0x18] sm:$0xff]  }
   0xb   :  { %v892_v26 = vld [vmem:[%s1127_s1 + $0x8] sm:$0xff]   ;;  %v896_v30 = vld [vmem:[%s1127_s1] sm:$0xff]   ;;  %v906_v38 = vld [vmem:[%s1127_s1 + $0x110] sm:$0xff]  }
   0xc   :  { %779 = vmatpush3.bf16.msra.mxu0 %v876_v10  ;;  %v893_v27 = vld [vmem:[%s1127_s1 + $0x88] sm:$0xff]   ;;  %v897_v31 = vld [vmem:[%s1127_s1 + $0x80] sm:$0xff]   ;;  %v907_v39 = vld [vmem:[%s1129_s3 + $0x10] sm:$0xff]  }
   0xd   :  { %807 = vmatpush3.bf16.msra.mxu1 %v877_v11  ;;  %780 = vmatprep.subr.bf16.mxu0 %v878_v12  ;;  %v898_v32 = vld [vmem:[%s1128_s0] ss:$20 sps:$4 sm:$0xff]   ;;  %v900_v33 = vld [vmem:[%s1128_s0 + $0x4] ss:$20 sps:$4 sm:$0xff]   ;;  %v901_v34 = vld [vmem:[%s1128_s0 + $0x8] ss:$20 sps:$4 sm:$0xff]  }
   0xe   :  { %808 = vmatprep.subr.bf16.mxu1 %v879_v13  ;;  %v903_v35 = vld [vmem:[%s1128_s0 + $0xc] ss:$20 sps:$4 sm:$0xff]   ;;  %419 = vmatprep.mubr.bf16.mxu0 %v900_v33  ;;  %v910_v41 = vld [vmem:[%s1128_s0 + $0x34] ss:$20 sps:$4 sm:$0xff]   ;;  %v913_v43 = vld [vmem:[%s1128_s0 + $0x30] ss:$20 sps:$4 sm:$0xff]  }
   0xf   :  { %468 = vmatprep.mubr.bf16.mxu1 %v903_v35  ;;  %v908_v40 = vld [vmem:[%s1128_s0 + $0x2c] ss:$20 sps:$4 sm:$0xff]   ;;  %v912_v42 = vld [vmem:[%s1128_s0 + $0x28] ss:$20 sps:$4 sm:$0xff]   ;;  %v918_v48 = vld [vmem:[%s1128_s0 + $0x10] ss:$20 sps:$4 sm:$0xff]  }
  0x10   :  { %781 = vmatpush3.bf16.msra.mxu0 %v880_v14  ;;  %v914_v44 = vld [vmem:[%s1127_s1 + $0x108] sm:$0xff]   ;;  %v916_v46 = vld [vmem:[%s1127_s1 + $0x100] sm:$0xff]  }
  0x11   :  { %809 = vmatpush3.bf16.msra.mxu1 %v881_v15  ;;  %782 = vmatprep.subr.bf16.mxu0 %v882_v16  ;;  %v915_v45 = vld [vmem:[%s1129_s3 + $0x8] sm:$0xff]   ;;  %v917_v47 = vld [vmem:[%s1129_s3] sm:$0xff]  }
  0x12   :  { %810 = vmatprep.subr.bf16.mxu1 %v883_v17  ;;  %v919_v49 = vld [vmem:[%s1128_s0 + $0x38] ss:$20 sps:$4 sm:$0xff]   ;;  %v680_v63 = vld [vmem:[%s1130_s2] ss:$0 sm:$0xff] }
  0x14   :  { %783 = vmatpush3.bf16.msra.mxu0 %v884_v18 }
  0x15   :  { %811 = vmatpush3.bf16.msra.mxu1 %v885_v19  ;;  %784 = vmatprep.subr.bf16.mxu0 %v886_v20 }
  0x16   :  { %812 = vmatprep.subr.bf16.mxu1 %v887_v21  ;;  %v733_v21 = vld [vmem:[%s1131_s4] ss:$0 sm:$0xff] }
  0x18   :  { %785 = vmatpush3.bf16.msra.mxu0 %v888_v22 }
  0x19   :  { %813 = vmatpush3.bf16.msra.mxu1 %v889_v23  ;;  %786 = vmatprep.subr.bf16.mxu0 %v890_v24 }
  0x1a   :  { %814 = vmatprep.subr.bf16.mxu1 %v891_v25 }
  0x1c   :  { %787 = vmatpush3.bf16.msra.mxu0 %v892_v26 }
  0x1d   :  { %815 = vmatpush3.bf16.msra.mxu1 %v893_v27  ;;  %788 = vmatprep.subr.bf16.mxu0 %v894_v28 }
  0x1e   :  { %816 = vmatprep.subr.bf16.mxu1 %v895_v29 }
  0x20   :  { %789 = vmatpush3.bf16.msra.mxu0 %v896_v30 }
  0x21   :  { %817 = vmatpush3.bf16.msra.mxu1 %v897_v31  ;;  %842 = vmatprep.subr.bf16.mxu0 %v904_v36 }
  0x22   :  { %854 = vmatprep.subr.bf16.mxu1 %v905_v37 }
  0x23   :  { %420 = vmatmul.mubr.bf16.vlgmr.msra.gmra.mxu0 %v898_v32 }
  0x24   :  { %469 = vmatmul.mubr.bf16.vlgmr.msra.gmra.mxu1 %v901_v34  ;;  %843 = vmatpush3.bf16.msra.mxu0 %v904_v36 }
  0x25   :  { %855 = vmatpush3.bf16.msra.mxu1 %v905_v37  ;;  %844 = vmatprep.subr.bf16.mxu0 %v906_v38 }
  0x26   :  { %856 = vmatprep.subr.bf16.mxu1 %v907_v39  ;;  %427 = vmatprep.mubr.bf16.mxu0 %v908_v40 }
  0x27   :  { %476 = vmatprep.mubr.bf16.mxu1 %v910_v41 }
  0x28   :  { %845 = vmatpush3.bf16.msra.mxu0 %v906_v38 }
  0x29   :  { %857 = vmatpush3.bf16.msra.mxu1 %v907_v39  ;;  %846 = vmatprep.subr.bf16.mxu0 %v914_v44 }
  0x2a   :  { %858 = vmatprep.subr.bf16.mxu1 %v915_v45 }
  0x2b   :  { %428 = vmatmul.mubr.bf16.gmra.mxu0 %v912_v42 }
  0x2c   :  { %477 = vmatmul.mubr.bf16.gmra.mxu1 %v913_v43  ;;  %847 = vmatpush3.bf16.msra.mxu0 %v914_v44 }
  0x2d   :  { %862 = vmatprep.mubr.msk.bf16.mxu1 %vm380_vm0, %v901_v34  ;;  %859 = vmatpush3.bf16.msra.mxu1 %v915_v45 }
  0x2e   :  { %848 = vmatprep.subr.bf16.mxu0 %v916_v46  ;;  %860 = vmatprep.subr.bf16.mxu1 %v917_v47 }
  0x2f   :  { %850 = vmatprep.mubr.msk.bf16.mxu0 %vm380_vm0, %v918_v48 }
  0x30   :  { %849 = vmatpush3.bf16.msra.mxu0 %v916_v46 }
  0x31   :  { %861 = vmatpush3.bf16.msra.mxu1 %v917_v47 }
  0x33   :  { %851 = vmatmul.mubr.msk.bf16.vlgmr.msra.gmra.mxu0 %vm380_vm0, %v919_v49 }
  0x34   :  { %863 = vmatmul.mubr.msk.bf16.vlgmr.msra.gmra.mxu1 %vm380_vm0, %v913_v43 }
  0xe3   :  { %v790_v50 = vpop.f32.mrf.mxu0 }
  0xe4   :  { %v818_v51 = vpop.f32.mrf.mxu1 }
  0xe5   :  { %v791_v52 = vpop.f32.mrf.mxu0 }
  0xe6   :  { %v819_v53 = vpop.f32.mrf.mxu1  ;;  %v792_v0 = vadd.f32 %v791_v52, %v790_v50 }
  0xe7   :  { %v793_v54 = vpop.f32.mrf.mxu0  ;;  %v820_v14 = vadd.f32 %v819_v53, %v818_v51 }
  0xe8   :  { %v821_v55 = vpop.f32.mrf.mxu1  ;;  %v422_v9 = vadd.f32 %v792_v0, %v680_v63 }
  0xe9   :  { %v794_v56 = vpop.f32.mrf.mxu0 }
  0xea   :  { %v822_v57 = vpop.f32.mrf.mxu1  ;;  %v795_v4 = vadd.f32 %v794_v56, %v793_v54  ;;  %v471_v22 = vadd.f32 %v820_v14, %v422_v9 }
  0xeb   :  { %v796_v58 = vpop.f32.mrf.mxu0  ;;  %v823_v19 = vadd.f32 %v822_v57, %v821_v55 }
  0xec   :  { %v824_v59 = vpop.f32.mrf.mxu1  ;;  %v425_v15 = vadd.f32 %v795_v4, %v680_v63 }
  0xed   :  { %v797_v60 = vpop.f32.mrf.mxu0 }
  0xee   :  { %v798_v61 = vadd.f32 %v797_v60, %v796_v58  ;;  %v825_v62 = vpop.f32.mrf.mxu1  ;;  %v474_v28 = vadd.f32 %v823_v19, %v425_v15 }
  0xef   :  { %v799_v1 = vpop.f32.mrf.mxu0  ;;  %v826_v5 = vadd.f32 %v825_v62, %v824_v59 }
  0xf0   :  { %v430_v2 = vadd.f32 %v798_v61, %v680_v63  ;;  %v827_v3 = vpop.f32.mrf.mxu1 }
  0xf1   :  { %v800_v6 = vpop.f32.mrf.mxu0 }
  0xf2   :  { %v801_v7 = vadd.f32 %v800_v6, %v799_v1  ;;  %v828_v8 = vpop.f32.mrf.mxu1  ;;  %v479_v10 = vadd.f32 %v826_v5, %v430_v2 }
  0xf3   :  { %v829_v12 = vadd.f32 %v828_v8, %v827_v3  ;;  %v852_v13 = vpop.f32.mrf.mxu0 }
  0xf4   :  { %v433_v11 = vadd.f32 %v801_v7, %v680_v63  ;;  %v864_v16 = vpop.f32.mrf.mxu1  ;;  %v528_v20 = vadd.f32 %v852_v13, %v479_v10 }
  0xf5   :  { %v519_v17 = vpop.f32.mrf.mxu0  ;;  %v646_v29 = vadd.f32 %v864_v16, %v733_v21 }
  0xf6   :  { %v482_v18 = vadd.f32 %v829_v12, %v433_v11  ;;  %v637_v23 = vpop.f32.mrf.mxu1  ;;  %v520_v25 = vadd.f32 %v519_v17, %v471_v22  ;;  %v536_v32 = vmax.f32 %v528_v20, 0.0 }
  0xf7   :  { %v853_v24 = vpop.f32.mrf.mxu0  ;;  %v638_v36 = vadd.f32 %v733_v21, %v637_v23 }
  0xf8   :  { %v531_v26 = vadd.f32 %v853_v24, %v482_v18  ;;  %v865_v27 = vpop.f32.mrf.mxu1  ;;  %v534_v39 = vmax.f32 %v520_v25, 0.0 }
  0xf9   :  { %v649_v30 = vadd.f32 %v865_v27, %v733_v21  ;;  %v522_v31 = vpop.f32.mrf.mxu0 }
  0xfa   :  { %v537_v33 = vmax.f32 %v531_v26, 0.0  ;;  %v523_v34 = vadd.f32 %v522_v31, %v474_v28  ;;  %v640_v35 = vpop.f32.mrf.mxu1 }
  0xfb   :  { %v770_v37 = vpack.c.bf16 %v649_v30, %v646_v29  ;;  %v641_v38 = vadd.f32 %v733_v21, %v640_v35 }
  0xfc   :  { %v760_v40 = vpack.c.bf16 %v537_v33, %v536_v32  ;;  %v535_v41 = vmax.f32 %v523_v34, 0.0 }
  0xfd   :  { %773 = vst [vmem:[%s1132_s6 + $0x8] sm:$0xff] %v770_v37   ;;  %v765_v42 = vpack.c.bf16 %v641_v38, %v638_v36 }
  0xfe   :  { %772 = vst [vmem:[%s1133_s5 + $0x8] sm:$0xff] %v760_v40   ;;  %v755_v43 = vpack.c.bf16 %v535_v41, %v534_v39 }
  0xff   :  { %766 = vst [vmem:[%s1132_s6] sm:$0xff] %v765_v42  }
 0x100   :  { %756 = vst [vmem:[%s1133_s5] sm:$0xff] %v755_v43  }

// kernel: _lambda_.38
= control target key start
LH: loop header
LB: loop body
LE: loop exit
PB: predicated region body
PF: predicated region fallthrough
CT: control target
= control target key end

     0   :  { %s1632_s1 = inlined_call_operand.vmem [shape: bf16[1152,128], index: 1, kind: input, shape index: {}]   ;;  %s1633_s0 = inlined_call_operand.vmem [shape: bf16[32,1152], index: 0, kind: input, shape index: {}]   ;;  %s1634_s2 = inlined_call_operand.vmem [shape: f32[1,128], index: 2, kind: input, shape index: {}]   ;;  %s1635_s3 = inlined_call_operand.vmem [shape: bf16[32,128], index: 3, kind: output, shape index: {}]  }
   0x1   :  { %v1235_v0 = vld [vmem:[%s1632_s1 + $0x78] sm:$0xff]   ;;  %v1239_v4 = vld [vmem:[%s1632_s1 + $0x70] sm:$0xff]   ;;  %v1243_v8 = vld [vmem:[%s1632_s1 + $0x68] sm:$0xff]  }
   0x2   :  { %v1236_v1 = vld [vmem:[%s1632_s1 + $0x38] sm:$0xff]   ;;  %1093 = vmatprep.subr.bf16.mxu0 %v1235_v0  ;;  %v1240_v5 = vld [vmem:[%s1632_s1 + $0x30] sm:$0xff]   ;;  %v1244_v9 = vld [vmem:[%s1632_s1 + $0x28] sm:$0xff]  }
   0x3   :  { %v1237_v2 = vld [vmem:[%s1632_s1 + $0xf8] sm:$0xff]   ;;  %1094 = vmatpush3.bf16.msra.mxu0 %v1236_v1  ;;  %v1241_v6 = vld [vmem:[%s1632_s1 + $0xf0] sm:$0xff]   ;;  %v1245_v10 = vld [vmem:[%s1632_s1 + $0xe8] sm:$0xff]  }
   0x4   :  { %v1238_v3 = vld [vmem:[%s1632_s1 + $0xb8] sm:$0xff]   ;;  %1121 = vmatprep.subr.bf16.mxu1 %v1237_v2  ;;  %1095 = vmatprep.subr.bf16.mxu0 %v1239_v4  ;;  %v1242_v7 = vld [vmem:[%s1632_s1 + $0xb0] sm:$0xff]   ;;  %v1246_v11 = vld [vmem:[%s1632_s1 + $0xa8] sm:$0xff]  }
   0x5   :  { %1122 = vmatpush3.bf16.msra.mxu1 %v1238_v3  ;;  %v1247_v12 = vld [vmem:[%s1632_s1 + $0x60] sm:$0xff]   ;;  %v1251_v16 = vld [vmem:[%s1632_s1 + $0x58] sm:$0xff]   ;;  %v1255_v20 = vld [vmem:[%s1632_s1 + $0x50] sm:$0xff]  }
   0x6   :  { %1123 = vmatprep.subr.bf16.mxu1 %v1241_v6  ;;  %v1248_v13 = vld [vmem:[%s1632_s1 + $0x20] sm:$0xff]   ;;  %v1252_v17 = vld [vmem:[%s1632_s1 + $0x18] sm:$0xff]   ;;  %v1256_v21 = vld [vmem:[%s1632_s1 + $0x10] sm:$0xff]  }
   0x7   :  { %1096 = vmatpush3.bf16.msra.mxu0 %v1240_v5  ;;  %v1249_v14 = vld [vmem:[%s1632_s1 + $0xe0] sm:$0xff]   ;;  %v1253_v18 = vld [vmem:[%s1632_s1 + $0xd8] sm:$0xff]   ;;  %v1257_v22 = vld [vmem:[%s1632_s1 + $0xd0] sm:$0xff]  }
   0x8   :  { %1097 = vmatprep.subr.bf16.mxu0 %v1243_v8  ;;  %v1250_v15 = vld [vmem:[%s1632_s1 + $0xa0] sm:$0xff]   ;;  %v1254_v19 = vld [vmem:[%s1632_s1 + $0x98] sm:$0xff]   ;;  %v1258_v23 = vld [vmem:[%s1632_s1 + $0x90] sm:$0xff]  }
   0x9   :  { %1124 = vmatpush3.bf16.msra.mxu1 %v1242_v7  ;;  %v1259_v24 = vld [vmem:[%s1632_s1 + $0x48] sm:$0xff]   ;;  %v1263_v28 = vld [vmem:[%s1632_s1 + $0x40] sm:$0xff]   ;;  %v1270_v34 = vld [vmem:[%s1632_s1 + $0x178] sm:$0xff]  }
   0xa   :  { %1125 = vmatprep.subr.bf16.mxu1 %v1245_v10  ;;  %v1260_v25 = vld [vmem:[%s1632_s1 + $0x8] sm:$0xff]   ;;  %v1264_v29 = vld [vmem:[%s1632_s1] sm:$0xff]   ;;  %v1274_v37 = vld [vmem:[%s1632_s1 + $0x138] sm:$0xff]  }
   0xb   :  { %1098 = vmatpush3.bf16.msra.mxu0 %v1244_v9  ;;  %v1261_v26 = vld [vmem:[%s1632_s1 + $0xc8] sm:$0xff]   ;;  %v1265_v30 = vld [vmem:[%s1632_s1 + $0xc0] sm:$0xff]   ;;  %v1275_v38 = vld [vmem:[%s1632_s1 + $0x1f8] sm:$0xff]  }
   0xc   :  { %1099 = vmatprep.subr.bf16.mxu0 %v1247_v12  ;;  %v1262_v27 = vld [vmem:[%s1632_s1 + $0x88] sm:$0xff]   ;;  %v1266_v31 = vld [vmem:[%s1633_s0] ss:$36 sps:$4 sm:$0xff]   ;;  %v1276_v39 = vld [vmem:[%s1632_s1 + $0x1b8] sm:$0xff]  }
   0xd   :  { %1126 = vmatpush3.bf16.msra.mxu1 %v1246_v11  ;;  %v1268_v32 = vld [vmem:[%s1633_s0 + $0x4] ss:$36 sps:$4 sm:$0xff]   ;;  %v1273_v36 = vld [vmem:[%s1633_s0 + $0xc] ss:$36 sps:$4 sm:$0xff]   ;;  %v1289_v52 = vld [vmem:[%s1632_s1 + $0x158] sm:$0xff]  }
   0xe   :  { %1127 = vmatprep.subr.bf16.mxu1 %v1249_v14  ;;  %v1269_v33 = vld [vmem:[%s1632_s1 + $0x80] sm:$0xff]   ;;  %742 = vmatprep.mubr.bf16.mxu0 %v1268_v32  ;;  %v1271_v35 = vld [vmem:[%s1633_s0 + $0x8] ss:$36 sps:$4 sm:$0xff]   ;;  %v1277_v40 = vld [vmem:[%s1632_s1 + $0x170] sm:$0xff]  }
   0xf   :  { %1100 = vmatpush3.bf16.msra.mxu0 %v1248_v13  ;;  %791 = vmatprep.mubr.bf16.mxu1 %v1273_v36  ;;  %v1278_v41 = vld [vmem:[%s1632_s1 + $0x130] sm:$0xff]   ;;  %v1281_v44 = vld [vmem:[%s1632_s1 + $0x168] sm:$0xff]   ;;  %v1285_v48 = vld [vmem:[%s1632_s1 + $0x160] sm:$0xff]  }
  0x10   :  { %1101 = vmatprep.subr.bf16.mxu0 %v1251_v16  ;;  %v1279_v42 = vld [vmem:[%s1632_s1 + $0x1f0] sm:$0xff]   ;;  %v1282_v45 = vld [vmem:[%s1632_s1 + $0x128] sm:$0xff]   ;;  %v1286_v49 = vld [vmem:[%s1632_s1 + $0x120] sm:$0xff]  }
  0x11   :  { %1128 = vmatpush3.bf16.msra.mxu1 %v1250_v15  ;;  %v1280_v43 = vld [vmem:[%s1632_s1 + $0x1b0] sm:$0xff]   ;;  %v1283_v46 = vld [vmem:[%s1632_s1 + $0x1e8] sm:$0xff]   ;;  %v1287_v50 = vld [vmem:[%s1632_s1 + $0x1e0] sm:$0xff]  }
  0x12   :  { %1129 = vmatprep.subr.bf16.mxu1 %v1253_v18  ;;  %v1284_v47 = vld [vmem:[%s1632_s1 + $0x1a8] sm:$0xff]   ;;  %v1288_v51 = vld [vmem:[%s1632_s1 + $0x1a0] sm:$0xff]   ;;  %v1290_v53 = vld [vmem:[%s1632_s1 + $0x118] sm:$0xff]  }
  0x13   :  { %1102 = vmatpush3.bf16.msra.mxu0 %v1252_v17  ;;  %v1291_v54 = vld [vmem:[%s1633_s0 + $0x4c] ss:$36 sps:$4 sm:$0xff]   ;;  %v1293_v55 = vld [vmem:[%s1632_s1 + $0x1d8] sm:$0xff]   ;;  %v1307_v4 = vld [vmem:[%s1632_s1 + $0x140] sm:$0xff]  }
  0x14   :  { %1103 = vmatprep.subr.bf16.mxu0 %v1255_v20  ;;  %v1294_v56 = vld [vmem:[%s1633_s0 + $0x48] ss:$36 sps:$4 sm:$0xff]   ;;  %v1295_v57 = vld [vmem:[%s1632_s1 + $0x198] sm:$0xff]   ;;  %v1298_v59 = vld [vmem:[%s1632_s1 + $0x150] sm:$0xff]  }
  0x15   :  { %1130 = vmatpush3.bf16.msra.mxu1 %v1254_v19  ;;  %v1296_v58 = vld [vmem:[%s1633_s0 + $0x54] ss:$36 sps:$4 sm:$0xff]   ;;  %v1303_v0 = vld [vmem:[%s1632_s1 + $0x148] sm:$0xff]   ;;  %v1308_v5 = vld [vmem:[%s1632_s1 + $0x100] sm:$0xff]  }
  0x16   :  { %1131 = vmatprep.subr.bf16.mxu1 %v1257_v22  ;;  %v1299_v60 = vld [vmem:[%s1633_s0 + $0x50] ss:$36 sps:$4 sm:$0xff]   ;;  %v1304_v1 = vld [vmem:[%s1632_s1 + $0x108] sm:$0xff]   ;;  %v1309_v6 = vld [vmem:[%s1632_s1 + $0x1c0] sm:$0xff]  }
  0x17   :  { %1104 = vmatpush3.bf16.msra.mxu0 %v1256_v21  ;;  %v1300_v61 = vld [vmem:[%s1632_s1 + $0x110] sm:$0xff]   ;;  %v1305_v2 = vld [vmem:[%s1632_s1 + $0x1c8] sm:$0xff]   ;;  %v1313_v9 = vld [vmem:[%s1632_s1 + $0x180] sm:$0xff]  }
  0x18   :  { %1105 = vmatprep.subr.bf16.mxu0 %v1259_v24  ;;  %v1301_v62 = vld [vmem:[%s1632_s1 + $0x1d0] sm:$0xff]   ;;  %v1306_v3 = vld [vmem:[%s1632_s1 + $0x188] sm:$0xff]   ;;  %v1314_v10 = vld [vmem:[%s1632_s1 + $0x238] sm:$0xff]  }
  0x19   :  { %1132 = vmatpush3.bf16.msra.mxu1 %v1258_v23  ;;  %v1302_v63 = vld [vmem:[%s1632_s1 + $0x190] sm:$0xff]   ;;  %v1315_v11 = vld [vmem:[%s1633_s0 + $0x18] ss:$36 sps:$4 sm:$0xff]   ;;  %v1322_v16 = vld [vmem:[%s1632_s1 + $0x228] sm:$0xff]  }
  0x1a   :  { %1133 = vmatprep.subr.bf16.mxu1 %v1261_v26  ;;  %v1310_v7 = vld [vmem:[%s1633_s0 + $0x10] ss:$36 sps:$4 sm:$0xff]   ;;  %v1317_v12 = vld [vmem:[%s1633_s0 + $0x1c] ss:$36 sps:$4 sm:$0xff]   ;;  %v1323_v17 = vld [vmem:[%s1633_s0 + $0x64] ss:$36 sps:$4 sm:$0xff]  }
  0x1b   :  { %1106 = vmatpush3.bf16.msra.mxu0 %v1260_v25  ;;  %v1312_v8 = vld [vmem:[%s1633_s0 + $0x14] ss:$36 sps:$4 sm:$0xff]   ;;  %v1319_v14 = vld [vmem:[%s1633_s0 + $0x5c] ss:$36 sps:$4 sm:$0xff]   ;;  %v1329_v23 = vld [vmem:[%s1632_s1 + $0x208] sm:$0xff]  }
  0x1c   :  { %1107 = vmatprep.subr.bf16.mxu0 %v1263_v28  ;;  %v1318_v13 = vld [vmem:[%s1632_s1 + $0x230] sm:$0xff]   ;;  %v1321_v15 = vld [vmem:[%s1633_s0 + $0x58] ss:$36 sps:$4 sm:$0xff]   ;;  %v1325_v18 = vld [vmem:[%s1633_s0 + $0x60] ss:$36 sps:$4 sm:$0xff]  }
  0x1d   :  { %1134 = vmatpush3.bf16.msra.mxu1 %v1262_v27  ;;  %v1326_v19 = vld [vmem:[%s1632_s1 + $0x220] sm:$0xff]   ;;  %v1327_v20 = vld [vmem:[%s1632_s1 + $0x218] sm:$0xff]   ;;  %v1328_v22 = vld [vmem:[%s1632_s1 + $0x210] sm:$0xff]  }
  0x1e   :  { %1135 = vmatprep.subr.bf16.mxu1 %v1265_v30  ;;  %v1331_v21 = vld [vmem:[%s1633_s0 + $0x20] ss:$36 sps:$4 sm:$0xff]   ;;  %v1332_v25 = vld [vmem:[%s1633_s0 + $0x68] ss:$36 sps:$4 sm:$0xff]  }
  0x1f   :  { %1108 = vmatpush3.bf16.msra.mxu0 %v1264_v29  ;;  %v1330_v24 = vld [vmem:[%s1632_s1 + $0x200] sm:$0xff]  }
  0x20   :  { %1149 = vmatprep.subr.bf16.mxu0 %v1270_v34 }
  0x21   :  { %1136 = vmatpush3.bf16.msra.mxu1 %v1269_v33 }
  0x22   :  { %743 = vmatmul.mubr.bf16.vlgmr.msra.gmra.mxu0 %v1266_v31  ;;  %1177 = vmatprep.subr.bf16.mxu1 %v1275_v38 }
  0x23   :  { %1150 = vmatpush3.bf16.msra.mxu0 %v1274_v37  ;;  %750 = vmatprep.mubr.bf16.mxu0 %v1291_v54 }
  0x24   :  { %792 = vmatmul.mubr.bf16.vlgmr.msra.gmra.mxu1 %v1271_v35  ;;  %1151 = vmatprep.subr.bf16.mxu0 %v1277_v40 }
  0x25   :  { %1178 = vmatpush3.bf16.msra.mxu1 %v1276_v39  ;;  %799 = vmatprep.mubr.bf16.mxu1 %v1296_v58 }
  0x26   :  { %1179 = vmatprep.subr.bf16.mxu1 %v1279_v42 }
  0x27   :  { %1152 = vmatpush3.bf16.msra.mxu0 %v1278_v41 }
  0x28   :  { %1153 = vmatprep.subr.bf16.mxu0 %v1281_v44 }
  0x29   :  { %1180 = vmatpush3.bf16.msra.mxu1 %v1280_v43 }
  0x2a   :  { %1181 = vmatprep.subr.bf16.mxu1 %v1283_v46  ;;  %751 = vmatmul.mubr.bf16.gmra.mxu0 %v1294_v56 }
  0x2b   :  { %1154 = vmatpush3.bf16.msra.mxu0 %v1282_v45  ;;  %840 = vmatprep.mubr.bf16.mxu0 %v1312_v8 }
  0x2c   :  { %1155 = vmatprep.subr.bf16.mxu0 %v1285_v48  ;;  %800 = vmatmul.mubr.bf16.gmra.mxu1 %v1299_v60 }
  0x2d   :  { %1182 = vmatpush3.bf16.msra.mxu1 %v1284_v47  ;;  %889 = vmatprep.mubr.bf16.mxu1 %v1317_v12 }
  0x2e   :  { %1183 = vmatprep.subr.bf16.mxu1 %v1287_v50 }
  0x2f   :  { %1156 = vmatpush3.bf16.msra.mxu0 %v1286_v49 }
  0x30   :  { %1157 = vmatprep.subr.bf16.mxu0 %v1289_v52 }
  0x31   :  { %1184 = vmatpush3.bf16.msra.mxu1 %v1288_v51 }
  0x32   :  { %1185 = vmatprep.subr.bf16.mxu1 %v1293_v55 }
  0x33   :  { %1158 = vmatpush3.bf16.msra.mxu0 %v1290_v53 }
  0x34   :  { %1159 = vmatprep.subr.bf16.mxu0 %v1298_v59 }
  0x35   :  { %1186 = vmatpush3.bf16.msra.mxu1 %v1295_v57  ;;  %v983_v57 = vld [vmem:[%s1634_s2] ss:$0 sm:$0xff] }
  0x36   :  { %1187 = vmatprep.subr.bf16.mxu1 %v1301_v62 }
  0x37   :  { %1160 = vmatpush3.bf16.msra.mxu0 %v1300_v61 }
  0x38   :  { %1161 = vmatprep.subr.bf16.mxu0 %v1303_v0 }
  0x39   :  { %1188 = vmatpush3.bf16.msra.mxu1 %v1302_v63 }
  0x3a   :  { %1189 = vmatprep.subr.bf16.mxu1 %v1305_v2 }
  0x3b   :  { %1162 = vmatpush3.bf16.msra.mxu0 %v1304_v1 }
  0x3c   :  { %1163 = vmatprep.subr.bf16.mxu0 %v1307_v4 }
  0x3d   :  { %1190 = vmatpush3.bf16.msra.mxu1 %v1306_v3 }
  0x3e   :  { %1191 = vmatprep.subr.bf16.mxu1 %v1309_v6 }
  0x3f   :  { %1164 = vmatpush3.bf16.msra.mxu0 %v1308_v5 }
  0x40   :  { %1215 = vmatprep.subr.bf16.mxu0 %v1314_v10 }
  0x41   :  { %1192 = vmatpush3.bf16.msra.mxu1 %v1313_v9 }
  0x42   :  { %841 = vmatmul.mubr.bf16.vlgmr.msra.gmra.mxu0 %v1310_v7 }
  0x43   :  { %1216 = vmatpush3.bf16.msra.mxu0 %v1314_v10  ;;  %848 = vmatprep.mubr.bf16.mxu0 %v1319_v14 }
  0x44   :  { %890 = vmatmul.mubr.bf16.vlgmr.msra.gmra.mxu1 %v1315_v11  ;;  %1217 = vmatprep.subr.bf16.mxu0 %v1318_v13 }
  0x45   :  { %897 = vmatprep.mubr.bf16.mxu1 %v1323_v17 }
  0x47   :  { %1218 = vmatpush3.bf16.msra.mxu0 %v1318_v13 }
  0x48   :  { %1219 = vmatprep.subr.bf16.mxu0 %v1322_v16 }
  0x4a   :  { %849 = vmatmul.mubr.bf16.gmra.mxu0 %v1321_v15 }
  0x4b   :  { %1220 = vmatpush3.bf16.msra.mxu0 %v1322_v16  ;;  %1231 = vmatprep.mubr.bf16.mxu0 %v1331_v21 }
  0x4c   :  { %898 = vmatmul.mubr.bf16.gmra.mxu1 %v1325_v18  ;;  %1221 = vmatprep.subr.bf16.mxu0 %v1326_v19 }
  0x4f   :  { %1222 = vmatpush3.bf16.msra.mxu0 %v1326_v19 }
  0x50   :  { %1223 = vmatprep.subr.bf16.mxu0 %v1327_v20 }
  0x53   :  { %1224 = vmatpush3.bf16.msra.mxu0 %v1327_v20 }
  0x54   :  { %1225 = vmatprep.subr.bf16.mxu0 %v1328_v22 }
  0x57   :  { %1226 = vmatpush3.bf16.msra.mxu0 %v1328_v22 }
  0x58   :  { %1227 = vmatprep.subr.bf16.mxu0 %v1329_v23 }
  0x5b   :  { %1228 = vmatpush3.bf16.msra.mxu0 %v1329_v23 }
  0x5c   :  { %1229 = vmatprep.subr.bf16.mxu0 %v1330_v24 }
  0x5f   :  { %1230 = vmatpush3.bf16.msra.mxu0 %v1330_v24 }
  0x62   :  { %1232 = vmatmul.mubr.bf16.vlgmr.msra.gmra.mxu0 %v1332_v25 }
  0xe2   :  { %v1109_v26 = vpop.f32.mrf.mxu0 }
  0xe4   :  { %v1137_v27 = vpop.f32.mrf.mxu1  ;;  %v1110_v28 = vpop.f32.mrf.mxu0 }
  0xe5   :  { %v1111_v54 = vadd.f32 %v1110_v28, %v1109_v26 }
  0xe6   :  { %v1138_v29 = vpop.f32.mrf.mxu1  ;;  %v1112_v30 = vpop.f32.mrf.mxu0 }
  0xe7   :  { %v745_v62 = vadd.f32 %v1111_v54, %v983_v57  ;;  %v1139_v63 = vadd.f32 %v1138_v29, %v1137_v27 }
  0xe8   :  { %v1140_v31 = vpop.f32.mrf.mxu1  ;;  %v1113_v32 = vpop.f32.mrf.mxu0 }
  0xe9   :  { %v1114_v59 = vadd.f32 %v1113_v32, %v1112_v30  ;;  %v794_v10 = vadd.f32 %v1139_v63, %v745_v62 }
  0xea   :  { %v1115_v33 = vpop.f32.mrf.mxu0  ;;  %v1141_v34 = vpop.f32.mrf.mxu1 }
  0xeb   :  { %v748_v5 = vadd.f32 %v1114_v59, %v983_v57  ;;  %v1142_v6 = vadd.f32 %v1141_v34, %v1140_v31 }
  0xec   :  { %v1143_v35 = vpop.f32.mrf.mxu1  ;;  %v1116_v36 = vpop.f32.mrf.mxu0 }
  0xed   :  { %v1117_v53 = vadd.f32 %v1116_v36, %v1115_v33  ;;  %v797_v16 = vadd.f32 %v1142_v6, %v748_v5 }
  0xee   :  { %v1144_v37 = vpop.f32.mrf.mxu1  ;;  %v1118_v38 = vpop.f32.mrf.mxu0 }
  0xef   :  { %v753_v60 = vadd.f32 %v1117_v53, %v983_v57  ;;  %v1145_v61 = vadd.f32 %v1144_v37, %v1143_v35 }
  0xf0   :  { %v1146_v39 = vpop.f32.mrf.mxu1  ;;  %v1119_v40 = vpop.f32.mrf.mxu0 }
  0xf1   :  { %v1120_v58 = vadd.f32 %v1119_v40, %v1118_v38  ;;  %v802_v7 = vadd.f32 %v1145_v61, %v753_v60 }
  0xf2   :  { %v1147_v42 = vpop.f32.mrf.mxu1 }
  0xf3   :  { %v756_v2 = vadd.f32 %v1120_v58, %v983_v57  ;;  %v1148_v3 = vadd.f32 %v1147_v42, %v1146_v39 }
  0xf5   :  { %v805_v12 = vadd.f32 %v1148_v3, %v756_v2 }
 0x102   :  { %v1165_v41 = vpop.f32.mrf.mxu0 }
 0x104   :  { %v1166_v43 = vpop.f32.mrf.mxu0  ;;  %v1193_v44 = vpop.f32.mrf.mxu1 }
 0x105   :  { %v1167_v8 = vadd.f32 %v1166_v43, %v1165_v41 }
 0x106   :  { %v1168_v45 = vpop.f32.mrf.mxu0  ;;  %v1194_v46 = vpop.f32.mrf.mxu1 }
 0x107   :  { %v843_v17 = vadd.f32 %v1167_v8, %v794_v10  ;;  %v1195_v18 = vadd.f32 %v1194_v46, %v1193_v44 }
 0x108   :  { %v1169_v47 = vpop.f32.mrf.mxu0  ;;  %v1196_v48 = vpop.f32.mrf.mxu1 }
 0x109   :  { %v1170_v13 = vadd.f32 %v1169_v47, %v1168_v45  ;;  %v892_v27 = vadd.f32 %v1195_v18, %v843_v17 }
 0x10a   :  { %v1171_v49 = vpop.f32.mrf.mxu0  ;;  %v1197_v50 = vpop.f32.mrf.mxu1 }
 0x10b   :  { %v846_v22 = vadd.f32 %v1170_v13, %v797_v16  ;;  %v1198_v23 = vadd.f32 %v1197_v50, %v1196_v48 }
 0x10c   :  { %v1172_v51 = vpop.f32.mrf.mxu0  ;;  %v1199_v52 = vpop.f32.mrf.mxu1 }
 0x10d   :  { %v1173_v4 = vadd.f32 %v1172_v51, %v1171_v49  ;;  %v895_v32 = vadd.f32 %v1198_v23, %v846_v22 }
 0x10e   :  { %v1174_v55 = vpop.f32.mrf.mxu0  ;;  %v1200_v56 = vpop.f32.mrf.mxu1 }
 0x10f   :  { %v851_v14 = vadd.f32 %v1173_v4, %v802_v7  ;;  %v1201_v15 = vadd.f32 %v1200_v56, %v1199_v52 }
 0x110   :  { %v1175_v0 = vpop.f32.mrf.mxu0  ;;  %v1202_v1 = vpop.f32.mrf.mxu1 }
 0x111   :  { %v1176_v9 = vadd.f32 %v1175_v0, %v1174_v55  ;;  %v900_v24 = vadd.f32 %v1201_v15, %v851_v14 }
 0x112   :  { %v1203_v11 = vpop.f32.mrf.mxu1 }
 0x113   :  { %v854_v19 = vadd.f32 %v1176_v9, %v805_v12  ;;  %v1204_v20 = vadd.f32 %v1203_v11, %v1202_v1 }
 0x115   :  { %v903_v28 = vadd.f32 %v1204_v20, %v854_v19 }
 0x122   :  { %v1233_v21 = vpop.f32.mrf.mxu0 }
 0x123   :  { %v949_v26 = vadd.f32 %v1233_v21, %v900_v24 }
 0x124   :  { %v940_v25 = vpop.f32.mrf.mxu0 }
 0x125   :  { %v941_v30 = vadd.f32 %v940_v25, %v892_v27  ;;  %v957_v34 = vmax.f32 %v949_v26, 0.0 }
 0x126   :  { %v1234_v29 = vpop.f32.mrf.mxu0 }
 0x127   :  { %v952_v31 = vadd.f32 %v1234_v29, %v903_v28  ;;  %v955_v37 = vmax.f32 %v941_v30, 0.0 }
 0x128   :  { %v943_v33 = vpop.f32.mrf.mxu0 }
 0x129   :  { %v958_v35 = vmax.f32 %v952_v31, 0.0  ;;  %v944_v36 = vadd.f32 %v943_v33, %v895_v32 }
 0x12b   :  { %v1090_v38 = vpack.c.bf16 %v958_v35, %v957_v34  ;;  %v956_v39 = vmax.f32 %v944_v36, 0.0 }
 0x12d   :  { %1092 = vst [vmem:[%s1635_s3 + $0x8] sm:$0xff] %v1090_v38   ;;  %v1085_v40 = vpack.c.bf16 %v956_v39, %v955_v37 }
 0x12f   :  { %1086 = vst [vmem:[%s1635_s3] sm:$0xff] %v1085_v40  }

// kernel: _lambda_.44
= control target key start
LH: loop header
LB: loop body
LE: loop exit
PB: predicated region body
PF: predicated region fallthrough
CT: control target
= control target key end

     0   :  { %s2592_s1 = inlined_call_operand.vmem [shape: bf16[1152,256], index: 1, kind: input, shape index: {}]   ;;  %s2593_s0 = inlined_call_operand.vmem [shape: bf16[32,1152], index: 0, kind: input, shape index: {}]   ;;  %s2594_s3 = inlined_call_operand.vmem [shape: bf16[128,256], index: 3, kind: input, shape index: {}]   ;;  %s2595_s2 = inlined_call_operand.vmem [shape: f32[1,256], index: 2, kind: input, shape index: {}]   ;;  %s2596_s4 = inlined_call_operand.vmem [shape: f32[1,256], index: 4, kind: input, shape index: {}]   ;;  %s2597_s6 = inlined_call_operand.vmem [shape: bf16[32,256], index: 6, kind: output, shape index: {1}]   ;;  %s2598_s5 = inlined_call_operand.vmem [shape: bf16[32,256], index: 5, kind: output, shape index: {0}]  }
   0x1   :  { %v1704_v0 = vld [vmem:[%s2592_s1 + $0x74] ss:$8 sps:$4 sm:$0xff]   ;;  %v1708_v2 = vld [vmem:[%s2592_s1 + $0x70] ss:$8 sps:$4 sm:$0xff]   ;;  %v1710_v4 = vld [vmem:[%s2592_s1 + $0x64] ss:$8 sps:$4 sm:$0xff]  }
   0x2   :  { %v1706_v1 = vld [vmem:[%s2592_s1 + $0x174] ss:$8 sps:$4 sm:$0xff]   ;;  %1011 = vmatprep.subr.bf16.mxu0 %v1704_v0  ;;  %v1709_v3 = vld [vmem:[%s2592_s1 + $0x170] ss:$8 sps:$4 sm:$0xff]   ;;  %v1712_v5 = vld [vmem:[%s2592_s1 + $0x164] ss:$8 sps:$4 sm:$0xff]  }
   0x3   :  { %1064 = vmatprep.subr.bf16.mxu1 %v1706_v1  ;;  %1012 = vmatpush1.bf16.msra.mxu0 %v1708_v2  ;;  %v1714_v6 = vld [vmem:[%s2592_s1 + $0x60] ss:$8 sps:$4 sm:$0xff]   ;;  %v1716_v8 = vld [vmem:[%s2592_s1 + $0x54] ss:$8 sps:$4 sm:$0xff]   ;;  %v1720_v10 = vld [vmem:[%s2592_s1 + $0x50] ss:$8 sps:$4 sm:$0xff]  }
   0x4   :  { %1065 = vmatpush1.bf16.msra.mxu1 %v1709_v3  ;;  %1013 = vmatprep.subr.bf16.mxu0 %v1710_v4  ;;  %v1715_v7 = vld [vmem:[%s2592_s1 + $0x160] ss:$8 sps:$4 sm:$0xff]   ;;  %v1718_v9 = vld [vmem:[%s2592_s1 + $0x154] ss:$8 sps:$4 sm:$0xff]   ;;  %v1721_v11 = vld [vmem:[%s2592_s1 + $0x150] ss:$8 sps:$4 sm:$0xff]  }
   0x5   :  { %1066 = vmatprep.subr.bf16.mxu1 %v1712_v5  ;;  %v1722_v12 = vld [vmem:[%s2592_s1 + $0x44] ss:$8 sps:$4 sm:$0xff]   ;;  %v1726_v14 = vld [vmem:[%s2592_s1 + $0x40] ss:$8 sps:$4 sm:$0xff]   ;;  %v1728_v16 = vld [vmem:[%s2592_s1 + $0x34] ss:$8 sps:$4 sm:$0xff]  }
   0x6   :  { %v1724_v13 = vld [vmem:[%s2592_s1 + $0x144] ss:$8 sps:$4 sm:$0xff]   ;;  %v1727_v15 = vld [vmem:[%s2592_s1 + $0x140] ss:$8 sps:$4 sm:$0xff]   ;;  %v1730_v17 = vld [vmem:[%s2592_s1 + $0x134] ss:$8 sps:$4 sm:$0xff]  }
   0x7   :  { %1014 = vmatpush1.bf16.msra.mxu0 %v1714_v6  ;;  %v1732_v18 = vld [vmem:[%s2592_s1 + $0x30] ss:$8 sps:$4 sm:$0xff]   ;;  %v1734_v20 = vld [vmem:[%s2592_s1 + $0x24] ss:$8 sps:$4 sm:$0xff]   ;;  %v1738_v22 = vld [vmem:[%s2592_s1 + $0x20] ss:$8 sps:$4 sm:$0xff]  }
   0x8   :  { %1067 = vmatpush1.bf16.msra.mxu1 %v1715_v7  ;;  %1015 = vmatprep.subr.bf16.mxu0 %v1716_v8  ;;  %v1733_v19 = vld [vmem:[%s2592_s1 + $0x130] ss:$8 sps:$4 sm:$0xff]   ;;  %v1736_v21 = vld [vmem:[%s2592_s1 + $0x124] ss:$8 sps:$4 sm:$0xff]   ;;  %v1739_v23 = vld [vmem:[%s2592_s1 + $0x120] ss:$8 sps:$4 sm:$0xff]  }
   0x9   :  { %1068 = vmatprep.subr.bf16.mxu1 %v1718_v9  ;;  %v1740_v24 = vld [vmem:[%s2592_s1 + $0x14] ss:$8 sps:$4 sm:$0xff]   ;;  %v1744_v26 = vld [vmem:[%s2592_s1 + $0x10] ss:$8 sps:$4 sm:$0xff]   ;;  %v1746_v28 = vld [vmem:[%s2592_s1 + $0x4] ss:$8 sps:$4 sm:$0xff]  }
   0xa   :  { %v1742_v25 = vld [vmem:[%s2592_s1 + $0x114] ss:$8 sps:$4 sm:$0xff]   ;;  %v1745_v27 = vld [vmem:[%s2592_s1 + $0x110] ss:$8 sps:$4 sm:$0xff]   ;;  %v1748_v29 = vld [vmem:[%s2592_s1 + $0x104] ss:$8 sps:$4 sm:$0xff]  }
   0xb   :  { %1016 = vmatpush1.bf16.msra.mxu0 %v1720_v10  ;;  %v1750_v30 = vld [vmem:[%s2592_s1] ss:$8 sps:$4 sm:$0xff]   ;;  %v1752_v32 = vld [vmem:[%s2592_s1 + $0xf4] ss:$8 sps:$4 sm:$0xff]   ;;  %v1756_v34 = vld [vmem:[%s2592_s1 + $0xf0] ss:$8 sps:$4 sm:$0xff]  }
   0xc   :  { %1069 = vmatpush1.bf16.msra.mxu1 %v1721_v11  ;;  %1017 = vmatprep.subr.bf16.mxu0 %v1722_v12  ;;  %v1751_v31 = vld [vmem:[%s2592_s1 + $0x100] ss:$8 sps:$4 sm:$0xff]   ;;  %v1754_v33 = vld [vmem:[%s2592_s1 + $0x1f4] ss:$8 sps:$4 sm:$0xff]   ;;  %v1757_v35 = vld [vmem:[%s2592_s1 + $0x1f0] ss:$8 sps:$4 sm:$0xff]  }
   0xd   :  { %1070 = vmatprep.subr.bf16.mxu1 %v1724_v13  ;;  %v1758_v36 = vld [vmem:[%s2592_s1 + $0xe4] ss:$8 sps:$4 sm:$0xff]   ;;  %v1762_v38 = vld [vmem:[%s2592_s1 + $0xe0] ss:$8 sps:$4 sm:$0xff]   ;;  %v1764_v40 = vld [vmem:[%s2592_s1 + $0xd4] ss:$8 sps:$4 sm:$0xff]  }
   0xe   :  { %v1760_v37 = vld [vmem:[%s2592_s1 + $0x1e4] ss:$8 sps:$4 sm:$0xff]   ;;  %v1763_v39 = vld [vmem:[%s2592_s1 + $0x1e0] ss:$8 sps:$4 sm:$0xff]   ;;  %v1766_v41 = vld [vmem:[%s2592_s1 + $0x1d4] ss:$8 sps:$4 sm:$0xff]  }
   0xf   :  { %1018 = vmatpush1.bf16.msra.mxu0 %v1726_v14  ;;  %v1768_v42 = vld [vmem:[%s2592_s1 + $0xd0] ss:$8 sps:$4 sm:$0xff]   ;;  %v1770_v44 = vld [vmem:[%s2592_s1 + $0xc4] ss:$8 sps:$4 sm:$0xff]   ;;  %v1774_v46 = vld [vmem:[%s2592_s1 + $0xc0] ss:$8 sps:$4 sm:$0xff]  }
  0x10   :  { %1071 = vmatpush1.bf16.msra.mxu1 %v1727_v15  ;;  %1019 = vmatprep.subr.bf16.mxu0 %v1728_v16  ;;  %v1769_v43 = vld [vmem:[%s2592_s1 + $0x1d0] ss:$8 sps:$4 sm:$0xff]   ;;  %v1772_v45 = vld [vmem:[%s2592_s1 + $0x1c4] ss:$8 sps:$4 sm:$0xff]   ;;  %v1775_v47 = vld [vmem:[%s2592_s1 + $0x1c0] ss:$8 sps:$4 sm:$0xff]  }
  0x11   :  { %1072 = vmatprep.subr.bf16.mxu1 %v1730_v17  ;;  %v1776_v48 = vld [vmem:[%s2592_s1 + $0xb4] ss:$8 sps:$4 sm:$0xff]   ;;  %v1802_v49 = vld [vmem:[%s2593_s0 + $0x4] ss:$36 sps:$4 sm:$0xff]   ;;  %v1805_v51 = vld [vmem:[%s2593_s0 + $0xc] ss:$36 sps:$4 sm:$0xff]  }
  0x12   :  { %v1778_v50 = vld [vmem:[%s2592_s1 + $0x1b4] ss:$8 sps:$4 sm:$0xff]   ;;  %1043 = vmatprep.mubr.bf16.mxu0 %v1802_v49  ;;  %v1780_v52 = vld [vmem:[%s2592_s1 + $0xb0] ss:$8 sps:$4 sm:$0xff]   ;;  %1096 = vmatprep.mubr.bf16.mxu1 %v1805_v51  ;;  %v1782_v54 = vld [vmem:[%s2592_s1 + $0xa4] ss:$8 sps:$4 sm:$0xff]  }
  0x13   :  { %1020 = vmatpush1.bf16.msra.mxu0 %v1732_v18  ;;  %v1781_v53 = vld [vmem:[%s2592_s1 + $0x1b0] ss:$8 sps:$4 sm:$0xff]   ;;  %v1784_v55 = vld [vmem:[%s2592_s1 + $0x1a4] ss:$8 sps:$4 sm:$0xff]   ;;  %v1786_v56 = vld [vmem:[%s2592_s1 + $0xa0] ss:$8 sps:$4 sm:$0xff]  }
  0x14   :  { %1073 = vmatpush1.bf16.msra.mxu1 %v1733_v19  ;;  %1021 = vmatprep.subr.bf16.mxu0 %v1734_v20  ;;  %v1787_v57 = vld [vmem:[%s2592_s1 + $0x1a0] ss:$8 sps:$4 sm:$0xff]   ;;  %v1788_v58 = vld [vmem:[%s2592_s1 + $0x94] ss:$8 sps:$4 sm:$0xff]   ;;  %v1792_v60 = vld [vmem:[%s2592_s1 + $0x90] ss:$8 sps:$4 sm:$0xff]  }
  0x15   :  { %1074 = vmatprep.subr.bf16.mxu1 %v1736_v21  ;;  %v1790_v59 = vld [vmem:[%s2592_s1 + $0x194] ss:$8 sps:$4 sm:$0xff]   ;;  %v1793_v61 = vld [vmem:[%s2592_s1 + $0x190] ss:$8 sps:$4 sm:$0xff]   ;;  %v1794_v62 = vld [vmem:[%s2592_s1 + $0x84] ss:$8 sps:$4 sm:$0xff]  }
  0x16   :  { %v1796_v63 = vld [vmem:[%s2592_s1 + $0x184] ss:$8 sps:$4 sm:$0xff]   ;;  %v1798_v0 = vld [vmem:[%s2592_s1 + $0x80] ss:$8 sps:$4 sm:$0xff]   ;;  %v1808_v2 = vld [vmem:[%s2592_s1 + $0x274] ss:$8 sps:$4 sm:$0xff]  }
  0x17   :  { %1022 = vmatpush1.bf16.msra.mxu0 %v1738_v22  ;;  %v1799_v1 = vld [vmem:[%s2592_s1 + $0x180] ss:$8 sps:$4 sm:$0xff]   ;;  %v1811_v3 = vld [vmem:[%s2592_s1 + $0x374] ss:$8 sps:$4 sm:$0xff]   ;;  %v1806_v6 = vld [vmem:[%s2592_s1 + $0x270] ss:$8 sps:$4 sm:$0xff]  }
  0x18   :  { %1075 = vmatpush1.bf16.msra.mxu1 %v1739_v23  ;;  %1023 = vmatprep.subr.bf16.mxu0 %v1740_v24  ;;  %v1800_v4 = vld [vmem:[%s2593_s0] ss:$36 sps:$4 sm:$0xff]   ;;  %v1803_v5 = vld [vmem:[%s2593_s0 + $0x8] ss:$36 sps:$4 sm:$0xff]   ;;  %v1809_v7 = vld [vmem:[%s2592_s1 + $0x370] ss:$8 sps:$4 sm:$0xff]  }
  0x19   :  { %1076 = vmatprep.subr.bf16.mxu1 %v1742_v25  ;;  %v1814_v8 = vld [vmem:[%s2592_s1 + $0x264] ss:$8 sps:$4 sm:$0xff]   ;;  %v1812_v10 = vld [vmem:[%s2592_s1 + $0x260] ss:$8 sps:$4 sm:$0xff]   ;;  %v1820_v12 = vld [vmem:[%s2592_s1 + $0x254] ss:$8 sps:$4 sm:$0xff]  }
  0x1a   :  { %v1817_v9 = vld [vmem:[%s2592_s1 + $0x364] ss:$8 sps:$4 sm:$0xff]   ;;  %v1815_v11 = vld [vmem:[%s2592_s1 + $0x360] ss:$8 sps:$4 sm:$0xff]   ;;  %v1823_v13 = vld [vmem:[%s2592_s1 + $0x354] ss:$8 sps:$4 sm:$0xff]  }
  0x1b   :  { %1024 = vmatpush1.bf16.msra.mxu0 %v1744_v26  ;;  %v1818_v14 = vld [vmem:[%s2592_s1 + $0x250] ss:$8 sps:$4 sm:$0xff]   ;;  %v1826_v16 = vld [vmem:[%s2592_s1 + $0x244] ss:$8 sps:$4 sm:$0xff]   ;;  %v1824_v18 = vld [vmem:[%s2592_s1 + $0x240] ss:$8 sps:$4 sm:$0xff]  }
  0x1c   :  { %1077 = vmatpush1.bf16.msra.mxu1 %v1745_v27  ;;  %1025 = vmatprep.subr.bf16.mxu0 %v1746_v28  ;;  %v1821_v15 = vld [vmem:[%s2592_s1 + $0x350] ss:$8 sps:$4 sm:$0xff]   ;;  %v1829_v17 = vld [vmem:[%s2592_s1 + $0x344] ss:$8 sps:$4 sm:$0xff]   ;;  %v1827_v19 = vld [vmem:[%s2592_s1 + $0x340] ss:$8 sps:$4 sm:$0xff]  }
  0x1d   :  { %1078 = vmatprep.subr.bf16.mxu1 %v1748_v29  ;;  %v1832_v20 = vld [vmem:[%s2592_s1 + $0x234] ss:$8 sps:$4 sm:$0xff]   ;;  %v1830_v22 = vld [vmem:[%s2592_s1 + $0x230] ss:$8 sps:$4 sm:$0xff]   ;;  %v1838_v24 = vld [vmem:[%s2592_s1 + $0x224] ss:$8 sps:$4 sm:$0xff]  }
  0x1e   :  { %v1835_v21 = vld [vmem:[%s2592_s1 + $0x334] ss:$8 sps:$4 sm:$0xff]   ;;  %v1833_v23 = vld [vmem:[%s2592_s1 + $0x330] ss:$8 sps:$4 sm:$0xff]   ;;  %v1841_v25 = vld [vmem:[%s2592_s1 + $0x324] ss:$8 sps:$4 sm:$0xff]  }
  0x1f   :  { %1026 = vmatpush1.bf16.msra.mxu0 %v1750_v30  ;;  %v1884_v26 = vld [vmem:[%s2593_s0 + $0x4c] ss:$36 sps:$4 sm:$0xff]   ;;  %v1887_v28 = vld [vmem:[%s2593_s0 + $0x54] ss:$36 sps:$4 sm:$0xff]   ;;  %v1836_v29 = vld [vmem:[%s2592_s1 + $0x220] ss:$8 sps:$4 sm:$0xff]  }
  0x20   :  { %1079 = vmatpush1.bf16.msra.mxu1 %v1751_v31  ;;  %1027 = vmatprep.subr.bf16.mxu0 %v1752_v32  ;;  %v1886_v27 = vld [vmem:[%s2593_s0 + $0x48] ss:$36 sps:$4 sm:$0xff]   ;;  %v1844_v31 = vld [vmem:[%s2592_s1 + $0x214] ss:$8 sps:$4 sm:$0xff]  }
  0x21   :  { %1080 = vmatprep.subr.bf16.mxu1 %v1754_v33  ;;  %v1839_v30 = vld [vmem:[%s2592_s1 + $0x320] ss:$8 sps:$4 sm:$0xff]   ;;  %v1847_v32 = vld [vmem:[%s2592_s1 + $0x314] ss:$8 sps:$4 sm:$0xff]  }
  0x22   :  { %v1895_v33 = vld [vmem:[%s2593_s0 + $0x50] ss:$36 sps:$4 sm:$0xff]   ;;  %v1863_v49 = vld [vmem:[%s2592_s1 + $0x3e0] ss:$8 sps:$4 sm:$0xff]  }
  0x23   :  { %1028 = vmatpush2.bf16.msra.mxu0 %v1756_v34  ;;  %v1842_v34 = vld [vmem:[%s2592_s1 + $0x210] ss:$8 sps:$4 sm:$0xff]   ;;  %v1871_v51 = vld [vmem:[%s2592_s1 + $0x3d4] ss:$8 sps:$4 sm:$0xff]  }
  0x24   :  { %1081 = vmatpush2.bf16.msra.mxu1 %v1757_v35  ;;  %1029 = vmatprep.subr.bf16.mxu0 %v1758_v36  ;;  %v1845_v35 = vld [vmem:[%s2592_s1 + $0x310] ss:$8 sps:$4 sm:$0xff]   ;;  %v1850_v36 = vld [vmem:[%s2592_s1 + $0x204] ss:$8 sps:$4 sm:$0xff]  }
  0x25   :  { %1082 = vmatprep.subr.bf16.mxu1 %v1760_v37  ;;  %v1853_v37 = vld [vmem:[%s2592_s1 + $0x304] ss:$8 sps:$4 sm:$0xff]  }
  0x27   :  { %1030 = vmatpush2.bf16.msra.mxu0 %v1762_v38  ;;  %v1848_v38 = vld [vmem:[%s2592_s1 + $0x200] ss:$8 sps:$4 sm:$0xff]  }
  0x28   :  { %1083 = vmatpush2.bf16.msra.mxu1 %v1763_v39  ;;  %1031 = vmatprep.subr.bf16.mxu0 %v1764_v40  ;;  %v1851_v39 = vld [vmem:[%s2592_s1 + $0x300] ss:$8 sps:$4 sm:$0xff]   ;;  %v1856_v40 = vld [vmem:[%s2592_s1 + $0x2f4] ss:$8 sps:$4 sm:$0xff]  }
  0x29   :  { %1084 = vmatprep.subr.bf16.mxu1 %v1766_v41  ;;  %v1910_v41 = vld [vmem:[%s2593_s0 + $0x14] ss:$36 sps:$4 sm:$0xff]  }
  0x2b   :  { %1032 = vmatpush2.bf16.msra.mxu0 %v1768_v42  ;;  %v1859_v42 = vld [vmem:[%s2592_s1 + $0x3f4] ss:$8 sps:$4 sm:$0xff]  }
  0x2c   :  { %1085 = vmatpush2.bf16.msra.mxu1 %v1769_v43  ;;  %1033 = vmatprep.subr.bf16.mxu0 %v1770_v44  ;;  %v1913_v43 = vld [vmem:[%s2593_s0 + $0x1c] ss:$36 sps:$4 sm:$0xff]   ;;  %v1854_v44 = vld [vmem:[%s2592_s1 + $0x2f0] ss:$8 sps:$4 sm:$0xff]  }
  0x2d   :  { %1086 = vmatprep.subr.bf16.mxu1 %v1772_v45  ;;  %v1857_v45 = vld [vmem:[%s2592_s1 + $0x3f0] ss:$8 sps:$4 sm:$0xff]  }
  0x2f   :  { %1034 = vmatpush2.bf16.msra.mxu0 %v1774_v46  ;;  %v1862_v46 = vld [vmem:[%s2592_s1 + $0x2e4] ss:$8 sps:$4 sm:$0xff]  }
  0x30   :  { %1087 = vmatpush2.bf16.msra.mxu1 %v1775_v47  ;;  %1035 = vmatprep.subr.bf16.mxu0 %v1776_v48  ;;  %v1865_v47 = vld [vmem:[%s2592_s1 + $0x3e4] ss:$8 sps:$4 sm:$0xff]   ;;  %v1860_v48 = vld [vmem:[%s2592_s1 + $0x2e0] ss:$8 sps:$4 sm:$0xff]  }
  0x31   :  { %1088 = vmatprep.subr.bf16.mxu1 %v1778_v50  ;;  %v1868_v50 = vld [vmem:[%s2592_s1 + $0x2d4] ss:$8 sps:$4 sm:$0xff]  }
  0x33   :  { %1036 = vmatpush2.bf16.msra.mxu0 %v1780_v52  ;;  %v1866_v52 = vld [vmem:[%s2592_s1 + $0x2d0] ss:$8 sps:$4 sm:$0xff]  }
  0x34   :  { %1089 = vmatpush2.bf16.msra.mxu1 %v1781_v53  ;;  %1037 = vmatprep.subr.bf16.mxu0 %v1782_v54  ;;  %v1869_v53 = vld [vmem:[%s2592_s1 + $0x3d0] ss:$8 sps:$4 sm:$0xff]   ;;  %v1874_v54 = vld [vmem:[%s2592_s1 + $0x2c4] ss:$8 sps:$4 sm:$0xff]  }
  0x35   :  { %1090 = vmatprep.subr.bf16.mxu1 %v1784_v55  ;;  %v1877_v55 = vld [vmem:[%s2592_s1 + $0x3c4] ss:$8 sps:$4 sm:$0xff]  }
  0x37   :  { %1038 = vmatpush2.bf16.msra.mxu0 %v1786_v56  ;;  %v1872_v56 = vld [vmem:[%s2592_s1 + $0x2c0] ss:$8 sps:$4 sm:$0xff]  }
  0x38   :  { %1091 = vmatpush2.bf16.msra.mxu1 %v1787_v57  ;;  %1039 = vmatprep.subr.bf16.mxu0 %v1788_v58  ;;  %v1875_v57 = vld [vmem:[%s2592_s1 + $0x3c0] ss:$8 sps:$4 sm:$0xff]   ;;  %v1880_v58 = vld [vmem:[%s2592_s1 + $0x2b4] ss:$8 sps:$4 sm:$0xff]  }
  0x39   :  { %1092 = vmatprep.subr.bf16.mxu1 %v1790_v59  ;;  %v1883_v59 = vld [vmem:[%s2592_s1 + $0x3b4] ss:$8 sps:$4 sm:$0xff]  }
  0x3b   :  { %1040 = vmatpush2.bf16.msra.mxu0 %v1792_v60  ;;  %v1878_v60 = vld [vmem:[%s2592_s1 + $0x2b0] ss:$8 sps:$4 sm:$0xff]  }
  0x3c   :  { %1093 = vmatpush2.bf16.msra.mxu1 %v1793_v61  ;;  %1041 = vmatprep.subr.bf16.mxu0 %v1794_v62  ;;  %v1881_v61 = vld [vmem:[%s2592_s1 + $0x3b0] ss:$8 sps:$4 sm:$0xff]   ;;  %v1891_v62 = vld [vmem:[%s2592_s1 + $0x2a4] ss:$8 sps:$4 sm:$0xff]  }
  0x3d   :  { %1094 = vmatprep.subr.bf16.mxu1 %v1796_v63  ;;  %v1894_v63 = vld [vmem:[%s2592_s1 + $0x3a4] ss:$8 sps:$4 sm:$0xff]  }
  0x3f   :  { %1042 = vmatpush2.bf16.msra.mxu0 %v1798_v0  ;;  %v1889_v0 = vld [vmem:[%s2592_s1 + $0x2a0] ss:$8 sps:$4 sm:$0xff]  }
  0x40   :  { %1095 = vmatpush2.bf16.msra.mxu1 %v1799_v1  ;;  %1117 = vmatprep.subr.bf16.mxu0 %v1808_v2  ;;  %v1892_v1 = vld [vmem:[%s2592_s1 + $0x3a0] ss:$8 sps:$4 sm:$0xff]   ;;  %v1898_v2 = vld [vmem:[%s2592_s1 + $0x294] ss:$8 sps:$4 sm:$0xff]  }
  0x41   :  { %1170 = vmatprep.subr.bf16.mxu1 %v1811_v3  ;;  %v1901_v3 = vld [vmem:[%s2592_s1 + $0x394] ss:$8 sps:$4 sm:$0xff]  }
  0x42   :  { %1044 = vmatmul.mubr.bf16.vlgmr.msra.gmra.mxu0 %v1800_v4  ;;  %v1896_v4 = vld [vmem:[%s2592_s1 + $0x290] ss:$8 sps:$4 sm:$0xff]  }
  0x43   :  { %1097 = vmatmul.mubr.bf16.vlgmr.msra.gmra.mxu1 %v1803_v5  ;;  %1118 = vmatpush1.bf16.msra.mxu0 %v1806_v6  ;;  %v1899_v5 = vld [vmem:[%s2592_s1 + $0x390] ss:$8 sps:$4 sm:$0xff]   ;;  %v1904_v6 = vld [vmem:[%s2592_s1 + $0x284] ss:$8 sps:$4 sm:$0xff]  }
  0x44   :  { %1171 = vmatpush1.bf16.msra.mxu1 %v1809_v7  ;;  %1119 = vmatprep.subr.bf16.mxu0 %v1814_v8  ;;  %v1907_v7 = vld [vmem:[%s2592_s1 + $0x384] ss:$8 sps:$4 sm:$0xff]   ;;  %v1902_v8 = vld [vmem:[%s2592_s1 + $0x280] ss:$8 sps:$4 sm:$0xff]  }
  0x45   :  { %1172 = vmatprep.subr.bf16.mxu1 %v1817_v9  ;;  %1053 = vmatprep.mubr.bf16.mxu0 %v1884_v26  ;;  %v1905_v9 = vld [vmem:[%s2592_s1 + $0x380] ss:$8 sps:$4 sm:$0xff]   ;;  %v1929_v26 = vld [vmem:[%s2592_s1 + $0x450] ss:$8 sps:$4 sm:$0xff]  }
  0x46   :  { %1106 = vmatprep.mubr.bf16.mxu1 %v1887_v28  ;;  %v1940_v28 = vld [vmem:[%s2592_s1 + $0x444] ss:$8 sps:$4 sm:$0xff]  }
  0x47   :  { %1120 = vmatpush1.bf16.msra.mxu0 %v1812_v10  ;;  %v1916_v10 = vld [vmem:[%s2592_s1 + $0x474] ss:$8 sps:$4 sm:$0xff]  }
  0x48   :  { %1173 = vmatpush1.bf16.msra.mxu1 %v1815_v11  ;;  %1121 = vmatprep.subr.bf16.mxu0 %v1820_v12  ;;  %v1919_v11 = vld [vmem:[%s2594_s3 + $0x74] ss:$8 sps:$4 sm:$0xff]  }
  0x49   :  { %1174 = vmatprep.subr.bf16.mxu1 %v1823_v13  ;;  %v2429_v12 = vld [vmem:[%s2593_s0 + $0x10] ss:$36 sps:$4 sm:$0xff]   ;;  %v1911_v13 = vld [vmem:[%s2593_s0 + $0x18] ss:$36 sps:$4 sm:$0xff]  }
  0x4a   :  { %1054 = vmatmul.mubr.bf16.gmra.mxu0 %v1886_v27  ;;  %v1932_v27 = vld [vmem:[%s2594_s3 + $0x50] ss:$8 sps:$4 sm:$0xff]  }
  0x4b   :  { %1122 = vmatpush1.bf16.msra.mxu0 %v1818_v14  ;;  %1107 = vmatmul.mubr.bf16.gmra.mxu1 %v1895_v33  ;;  %v1914_v14 = vld [vmem:[%s2592_s1 + $0x470] ss:$8 sps:$4 sm:$0xff]   ;;  %v1949_v33 = vld [vmem:[%s2594_s3 + $0x34] ss:$8 sps:$4 sm:$0xff]  }
  0x4c   :  { %1175 = vmatpush1.bf16.msra.mxu1 %v1821_v15  ;;  %1123 = vmatprep.subr.bf16.mxu0 %v1826_v16  ;;  %v1917_v15 = vld [vmem:[%s2594_s3 + $0x70] ss:$8 sps:$4 sm:$0xff]   ;;  %v1922_v16 = vld [vmem:[%s2592_s1 + $0x464] ss:$8 sps:$4 sm:$0xff]  }
  0x4d   :  { %1176 = vmatprep.subr.bf16.mxu1 %v1829_v17  ;;  %1149 = vmatprep.mubr.bf16.mxu0 %v1910_v41  ;;  %v1925_v17 = vld [vmem:[%s2594_s3 + $0x64] ss:$8 sps:$4 sm:$0xff]   ;;  %v1958_v41 = vld [vmem:[%s2592_s1 + $0x414] ss:$8 sps:$4 sm:$0xff]  }
  0x4e   :  { %1202 = vmatprep.mubr.bf16.mxu1 %v1913_v43  ;;  %v1956_v43 = vld [vmem:[%s2592_s1 + $0x410] ss:$8 sps:$4 sm:$0xff]  }
  0x4f   :  { %1124 = vmatpush1.bf16.msra.mxu0 %v1824_v18  ;;  %v1926_v18 = vld [vmem:[%s2593_s0 + $0x5c] ss:$36 sps:$4 sm:$0xff]  }
  0x50   :  { %1177 = vmatpush1.bf16.msra.mxu1 %v1827_v19  ;;  %1125 = vmatprep.subr.bf16.mxu0 %v1832_v20  ;;  %v1935_v19 = vld [vmem:[%s2593_s0 + $0x64] ss:$36 sps:$4 sm:$0xff]  }
  0x51   :  { %1178 = vmatprep.subr.bf16.mxu1 %v1835_v21  ;;  %v1920_v20 = vld [vmem:[%s2592_s1 + $0x460] ss:$8 sps:$4 sm:$0xff]  }
  0x52   :  { %v1923_v21 = vld [vmem:[%s2594_s3 + $0x60] ss:$8 sps:$4 sm:$0xff]  }
  0x53   :  { %1126 = vmatpush1.bf16.msra.mxu0 %v1830_v22  ;;  %v1931_v22 = vld [vmem:[%s2592_s1 + $0x454] ss:$8 sps:$4 sm:$0xff]  }
  0x54   :  { %1179 = vmatpush1.bf16.msra.mxu1 %v1833_v23  ;;  %1127 = vmatprep.subr.bf16.mxu0 %v1838_v24  ;;  %v1934_v23 = vld [vmem:[%s2594_s3 + $0x54] ss:$8 sps:$4 sm:$0xff]  }
  0x55   :  { %1180 = vmatprep.subr.bf16.mxu1 %v1841_v25  ;;  %v1928_v24 = vld [vmem:[%s2593_s0 + $0x58] ss:$36 sps:$4 sm:$0xff]   ;;  %v1937_v25 = vld [vmem:[%s2593_s0 + $0x60] ss:$36 sps:$4 sm:$0xff]  }
  0x57   :  { %1128 = vmatpush1.bf16.msra.mxu0 %v1836_v29  ;;  %v1943_v29 = vld [vmem:[%s2594_s3 + $0x44] ss:$8 sps:$4 sm:$0xff]  }
  0x58   :  { %1181 = vmatpush1.bf16.msra.mxu1 %v1839_v30  ;;  %1129 = vmatprep.subr.bf16.mxu0 %v1844_v31  ;;  %v1938_v30 = vld [vmem:[%s2592_s1 + $0x440] ss:$8 sps:$4 sm:$0xff]  }
  0x59   :  { %1182 = vmatprep.subr.bf16.mxu1 %v1847_v32  ;;  %v1941_v31 = vld [vmem:[%s2594_s3 + $0x40] ss:$8 sps:$4 sm:$0xff]   ;;  %v1946_v32 = vld [vmem:[%s2592_s1 + $0x434] ss:$8 sps:$4 sm:$0xff]  }
  0x5b   :  { %1130 = vmatpush1.bf16.msra.mxu0 %v1842_v34  ;;  %v1970_v34 = vmov 0  }
  0x5c   :  { %1183 = vmatpush1.bf16.msra.mxu1 %v1845_v35  ;;  %1131 = vmatprep.subr.bf16.mxu0 %v1850_v36  ;;  %v1944_v35 = vld [vmem:[%s2592_s1 + $0x430] ss:$8 sps:$4 sm:$0xff]  }
  0x5d   :  { %1184 = vmatprep.subr.bf16.mxu1 %v1853_v37  ;;  %v1947_v36 = vld [vmem:[%s2594_s3 + $0x30] ss:$8 sps:$4 sm:$0xff]   ;;  %v1952_v37 = vld [vmem:[%s2592_s1 + $0x424] ss:$8 sps:$4 sm:$0xff]  }
  0x5f   :  { %1132 = vmatpush1.bf16.msra.mxu0 %v1848_v38  ;;  %v1955_v38 = vld [vmem:[%s2594_s3 + $0x24] ss:$8 sps:$4 sm:$0xff]  }
  0x60   :  { %1185 = vmatpush1.bf16.msra.mxu1 %v1851_v39  ;;  %1133 = vmatprep.subr.bf16.mxu0 %v1856_v40  ;;  %v1950_v39 = vld [vmem:[%s2592_s1 + $0x420] ss:$8 sps:$4 sm:$0xff]  }
  0x61   :  { %1186 = vmatprep.subr.bf16.mxu1 %v1859_v42  ;;  %v1953_v40 = vld [vmem:[%s2594_s3 + $0x20] ss:$8 sps:$4 sm:$0xff]   ;;  %v1961_v42 = vld [vmem:[%s2594_s3 + $0x14] ss:$8 sps:$4 sm:$0xff]  }
  0x63   :  { %1134 = vmatpush2.bf16.msra.mxu0 %v1854_v44  ;;  %v1959_v44 = vld [vmem:[%s2594_s3 + $0x10] ss:$8 sps:$4 sm:$0xff]  }
  0x64   :  { %1187 = vmatpush2.bf16.msra.mxu1 %v1857_v45  ;;  %1135 = vmatprep.subr.bf16.mxu0 %v1862_v46  ;;  %v1964_v45 = vld [vmem:[%s2592_s1 + $0x404] ss:$8 sps:$4 sm:$0xff]  }
  0x65   :  { %1188 = vmatprep.subr.bf16.mxu1 %v1865_v47  ;;  %v1967_v46 = vld [vmem:[%s2594_s3 + $0x4] ss:$8 sps:$4 sm:$0xff]   ;;  %v1962_v47 = vld [vmem:[%s2592_s1 + $0x400] ss:$8 sps:$4 sm:$0xff]  }
  0x67   :  { %1136 = vmatpush2.bf16.msra.mxu0 %v1860_v48  ;;  %v1965_v48 = vld [vmem:[%s2594_s3] ss:$8 sps:$4 sm:$0xff]  }
  0x68   :  { %1189 = vmatpush2.bf16.msra.mxu1 %v1863_v49  ;;  %1137 = vmatprep.subr.bf16.mxu0 %v1868_v50  ;;  %v1968_v49 = vld [vmem:[%s2593_s0 + $0x20] ss:$36 sps:$4 sm:$0xff]   ;;  %v1969_v50 = vld [vmem:[%s2593_s0 + $0x68] ss:$36 sps:$4 sm:$0xff]  }
  0x69   :  { %1190 = vmatprep.subr.bf16.mxu1 %v1871_v51 }
  0x6b   :  { %1138 = vmatpush2.bf16.msra.mxu0 %v1866_v52 }
  0x6c   :  { %1191 = vmatpush2.bf16.msra.mxu1 %v1869_v53  ;;  %1139 = vmatprep.subr.bf16.mxu0 %v1874_v54 }
  0x6d   :  { %1192 = vmatprep.subr.bf16.mxu1 %v1877_v55 }
  0x6f   :  { %1140 = vmatpush2.bf16.msra.mxu0 %v1872_v56 }
  0x70   :  { %1193 = vmatpush2.bf16.msra.mxu1 %v1875_v57  ;;  %1141 = vmatprep.subr.bf16.mxu0 %v1880_v58 }
  0x71   :  { %1194 = vmatprep.subr.bf16.mxu1 %v1883_v59 }
  0x73   :  { %1142 = vmatpush2.bf16.msra.mxu0 %v1878_v60 }
  0x74   :  { %1195 = vmatpush2.bf16.msra.mxu1 %v1881_v61  ;;  %1143 = vmatprep.subr.bf16.mxu0 %v1891_v62 }
  0x75   :  { %1196 = vmatprep.subr.bf16.mxu1 %v1894_v63 }
  0x77   :  { %1144 = vmatpush2.bf16.msra.mxu0 %v1889_v0 }
  0x78   :  { %1197 = vmatpush2.bf16.msra.mxu1 %v1892_v1  ;;  %1145 = vmatprep.subr.bf16.mxu0 %v1898_v2 }
  0x79   :  { %1198 = vmatprep.subr.bf16.mxu1 %v1901_v3 }
  0x7b   :  { %1146 = vmatpush2.bf16.msra.mxu0 %v1896_v4 }
  0x7c   :  { %1199 = vmatpush2.bf16.msra.mxu1 %v1899_v5  ;;  %1147 = vmatprep.subr.bf16.mxu0 %v1904_v6  ;;  %v189_v5 = vlaneseq }
  0x7d   :  { %1200 = vmatprep.subr.bf16.mxu1 %v1907_v7 }
  0x7f   :  { %1148 = vmatpush2.bf16.msra.mxu0 %v1902_v8  ;;  %v190_v8 = vshrl.u32 %v189_v5, 7 }
  0x80   :  { %1201 = vmatpush2.bf16.msra.mxu1 %v1905_v9  ;;  %1223 = vmatprep.subr.bf16.mxu0 %v1916_v10 }
  0x81   :  { %1420 = vmatprep.subr.bf16.mxu1 %v1919_v11  ;;  %v191_v11 = vsub.s32 0, %v190_v8 }
  0x82   :  { %1150 = vmatmul.mubr.bf16.vlgmr.msra.gmra.mxu0 %v2429_v12 }
  0x83   :  { %1203 = vmatmul.mubr.bf16.vlgmr.msra.gmra.mxu1 %v1911_v13  ;;  %1224 = vmatpush1.bf16.msra.mxu0 %v1914_v14  ;;  %v195_v14 = vsub.s32 1, %v190_v8 }
  0x84   :  { %1421 = vmatpush1.bf16.msra.mxu1 %v1917_v15  ;;  %1225 = vmatprep.subr.bf16.mxu0 %v1922_v16 }
  0x85   :  { %1422 = vmatprep.subr.bf16.mxu1 %v1925_v17  ;;  %1159 = vmatprep.mubr.bf16.mxu0 %v1926_v18 }
  0x86   :  { %1212 = vmatprep.mubr.bf16.mxu1 %v1935_v19 }
  0x87   :  { %1226 = vmatpush1.bf16.msra.mxu0 %v1920_v20 }
  0x88   :  { %1423 = vmatpush1.bf16.msra.mxu1 %v1923_v21  ;;  %1227 = vmatprep.subr.bf16.mxu0 %v1931_v22 }
  0x89   :  { %1424 = vmatprep.subr.bf16.mxu1 %v1934_v23 }
  0x8a   :  { %1160 = vmatmul.mubr.bf16.gmra.mxu0 %v1928_v24 }
  0x8b   :  { %1213 = vmatmul.mubr.bf16.gmra.mxu1 %v1937_v25  ;;  %1228 = vmatpush1.bf16.msra.mxu0 %v1929_v26 }
  0x8c   :  { %1425 = vmatpush1.bf16.msra.mxu1 %v1932_v27  ;;  %1229 = vmatprep.subr.bf16.mxu0 %v1940_v28 }
  0x8d   :  { %1426 = vmatprep.subr.bf16.mxu1 %v1943_v29  ;;  %1255 = vmatprep.mubr.bf16.mxu0 %v1970_v34  ;;  %v1328_v29 = vld [vmem:[%s2596_s4] sm:$0x3] }
  0x8e   :  { %1452 = vmatprep.mubr.bf16.mxu1 %v1970_v34 }
  0x8f   :  { %1230 = vmatpush1.bf16.msra.mxu0 %v1938_v30 }
  0x90   :  { %1427 = vmatpush1.bf16.msra.mxu1 %v1941_v31  ;;  %1231 = vmatprep.subr.bf16.mxu0 %v1946_v32 }
  0x91   :  { %1428 = vmatprep.subr.bf16.mxu1 %v1949_v33 }
  0x93   :  { %1232 = vmatpush1.bf16.msra.mxu0 %v1944_v35  ;;  %v2554_v35 = vrot.slane %v1328_v29, %v191_v11 }
  0x94   :  { %1429 = vmatpush1.bf16.msra.mxu1 %v1947_v36  ;;  %1233 = vmatprep.subr.bf16.mxu0 %v1952_v37 }
  0x95   :  { %1430 = vmatprep.subr.bf16.mxu1 %v1955_v38 }
  0x97   :  { %1234 = vmatpush1.bf16.msra.mxu0 %v1950_v39 }
  0x98   :  { %1431 = vmatpush1.bf16.msra.mxu1 %v1953_v40  ;;  %1235 = vmatprep.subr.bf16.mxu0 %v1958_v41 }
  0x99   :  { %1432 = vmatprep.subr.bf16.mxu1 %v1961_v42  ;;  %v2556_v42 = vrot.slane %v1328_v29, %v195_v14 }
  0x9b   :  { %1236 = vmatpush1.bf16.msra.mxu0 %v1956_v43 }
  0x9c   :  { %1433 = vmatpush1.bf16.msra.mxu1 %v1959_v44  ;;  %1237 = vmatprep.subr.bf16.mxu0 %v1964_v45 }
  0x9d   :  { %1434 = vmatprep.subr.bf16.mxu1 %v1967_v46 }
  0x9f   :  { %1238 = vmatpush1.bf16.msra.mxu0 %v1962_v47 }
  0xa0   :  { %1435 = vmatpush1.bf16.msra.mxu1 %v1965_v48 }
  0xa2   :  { %1256 = vmatmul.mubr.bf16.vlgmr.msra.gmra.mxu0 %v1968_v49 }
  0xa3   :  { %1453 = vmatmul.mubr.bf16.vlgmr.msra.gmra.mxu1 %v2429_v12  ;;  %1265 = vmatprep.mubr.bf16.mxu0 %v1970_v34  ;;  %v187_v12 = vld [vmem:[%s2595_s2] sm:$0x3] }
  0xa4   :  { %1462 = vmatprep.mubr.bf16.mxu1 %v1970_v34  ;;  %v192_v16 = vrot.slane %v187_v12, %v191_v11  ;;  %v196_v19 = vrot.slane %v187_v12, %v195_v14 }
  0xaa   :  { %1266 = vmatmul.mubr.bf16.gmra.mxu0 %v1969_v50 }
  0xab   :  { %1463 = vmatmul.mubr.bf16.gmra.mxu1 %v1928_v24 }
 0x102   :  { %v1045_v51 = vpop.f32.mrf.mxu0 }
 0x103   :  { %v1098_v52 = vpop.f32.mrf.mxu1  ;;  %v1046_v20 = vadd.f32 %v1045_v51, %v192_v16 }
 0x104   :  { %v1047_v53 = vpop.f32.mrf.mxu0 }
 0x105   :  { %v1100_v54 = vpop.f32.mrf.mxu1  ;;  %v1048_v23 = vadd.f32 %v1047_v53, %v196_v19  ;;  %v1099_v24 = vadd.f32 %v1098_v52, %v1046_v20 }
 0x106   :  { %v1049_v55 = vpop.f32.mrf.mxu0 }
 0x107   :  { %v1102_v56 = vpop.f32.mrf.mxu1  ;;  %v1050_v25 = vadd.f32 %v1049_v55, %v192_v16  ;;  %v1101_v30 = vadd.f32 %v1100_v54, %v1048_v23 }
 0x108   :  { %v1051_v57 = vpop.f32.mrf.mxu0 }
 0x109   :  { %v1104_v58 = vpop.f32.mrf.mxu1  ;;  %v1052_v26 = vadd.f32 %v1051_v57, %v196_v19  ;;  %v1103_v33 = vadd.f32 %v1102_v56, %v1050_v25 }
 0x10a   :  { %v1055_v59 = vpop.f32.mrf.mxu0 }
 0x10b   :  { %v1108_v60 = vpop.f32.mrf.mxu1  ;;  %v1056_v32 = vadd.f32 %v1055_v59, %v192_v16  ;;  %v1105_v36 = vadd.f32 %v1104_v58, %v1052_v26 }
 0x10c   :  { %v1057_v61 = vpop.f32.mrf.mxu0 }
 0x10d   :  { %v1110_v62 = vpop.f32.mrf.mxu1  ;;  %v1058_v37 = vadd.f32 %v1057_v61, %v196_v19  ;;  %v1109_v43 = vadd.f32 %v1108_v60, %v1056_v32 }
 0x10e   :  { %v1059_v63 = vpop.f32.mrf.mxu0 }
 0x10f   :  { %v1112_v0 = vpop.f32.mrf.mxu1  ;;  %v1060_v44 = vadd.f32 %v1059_v63, %v192_v16  ;;  %v1111_v51 = vadd.f32 %v1110_v62, %v1058_v37 }
 0x110   :  { %v1061_v1 = vpop.f32.mrf.mxu0 }
 0x111   :  { %v2544_v2 = vpop.f32.mrf.mxu1  ;;  %v1062_v52 = vadd.f32 %v1061_v1, %v196_v19  ;;  %v1113_v59 = vadd.f32 %v1112_v0, %v1060_v44 }
 0x113   :  { %v1115_v8 = vadd.f32 %v2544_v2, %v1062_v52 }
 0x142   :  { %v1151_v3 = vpop.f32.mrf.mxu0 }
 0x143   :  { %v1204_v4 = vpop.f32.mrf.mxu1  ;;  %v1152_v31 = vadd.f32 %v1151_v3, %v1099_v24 }
 0x144   :  { %v1153_v6 = vpop.f32.mrf.mxu0 }
 0x145   :  { %v1206_v7 = vpop.f32.mrf.mxu1  ;;  %v1154_v34 = vadd.f32 %v1153_v6, %v1101_v30  ;;  %v1205_v40 = vadd.f32 %v1204_v4, %v1152_v31 }
 0x146   :  { %v1155_v9 = vpop.f32.mrf.mxu0 }
 0x147   :  { %v1208_v10 = vpop.f32.mrf.mxu1  ;;  %v1156_v41 = vadd.f32 %v1155_v9, %v1103_v33  ;;  %v1207_v48 = vadd.f32 %v1206_v7, %v1154_v34 }
 0x148   :  { %v1157_v13 = vpop.f32.mrf.mxu0 }
 0x149   :  { %v1210_v15 = vpop.f32.mrf.mxu1  ;;  %v1158_v45 = vadd.f32 %v1157_v13, %v1105_v36  ;;  %v1209_v56 = vadd.f32 %v1208_v10, %v1156_v41 }
 0x14a   :  { %v1161_v17 = vpop.f32.mrf.mxu0 }
 0x14b   :  { %v1214_v18 = vpop.f32.mrf.mxu1  ;;  %v1162_v53 = vadd.f32 %v1161_v17, %v1109_v43  ;;  %v1211_v61 = vadd.f32 %v1210_v15, %v1158_v45 }
 0x14c   :  { %v1163_v21 = vpop.f32.mrf.mxu0 }
 0x14d   :  { %v1216_v22 = vpop.f32.mrf.mxu1  ;;  %v1164_v60 = vadd.f32 %v1163_v21, %v1111_v51  ;;  %v1215_v62 = vadd.f32 %v1214_v18, %v1162_v53 }
 0x14e   :  { %v1165_v27 = vpop.f32.mrf.mxu0 }
 0x14f   :  { %v2549_v28 = vpop.f32.mrf.mxu1  ;;  %v1166_v1 = vadd.f32 %v1165_v27, %v1113_v59  ;;  %v1217_v14 = vadd.f32 %v1216_v22, %v1164_v60 }
 0x150   :  { %v1167_v38 = vpop.f32.mrf.mxu0 }
 0x151   :  { %v1220_v39 = vpop.f32.mrf.mxu1  ;;  %v1168_v15 = vadd.f32 %v1167_v38, %v1115_v8  ;;  %v1219_v25 = vadd.f32 %v2549_v28, %v1166_v1 }
 0x153   :  { %v1221_v29 = vadd.f32 %v1220_v39, %v1168_v15 }
 0x162   :  { %v1257_v46 = vpop.f32.mrf.mxu0 }
 0x163   :  { %v1454_v47 = vpop.f32.mrf.mxu1  ;;  %v1258_v49 = vadd.f32 %v1257_v46, %v1205_v40 }
 0x164   :  { %v1455_v50 = vadd.f32 %v1454_v47, %v2554_v35  ;;  %v1259_v54 = vpop.f32.mrf.mxu0 }
 0x165   :  { %v1456_v55 = vpop.f32.mrf.mxu1  ;;  %v1260_v57 = vadd.f32 %v1259_v54, %v1207_v48  ;;  %v1276_v4 = vmax.f32 %v1258_v49, 0.0 }
 0x166   :  { %v1457_v58 = vadd.f32 %v1456_v55, %v2556_v42  ;;  %v1261_v63 = vpop.f32.mrf.mxu0 }
 0x167   :  { %v1458_v3 = vpop.f32.mrf.mxu1  ;;  %v1277_v5 = vmax.f32 %v1260_v57, 0.0  ;;  %v1262_v7 = vadd.f32 %v1261_v63, %v1209_v56 }
 0x168   :  { %v1699_v6 = vpack.c.bf16 %v1457_v58, %v1455_v50  ;;  %v1263_v9 = vpop.f32.mrf.mxu0  ;;  %v1459_v0 = vadd.f32 %v1458_v3, %v2554_v35 }
 0x169   :  { %v1460_v11 = vpop.f32.mrf.mxu1  ;;  %v1695_v12 = vpack.c.bf16 %v1277_v5, %v1276_v4  ;;  %v1264_v10 = vadd.f32 %v1263_v9, %v1211_v61  ;;  %v1278_v16 = vmax.f32 %v1262_v7, 0.0 }
 0x16a   :  { %1497 = vst [vmem:[%s2597_s6] sm:$0xff] %v1699_v6  ;;  %v1461_v13 = vadd.f32 %v1460_v11, %v2556_v42  ;;  %v1267_v17 = vpop.f32.mrf.mxu0 }
 0x16b   :  { %v1464_v19 = vpop.f32.mrf.mxu1  ;;  %1308 = vst [vmem:[%s2598_s5] sm:$0xff] %v1695_v12  ;;  %v1279_v2 = vmax.f32 %v1264_v10, 0.0  ;;  %v1268_v20 = vadd.f32 %v1267_v17, %v1215_v62 }
 0x16c   :  { %v1700_v18 = vpack.c.bf16 %v1461_v13, %v1459_v0  ;;  %v1465_v21 = vadd.f32 %v1464_v19, %v2554_v35  ;;  %v1269_v23 = vpop.f32.mrf.mxu0 }
 0x16d   :  { %v1466_v24 = vpop.f32.mrf.mxu1  ;;  %v1696_v26 = vpack.c.bf16 %v1279_v2, %v1278_v16  ;;  %v1270_v22 = vadd.f32 %v1269_v23, %v1217_v14  ;;  %v1280_v32 = vmax.f32 %v1268_v20, 0.0 }
 0x16e   :  { %1498 = vst [vmem:[%s2597_s6 + $0x8] sm:$0xff] %v1700_v18  ;;  %v1467_v27 = vadd.f32 %v1466_v24, %v2556_v42  ;;  %v1271_v30 = vpop.f32.mrf.mxu0 }
 0x16f   :  { %v1468_v31 = vpop.f32.mrf.mxu1  ;;  %1309 = vst [vmem:[%s2598_s5 + $0x8] sm:$0xff] %v1696_v26  ;;  %v1281_v33 = vmax.f32 %v1270_v22, 0.0  ;;  %v1272_v36 = vadd.f32 %v1271_v30, %v1219_v25 }
 0x170   :  { %v1701_v34 = vpack.c.bf16 %v1467_v27, %v1465_v21  ;;  %v1273_v28 = vpop.f32.mrf.mxu0  ;;  %v1469_v40 = vadd.f32 %v1468_v31, %v2554_v35 }
 0x171   :  { %v1470_v37 = vpop.f32.mrf.mxu1  ;;  %v1697_v38 = vpack.c.bf16 %v1281_v33, %v1280_v32  ;;  %v1274_v39 = vadd.f32 %v1273_v28, %v1221_v29  ;;  %v1282_v43 = vmax.f32 %v1272_v36, 0.0 }
 0x172   :  { %1499 = vst [vmem:[%s2597_s6 + $0x10] sm:$0xff] %v1701_v34  ;;  %v1471_v41 = vadd.f32 %v1470_v37, %v2556_v42 }
 0x173   :  { %1310 = vst [vmem:[%s2598_s5 + $0x10] sm:$0xff] %v1697_v38  ;;  %v1283_v44 = vmax.f32 %v1274_v39, 0.0 }
 0x174   :  { %v1702_v45 = vpack.c.bf16 %v1471_v41, %v1469_v40 }
 0x175   :  { %v1698_v46 = vpack.c.bf16 %v1283_v44, %v1282_v43 }
 0x176   :  { %1500 = vst [vmem:[%s2597_s6 + $0x18] sm:$0xff] %v1702_v45 }
 0x177   :  { %1311 = vst [vmem:[%s2598_s5 + $0x18] sm:$0xff] %v1698_v46 }

// kernel: _lambda_.37
= control target key start
LH: loop header
LB: loop body
LE: loop exit
PB: predicated region body
PF: predicated region fallthrough
CT: control target
= control target key end

     0   :  { %s1667_s1 = inlined_call_operand.vmem [shape: bf16[1152,128], index: 1, kind: input, shape index: {}]   ;;  %s1668_s0 = inlined_call_operand.vmem [shape: bf16[32,1152], index: 0, kind: input, shape index: {}]   ;;  %s1669_s2 = inlined_call_operand.vmem [shape: f32[1,128], index: 2, kind: input, shape index: {}]   ;;  %s1670_s3 = inlined_call_operand.vmem [shape: bf16[32,128], index: 3, kind: input, shape index: {}]   ;;  %s1671_s4 = inlined_call_operand.vmem [shape: bf16[32,128], index: 4, kind: output, shape index: {}]  }
   0x1   :  { %v1259_v0 = vld [vmem:[%s1667_s1 + $0x78] sm:$0xff]   ;;  %v1263_v4 = vld [vmem:[%s1667_s1 + $0x70] sm:$0xff]   ;;  %v1267_v8 = vld [vmem:[%s1667_s1 + $0x68] sm:$0xff]  }
   0x2   :  { %v1260_v1 = vld [vmem:[%s1667_s1 + $0x38] sm:$0xff]   ;;  %1117 = vmatprep.subr.bf16.mxu0 %v1259_v0  ;;  %v1264_v5 = vld [vmem:[%s1667_s1 + $0x30] sm:$0xff]   ;;  %v1268_v9 = vld [vmem:[%s1667_s1 + $0x28] sm:$0xff]  }
   0x3   :  { %v1261_v2 = vld [vmem:[%s1667_s1 + $0xf8] sm:$0xff]   ;;  %1118 = vmatpush3.bf16.msra.mxu0 %v1260_v1  ;;  %v1265_v6 = vld [vmem:[%s1667_s1 + $0xf0] sm:$0xff]   ;;  %v1269_v10 = vld [vmem:[%s1667_s1 + $0xe8] sm:$0xff]  }
   0x4   :  { %v1262_v3 = vld [vmem:[%s1667_s1 + $0xb8] sm:$0xff]   ;;  %1145 = vmatprep.subr.bf16.mxu1 %v1261_v2  ;;  %1119 = vmatprep.subr.bf16.mxu0 %v1263_v4  ;;  %v1266_v7 = vld [vmem:[%s1667_s1 + $0xb0] sm:$0xff]   ;;  %v1270_v11 = vld [vmem:[%s1667_s1 + $0xa8] sm:$0xff]  }
   0x5   :  { %1146 = vmatpush3.bf16.msra.mxu1 %v1262_v3  ;;  %v1271_v12 = vld [vmem:[%s1667_s1 + $0x60] sm:$0xff]   ;;  %v1275_v16 = vld [vmem:[%s1667_s1 + $0x58] sm:$0xff]   ;;  %v1279_v20 = vld [vmem:[%s1667_s1 + $0x50] sm:$0xff]  }
   0x6   :  { %1147 = vmatprep.subr.bf16.mxu1 %v1265_v6  ;;  %v1272_v13 = vld [vmem:[%s1667_s1 + $0x20] sm:$0xff]   ;;  %v1276_v17 = vld [vmem:[%s1667_s1 + $0x18] sm:$0xff]   ;;  %v1280_v21 = vld [vmem:[%s1667_s1 + $0x10] sm:$0xff]  }
   0x7   :  { %1120 = vmatpush3.bf16.msra.mxu0 %v1264_v5  ;;  %v1273_v14 = vld [vmem:[%s1667_s1 + $0xe0] sm:$0xff]   ;;  %v1277_v18 = vld [vmem:[%s1667_s1 + $0xd8] sm:$0xff]   ;;  %v1281_v22 = vld [vmem:[%s1667_s1 + $0xd0] sm:$0xff]  }
   0x8   :  { %1121 = vmatprep.subr.bf16.mxu0 %v1267_v8  ;;  %v1274_v15 = vld [vmem:[%s1667_s1 + $0xa0] sm:$0xff]   ;;  %v1278_v19 = vld [vmem:[%s1667_s1 + $0x98] sm:$0xff]   ;;  %v1282_v23 = vld [vmem:[%s1667_s1 + $0x90] sm:$0xff]  }
   0x9   :  { %1148 = vmatpush3.bf16.msra.mxu1 %v1266_v7  ;;  %v1283_v24 = vld [vmem:[%s1667_s1 + $0x48] sm:$0xff]   ;;  %v1287_v28 = vld [vmem:[%s1667_s1 + $0x40] sm:$0xff]   ;;  %v1294_v34 = vld [vmem:[%s1667_s1 + $0x178] sm:$0xff]  }
   0xa   :  { %1149 = vmatprep.subr.bf16.mxu1 %v1269_v10  ;;  %v1284_v25 = vld [vmem:[%s1667_s1 + $0x8] sm:$0xff]   ;;  %v1288_v29 = vld [vmem:[%s1667_s1] sm:$0xff]   ;;  %v1298_v37 = vld [vmem:[%s1667_s1 + $0x138] sm:$0xff]  }
   0xb   :  { %1122 = vmatpush3.bf16.msra.mxu0 %v1268_v9  ;;  %v1285_v26 = vld [vmem:[%s1667_s1 + $0xc8] sm:$0xff]   ;;  %v1289_v30 = vld [vmem:[%s1667_s1 + $0xc0] sm:$0xff]   ;;  %v1299_v38 = vld [vmem:[%s1667_s1 + $0x1f8] sm:$0xff]  }
   0xc   :  { %1123 = vmatprep.subr.bf16.mxu0 %v1271_v12  ;;  %v1286_v27 = vld [vmem:[%s1667_s1 + $0x88] sm:$0xff]   ;;  %v1290_v31 = vld [vmem:[%s1668_s0] ss:$36 sps:$4 sm:$0xff]   ;;  %v1300_v39 = vld [vmem:[%s1667_s1 + $0x1b8] sm:$0xff]  }
   0xd   :  { %1150 = vmatpush3.bf16.msra.mxu1 %v1270_v11  ;;  %v1292_v32 = vld [vmem:[%s1668_s0 + $0x4] ss:$36 sps:$4 sm:$0xff]   ;;  %v1297_v36 = vld [vmem:[%s1668_s0 + $0xc] ss:$36 sps:$4 sm:$0xff]   ;;  %v1313_v52 = vld [vmem:[%s1667_s1 + $0x158] sm:$0xff]  }
   0xe   :  { %1151 = vmatprep.subr.bf16.mxu1 %v1273_v14  ;;  %v1293_v33 = vld [vmem:[%s1667_s1 + $0x80] sm:$0xff]   ;;  %745 = vmatprep.mubr.bf16.mxu0 %v1292_v32  ;;  %v1295_v35 = vld [vmem:[%s1668_s0 + $0x8] ss:$36 sps:$4 sm:$0xff]   ;;  %v1301_v40 = vld [vmem:[%s1667_s1 + $0x170] sm:$0xff]  }
   0xf   :  { %1124 = vmatpush3.bf16.msra.mxu0 %v1272_v13  ;;  %794 = vmatprep.mubr.bf16.mxu1 %v1297_v36  ;;  %v1302_v41 = vld [vmem:[%s1667_s1 + $0x130] sm:$0xff]   ;;  %v1305_v44 = vld [vmem:[%s1667_s1 + $0x168] sm:$0xff]   ;;  %v1309_v48 = vld [vmem:[%s1667_s1 + $0x160] sm:$0xff]  }
  0x10   :  { %1125 = vmatprep.subr.bf16.mxu0 %v1275_v16  ;;  %v1303_v42 = vld [vmem:[%s1667_s1 + $0x1f0] sm:$0xff]   ;;  %v1306_v45 = vld [vmem:[%s1667_s1 + $0x128] sm:$0xff]   ;;  %v1310_v49 = vld [vmem:[%s1667_s1 + $0x120] sm:$0xff]  }
  0x11   :  { %1152 = vmatpush3.bf16.msra.mxu1 %v1274_v15  ;;  %v1304_v43 = vld [vmem:[%s1667_s1 + $0x1b0] sm:$0xff]   ;;  %v1307_v46 = vld [vmem:[%s1667_s1 + $0x1e8] sm:$0xff]   ;;  %v1311_v50 = vld [vmem:[%s1667_s1 + $0x1e0] sm:$0xff]  }
  0x12   :  { %1153 = vmatprep.subr.bf16.mxu1 %v1277_v18  ;;  %v1308_v47 = vld [vmem:[%s1667_s1 + $0x1a8] sm:$0xff]   ;;  %v1312_v51 = vld [vmem:[%s1667_s1 + $0x1a0] sm:$0xff]   ;;  %v1314_v53 = vld [vmem:[%s1667_s1 + $0x118] sm:$0xff]  }
  0x13   :  { %1126 = vmatpush3.bf16.msra.mxu0 %v1276_v17  ;;  %v1315_v54 = vld [vmem:[%s1668_s0 + $0x4c] ss:$36 sps:$4 sm:$0xff]   ;;  %v1317_v55 = vld [vmem:[%s1667_s1 + $0x1d8] sm:$0xff]   ;;  %v1331_v4 = vld [vmem:[%s1667_s1 + $0x140] sm:$0xff]  }
  0x14   :  { %1127 = vmatprep.subr.bf16.mxu0 %v1279_v20  ;;  %v1318_v56 = vld [vmem:[%s1668_s0 + $0x48] ss:$36 sps:$4 sm:$0xff]   ;;  %v1319_v57 = vld [vmem:[%s1667_s1 + $0x198] sm:$0xff]   ;;  %v1322_v59 = vld [vmem:[%s1667_s1 + $0x150] sm:$0xff]  }
  0x15   :  { %1154 = vmatpush3.bf16.msra.mxu1 %v1278_v19  ;;  %v1320_v58 = vld [vmem:[%s1668_s0 + $0x54] ss:$36 sps:$4 sm:$0xff]   ;;  %v1327_v0 = vld [vmem:[%s1667_s1 + $0x148] sm:$0xff]   ;;  %v1332_v5 = vld [vmem:[%s1667_s1 + $0x100] sm:$0xff]  }
  0x16   :  { %1155 = vmatprep.subr.bf16.mxu1 %v1281_v22  ;;  %v1323_v60 = vld [vmem:[%s1668_s0 + $0x50] ss:$36 sps:$4 sm:$0xff]   ;;  %v1328_v1 = vld [vmem:[%s1667_s1 + $0x108] sm:$0xff]   ;;  %v1333_v6 = vld [vmem:[%s1667_s1 + $0x1c0] sm:$0xff]  }
  0x17   :  { %1128 = vmatpush3.bf16.msra.mxu0 %v1280_v21  ;;  %v1324_v61 = vld [vmem:[%s1667_s1 + $0x110] sm:$0xff]   ;;  %v1329_v2 = vld [vmem:[%s1667_s1 + $0x1c8] sm:$0xff]   ;;  %v1337_v9 = vld [vmem:[%s1667_s1 + $0x180] sm:$0xff]  }
  0x18   :  { %1129 = vmatprep.subr.bf16.mxu0 %v1283_v24  ;;  %v1325_v62 = vld [vmem:[%s1667_s1 + $0x1d0] sm:$0xff]   ;;  %v1330_v3 = vld [vmem:[%s1667_s1 + $0x188] sm:$0xff]   ;;  %v1338_v10 = vld [vmem:[%s1667_s1 + $0x238] sm:$0xff]  }
  0x19   :  { %1156 = vmatpush3.bf16.msra.mxu1 %v1282_v23  ;;  %v1326_v63 = vld [vmem:[%s1667_s1 + $0x190] sm:$0xff]   ;;  %v1339_v11 = vld [vmem:[%s1668_s0 + $0x18] ss:$36 sps:$4 sm:$0xff]   ;;  %v1346_v16 = vld [vmem:[%s1667_s1 + $0x228] sm:$0xff]  }
  0x1a   :  { %1157 = vmatprep.subr.bf16.mxu1 %v1285_v26  ;;  %v1334_v7 = vld [vmem:[%s1668_s0 + $0x10] ss:$36 sps:$4 sm:$0xff]   ;;  %v1341_v12 = vld [vmem:[%s1668_s0 + $0x1c] ss:$36 sps:$4 sm:$0xff]   ;;  %v1347_v17 = vld [vmem:[%s1668_s0 + $0x64] ss:$36 sps:$4 sm:$0xff]  }
  0x1b   :  { %1130 = vmatpush3.bf16.msra.mxu0 %v1284_v25  ;;  %v1336_v8 = vld [vmem:[%s1668_s0 + $0x14] ss:$36 sps:$4 sm:$0xff]   ;;  %v1343_v14 = vld [vmem:[%s1668_s0 + $0x5c] ss:$36 sps:$4 sm:$0xff]   ;;  %v1353_v23 = vld [vmem:[%s1667_s1 + $0x208] sm:$0xff]  }
  0x1c   :  { %1131 = vmatprep.subr.bf16.mxu0 %v1287_v28  ;;  %v1342_v13 = vld [vmem:[%s1667_s1 + $0x230] sm:$0xff]   ;;  %v1345_v15 = vld [vmem:[%s1668_s0 + $0x58] ss:$36 sps:$4 sm:$0xff]   ;;  %v1349_v18 = vld [vmem:[%s1668_s0 + $0x60] ss:$36 sps:$4 sm:$0xff]  }
  0x1d   :  { %1158 = vmatpush3.bf16.msra.mxu1 %v1286_v27  ;;  %v1350_v19 = vld [vmem:[%s1667_s1 + $0x220] sm:$0xff]   ;;  %v1351_v20 = vld [vmem:[%s1667_s1 + $0x218] sm:$0xff]   ;;  %v1352_v22 = vld [vmem:[%s1667_s1 + $0x210] sm:$0xff]  }
  0x1e   :  { %1159 = vmatprep.subr.bf16.mxu1 %v1289_v30  ;;  %v1355_v21 = vld [vmem:[%s1668_s0 + $0x20] ss:$36 sps:$4 sm:$0xff]   ;;  %v1356_v25 = vld [vmem:[%s1668_s0 + $0x68] ss:$36 sps:$4 sm:$0xff]  }
  0x1f   :  { %1132 = vmatpush3.bf16.msra.mxu0 %v1288_v29  ;;  %v1354_v24 = vld [vmem:[%s1667_s1 + $0x200] sm:$0xff]  }
  0x20   :  { %1173 = vmatprep.subr.bf16.mxu0 %v1294_v34 }
  0x21   :  { %1160 = vmatpush3.bf16.msra.mxu1 %v1293_v33 }
  0x22   :  { %746 = vmatmul.mubr.bf16.vlgmr.msra.gmra.mxu0 %v1290_v31  ;;  %1201 = vmatprep.subr.bf16.mxu1 %v1299_v38 }
  0x23   :  { %1174 = vmatpush3.bf16.msra.mxu0 %v1298_v37  ;;  %753 = vmatprep.mubr.bf16.mxu0 %v1315_v54 }
  0x24   :  { %795 = vmatmul.mubr.bf16.vlgmr.msra.gmra.mxu1 %v1295_v35  ;;  %1175 = vmatprep.subr.bf16.mxu0 %v1301_v40 }
  0x25   :  { %1202 = vmatpush3.bf16.msra.mxu1 %v1300_v39  ;;  %802 = vmatprep.mubr.bf16.mxu1 %v1320_v58 }
  0x26   :  { %1203 = vmatprep.subr.bf16.mxu1 %v1303_v42 }
  0x27   :  { %1176 = vmatpush3.bf16.msra.mxu0 %v1302_v41 }
  0x28   :  { %1177 = vmatprep.subr.bf16.mxu0 %v1305_v44 }
  0x29   :  { %1204 = vmatpush3.bf16.msra.mxu1 %v1304_v43 }
  0x2a   :  { %1205 = vmatprep.subr.bf16.mxu1 %v1307_v46  ;;  %754 = vmatmul.mubr.bf16.gmra.mxu0 %v1318_v56 }
  0x2b   :  { %1178 = vmatpush3.bf16.msra.mxu0 %v1306_v45  ;;  %843 = vmatprep.mubr.bf16.mxu0 %v1336_v8 }
  0x2c   :  { %1179 = vmatprep.subr.bf16.mxu0 %v1309_v48  ;;  %803 = vmatmul.mubr.bf16.gmra.mxu1 %v1323_v60 }
  0x2d   :  { %1206 = vmatpush3.bf16.msra.mxu1 %v1308_v47  ;;  %892 = vmatprep.mubr.bf16.mxu1 %v1341_v12 }
  0x2e   :  { %1207 = vmatprep.subr.bf16.mxu1 %v1311_v50 }
  0x2f   :  { %1180 = vmatpush3.bf16.msra.mxu0 %v1310_v49 }
  0x30   :  { %1181 = vmatprep.subr.bf16.mxu0 %v1313_v52 }
  0x31   :  { %1208 = vmatpush3.bf16.msra.mxu1 %v1312_v51 }
  0x32   :  { %1209 = vmatprep.subr.bf16.mxu1 %v1317_v55  ;;  %v998_v55 = vld [vmem:[%s1669_s2] ss:$0 sm:$0xff] }
  0x33   :  { %1182 = vmatpush3.bf16.msra.mxu0 %v1314_v53 }
  0x34   :  { %1183 = vmatprep.subr.bf16.mxu0 %v1322_v59 }
  0x35   :  { %1210 = vmatpush3.bf16.msra.mxu1 %v1319_v57 }
  0x36   :  { %1211 = vmatprep.subr.bf16.mxu1 %v1325_v62 }
  0x37   :  { %1184 = vmatpush3.bf16.msra.mxu0 %v1324_v61 }
  0x38   :  { %1185 = vmatprep.subr.bf16.mxu0 %v1327_v0 }
  0x39   :  { %1212 = vmatpush3.bf16.msra.mxu1 %v1326_v63 }
  0x3a   :  { %1213 = vmatprep.subr.bf16.mxu1 %v1329_v2 }
  0x3b   :  { %1186 = vmatpush3.bf16.msra.mxu0 %v1328_v1 }
  0x3c   :  { %1187 = vmatprep.subr.bf16.mxu0 %v1331_v4 }
  0x3d   :  { %1214 = vmatpush3.bf16.msra.mxu1 %v1330_v3 }
  0x3e   :  { %1215 = vmatprep.subr.bf16.mxu1 %v1333_v6 }
  0x3f   :  { %1188 = vmatpush3.bf16.msra.mxu0 %v1332_v5 }
  0x40   :  { %1239 = vmatprep.subr.bf16.mxu0 %v1338_v10 }
  0x41   :  { %1216 = vmatpush3.bf16.msra.mxu1 %v1337_v9 }
  0x42   :  { %844 = vmatmul.mubr.bf16.vlgmr.msra.gmra.mxu0 %v1334_v7 }
  0x43   :  { %1240 = vmatpush3.bf16.msra.mxu0 %v1338_v10  ;;  %851 = vmatprep.mubr.bf16.mxu0 %v1343_v14 }
  0x44   :  { %893 = vmatmul.mubr.bf16.vlgmr.msra.gmra.mxu1 %v1339_v11  ;;  %1241 = vmatprep.subr.bf16.mxu0 %v1342_v13 }
  0x45   :  { %900 = vmatprep.mubr.bf16.mxu1 %v1347_v17 }
  0x47   :  { %1242 = vmatpush3.bf16.msra.mxu0 %v1342_v13 }
  0x48   :  { %1243 = vmatprep.subr.bf16.mxu0 %v1346_v16 }
  0x4a   :  { %852 = vmatmul.mubr.bf16.gmra.mxu0 %v1345_v15 }
  0x4b   :  { %1244 = vmatpush3.bf16.msra.mxu0 %v1346_v16  ;;  %1255 = vmatprep.mubr.bf16.mxu0 %v1355_v21 }
  0x4c   :  { %901 = vmatmul.mubr.bf16.gmra.mxu1 %v1349_v18  ;;  %1245 = vmatprep.subr.bf16.mxu0 %v1350_v19  ;;  %v1115_v18 = vld [vmem:[%s1670_s3 + $0x8] sm:$0xff]  }
  0x4f   :  { %1246 = vmatpush3.bf16.msra.mxu0 %v1350_v19 }
  0x50   :  { %1247 = vmatprep.subr.bf16.mxu0 %v1351_v20 }
  0x53   :  { %1248 = vmatpush3.bf16.msra.mxu0 %v1351_v20 }
  0x54   :  { %1249 = vmatprep.subr.bf16.mxu0 %v1352_v22 }
  0x57   :  { %1250 = vmatpush3.bf16.msra.mxu0 %v1352_v22 }
  0x58   :  { %1251 = vmatprep.subr.bf16.mxu0 %v1353_v23 }
  0x5b   :  { %1252 = vmatpush3.bf16.msra.mxu0 %v1353_v23 }
  0x5c   :  { %1253 = vmatprep.subr.bf16.mxu0 %v1354_v24 }
  0x5f   :  { %1254 = vmatpush3.bf16.msra.mxu0 %v1354_v24  ;;  %v1103_v24 = vunpack.c.l.bf16 %v1115_v18 }
  0x62   :  { %1256 = vmatmul.mubr.bf16.vlgmr.msra.gmra.mxu0 %v1356_v25  ;;  %v1098_v25 = vld [vmem:[%s1670_s3] sm:$0xff]  }
  0xe2   :  { %v1133_v26 = vpop.f32.mrf.mxu0 }
  0xe4   :  { %v1161_v27 = vpop.f32.mrf.mxu1  ;;  %v1134_v28 = vpop.f32.mrf.mxu0 }
  0xe5   :  { %v1135_v54 = vadd.f32 %v1134_v28, %v1133_v26 }
  0xe6   :  { %v1162_v29 = vpop.f32.mrf.mxu1  ;;  %v1136_v30 = vpop.f32.mrf.mxu0 }
  0xe7   :  { %v748_v61 = vadd.f32 %v1135_v54, %v998_v55  ;;  %v1163_v62 = vadd.f32 %v1162_v29, %v1161_v27 }
  0xe8   :  { %v1164_v31 = vpop.f32.mrf.mxu1  ;;  %v1137_v32 = vpop.f32.mrf.mxu0 }
  0xe9   :  { %v1138_v63 = vadd.f32 %v1137_v32, %v1136_v30  ;;  %v797_v7 = vadd.f32 %v1163_v62, %v748_v61  ;;  %v1099_v32 = vunpack.c.l.bf16 %v1098_v25 }
  0xea   :  { %v1139_v33 = vpop.f32.mrf.mxu0  ;;  %v1165_v34 = vpop.f32.mrf.mxu1 }
  0xeb   :  { %v751_v8 = vadd.f32 %v1138_v63, %v998_v55  ;;  %v1166_v9 = vadd.f32 %v1165_v34, %v1164_v31  ;;  %v1104_v34 = vunpack.c.h.bf16 %v1115_v18 }
  0xec   :  { %v1167_v35 = vpop.f32.mrf.mxu1  ;;  %v1140_v36 = vpop.f32.mrf.mxu0 }
  0xed   :  { %v1141_v53 = vadd.f32 %v1140_v36, %v1139_v33  ;;  %v800_v19 = vadd.f32 %v1166_v9, %v751_v8 }
  0xee   :  { %v1168_v37 = vpop.f32.mrf.mxu1  ;;  %v1142_v38 = vpop.f32.mrf.mxu0 }
  0xef   :  { %v756_v58 = vadd.f32 %v1141_v53, %v998_v55  ;;  %v1169_v59 = vadd.f32 %v1168_v37, %v1167_v35 }
  0xf0   :  { %v1170_v39 = vpop.f32.mrf.mxu1  ;;  %v1143_v40 = vpop.f32.mrf.mxu0 }
  0xf1   :  { %v1144_v60 = vadd.f32 %v1143_v40, %v1142_v38  ;;  %v805_v3 = vadd.f32 %v1169_v59, %v756_v58 }
  0xf2   :  { %v1171_v42 = vpop.f32.mrf.mxu1 }
  0xf3   :  { %v759_v4 = vadd.f32 %v1144_v60, %v998_v55  ;;  %v1172_v5 = vadd.f32 %v1171_v42, %v1170_v39  ;;  %v1100_v39 = vunpack.c.h.bf16 %v1098_v25 }
  0xf5   :  { %v808_v14 = vadd.f32 %v1172_v5, %v759_v4 }
 0x102   :  { %v1189_v41 = vpop.f32.mrf.mxu0 }
 0x104   :  { %v1190_v43 = vpop.f32.mrf.mxu0  ;;  %v1217_v44 = vpop.f32.mrf.mxu1 }
 0x105   :  { %v1191_v6 = vadd.f32 %v1190_v43, %v1189_v41 }
 0x106   :  { %v1192_v45 = vpop.f32.mrf.mxu0  ;;  %v1218_v46 = vpop.f32.mrf.mxu1 }
 0x107   :  { %v846_v15 = vadd.f32 %v1191_v6, %v797_v7  ;;  %v1219_v16 = vadd.f32 %v1218_v46, %v1217_v44 }
 0x108   :  { %v1193_v47 = vpop.f32.mrf.mxu0  ;;  %v1220_v48 = vpop.f32.mrf.mxu1 }
 0x109   :  { %v1194_v17 = vadd.f32 %v1193_v47, %v1192_v45  ;;  %v895_v29 = vadd.f32 %v1219_v16, %v846_v15 }
 0x10a   :  { %v1195_v49 = vpop.f32.mrf.mxu0  ;;  %v1221_v50 = vpop.f32.mrf.mxu1 }
 0x10b   :  { %v849_v26 = vadd.f32 %v1194_v17, %v800_v19  ;;  %v1222_v27 = vadd.f32 %v1221_v50, %v1220_v48 }
 0x10c   :  { %v1196_v51 = vpop.f32.mrf.mxu0  ;;  %v1223_v52 = vpop.f32.mrf.mxu1 }
 0x10d   :  { %v1197_v0 = vadd.f32 %v1196_v51, %v1195_v49  ;;  %v898_v38 = vadd.f32 %v1222_v27, %v849_v26 }
 0x10e   :  { %v1198_v56 = vpop.f32.mrf.mxu0  ;;  %v1224_v57 = vpop.f32.mrf.mxu1 }
 0x10f   :  { %v854_v10 = vadd.f32 %v1197_v0, %v805_v3  ;;  %v1225_v11 = vadd.f32 %v1224_v57, %v1223_v52 }
 0x110   :  { %v1199_v1 = vpop.f32.mrf.mxu0  ;;  %v1226_v2 = vpop.f32.mrf.mxu1 }
 0x111   :  { %v1200_v12 = vadd.f32 %v1199_v1, %v1198_v56  ;;  %v903_v22 = vadd.f32 %v1225_v11, %v854_v10 }
 0x112   :  { %v1227_v13 = vpop.f32.mrf.mxu1 }
 0x113   :  { %v857_v20 = vadd.f32 %v1200_v12, %v808_v14  ;;  %v1228_v21 = vadd.f32 %v1227_v13, %v1226_v2 }
 0x115   :  { %v906_v33 = vadd.f32 %v1228_v21, %v857_v20 }
 0x122   :  { %v1257_v23 = vpop.f32.mrf.mxu0 }
 0x123   :  { %v952_v28 = vadd.f32 %v1257_v23, %v903_v22 }
 0x124   :  { %v943_v30 = vpop.f32.mrf.mxu0 }
 0x125   :  { %v944_v31 = vadd.f32 %v943_v30, %v895_v29  ;;  %v968_v36 = vadd.f32 %v1103_v24, %v952_v28 }
 0x126   :  { %v1258_v35 = vpop.f32.mrf.mxu0 }
 0x127   :  { %v955_v37 = vadd.f32 %v1258_v35, %v906_v33  ;;  %v966_v41 = vadd.f32 %v1099_v32, %v944_v31  ;;  %v972_v44 = vmax.f32 %v968_v36, 0.0 }
 0x128   :  { %v946_v40 = vpop.f32.mrf.mxu0 }
 0x129   :  { %v969_v42 = vadd.f32 %v1104_v34, %v955_v37  ;;  %v947_v43 = vadd.f32 %v946_v40, %v898_v38  ;;  %v970_v47 = vmax.f32 %v966_v41, 0.0 }
 0x12b   :  { %v973_v45 = vmax.f32 %v969_v42, 0.0  ;;  %v967_v46 = vadd.f32 %v1100_v39, %v947_v43 }
 0x12d   :  { %v1113_v48 = vpack.c.bf16 %v973_v45, %v972_v44  ;;  %v971_v49 = vmax.f32 %v967_v46, 0.0 }
 0x12f   :  { %1116 = vst [vmem:[%s1671_s4 + $0x8] sm:$0xff] %v1113_v48   ;;  %v1108_v50 = vpack.c.bf16 %v971_v49, %v970_v47 }
 0x131   :  { %1109 = vst [vmem:[%s1671_s4] sm:$0xff] %v1108_v50  }

// kernel: _lambda_.45
= control target key start
LH: loop header
LB: loop body
LE: loop exit
PB: predicated region body
PF: predicated region fallthrough
CT: control target
= control target key end

     0   :  { %s4501_s1 = inlined_call_operand.vmem [shape: bf16[2304,256], index: 1, kind: input, shape index: {}]   ;;  %s4502_s0 = inlined_call_operand.vmem [shape: bf16[32,2304], index: 0, kind: input, shape index: {}]   ;;  %s4503_s2 = inlined_call_operand.vmem [shape: f32[1,256], index: 2, kind: input, shape index: {}]   ;;  %s4504_s3 = inlined_call_operand.vmem [shape: bf16[32,256], index: 3, kind: input, shape index: {}]   ;;  %s4505_s4 = inlined_call_operand.vmem [shape: bf16[32,256], index: 4, kind: output, shape index: {}]  }
   0x1   :  { %v2874_v0 = vld [vmem:[%s4501_s1 + $0x74] ss:$8 sps:$4 sm:$0xff]   ;;  %v2878_v2 = vld [vmem:[%s4501_s1 + $0x70] ss:$8 sps:$4 sm:$0xff]   ;;  %v2880_v4 = vld [vmem:[%s4501_s1 + $0x64] ss:$8 sps:$4 sm:$0xff]  }
   0x2   :  { %v2876_v1 = vld [vmem:[%s4501_s1 + $0x174] ss:$8 sps:$4 sm:$0xff]   ;;  %1973 = vmatprep.subr.bf16.mxu0 %v2874_v0  ;;  %v2879_v3 = vld [vmem:[%s4501_s1 + $0x170] ss:$8 sps:$4 sm:$0xff]   ;;  %v2882_v5 = vld [vmem:[%s4501_s1 + $0x164] ss:$8 sps:$4 sm:$0xff]  }
   0x3   :  { %2026 = vmatprep.subr.bf16.mxu1 %v2876_v1  ;;  %1974 = vmatpush1.bf16.msra.mxu0 %v2878_v2  ;;  %v2884_v6 = vld [vmem:[%s4501_s1 + $0x60] ss:$8 sps:$4 sm:$0xff]   ;;  %v2886_v8 = vld [vmem:[%s4501_s1 + $0x54] ss:$8 sps:$4 sm:$0xff]   ;;  %v2890_v10 = vld [vmem:[%s4501_s1 + $0x50] ss:$8 sps:$4 sm:$0xff]  }
   0x4   :  { %2027 = vmatpush1.bf16.msra.mxu1 %v2879_v3  ;;  %1975 = vmatprep.subr.bf16.mxu0 %v2880_v4  ;;  %v2885_v7 = vld [vmem:[%s4501_s1 + $0x160] ss:$8 sps:$4 sm:$0xff]   ;;  %v2888_v9 = vld [vmem:[%s4501_s1 + $0x154] ss:$8 sps:$4 sm:$0xff]   ;;  %v2891_v11 = vld [vmem:[%s4501_s1 + $0x150] ss:$8 sps:$4 sm:$0xff]  }
   0x5   :  { %2028 = vmatprep.subr.bf16.mxu1 %v2882_v5  ;;  %v2892_v12 = vld [vmem:[%s4501_s1 + $0x44] ss:$8 sps:$4 sm:$0xff]   ;;  %v2896_v14 = vld [vmem:[%s4501_s1 + $0x40] ss:$8 sps:$4 sm:$0xff]   ;;  %v2898_v16 = vld [vmem:[%s4501_s1 + $0x34] ss:$8 sps:$4 sm:$0xff]  }
   0x6   :  { %v2894_v13 = vld [vmem:[%s4501_s1 + $0x144] ss:$8 sps:$4 sm:$0xff]   ;;  %v2897_v15 = vld [vmem:[%s4501_s1 + $0x140] ss:$8 sps:$4 sm:$0xff]   ;;  %v2900_v17 = vld [vmem:[%s4501_s1 + $0x134] ss:$8 sps:$4 sm:$0xff]  }
   0x7   :  { %1976 = vmatpush1.bf16.msra.mxu0 %v2884_v6  ;;  %v2902_v18 = vld [vmem:[%s4501_s1 + $0x30] ss:$8 sps:$4 sm:$0xff]   ;;  %v2904_v20 = vld [vmem:[%s4501_s1 + $0x24] ss:$8 sps:$4 sm:$0xff]   ;;  %v2908_v22 = vld [vmem:[%s4501_s1 + $0x20] ss:$8 sps:$4 sm:$0xff]  }
   0x8   :  { %2029 = vmatpush1.bf16.msra.mxu1 %v2885_v7  ;;  %1977 = vmatprep.subr.bf16.mxu0 %v2886_v8  ;;  %v2903_v19 = vld [vmem:[%s4501_s1 + $0x130] ss:$8 sps:$4 sm:$0xff]   ;;  %v2906_v21 = vld [vmem:[%s4501_s1 + $0x124] ss:$8 sps:$4 sm:$0xff]   ;;  %v2909_v23 = vld [vmem:[%s4501_s1 + $0x120] ss:$8 sps:$4 sm:$0xff]  }
   0x9   :  { %2030 = vmatprep.subr.bf16.mxu1 %v2888_v9  ;;  %v2910_v24 = vld [vmem:[%s4501_s1 + $0x14] ss:$8 sps:$4 sm:$0xff]   ;;  %v2914_v26 = vld [vmem:[%s4501_s1 + $0x10] ss:$8 sps:$4 sm:$0xff]   ;;  %v2916_v28 = vld [vmem:[%s4501_s1 + $0x4] ss:$8 sps:$4 sm:$0xff]  }
   0xa   :  { %v2912_v25 = vld [vmem:[%s4501_s1 + $0x114] ss:$8 sps:$4 sm:$0xff]   ;;  %v2915_v27 = vld [vmem:[%s4501_s1 + $0x110] ss:$8 sps:$4 sm:$0xff]   ;;  %v2918_v29 = vld [vmem:[%s4501_s1 + $0x104] ss:$8 sps:$4 sm:$0xff]  }
   0xb   :  { %1978 = vmatpush1.bf16.msra.mxu0 %v2890_v10  ;;  %v2920_v30 = vld [vmem:[%s4501_s1] ss:$8 sps:$4 sm:$0xff]   ;;  %v2922_v32 = vld [vmem:[%s4501_s1 + $0xf4] ss:$8 sps:$4 sm:$0xff]   ;;  %v2926_v34 = vld [vmem:[%s4501_s1 + $0xf0] ss:$8 sps:$4 sm:$0xff]  }
   0xc   :  { %2031 = vmatpush1.bf16.msra.mxu1 %v2891_v11  ;;  %1979 = vmatprep.subr.bf16.mxu0 %v2892_v12  ;;  %v2921_v31 = vld [vmem:[%s4501_s1 + $0x100] ss:$8 sps:$4 sm:$0xff]   ;;  %v2924_v33 = vld [vmem:[%s4501_s1 + $0x1f4] ss:$8 sps:$4 sm:$0xff]   ;;  %v2927_v35 = vld [vmem:[%s4501_s1 + $0x1f0] ss:$8 sps:$4 sm:$0xff]  }
   0xd   :  { %2032 = vmatprep.subr.bf16.mxu1 %v2894_v13  ;;  %v2928_v36 = vld [vmem:[%s4501_s1 + $0xe4] ss:$8 sps:$4 sm:$0xff]   ;;  %v2932_v38 = vld [vmem:[%s4501_s1 + $0xe0] ss:$8 sps:$4 sm:$0xff]   ;;  %v2934_v40 = vld [vmem:[%s4501_s1 + $0xd4] ss:$8 sps:$4 sm:$0xff]  }
   0xe   :  { %v2930_v37 = vld [vmem:[%s4501_s1 + $0x1e4] ss:$8 sps:$4 sm:$0xff]   ;;  %v2933_v39 = vld [vmem:[%s4501_s1 + $0x1e0] ss:$8 sps:$4 sm:$0xff]   ;;  %v2936_v41 = vld [vmem:[%s4501_s1 + $0x1d4] ss:$8 sps:$4 sm:$0xff]  }
   0xf   :  { %1980 = vmatpush1.bf16.msra.mxu0 %v2896_v14  ;;  %v2938_v42 = vld [vmem:[%s4501_s1 + $0xd0] ss:$8 sps:$4 sm:$0xff]   ;;  %v2940_v44 = vld [vmem:[%s4501_s1 + $0xc4] ss:$8 sps:$4 sm:$0xff]   ;;  %v2944_v46 = vld [vmem:[%s4501_s1 + $0xc0] ss:$8 sps:$4 sm:$0xff]  }
  0x10   :  { %2033 = vmatpush1.bf16.msra.mxu1 %v2897_v15  ;;  %1981 = vmatprep.subr.bf16.mxu0 %v2898_v16  ;;  %v2939_v43 = vld [vmem:[%s4501_s1 + $0x1d0] ss:$8 sps:$4 sm:$0xff]   ;;  %v2942_v45 = vld [vmem:[%s4501_s1 + $0x1c4] ss:$8 sps:$4 sm:$0xff]   ;;  %v2945_v47 = vld [vmem:[%s4501_s1 + $0x1c0] ss:$8 sps:$4 sm:$0xff]  }
  0x11   :  { %2034 = vmatprep.subr.bf16.mxu1 %v2900_v17  ;;  %v2946_v48 = vld [vmem:[%s4501_s1 + $0xb4] ss:$8 sps:$4 sm:$0xff]   ;;  %v2972_v49 = vld [vmem:[%s4502_s0 + $0x4] ss:$72 sps:$4 sm:$0xff]   ;;  %v2950_v52 = vld [vmem:[%s4501_s1 + $0xb0] ss:$8 sps:$4 sm:$0xff]  }
  0x12   :  { %v2948_v50 = vld [vmem:[%s4501_s1 + $0x1b4] ss:$8 sps:$4 sm:$0xff]   ;;  %2005 = vmatprep.mubr.bf16.mxu0 %v2972_v49  ;;  %v2951_v53 = vld [vmem:[%s4501_s1 + $0x1b0] ss:$8 sps:$4 sm:$0xff]   ;;  %v2952_v54 = vld [vmem:[%s4501_s1 + $0xa4] ss:$8 sps:$4 sm:$0xff]  }
  0x13   :  { %1982 = vmatpush1.bf16.msra.mxu0 %v2902_v18  ;;  %v2975_v51 = vld [vmem:[%s4502_s0 + $0xc] ss:$72 sps:$4 sm:$0xff]   ;;  %v2956_v56 = vld [vmem:[%s4501_s1 + $0xa0] ss:$8 sps:$4 sm:$0xff]   ;;  %v2962_v60 = vld [vmem:[%s4501_s1 + $0x90] ss:$8 sps:$4 sm:$0xff]  }
  0x14   :  { %2035 = vmatpush1.bf16.msra.mxu1 %v2903_v19  ;;  %1983 = vmatprep.subr.bf16.mxu0 %v2904_v20  ;;  %v2954_v55 = vld [vmem:[%s4501_s1 + $0x1a4] ss:$8 sps:$4 sm:$0xff]   ;;  %v2957_v57 = vld [vmem:[%s4501_s1 + $0x1a0] ss:$8 sps:$4 sm:$0xff]   ;;  %v2958_v58 = vld [vmem:[%s4501_s1 + $0x94] ss:$8 sps:$4 sm:$0xff]  }
  0x15   :  { %2036 = vmatprep.subr.bf16.mxu1 %v2906_v21  ;;  %2058 = vmatprep.mubr.bf16.mxu1 %v2975_v51  ;;  %v2960_v59 = vld [vmem:[%s4501_s1 + $0x194] ss:$8 sps:$4 sm:$0xff]   ;;  %v2963_v61 = vld [vmem:[%s4501_s1 + $0x190] ss:$8 sps:$4 sm:$0xff]   ;;  %v2964_v62 = vld [vmem:[%s4501_s1 + $0x84] ss:$8 sps:$4 sm:$0xff]  }
  0x16   :  { %v2966_v63 = vld [vmem:[%s4501_s1 + $0x184] ss:$8 sps:$4 sm:$0xff]   ;;  %v2968_v0 = vld [vmem:[%s4501_s1 + $0x80] ss:$8 sps:$4 sm:$0xff]   ;;  %v2978_v2 = vld [vmem:[%s4501_s1 + $0x274] ss:$8 sps:$4 sm:$0xff]  }
  0x17   :  { %1984 = vmatpush1.bf16.msra.mxu0 %v2908_v22  ;;  %v2969_v1 = vld [vmem:[%s4501_s1 + $0x180] ss:$8 sps:$4 sm:$0xff]   ;;  %v2981_v3 = vld [vmem:[%s4501_s1 + $0x374] ss:$8 sps:$4 sm:$0xff]   ;;  %v2976_v6 = vld [vmem:[%s4501_s1 + $0x270] ss:$8 sps:$4 sm:$0xff]  }
  0x18   :  { %2037 = vmatpush1.bf16.msra.mxu1 %v2909_v23  ;;  %1985 = vmatprep.subr.bf16.mxu0 %v2910_v24  ;;  %v2970_v4 = vld [vmem:[%s4502_s0] ss:$72 sps:$4 sm:$0xff]   ;;  %v2979_v7 = vld [vmem:[%s4501_s1 + $0x370] ss:$8 sps:$4 sm:$0xff]   ;;  %v2984_v8 = vld [vmem:[%s4501_s1 + $0x264] ss:$8 sps:$4 sm:$0xff]  }
  0x19   :  { %2038 = vmatprep.subr.bf16.mxu1 %v2912_v25  ;;  %v2973_v5 = vld [vmem:[%s4502_s0 + $0x8] ss:$72 sps:$4 sm:$0xff]   ;;  %v2987_v9 = vld [vmem:[%s4501_s1 + $0x364] ss:$8 sps:$4 sm:$0xff]   ;;  %v2990_v12 = vld [vmem:[%s4501_s1 + $0x254] ss:$8 sps:$4 sm:$0xff]  }
  0x1a   :  { %v2982_v10 = vld [vmem:[%s4501_s1 + $0x260] ss:$8 sps:$4 sm:$0xff]   ;;  %v2993_v13 = vld [vmem:[%s4501_s1 + $0x354] ss:$8 sps:$4 sm:$0xff]   ;;  %v2988_v14 = vld [vmem:[%s4501_s1 + $0x250] ss:$8 sps:$4 sm:$0xff]  }
  0x1b   :  { %1986 = vmatpush1.bf16.msra.mxu0 %v2914_v26  ;;  %v2985_v11 = vld [vmem:[%s4501_s1 + $0x360] ss:$8 sps:$4 sm:$0xff]   ;;  %v2991_v15 = vld [vmem:[%s4501_s1 + $0x350] ss:$8 sps:$4 sm:$0xff]   ;;  %v2996_v16 = vld [vmem:[%s4501_s1 + $0x244] ss:$8 sps:$4 sm:$0xff]  }
  0x1c   :  { %2039 = vmatpush1.bf16.msra.mxu1 %v2915_v27  ;;  %1987 = vmatprep.subr.bf16.mxu0 %v2916_v28  ;;  %v2999_v17 = vld [vmem:[%s4501_s1 + $0x344] ss:$8 sps:$4 sm:$0xff]   ;;  %v2994_v18 = vld [vmem:[%s4501_s1 + $0x240] ss:$8 sps:$4 sm:$0xff]   ;;  %v3002_v20 = vld [vmem:[%s4501_s1 + $0x234] ss:$8 sps:$4 sm:$0xff]  }
  0x1d   :  { %2040 = vmatprep.subr.bf16.mxu1 %v2918_v29  ;;  %v2997_v19 = vld [vmem:[%s4501_s1 + $0x340] ss:$8 sps:$4 sm:$0xff]   ;;  %v3005_v21 = vld [vmem:[%s4501_s1 + $0x334] ss:$8 sps:$4 sm:$0xff]   ;;  %v3000_v23 = vld [vmem:[%s4501_s1 + $0x230] ss:$8 sps:$4 sm:$0xff]  }
  0x1e   :  { %v3048_v22 = vld [vmem:[%s4502_s0 + $0x94] ss:$72 sps:$4 sm:$0xff]   ;;  %v3003_v24 = vld [vmem:[%s4501_s1 + $0x330] ss:$8 sps:$4 sm:$0xff]   ;;  %v3008_v25 = vld [vmem:[%s4501_s1 + $0x224] ss:$8 sps:$4 sm:$0xff]  }
  0x1f   :  { %1988 = vmatpush1.bf16.msra.mxu0 %v2920_v30  ;;  %v3011_v26 = vld [vmem:[%s4501_s1 + $0x324] ss:$8 sps:$4 sm:$0xff]   ;;  %v3056_v27 = vld [vmem:[%s4502_s0 + $0x90] ss:$72 sps:$4 sm:$0xff]   ;;  %v3006_v28 = vld [vmem:[%s4501_s1 + $0x220] ss:$8 sps:$4 sm:$0xff]  }
  0x20   :  { %2041 = vmatpush1.bf16.msra.mxu1 %v2921_v31  ;;  %1989 = vmatprep.subr.bf16.mxu0 %v2922_v32  ;;  %v3057_v29 = vld [vmem:[%s4502_s0 + $0x9c] ss:$72 sps:$4 sm:$0xff]   ;;  %v3009_v30 = vld [vmem:[%s4501_s1 + $0x320] ss:$8 sps:$4 sm:$0xff]  }
  0x21   :  { %2042 = vmatprep.subr.bf16.mxu1 %v2924_v33  ;;  %v3059_v31 = vld [vmem:[%s4502_s0 + $0x98] ss:$72 sps:$4 sm:$0xff]   ;;  %v3014_v32 = vld [vmem:[%s4501_s1 + $0x214] ss:$8 sps:$4 sm:$0xff]  }
  0x22   :  { %v3017_v33 = vld [vmem:[%s4501_s1 + $0x314] ss:$8 sps:$4 sm:$0xff]   ;;  %v3033_v49 = vld [vmem:[%s4501_s1 + $0x3e0] ss:$8 sps:$4 sm:$0xff]  }
  0x23   :  { %1990 = vmatpush2.bf16.msra.mxu0 %v2926_v34  ;;  %v3012_v34 = vld [vmem:[%s4501_s1 + $0x210] ss:$8 sps:$4 sm:$0xff]   ;;  %v3041_v51 = vld [vmem:[%s4501_s1 + $0x3d4] ss:$8 sps:$4 sm:$0xff]  }
  0x24   :  { %2043 = vmatpush2.bf16.msra.mxu1 %v2927_v35  ;;  %1991 = vmatprep.subr.bf16.mxu0 %v2928_v36  ;;  %v3015_v35 = vld [vmem:[%s4501_s1 + $0x310] ss:$8 sps:$4 sm:$0xff]   ;;  %v3020_v36 = vld [vmem:[%s4501_s1 + $0x204] ss:$8 sps:$4 sm:$0xff]  }
  0x25   :  { %2044 = vmatprep.subr.bf16.mxu1 %v2930_v37  ;;  %v3023_v37 = vld [vmem:[%s4501_s1 + $0x304] ss:$8 sps:$4 sm:$0xff]  }
  0x27   :  { %1992 = vmatpush2.bf16.msra.mxu0 %v2932_v38  ;;  %v3018_v38 = vld [vmem:[%s4501_s1 + $0x200] ss:$8 sps:$4 sm:$0xff]  }
  0x28   :  { %2045 = vmatpush2.bf16.msra.mxu1 %v2933_v39  ;;  %1993 = vmatprep.subr.bf16.mxu0 %v2934_v40  ;;  %v3021_v39 = vld [vmem:[%s4501_s1 + $0x300] ss:$8 sps:$4 sm:$0xff]   ;;  %v3026_v40 = vld [vmem:[%s4501_s1 + $0x2f4] ss:$8 sps:$4 sm:$0xff]  }
  0x29   :  { %2046 = vmatprep.subr.bf16.mxu1 %v2936_v41  ;;  %v3080_v41 = vld [vmem:[%s4502_s0 + $0x14] ss:$72 sps:$4 sm:$0xff]  }
  0x2b   :  { %1994 = vmatpush2.bf16.msra.mxu0 %v2938_v42  ;;  %v3029_v42 = vld [vmem:[%s4501_s1 + $0x3f4] ss:$8 sps:$4 sm:$0xff]  }
  0x2c   :  { %2047 = vmatpush2.bf16.msra.mxu1 %v2939_v43  ;;  %1995 = vmatprep.subr.bf16.mxu0 %v2940_v44  ;;  %v3083_v43 = vld [vmem:[%s4502_s0 + $0x1c] ss:$72 sps:$4 sm:$0xff]   ;;  %v3024_v44 = vld [vmem:[%s4501_s1 + $0x2f0] ss:$8 sps:$4 sm:$0xff]  }
  0x2d   :  { %2048 = vmatprep.subr.bf16.mxu1 %v2942_v45  ;;  %v3027_v45 = vld [vmem:[%s4501_s1 + $0x3f0] ss:$8 sps:$4 sm:$0xff]  }
  0x2f   :  { %1996 = vmatpush2.bf16.msra.mxu0 %v2944_v46  ;;  %v3032_v46 = vld [vmem:[%s4501_s1 + $0x2e4] ss:$8 sps:$4 sm:$0xff]  }
  0x30   :  { %2049 = vmatpush2.bf16.msra.mxu1 %v2945_v47  ;;  %1997 = vmatprep.subr.bf16.mxu0 %v2946_v48  ;;  %v3035_v47 = vld [vmem:[%s4501_s1 + $0x3e4] ss:$8 sps:$4 sm:$0xff]   ;;  %v3030_v48 = vld [vmem:[%s4501_s1 + $0x2e0] ss:$8 sps:$4 sm:$0xff]  }
  0x31   :  { %2050 = vmatprep.subr.bf16.mxu1 %v2948_v50  ;;  %v3038_v50 = vld [vmem:[%s4501_s1 + $0x2d4] ss:$8 sps:$4 sm:$0xff]  }
  0x33   :  { %1998 = vmatpush2.bf16.msra.mxu0 %v2950_v52  ;;  %v3036_v52 = vld [vmem:[%s4501_s1 + $0x2d0] ss:$8 sps:$4 sm:$0xff]  }
  0x34   :  { %2051 = vmatpush2.bf16.msra.mxu1 %v2951_v53  ;;  %1999 = vmatprep.subr.bf16.mxu0 %v2952_v54  ;;  %v3039_v53 = vld [vmem:[%s4501_s1 + $0x3d0] ss:$8 sps:$4 sm:$0xff]   ;;  %v3044_v54 = vld [vmem:[%s4501_s1 + $0x2c4] ss:$8 sps:$4 sm:$0xff]  }
  0x35   :  { %2052 = vmatprep.subr.bf16.mxu1 %v2954_v55  ;;  %v3047_v55 = vld [vmem:[%s4501_s1 + $0x3c4] ss:$8 sps:$4 sm:$0xff]  }
  0x37   :  { %2000 = vmatpush2.bf16.msra.mxu0 %v2956_v56  ;;  %v3042_v56 = vld [vmem:[%s4501_s1 + $0x2c0] ss:$8 sps:$4 sm:$0xff]  }
  0x38   :  { %2053 = vmatpush2.bf16.msra.mxu1 %v2957_v57  ;;  %2001 = vmatprep.subr.bf16.mxu0 %v2958_v58  ;;  %v3045_v57 = vld [vmem:[%s4501_s1 + $0x3c0] ss:$8 sps:$4 sm:$0xff]   ;;  %v3052_v58 = vld [vmem:[%s4501_s1 + $0x2b4] ss:$8 sps:$4 sm:$0xff]  }
  0x39   :  { %2054 = vmatprep.subr.bf16.mxu1 %v2960_v59  ;;  %v3055_v59 = vld [vmem:[%s4501_s1 + $0x3b4] ss:$8 sps:$4 sm:$0xff]  }
  0x3b   :  { %2002 = vmatpush2.bf16.msra.mxu0 %v2962_v60  ;;  %v3050_v60 = vld [vmem:[%s4501_s1 + $0x2b0] ss:$8 sps:$4 sm:$0xff]  }
  0x3c   :  { %2055 = vmatpush2.bf16.msra.mxu1 %v2963_v61  ;;  %2003 = vmatprep.subr.bf16.mxu0 %v2964_v62  ;;  %v3053_v61 = vld [vmem:[%s4501_s1 + $0x3b0] ss:$8 sps:$4 sm:$0xff]   ;;  %v3062_v62 = vld [vmem:[%s4501_s1 + $0x2a4] ss:$8 sps:$4 sm:$0xff]  }
  0x3d   :  { %2056 = vmatprep.subr.bf16.mxu1 %v2966_v63  ;;  %v3065_v63 = vld [vmem:[%s4501_s1 + $0x3a4] ss:$8 sps:$4 sm:$0xff]  }
  0x3f   :  { %2004 = vmatpush2.bf16.msra.mxu0 %v2968_v0  ;;  %v3060_v0 = vld [vmem:[%s4501_s1 + $0x2a0] ss:$8 sps:$4 sm:$0xff]  }
  0x40   :  { %2057 = vmatpush2.bf16.msra.mxu1 %v2969_v1  ;;  %2079 = vmatprep.subr.bf16.mxu0 %v2978_v2  ;;  %v3063_v1 = vld [vmem:[%s4501_s1 + $0x3a0] ss:$8 sps:$4 sm:$0xff]   ;;  %v3068_v2 = vld [vmem:[%s4501_s1 + $0x294] ss:$8 sps:$4 sm:$0xff]  }
  0x41   :  { %2132 = vmatprep.subr.bf16.mxu1 %v2981_v3  ;;  %v3071_v3 = vld [vmem:[%s4501_s1 + $0x394] ss:$8 sps:$4 sm:$0xff]  }
  0x42   :  { %2006 = vmatmul.mubr.bf16.vlgmr.msra.gmra.mxu0 %v2970_v4  ;;  %v3066_v4 = vld [vmem:[%s4501_s1 + $0x290] ss:$8 sps:$4 sm:$0xff]  }
  0x43   :  { %2059 = vmatmul.mubr.bf16.vlgmr.msra.gmra.mxu1 %v2973_v5  ;;  %2080 = vmatpush1.bf16.msra.mxu0 %v2976_v6  ;;  %v3069_v5 = vld [vmem:[%s4501_s1 + $0x390] ss:$8 sps:$4 sm:$0xff]   ;;  %v3074_v6 = vld [vmem:[%s4501_s1 + $0x284] ss:$8 sps:$4 sm:$0xff]  }
  0x44   :  { %2133 = vmatpush1.bf16.msra.mxu1 %v2979_v7  ;;  %2081 = vmatprep.subr.bf16.mxu0 %v2984_v8  ;;  %v3077_v7 = vld [vmem:[%s4501_s1 + $0x384] ss:$8 sps:$4 sm:$0xff]   ;;  %v3072_v8 = vld [vmem:[%s4501_s1 + $0x280] ss:$8 sps:$4 sm:$0xff]  }
  0x45   :  { %2134 = vmatprep.subr.bf16.mxu1 %v2987_v9  ;;  %2015 = vmatprep.mubr.bf16.mxu0 %v3048_v22  ;;  %v3075_v9 = vld [vmem:[%s4501_s1 + $0x380] ss:$8 sps:$4 sm:$0xff]   ;;  %v3101_v22 = vld [vmem:[%s4501_s1 + $0x454] ss:$8 sps:$4 sm:$0xff]  }
  0x46   :  { %2068 = vmatprep.mubr.bf16.mxu1 %v3057_v29  ;;  %v3113_v29 = vld [vmem:[%s4501_s1 + $0x544] ss:$8 sps:$4 sm:$0xff]  }
  0x47   :  { %2082 = vmatpush1.bf16.msra.mxu0 %v2982_v10  ;;  %v3086_v10 = vld [vmem:[%s4501_s1 + $0x474] ss:$8 sps:$4 sm:$0xff]  }
  0x48   :  { %2135 = vmatpush1.bf16.msra.mxu1 %v2985_v11  ;;  %2083 = vmatprep.subr.bf16.mxu0 %v2990_v12  ;;  %v3089_v11 = vld [vmem:[%s4501_s1 + $0x574] ss:$8 sps:$4 sm:$0xff]   ;;  %v3078_v12 = vld [vmem:[%s4502_s0 + $0x10] ss:$72 sps:$4 sm:$0xff]  }
  0x49   :  { %2136 = vmatprep.subr.bf16.mxu1 %v2993_v13  ;;  %v3081_v13 = vld [vmem:[%s4502_s0 + $0x18] ss:$72 sps:$4 sm:$0xff]  }
  0x4a   :  { %2016 = vmatmul.mubr.bf16.gmra.mxu0 %v3056_v27  ;;  %v3107_v27 = vld [vmem:[%s4502_s0 + $0xa8] ss:$72 sps:$4 sm:$0xff]  }
  0x4b   :  { %2084 = vmatpush1.bf16.msra.mxu0 %v2988_v14  ;;  %2069 = vmatmul.mubr.bf16.gmra.mxu1 %v3059_v31  ;;  %v3084_v14 = vld [vmem:[%s4501_s1 + $0x470] ss:$8 sps:$4 sm:$0xff]   ;;  %v3111_v31 = vld [vmem:[%s4501_s1 + $0x540] ss:$8 sps:$4 sm:$0xff]  }
  0x4c   :  { %2137 = vmatpush1.bf16.msra.mxu1 %v2991_v15  ;;  %2085 = vmatprep.subr.bf16.mxu0 %v2996_v16  ;;  %v3087_v15 = vld [vmem:[%s4501_s1 + $0x570] ss:$8 sps:$4 sm:$0xff]   ;;  %v3092_v16 = vld [vmem:[%s4501_s1 + $0x464] ss:$8 sps:$4 sm:$0xff]  }
  0x4d   :  { %2138 = vmatprep.subr.bf16.mxu1 %v2999_v17  ;;  %2111 = vmatprep.mubr.bf16.mxu0 %v3080_v41  ;;  %v3095_v17 = vld [vmem:[%s4501_s1 + $0x564] ss:$8 sps:$4 sm:$0xff]   ;;  %v3123_v41 = vld [vmem:[%s4501_s1 + $0x520] ss:$8 sps:$4 sm:$0xff]  }
  0x4e   :  { %2164 = vmatprep.mubr.bf16.mxu1 %v3083_v43  ;;  %v3131_v43 = vld [vmem:[%s4501_s1 + $0x514] ss:$8 sps:$4 sm:$0xff]  }
  0x4f   :  { %2086 = vmatpush1.bf16.msra.mxu0 %v2994_v18  ;;  %v3096_v18 = vld [vmem:[%s4502_s0 + $0xa4] ss:$72 sps:$4 sm:$0xff]  }
  0x50   :  { %2139 = vmatpush1.bf16.msra.mxu1 %v2997_v19  ;;  %2087 = vmatprep.subr.bf16.mxu0 %v3002_v20  ;;  %v3105_v19 = vld [vmem:[%s4502_s0 + $0xac] ss:$72 sps:$4 sm:$0xff]   ;;  %v3090_v20 = vld [vmem:[%s4501_s1 + $0x460] ss:$8 sps:$4 sm:$0xff]  }
  0x51   :  { %2140 = vmatprep.subr.bf16.mxu1 %v3005_v21  ;;  %v3093_v21 = vld [vmem:[%s4501_s1 + $0x560] ss:$8 sps:$4 sm:$0xff]  }
  0x53   :  { %2088 = vmatpush1.bf16.msra.mxu0 %v3000_v23  ;;  %v3104_v23 = vld [vmem:[%s4501_s1 + $0x554] ss:$8 sps:$4 sm:$0xff]  }
  0x54   :  { %2141 = vmatpush1.bf16.msra.mxu1 %v3003_v24  ;;  %2089 = vmatprep.subr.bf16.mxu0 %v3008_v25  ;;  %v3098_v24 = vld [vmem:[%s4502_s0 + $0xa0] ss:$72 sps:$4 sm:$0xff]   ;;  %v3099_v25 = vld [vmem:[%s4501_s1 + $0x450] ss:$8 sps:$4 sm:$0xff]  }
  0x55   :  { %2142 = vmatprep.subr.bf16.mxu1 %v3011_v26  ;;  %v3102_v26 = vld [vmem:[%s4501_s1 + $0x550] ss:$8 sps:$4 sm:$0xff]  }
  0x57   :  { %2090 = vmatpush1.bf16.msra.mxu0 %v3006_v28  ;;  %v3110_v28 = vld [vmem:[%s4501_s1 + $0x444] ss:$8 sps:$4 sm:$0xff]  }
  0x58   :  { %2143 = vmatpush1.bf16.msra.mxu1 %v3009_v30  ;;  %2091 = vmatprep.subr.bf16.mxu0 %v3014_v32  ;;  %v3108_v30 = vld [vmem:[%s4501_s1 + $0x440] ss:$8 sps:$4 sm:$0xff]   ;;  %v3116_v32 = vld [vmem:[%s4501_s1 + $0x434] ss:$8 sps:$4 sm:$0xff]  }
  0x59   :  { %2144 = vmatprep.subr.bf16.mxu1 %v3017_v33  ;;  %v3188_v33 = vld [vmem:[%s4502_s0 + $0x24] ss:$72 sps:$4 sm:$0xff]  }
  0x5b   :  { %2092 = vmatpush1.bf16.msra.mxu0 %v3012_v34  ;;  %v3119_v34 = vld [vmem:[%s4501_s1 + $0x534] ss:$8 sps:$4 sm:$0xff]  }
  0x5c   :  { %2145 = vmatpush1.bf16.msra.mxu1 %v3015_v35  ;;  %2093 = vmatprep.subr.bf16.mxu0 %v3020_v36  ;;  %v3191_v35 = vld [vmem:[%s4502_s0 + $0x2c] ss:$72 sps:$4 sm:$0xff]   ;;  %v3114_v36 = vld [vmem:[%s4501_s1 + $0x430] ss:$8 sps:$4 sm:$0xff]  }
  0x5d   :  { %2146 = vmatprep.subr.bf16.mxu1 %v3023_v37  ;;  %v3117_v37 = vld [vmem:[%s4501_s1 + $0x530] ss:$8 sps:$4 sm:$0xff]  }
  0x5f   :  { %2094 = vmatpush1.bf16.msra.mxu0 %v3018_v38  ;;  %v3122_v38 = vld [vmem:[%s4501_s1 + $0x424] ss:$8 sps:$4 sm:$0xff]  }
  0x60   :  { %2147 = vmatpush1.bf16.msra.mxu1 %v3021_v39  ;;  %2095 = vmatprep.subr.bf16.mxu0 %v3026_v40  ;;  %v3125_v39 = vld [vmem:[%s4501_s1 + $0x524] ss:$8 sps:$4 sm:$0xff]   ;;  %v3120_v40 = vld [vmem:[%s4501_s1 + $0x420] ss:$8 sps:$4 sm:$0xff]  }
  0x61   :  { %2148 = vmatprep.subr.bf16.mxu1 %v3029_v42  ;;  %v3128_v42 = vld [vmem:[%s4501_s1 + $0x414] ss:$8 sps:$4 sm:$0xff]  }
  0x63   :  { %2096 = vmatpush2.bf16.msra.mxu0 %v3024_v44  ;;  %v3126_v44 = vld [vmem:[%s4501_s1 + $0x410] ss:$8 sps:$4 sm:$0xff]  }
  0x64   :  { %2149 = vmatpush2.bf16.msra.mxu1 %v3027_v45  ;;  %2097 = vmatprep.subr.bf16.mxu0 %v3032_v46  ;;  %v3129_v45 = vld [vmem:[%s4501_s1 + $0x510] ss:$8 sps:$4 sm:$0xff]   ;;  %v3134_v46 = vld [vmem:[%s4501_s1 + $0x404] ss:$8 sps:$4 sm:$0xff]  }
  0x65   :  { %2150 = vmatprep.subr.bf16.mxu1 %v3035_v47  ;;  %v3137_v47 = vld [vmem:[%s4501_s1 + $0x504] ss:$8 sps:$4 sm:$0xff]  }
  0x67   :  { %2098 = vmatpush2.bf16.msra.mxu0 %v3030_v48  ;;  %v3132_v48 = vld [vmem:[%s4501_s1 + $0x400] ss:$8 sps:$4 sm:$0xff]  }
  0x68   :  { %2151 = vmatpush2.bf16.msra.mxu1 %v3033_v49  ;;  %2099 = vmatprep.subr.bf16.mxu0 %v3038_v50  ;;  %v3135_v49 = vld [vmem:[%s4501_s1 + $0x500] ss:$8 sps:$4 sm:$0xff]   ;;  %v3140_v50 = vld [vmem:[%s4501_s1 + $0x4f4] ss:$8 sps:$4 sm:$0xff]  }
  0x69   :  { %2152 = vmatprep.subr.bf16.mxu1 %v3041_v51  ;;  %v3143_v51 = vld [vmem:[%s4501_s1 + $0x5f4] ss:$8 sps:$4 sm:$0xff]  }
  0x6b   :  { %2100 = vmatpush2.bf16.msra.mxu0 %v3036_v52  ;;  %v3138_v52 = vld [vmem:[%s4501_s1 + $0x4f0] ss:$8 sps:$4 sm:$0xff]  }
  0x6c   :  { %2153 = vmatpush2.bf16.msra.mxu1 %v3039_v53  ;;  %2101 = vmatprep.subr.bf16.mxu0 %v3044_v54  ;;  %v3141_v53 = vld [vmem:[%s4501_s1 + $0x5f0] ss:$8 sps:$4 sm:$0xff]   ;;  %v3146_v54 = vld [vmem:[%s4501_s1 + $0x4e4] ss:$8 sps:$4 sm:$0xff]  }
  0x6d   :  { %2154 = vmatprep.subr.bf16.mxu1 %v3047_v55  ;;  %v3149_v55 = vld [vmem:[%s4501_s1 + $0x5e4] ss:$8 sps:$4 sm:$0xff]  }
  0x6f   :  { %2102 = vmatpush2.bf16.msra.mxu0 %v3042_v56  ;;  %v3144_v56 = vld [vmem:[%s4501_s1 + $0x4e0] ss:$8 sps:$4 sm:$0xff]  }
  0x70   :  { %2155 = vmatpush2.bf16.msra.mxu1 %v3045_v57  ;;  %2103 = vmatprep.subr.bf16.mxu0 %v3052_v58  ;;  %v3147_v57 = vld [vmem:[%s4501_s1 + $0x5e0] ss:$8 sps:$4 sm:$0xff]   ;;  %v3152_v58 = vld [vmem:[%s4501_s1 + $0x4d4] ss:$8 sps:$4 sm:$0xff]  }
  0x71   :  { %2156 = vmatprep.subr.bf16.mxu1 %v3055_v59  ;;  %v3155_v59 = vld [vmem:[%s4501_s1 + $0x5d4] ss:$8 sps:$4 sm:$0xff]  }
  0x73   :  { %2104 = vmatpush2.bf16.msra.mxu0 %v3050_v60  ;;  %v3150_v60 = vld [vmem:[%s4501_s1 + $0x4d0] ss:$8 sps:$4 sm:$0xff]  }
  0x74   :  { %2157 = vmatpush2.bf16.msra.mxu1 %v3053_v61  ;;  %2105 = vmatprep.subr.bf16.mxu0 %v3062_v62  ;;  %v3153_v61 = vld [vmem:[%s4501_s1 + $0x5d0] ss:$8 sps:$4 sm:$0xff]   ;;  %v3158_v62 = vld [vmem:[%s4501_s1 + $0x4c4] ss:$8 sps:$4 sm:$0xff]  }
  0x75   :  { %2158 = vmatprep.subr.bf16.mxu1 %v3065_v63  ;;  %v3161_v63 = vld [vmem:[%s4501_s1 + $0x5c4] ss:$8 sps:$4 sm:$0xff]  }
  0x77   :  { %2106 = vmatpush2.bf16.msra.mxu0 %v3060_v0  ;;  %v3156_v0 = vld [vmem:[%s4501_s1 + $0x4c0] ss:$8 sps:$4 sm:$0xff]  }
  0x78   :  { %2159 = vmatpush2.bf16.msra.mxu1 %v3063_v1  ;;  %2107 = vmatprep.subr.bf16.mxu0 %v3068_v2  ;;  %v3159_v1 = vld [vmem:[%s4501_s1 + $0x5c0] ss:$8 sps:$4 sm:$0xff]   ;;  %v3164_v2 = vld [vmem:[%s4501_s1 + $0x4b4] ss:$8 sps:$4 sm:$0xff]  }
  0x79   :  { %2160 = vmatprep.subr.bf16.mxu1 %v3071_v3  ;;  %v3167_v3 = vld [vmem:[%s4501_s1 + $0x5b4] ss:$8 sps:$4 sm:$0xff]  }
  0x7b   :  { %2108 = vmatpush2.bf16.msra.mxu0 %v3066_v4  ;;  %v3162_v4 = vld [vmem:[%s4501_s1 + $0x4b0] ss:$8 sps:$4 sm:$0xff]  }
  0x7c   :  { %2161 = vmatpush2.bf16.msra.mxu1 %v3069_v5  ;;  %2109 = vmatprep.subr.bf16.mxu0 %v3074_v6  ;;  %v3165_v5 = vld [vmem:[%s4501_s1 + $0x5b0] ss:$8 sps:$4 sm:$0xff]   ;;  %v3170_v6 = vld [vmem:[%s4501_s1 + $0x4a4] ss:$8 sps:$4 sm:$0xff]  }
  0x7d   :  { %2162 = vmatprep.subr.bf16.mxu1 %v3077_v7  ;;  %v3173_v7 = vld [vmem:[%s4501_s1 + $0x5a4] ss:$8 sps:$4 sm:$0xff]  }
  0x7f   :  { %2110 = vmatpush2.bf16.msra.mxu0 %v3072_v8  ;;  %v3168_v8 = vld [vmem:[%s4501_s1 + $0x4a0] ss:$8 sps:$4 sm:$0xff]  }
  0x80   :  { %2163 = vmatpush2.bf16.msra.mxu1 %v3075_v9  ;;  %2185 = vmatprep.subr.bf16.mxu0 %v3086_v10  ;;  %v3171_v9 = vld [vmem:[%s4501_s1 + $0x5a0] ss:$8 sps:$4 sm:$0xff]   ;;  %v3176_v10 = vld [vmem:[%s4501_s1 + $0x494] ss:$8 sps:$4 sm:$0xff]  }
  0x81   :  { %2238 = vmatprep.subr.bf16.mxu1 %v3089_v11  ;;  %v3179_v11 = vld [vmem:[%s4501_s1 + $0x594] ss:$8 sps:$4 sm:$0xff]  }
  0x82   :  { %2112 = vmatmul.mubr.bf16.vlgmr.msra.gmra.mxu0 %v3078_v12  ;;  %v3174_v12 = vld [vmem:[%s4501_s1 + $0x490] ss:$8 sps:$4 sm:$0xff]  }
  0x83   :  { %2165 = vmatmul.mubr.bf16.vlgmr.msra.gmra.mxu1 %v3081_v13  ;;  %2186 = vmatpush1.bf16.msra.mxu0 %v3084_v14  ;;  %v3177_v13 = vld [vmem:[%s4501_s1 + $0x590] ss:$8 sps:$4 sm:$0xff]   ;;  %v3182_v14 = vld [vmem:[%s4501_s1 + $0x484] ss:$8 sps:$4 sm:$0xff]  }
  0x84   :  { %2239 = vmatpush1.bf16.msra.mxu1 %v3087_v15  ;;  %2187 = vmatprep.subr.bf16.mxu0 %v3092_v16  ;;  %v3185_v15 = vld [vmem:[%s4501_s1 + $0x584] ss:$8 sps:$4 sm:$0xff]   ;;  %v3180_v16 = vld [vmem:[%s4501_s1 + $0x480] ss:$8 sps:$4 sm:$0xff]  }
  0x85   :  { %2240 = vmatprep.subr.bf16.mxu1 %v3095_v17  ;;  %2121 = vmatprep.mubr.bf16.mxu0 %v3096_v18  ;;  %v3183_v17 = vld [vmem:[%s4501_s1 + $0x580] ss:$8 sps:$4 sm:$0xff]   ;;  %v3194_v18 = vld [vmem:[%s4501_s1 + $0x674] ss:$8 sps:$4 sm:$0xff]  }
  0x86   :  { %2174 = vmatprep.mubr.bf16.mxu1 %v3105_v19  ;;  %v3197_v19 = vld [vmem:[%s4501_s1 + $0x774] ss:$8 sps:$4 sm:$0xff]  }
  0x87   :  { %2188 = vmatpush1.bf16.msra.mxu0 %v3090_v20  ;;  %v3186_v20 = vld [vmem:[%s4502_s0 + $0x20] ss:$72 sps:$4 sm:$0xff]  }
  0x88   :  { %2241 = vmatpush1.bf16.msra.mxu1 %v3093_v21  ;;  %2189 = vmatprep.subr.bf16.mxu0 %v3101_v22  ;;  %v3189_v21 = vld [vmem:[%s4502_s0 + $0x28] ss:$72 sps:$4 sm:$0xff]  }
  0x89   :  { %2242 = vmatprep.subr.bf16.mxu1 %v3104_v23  ;;  %v3192_v22 = vld [vmem:[%s4501_s1 + $0x670] ss:$8 sps:$4 sm:$0xff]  }
  0x8a   :  { %2122 = vmatmul.mubr.bf16.gmra.mxu0 %v3098_v24  ;;  %v3195_v23 = vld [vmem:[%s4501_s1 + $0x770] ss:$8 sps:$4 sm:$0xff]   ;;  %v3200_v24 = vld [vmem:[%s4501_s1 + $0x664] ss:$8 sps:$4 sm:$0xff]  }
  0x8b   :  { %2175 = vmatmul.mubr.bf16.gmra.mxu1 %v3107_v27  ;;  %2190 = vmatpush1.bf16.msra.mxu0 %v3099_v25  ;;  %v3203_v25 = vld [vmem:[%s4501_s1 + $0x764] ss:$8 sps:$4 sm:$0xff]  }
  0x8c   :  { %2243 = vmatpush1.bf16.msra.mxu1 %v3102_v26  ;;  %2191 = vmatprep.subr.bf16.mxu0 %v3110_v28  ;;  %v3204_v26 = vld [vmem:[%s4502_s0 + $0xb4] ss:$72 sps:$4 sm:$0xff]   ;;  %v3198_v28 = vld [vmem:[%s4501_s1 + $0x660] ss:$8 sps:$4 sm:$0xff]  }
  0x8d   :  { %2244 = vmatprep.subr.bf16.mxu1 %v3113_v29  ;;  %2217 = vmatprep.mubr.bf16.mxu0 %v3188_v33  ;;  %v3213_v27 = vld [vmem:[%s4502_s0 + $0xbc] ss:$72 sps:$4 sm:$0xff]   ;;  %v3201_v29 = vld [vmem:[%s4501_s1 + $0x760] ss:$8 sps:$4 sm:$0xff]   ;;  %v3207_v33 = vld [vmem:[%s4501_s1 + $0x650] ss:$8 sps:$4 sm:$0xff]  }
  0x8e   :  { %2270 = vmatprep.mubr.bf16.mxu1 %v3191_v35  ;;  %v3210_v35 = vld [vmem:[%s4501_s1 + $0x750] ss:$8 sps:$4 sm:$0xff]  }
  0x8f   :  { %2192 = vmatpush1.bf16.msra.mxu0 %v3108_v30  ;;  %v3209_v30 = vld [vmem:[%s4501_s1 + $0x654] ss:$8 sps:$4 sm:$0xff]  }
  0x90   :  { %2245 = vmatpush1.bf16.msra.mxu1 %v3111_v31  ;;  %2193 = vmatprep.subr.bf16.mxu0 %v3116_v32  ;;  %v3212_v31 = vld [vmem:[%s4501_s1 + $0x754] ss:$8 sps:$4 sm:$0xff]   ;;  %v3206_v32 = vld [vmem:[%s4502_s0 + $0xb0] ss:$72 sps:$4 sm:$0xff]  }
  0x91   :  { %2246 = vmatprep.subr.bf16.mxu1 %v3119_v34  ;;  %v3215_v34 = vld [vmem:[%s4502_s0 + $0xb8] ss:$72 sps:$4 sm:$0xff]  }
  0x93   :  { %2194 = vmatpush1.bf16.msra.mxu0 %v3114_v36  ;;  %v3218_v36 = vld [vmem:[%s4501_s1 + $0x644] ss:$8 sps:$4 sm:$0xff]  }
  0x94   :  { %2247 = vmatpush1.bf16.msra.mxu1 %v3117_v37  ;;  %2195 = vmatprep.subr.bf16.mxu0 %v3122_v38  ;;  %v3221_v37 = vld [vmem:[%s4501_s1 + $0x744] ss:$8 sps:$4 sm:$0xff]   ;;  %v3296_v38 = vld [vmem:[%s4502_s0 + $0x34] ss:$72 sps:$4 sm:$0xff]  }
  0x95   :  { %2248 = vmatprep.subr.bf16.mxu1 %v3125_v39  ;;  %v3299_v39 = vld [vmem:[%s4502_s0 + $0x3c] ss:$72 sps:$4 sm:$0xff]  }
  0x97   :  { %2196 = vmatpush1.bf16.msra.mxu0 %v3120_v40  ;;  %v3216_v40 = vld [vmem:[%s4501_s1 + $0x640] ss:$8 sps:$4 sm:$0xff]  }
  0x98   :  { %2249 = vmatpush1.bf16.msra.mxu1 %v3123_v41  ;;  %2197 = vmatprep.subr.bf16.mxu0 %v3128_v42  ;;  %v3219_v41 = vld [vmem:[%s4501_s1 + $0x740] ss:$8 sps:$4 sm:$0xff]   ;;  %v3224_v42 = vld [vmem:[%s4501_s1 + $0x634] ss:$8 sps:$4 sm:$0xff]  }
  0x99   :  { %2250 = vmatprep.subr.bf16.mxu1 %v3131_v43  ;;  %v3227_v43 = vld [vmem:[%s4501_s1 + $0x734] ss:$8 sps:$4 sm:$0xff]  }
  0x9b   :  { %2198 = vmatpush1.bf16.msra.mxu0 %v3126_v44  ;;  %v3222_v44 = vld [vmem:[%s4501_s1 + $0x630] ss:$8 sps:$4 sm:$0xff]  }
  0x9c   :  { %2251 = vmatpush1.bf16.msra.mxu1 %v3129_v45  ;;  %2199 = vmatprep.subr.bf16.mxu0 %v3134_v46  ;;  %v3225_v45 = vld [vmem:[%s4501_s1 + $0x730] ss:$8 sps:$4 sm:$0xff]   ;;  %v3230_v46 = vld [vmem:[%s4501_s1 + $0x624] ss:$8 sps:$4 sm:$0xff]  }
  0x9d   :  { %2252 = vmatprep.subr.bf16.mxu1 %v3137_v47  ;;  %v3233_v47 = vld [vmem:[%s4501_s1 + $0x724] ss:$8 sps:$4 sm:$0xff]  }
  0x9f   :  { %2200 = vmatpush1.bf16.msra.mxu0 %v3132_v48  ;;  %v3228_v48 = vld [vmem:[%s4501_s1 + $0x620] ss:$8 sps:$4 sm:$0xff]  }
  0xa0   :  { %2253 = vmatpush1.bf16.msra.mxu1 %v3135_v49  ;;  %2201 = vmatprep.subr.bf16.mxu0 %v3140_v50  ;;  %v3231_v49 = vld [vmem:[%s4501_s1 + $0x720] ss:$8 sps:$4 sm:$0xff]   ;;  %v3236_v50 = vld [vmem:[%s4501_s1 + $0x614] ss:$8 sps:$4 sm:$0xff]  }
  0xa1   :  { %2254 = vmatprep.subr.bf16.mxu1 %v3143_v51  ;;  %v3239_v51 = vld [vmem:[%s4501_s1 + $0x714] ss:$8 sps:$4 sm:$0xff]  }
  0xa3   :  { %2202 = vmatpush2.bf16.msra.mxu0 %v3138_v52  ;;  %v3234_v52 = vld [vmem:[%s4501_s1 + $0x610] ss:$8 sps:$4 sm:$0xff]  }
  0xa4   :  { %2255 = vmatpush2.bf16.msra.mxu1 %v3141_v53  ;;  %2203 = vmatprep.subr.bf16.mxu0 %v3146_v54  ;;  %v3237_v53 = vld [vmem:[%s4501_s1 + $0x710] ss:$8 sps:$4 sm:$0xff]   ;;  %v3242_v54 = vld [vmem:[%s4501_s1 + $0x604] ss:$8 sps:$4 sm:$0xff]  }
  0xa5   :  { %2256 = vmatprep.subr.bf16.mxu1 %v3149_v55  ;;  %v3245_v55 = vld [vmem:[%s4501_s1 + $0x704] ss:$8 sps:$4 sm:$0xff]  }
  0xa7   :  { %2204 = vmatpush2.bf16.msra.mxu0 %v3144_v56  ;;  %v3240_v56 = vld [vmem:[%s4501_s1 + $0x600] ss:$8 sps:$4 sm:$0xff]  }
  0xa8   :  { %2257 = vmatpush2.bf16.msra.mxu1 %v3147_v57  ;;  %2205 = vmatprep.subr.bf16.mxu0 %v3152_v58  ;;  %v3243_v57 = vld [vmem:[%s4501_s1 + $0x700] ss:$8 sps:$4 sm:$0xff]   ;;  %v3248_v58 = vld [vmem:[%s4501_s1 + $0x6f4] ss:$8 sps:$4 sm:$0xff]  }
  0xa9   :  { %2258 = vmatprep.subr.bf16.mxu1 %v3155_v59  ;;  %v3251_v59 = vld [vmem:[%s4501_s1 + $0x7f4] ss:$8 sps:$4 sm:$0xff]  }
  0xab   :  { %2206 = vmatpush2.bf16.msra.mxu0 %v3150_v60  ;;  %v3246_v60 = vld [vmem:[%s4501_s1 + $0x6f0] ss:$8 sps:$4 sm:$0xff]  }
  0xac   :  { %2259 = vmatpush2.bf16.msra.mxu1 %v3153_v61  ;;  %2207 = vmatprep.subr.bf16.mxu0 %v3158_v62  ;;  %v3249_v61 = vld [vmem:[%s4501_s1 + $0x7f0] ss:$8 sps:$4 sm:$0xff]   ;;  %v3254_v62 = vld [vmem:[%s4501_s1 + $0x6e4] ss:$8 sps:$4 sm:$0xff]  }
  0xad   :  { %2260 = vmatprep.subr.bf16.mxu1 %v3161_v63  ;;  %v3257_v63 = vld [vmem:[%s4501_s1 + $0x7e4] ss:$8 sps:$4 sm:$0xff]  }
  0xaf   :  { %2208 = vmatpush2.bf16.msra.mxu0 %v3156_v0  ;;  %v3252_v0 = vld [vmem:[%s4501_s1 + $0x6e0] ss:$8 sps:$4 sm:$0xff]  }
  0xb0   :  { %2261 = vmatpush2.bf16.msra.mxu1 %v3159_v1  ;;  %2209 = vmatprep.subr.bf16.mxu0 %v3164_v2  ;;  %v3255_v1 = vld [vmem:[%s4501_s1 + $0x7e0] ss:$8 sps:$4 sm:$0xff]   ;;  %v3260_v2 = vld [vmem:[%s4501_s1 + $0x6d4] ss:$8 sps:$4 sm:$0xff]  }
  0xb1   :  { %2262 = vmatprep.subr.bf16.mxu1 %v3167_v3  ;;  %v3263_v3 = vld [vmem:[%s4501_s1 + $0x7d4] ss:$8 sps:$4 sm:$0xff]  }
  0xb3   :  { %2210 = vmatpush2.bf16.msra.mxu0 %v3162_v4  ;;  %v3258_v4 = vld [vmem:[%s4501_s1 + $0x6d0] ss:$8 sps:$4 sm:$0xff]  }
  0xb4   :  { %2263 = vmatpush2.bf16.msra.mxu1 %v3165_v5  ;;  %2211 = vmatprep.subr.bf16.mxu0 %v3170_v6  ;;  %v3261_v5 = vld [vmem:[%s4501_s1 + $0x7d0] ss:$8 sps:$4 sm:$0xff]   ;;  %v3266_v6 = vld [vmem:[%s4501_s1 + $0x6c4] ss:$8 sps:$4 sm:$0xff]  }
  0xb5   :  { %2264 = vmatprep.subr.bf16.mxu1 %v3173_v7  ;;  %v3269_v7 = vld [vmem:[%s4501_s1 + $0x7c4] ss:$8 sps:$4 sm:$0xff]  }
  0xb7   :  { %2212 = vmatpush2.bf16.msra.mxu0 %v3168_v8  ;;  %v3264_v8 = vld [vmem:[%s4501_s1 + $0x6c0] ss:$8 sps:$4 sm:$0xff]  }
  0xb8   :  { %2265 = vmatpush2.bf16.msra.mxu1 %v3171_v9  ;;  %2213 = vmatprep.subr.bf16.mxu0 %v3176_v10  ;;  %v3267_v9 = vld [vmem:[%s4501_s1 + $0x7c0] ss:$8 sps:$4 sm:$0xff]   ;;  %v3272_v10 = vld [vmem:[%s4501_s1 + $0x6b4] ss:$8 sps:$4 sm:$0xff]  }
  0xb9   :  { %2266 = vmatprep.subr.bf16.mxu1 %v3179_v11  ;;  %v3275_v11 = vld [vmem:[%s4501_s1 + $0x7b4] ss:$8 sps:$4 sm:$0xff]  }
  0xbb   :  { %2214 = vmatpush2.bf16.msra.mxu0 %v3174_v12  ;;  %v3270_v12 = vld [vmem:[%s4501_s1 + $0x6b0] ss:$8 sps:$4 sm:$0xff]  }
  0xbc   :  { %2267 = vmatpush2.bf16.msra.mxu1 %v3177_v13  ;;  %2215 = vmatprep.subr.bf16.mxu0 %v3182_v14  ;;  %v3273_v13 = vld [vmem:[%s4501_s1 + $0x7b0] ss:$8 sps:$4 sm:$0xff]   ;;  %v3278_v14 = vld [vmem:[%s4501_s1 + $0x6a4] ss:$8 sps:$4 sm:$0xff]  }
  0xbd   :  { %2268 = vmatprep.subr.bf16.mxu1 %v3185_v15  ;;  %v3281_v15 = vld [vmem:[%s4501_s1 + $0x7a4] ss:$8 sps:$4 sm:$0xff]  }
  0xbf   :  { %2216 = vmatpush2.bf16.msra.mxu0 %v3180_v16  ;;  %v3276_v16 = vld [vmem:[%s4501_s1 + $0x6a0] ss:$8 sps:$4 sm:$0xff]  }
  0xc0   :  { %2269 = vmatpush2.bf16.msra.mxu1 %v3183_v17  ;;  %2291 = vmatprep.subr.bf16.mxu0 %v3194_v18  ;;  %v3279_v17 = vld [vmem:[%s4501_s1 + $0x7a0] ss:$8 sps:$4 sm:$0xff]   ;;  %v3284_v18 = vld [vmem:[%s4501_s1 + $0x694] ss:$8 sps:$4 sm:$0xff]  }
  0xc1   :  { %2344 = vmatprep.subr.bf16.mxu1 %v3197_v19  ;;  %v3287_v19 = vld [vmem:[%s4501_s1 + $0x794] ss:$8 sps:$4 sm:$0xff]  }
  0xc2   :  { %2218 = vmatmul.mubr.bf16.vlgmr.msra.gmra.mxu0 %v3186_v20  ;;  %v3282_v20 = vld [vmem:[%s4501_s1 + $0x690] ss:$8 sps:$4 sm:$0xff]  }
  0xc3   :  { %2271 = vmatmul.mubr.bf16.vlgmr.msra.gmra.mxu1 %v3189_v21  ;;  %2292 = vmatpush1.bf16.msra.mxu0 %v3192_v22  ;;  %v3285_v21 = vld [vmem:[%s4501_s1 + $0x790] ss:$8 sps:$4 sm:$0xff]   ;;  %v3290_v22 = vld [vmem:[%s4501_s1 + $0x684] ss:$8 sps:$4 sm:$0xff]  }
  0xc4   :  { %2345 = vmatpush1.bf16.msra.mxu1 %v3195_v23  ;;  %2293 = vmatprep.subr.bf16.mxu0 %v3200_v24  ;;  %v3293_v23 = vld [vmem:[%s4501_s1 + $0x784] ss:$8 sps:$4 sm:$0xff]   ;;  %v3288_v24 = vld [vmem:[%s4501_s1 + $0x680] ss:$8 sps:$4 sm:$0xff]  }
  0xc5   :  { %2346 = vmatprep.subr.bf16.mxu1 %v3203_v25  ;;  %2227 = vmatprep.mubr.bf16.mxu0 %v3204_v26  ;;  %v3291_v25 = vld [vmem:[%s4501_s1 + $0x780] ss:$8 sps:$4 sm:$0xff]   ;;  %v3302_v26 = vld [vmem:[%s4501_s1 + $0x874] ss:$8 sps:$4 sm:$0xff]  }
  0xc6   :  { %2280 = vmatprep.mubr.bf16.mxu1 %v3213_v27  ;;  %v3294_v27 = vld [vmem:[%s4502_s0 + $0x30] ss:$72 sps:$4 sm:$0xff]  }
  0xc7   :  { %2294 = vmatpush1.bf16.msra.mxu0 %v3198_v28  ;;  %v3297_v28 = vld [vmem:[%s4502_s0 + $0x38] ss:$72 sps:$4 sm:$0xff]  }
  0xc8   :  { %2347 = vmatpush1.bf16.msra.mxu1 %v3201_v29  ;;  %2295 = vmatprep.subr.bf16.mxu0 %v3209_v30  ;;  %v3300_v29 = vld [vmem:[%s4501_s1 + $0x870] ss:$8 sps:$4 sm:$0xff]   ;;  %v3305_v30 = vld [vmem:[%s4501_s1 + $0x864] ss:$8 sps:$4 sm:$0xff]  }
  0xc9   :  { %2348 = vmatprep.subr.bf16.mxu1 %v3212_v31  ;;  %v3306_v31 = vld [vmem:[%s4502_s0 + $0xc4] ss:$72 sps:$4 sm:$0xff]  }
  0xca   :  { %2228 = vmatmul.mubr.bf16.gmra.mxu0 %v3206_v32  ;;  %v3312_v32 = vld [vmem:[%s4502_s0 + $0xcc] ss:$72 sps:$4 sm:$0xff]  }
  0xcb   :  { %2281 = vmatmul.mubr.bf16.gmra.mxu1 %v3215_v34  ;;  %2296 = vmatpush1.bf16.msra.mxu0 %v3207_v33  ;;  %v3303_v33 = vld [vmem:[%s4501_s1 + $0x860] ss:$8 sps:$4 sm:$0xff]   ;;  %v3311_v34 = vld [vmem:[%s4501_s1 + $0x854] ss:$8 sps:$4 sm:$0xff]  }
  0xcc   :  { %2349 = vmatpush1.bf16.msra.mxu1 %v3210_v35  ;;  %2297 = vmatprep.subr.bf16.mxu0 %v3218_v36  ;;  %v3308_v35 = vld [vmem:[%s4502_s0 + $0xc0] ss:$72 sps:$4 sm:$0xff]  }
  0xcd   :  { %2350 = vmatprep.subr.bf16.mxu1 %v3221_v37  ;;  %2323 = vmatprep.mubr.bf16.mxu0 %v3296_v38  ;;  %v3314_v36 = vld [vmem:[%s4502_s0 + $0xc8] ss:$72 sps:$4 sm:$0xff]   ;;  %v3317_v38 = vld [vmem:[%s4501_s1 + $0x844] ss:$8 sps:$4 sm:$0xff]  }
  0xce   :  { %2376 = vmatprep.mubr.bf16.mxu1 %v3299_v39  ;;  %v3309_v37 = vld [vmem:[%s4501_s1 + $0x850] ss:$8 sps:$4 sm:$0xff]   ;;  %v3356_v39 = vld [vmem:[%s4502_s0 + $0x44] ss:$72 sps:$4 sm:$0xff]  }
  0xcf   :  { %2298 = vmatpush1.bf16.msra.mxu0 %v3216_v40  ;;  %v3359_v40 = vld [vmem:[%s4502_s0 + $0xd4] ss:$72 sps:$4 sm:$0xff]  }
  0xd0   :  { %2351 = vmatpush1.bf16.msra.mxu1 %v3219_v41  ;;  %2299 = vmatprep.subr.bf16.mxu0 %v3224_v42  ;;  %v3315_v41 = vld [vmem:[%s4501_s1 + $0x840] ss:$8 sps:$4 sm:$0xff]   ;;  %v3320_v42 = vld [vmem:[%s4501_s1 + $0x834] ss:$8 sps:$4 sm:$0xff]  }
  0xd1   :  { %2352 = vmatprep.subr.bf16.mxu1 %v3227_v43  ;;  %v3318_v43 = vld [vmem:[%s4501_s1 + $0x830] ss:$8 sps:$4 sm:$0xff]  }
  0xd3   :  { %2300 = vmatpush1.bf16.msra.mxu0 %v3222_v44  ;;  %v3323_v44 = vld [vmem:[%s4501_s1 + $0x824] ss:$8 sps:$4 sm:$0xff]  }
  0xd4   :  { %2353 = vmatpush1.bf16.msra.mxu1 %v3225_v45  ;;  %2301 = vmatprep.subr.bf16.mxu0 %v3230_v46  ;;  %v3321_v45 = vld [vmem:[%s4501_s1 + $0x820] ss:$8 sps:$4 sm:$0xff]   ;;  %v3326_v46 = vld [vmem:[%s4501_s1 + $0x814] ss:$8 sps:$4 sm:$0xff]  }
  0xd5   :  { %2354 = vmatprep.subr.bf16.mxu1 %v3233_v47  ;;  %v3324_v47 = vld [vmem:[%s4501_s1 + $0x810] ss:$8 sps:$4 sm:$0xff]  }
  0xd7   :  { %2302 = vmatpush1.bf16.msra.mxu0 %v3228_v48  ;;  %v3329_v48 = vld [vmem:[%s4501_s1 + $0x804] ss:$8 sps:$4 sm:$0xff]  }
  0xd8   :  { %2355 = vmatpush1.bf16.msra.mxu1 %v3231_v49  ;;  %2303 = vmatprep.subr.bf16.mxu0 %v3236_v50  ;;  %v3327_v49 = vld [vmem:[%s4501_s1 + $0x800] ss:$8 sps:$4 sm:$0xff]   ;;  %v3332_v50 = vld [vmem:[%s4501_s1 + $0x8f4] ss:$8 sps:$4 sm:$0xff]  }
  0xd9   :  { %2356 = vmatprep.subr.bf16.mxu1 %v3239_v51  ;;  %v3330_v51 = vld [vmem:[%s4501_s1 + $0x8f0] ss:$8 sps:$4 sm:$0xff]  }
  0xdb   :  { %2304 = vmatpush1.bf16.msra.mxu0 %v3234_v52  ;;  %v3335_v52 = vld [vmem:[%s4501_s1 + $0x8e4] ss:$8 sps:$4 sm:$0xff]  }
  0xdc   :  { %2357 = vmatpush1.bf16.msra.mxu1 %v3237_v53  ;;  %2305 = vmatprep.subr.bf16.mxu0 %v3242_v54  ;;  %v3333_v53 = vld [vmem:[%s4501_s1 + $0x8e0] ss:$8 sps:$4 sm:$0xff]   ;;  %v3338_v54 = vld [vmem:[%s4501_s1 + $0x8d4] ss:$8 sps:$4 sm:$0xff]  }
  0xdd   :  { %2358 = vmatprep.subr.bf16.mxu1 %v3245_v55  ;;  %v3336_v55 = vld [vmem:[%s4501_s1 + $0x8d0] ss:$8 sps:$4 sm:$0xff]  }
  0xdf   :  { %2306 = vmatpush1.bf16.msra.mxu0 %v3240_v56  ;;  %v3341_v56 = vld [vmem:[%s4501_s1 + $0x8c4] ss:$8 sps:$4 sm:$0xff]  }
  0xe0   :  { %2359 = vmatpush1.bf16.msra.mxu1 %v3243_v57  ;;  %2307 = vmatprep.subr.bf16.mxu0 %v3248_v58  ;;  %v3339_v57 = vld [vmem:[%s4501_s1 + $0x8c0] ss:$8 sps:$4 sm:$0xff]   ;;  %v3344_v58 = vld [vmem:[%s4501_s1 + $0x8b4] ss:$8 sps:$4 sm:$0xff]  }
  0xe1   :  { %2360 = vmatprep.subr.bf16.mxu1 %v3251_v59  ;;  %v3342_v59 = vld [vmem:[%s4501_s1 + $0x8b0] ss:$8 sps:$4 sm:$0xff]  }
  0xe3   :  { %2308 = vmatpush2.bf16.msra.mxu0 %v3246_v60  ;;  %v3347_v60 = vld [vmem:[%s4501_s1 + $0x8a4] ss:$8 sps:$4 sm:$0xff]  }
  0xe4   :  { %2361 = vmatpush2.bf16.msra.mxu1 %v3249_v61  ;;  %2309 = vmatprep.subr.bf16.mxu0 %v3254_v62  ;;  %v3345_v61 = vld [vmem:[%s4501_s1 + $0x8a0] ss:$8 sps:$4 sm:$0xff]   ;;  %v3350_v62 = vld [vmem:[%s4501_s1 + $0x894] ss:$8 sps:$4 sm:$0xff]  }
  0xe5   :  { %2362 = vmatprep.subr.bf16.mxu1 %v3257_v63  ;;  %v3348_v63 = vld [vmem:[%s4501_s1 + $0x890] ss:$8 sps:$4 sm:$0xff]  }
  0xe7   :  { %2310 = vmatpush2.bf16.msra.mxu0 %v3252_v0  ;;  %v3353_v0 = vld [vmem:[%s4501_s1 + $0x884] ss:$8 sps:$4 sm:$0xff]  }
  0xe8   :  { %2363 = vmatpush2.bf16.msra.mxu1 %v3255_v1  ;;  %2311 = vmatprep.subr.bf16.mxu0 %v3260_v2  ;;  %v3351_v1 = vld [vmem:[%s4501_s1 + $0x880] ss:$8 sps:$4 sm:$0xff]  }
  0xe9   :  { %2364 = vmatprep.subr.bf16.mxu1 %v3263_v3  ;;  %v3354_v2 = vld [vmem:[%s4502_s0 + $0x40] ss:$72 sps:$4 sm:$0xff]   ;;  %v3357_v3 = vld [vmem:[%s4502_s0 + $0xd0] ss:$72 sps:$4 sm:$0xff]  }
  0xeb   :  { %2312 = vmatpush2.bf16.msra.mxu0 %v3258_v4 }
  0xec   :  { %2365 = vmatpush2.bf16.msra.mxu1 %v3261_v5  ;;  %2313 = vmatprep.subr.bf16.mxu0 %v3266_v6 }
  0xed   :  { %2366 = vmatprep.subr.bf16.mxu1 %v3269_v7 }
  0xef   :  { %2314 = vmatpush2.bf16.msra.mxu0 %v3264_v8 }
  0xf0   :  { %2367 = vmatpush2.bf16.msra.mxu1 %v3267_v9  ;;  %2315 = vmatprep.subr.bf16.mxu0 %v3272_v10 }
  0xf1   :  { %2368 = vmatprep.subr.bf16.mxu1 %v3275_v11 }
  0xf3   :  { %2316 = vmatpush2.bf16.msra.mxu0 %v3270_v12 }
  0xf4   :  { %2369 = vmatpush2.bf16.msra.mxu1 %v3273_v13  ;;  %2317 = vmatprep.subr.bf16.mxu0 %v3278_v14 }
  0xf5   :  { %2370 = vmatprep.subr.bf16.mxu1 %v3281_v15 }
  0xf7   :  { %2318 = vmatpush2.bf16.msra.mxu0 %v3276_v16 }
  0xf8   :  { %2371 = vmatpush2.bf16.msra.mxu1 %v3279_v17  ;;  %2319 = vmatprep.subr.bf16.mxu0 %v3284_v18 }
  0xf9   :  { %2372 = vmatprep.subr.bf16.mxu1 %v3287_v19 }
  0xfb   :  { %2320 = vmatpush2.bf16.msra.mxu0 %v3282_v20 }
  0xfc   :  { %2373 = vmatpush2.bf16.msra.mxu1 %v3285_v21  ;;  %2321 = vmatprep.subr.bf16.mxu0 %v3290_v22 }
  0xfd   :  { %2374 = vmatprep.subr.bf16.mxu1 %v3293_v23 }
  0xff   :  { %2322 = vmatpush2.bf16.msra.mxu0 %v3288_v24 }
 0x100   :  { %2375 = vmatpush2.bf16.msra.mxu1 %v3291_v25  ;;  %2397 = vmatprep.subr.bf16.mxu0 %v3302_v26 }
 0x101   :  { %2842 = vmatprep.subr.bf16.mxu1 %v3302_v26 }
 0x102   :  { %2324 = vmatmul.mubr.bf16.vlgmr.msra.gmra.mxu0 %v3294_v27  ;;  %v2007_v4 = vpop.f32.mrf.mxu0 }
 0x103   :  { %2377 = vmatmul.mubr.bf16.vlgmr.msra.gmra.mxu1 %v3297_v28  ;;  %2398 = vmatpush1.bf16.msra.mxu0 %v3300_v29  ;;  %v4357_v6 = vpop.f32.mrf.mxu1 }
 0x104   :  { %2858 = vmatpush1.bf16.msra.mxu1 %v3300_v29  ;;  %2399 = vmatprep.subr.bf16.mxu0 %v3305_v30  ;;  %v2009_v5 = vpop.f32.mrf.mxu0 }
 0x105   :  { %2843 = vmatprep.subr.bf16.mxu1 %v3305_v30  ;;  %2333 = vmatprep.mubr.bf16.mxu0 %v3306_v31  ;;  %v4361_v8 = vpop.f32.mrf.mxu1 }
 0x106   :  { %2386 = vmatprep.mubr.bf16.mxu1 %v3312_v32  ;;  %v4359_v7 = vpop.f32.mrf.mxu0 }
 0x107   :  { %2400 = vmatpush1.bf16.msra.mxu0 %v3303_v33  ;;  %v4365_v10 = vpop.f32.mrf.mxu1 }
 0x108   :  { %2859 = vmatpush1.bf16.msra.mxu1 %v3303_v33  ;;  %2401 = vmatprep.subr.bf16.mxu0 %v3311_v34  ;;  %v4363_v9 = vpop.f32.mrf.mxu0 }
 0x109   :  { %2844 = vmatprep.subr.bf16.mxu1 %v3311_v34  ;;  %v4367_v12 = vpop.f32.mrf.mxu1 }
 0x10a   :  { %2334 = vmatmul.mubr.bf16.gmra.mxu0 %v3308_v35  ;;  %v2017_v11 = vpop.f32.mrf.mxu0 }
 0x10b   :  { %2387 = vmatmul.mubr.bf16.gmra.mxu1 %v3314_v36  ;;  %2402 = vmatpush1.bf16.msra.mxu0 %v3309_v37  ;;  %v2070_v14 = vpop.f32.mrf.mxu1 }
 0x10c   :  { %2860 = vmatpush1.bf16.msra.mxu1 %v3309_v37  ;;  %2403 = vmatprep.subr.bf16.mxu0 %v3317_v38  ;;  %v2019_v13 = vpop.f32.mrf.mxu0 }
 0x10d   :  { %2845 = vmatprep.subr.bf16.mxu1 %v3317_v38  ;;  %2429 = vmatprep.mubr.bf16.mxu0 %v3356_v39  ;;  %v2072_v16 = vpop.f32.mrf.mxu1 }
 0x10e   :  { %2439 = vmatprep.mubr.bf16.mxu1 %v3359_v40  ;;  %v2021_v15 = vpop.f32.mrf.mxu0 }
 0x10f   :  { %2404 = vmatpush1.bf16.msra.mxu0 %v3315_v41  ;;  %v4369_v18 = vpop.f32.mrf.mxu1 }
 0x110   :  { %2861 = vmatpush1.bf16.msra.mxu1 %v3315_v41  ;;  %2405 = vmatprep.subr.bf16.mxu0 %v3320_v42  ;;  %v2023_v17 = vpop.f32.mrf.mxu0 }
 0x111   :  { %2846 = vmatprep.subr.bf16.mxu1 %v3320_v42  ;;  %v4371_v20 = vpop.f32.mrf.mxu1 }
 0x113   :  { %2406 = vmatpush1.bf16.msra.mxu0 %v3318_v43 }
 0x114   :  { %2862 = vmatpush1.bf16.msra.mxu1 %v3318_v43  ;;  %2407 = vmatprep.subr.bf16.mxu0 %v3323_v44 }
 0x115   :  { %2847 = vmatprep.subr.bf16.mxu1 %v3323_v44 }
 0x117   :  { %2408 = vmatpush1.bf16.msra.mxu0 %v3321_v45 }
 0x118   :  { %2863 = vmatpush1.bf16.msra.mxu1 %v3321_v45  ;;  %2409 = vmatprep.subr.bf16.mxu0 %v3326_v46 }
 0x119   :  { %2848 = vmatprep.subr.bf16.mxu1 %v3326_v46 }
 0x11b   :  { %2410 = vmatpush1.bf16.msra.mxu0 %v3324_v47 }
 0x11c   :  { %2864 = vmatpush1.bf16.msra.mxu1 %v3324_v47  ;;  %2411 = vmatprep.subr.bf16.mxu0 %v3329_v48  ;;  %v343_v47 = vlaneseq }
 0x11d   :  { %2849 = vmatprep.subr.bf16.mxu1 %v3329_v48 }
 0x11f   :  { %2412 = vmatpush1.bf16.msra.mxu0 %v3327_v49 }
 0x120   :  { %2865 = vmatpush1.bf16.msra.mxu1 %v3327_v49  ;;  %2413 = vmatprep.subr.bf16.mxu0 %v3332_v50 }
 0x121   :  { %2850 = vmatprep.subr.bf16.mxu1 %v3332_v50  ;;  %v344_v50 = vshrl.u32 %v343_v47, 7 }
 0x123   :  { %2414 = vmatpush2.bf16.msra.mxu0 %v3330_v51 }
 0x124   :  { %2866 = vmatpush2.bf16.msra.mxu1 %v3330_v51  ;;  %2415 = vmatprep.subr.bf16.mxu0 %v3335_v52 }
 0x125   :  { %2851 = vmatprep.subr.bf16.mxu1 %v3335_v52 }
 0x127   :  { %2416 = vmatpush2.bf16.msra.mxu0 %v3333_v53 }
 0x128   :  { %2867 = vmatpush2.bf16.msra.mxu1 %v3333_v53  ;;  %2417 = vmatprep.subr.bf16.mxu0 %v3338_v54  ;;  %v345_v53 = vsub.s32 0, %v344_v50 }
 0x129   :  { %2852 = vmatprep.subr.bf16.mxu1 %v3338_v54  ;;  %v341_v54 = vld [vmem:[%s4503_s2] sm:$0x3] }
 0x12b   :  { %2418 = vmatpush2.bf16.msra.mxu0 %v3336_v55 }
 0x12c   :  { %2868 = vmatpush2.bf16.msra.mxu1 %v3336_v55  ;;  %2419 = vmatprep.subr.bf16.mxu0 %v3341_v56  ;;  %v349_v55 = vsub.s32 1, %v344_v50 }
 0x12d   :  { %2853 = vmatprep.subr.bf16.mxu1 %v3341_v56 }
 0x12f   :  { %2420 = vmatpush2.bf16.msra.mxu0 %v3339_v57 }
 0x130   :  { %2869 = vmatpush2.bf16.msra.mxu1 %v3339_v57  ;;  %2421 = vmatprep.subr.bf16.mxu0 %v3344_v58 }
 0x131   :  { %2854 = vmatprep.subr.bf16.mxu1 %v3344_v58 }
 0x133   :  { %2422 = vmatpush2.bf16.msra.mxu0 %v3342_v59 }
 0x134   :  { %2870 = vmatpush2.bf16.msra.mxu1 %v3342_v59  ;;  %2423 = vmatprep.subr.bf16.mxu0 %v3347_v60  ;;  %v346_v59 = vrot.slane %v341_v54, %v345_v53 }
 0x135   :  { %2855 = vmatprep.subr.bf16.mxu1 %v3347_v60  ;;  %v350_v60 = vrot.slane %v341_v54, %v349_v55 }
 0x136   :  { %v2022_v54 = vadd.f32 %v2021_v15, %v346_v59 }
 0x137   :  { %2424 = vmatpush2.bf16.msra.mxu0 %v3345_v61  ;;  %v2014_v53 = vadd.f32 %v4363_v9, %v350_v60 }
 0x138   :  { %2871 = vmatpush2.bf16.msra.mxu1 %v3345_v61  ;;  %2425 = vmatprep.subr.bf16.mxu0 %v3350_v62 }
 0x139   :  { %2856 = vmatprep.subr.bf16.mxu1 %v3350_v62 }
 0x13b   :  { %2426 = vmatpush2.bf16.msra.mxu0 %v3348_v63 }
 0x13c   :  { %2872 = vmatpush2.bf16.msra.mxu1 %v3348_v63  ;;  %2427 = vmatprep.subr.bf16.mxu0 %v3353_v0  ;;  %v2008_v63 = vadd.f32 %v2007_v4, %v346_v59 }
 0x13d   :  { %2857 = vmatprep.subr.bf16.mxu1 %v3353_v0  ;;  %v2018_v0 = vadd.f32 %v2017_v11, %v346_v59  ;;  %v2024_v11 = vadd.f32 %v2023_v17, %v350_v60 }
 0x13e   :  { %v2061_v50 = vadd.f32 %v4357_v6, %v2008_v63 }
 0x13f   :  { %2428 = vmatpush2.bf16.msra.mxu0 %v3351_v1  ;;  %v2077_v9 = vadd.f32 %v4371_v20, %v2024_v11 }
 0x140   :  { %2873 = vmatpush2.bf16.msra.mxu1 %v3351_v1  ;;  %v2010_v1 = vadd.f32 %v2009_v5, %v350_v60 }
 0x142   :  { %2430 = vmatmul.mubr.bf16.vlgmr.msra.gmra.mxu0 %v3354_v2  ;;  %v2113_v19 = vpop.f32.mrf.mxu0 }
 0x143   :  { %2440 = vmatmul.mubr.bf16.vlgmr.msra.gmra.mxu1 %v3357_v3  ;;  %v4373_v22 = vpop.f32.mrf.mxu1  ;;  %v2020_v3 = vadd.f32 %v2019_v13, %v350_v60  ;;  %v2114_v5 = vadd.f32 %v2113_v19, %v2061_v50 }
 0x144   :  { %v2115_v21 = vpop.f32.mrf.mxu0 }
 0x145   :  { %v4377_v24 = vpop.f32.mrf.mxu1  ;;  %v2073_v4 = vadd.f32 %v2072_v16, %v2020_v3  ;;  %v2167_v15 = vadd.f32 %v4373_v22, %v2114_v5 }
 0x146   :  { %v4375_v23 = vpop.f32.mrf.mxu0 }
 0x147   :  { %v4381_v26 = vpop.f32.mrf.mxu1 }
 0x148   :  { %v4379_v25 = vpop.f32.mrf.mxu0 }
 0x149   :  { %v4383_v28 = vpop.f32.mrf.mxu1 }
 0x14a   :  { %v2123_v27 = vpop.f32.mrf.mxu0 }
 0x14b   :  { %v2176_v30 = vpop.f32.mrf.mxu1 }
 0x14c   :  { %v2125_v29 = vpop.f32.mrf.mxu0 }
 0x14d   :  { %v4387_v32 = vpop.f32.mrf.mxu1 }
 0x14e   :  { %v4385_v31 = vpop.f32.mrf.mxu0 }
 0x14f   :  { %v4391_v34 = vpop.f32.mrf.mxu1 }
 0x150   :  { %v4389_v33 = vpop.f32.mrf.mxu0 }
 0x151   :  { %v4395_v36 = vpop.f32.mrf.mxu1 }
 0x182   :  { %v4393_v35 = vpop.f32.mrf.mxu0 }
 0x183   :  { %v4397_v37 = vpop.f32.mrf.mxu1 }
 0x184   :  { %v2221_v38 = vpop.f32.mrf.mxu0 }
 0x185   :  { %v4399_v39 = vpop.f32.mrf.mxu1 }
 0x186   :  { %v4401_v40 = vpop.f32.mrf.mxu0 }
 0x187   :  { %v4403_v41 = vpop.f32.mrf.mxu1 }
 0x188   :  { %v4405_v42 = vpop.f32.mrf.mxu0 }
 0x189   :  { %v4407_v43 = vpop.f32.mrf.mxu1 }
 0x18a   :  { %v2229_v44 = vpop.f32.mrf.mxu0 }
 0x18b   :  { %v4409_v45 = vpop.f32.mrf.mxu1 }
 0x18c   :  { %v2231_v46 = vpop.f32.mrf.mxu0 }
 0x18d   :  { %v4411_v48 = vpop.f32.mrf.mxu1 }
 0x18e   :  { %v4413_v49 = vpop.f32.mrf.mxu0 }
 0x18f   :  { %v4415_v51 = vpop.f32.mrf.mxu1 }
 0x190   :  { %4506 = vst [vmem:[#allocation2_spill] sm:$0xff] %v4415_v51  ;;  %v4417_v52 = vpop.f32.mrf.mxu0  ;;  %v2063_v51 = vadd.f32 %v4361_v8, %v2010_v1  ;;  %v2075_v8 = vadd.f32 %v4369_v18, %v2022_v54  ;;  %v2220_v18 = vadd.f32 %v4393_v35, %v2167_v15 }
 0x191   :  { %v4422_v56 = vpop.f32.mrf.mxu1 }
 0x192   :  { %4507 = vst [vmem:[#allocation3_spill] sm:$0xff] %v4422_v56  ;;  %v2071_v56 = vadd.f32 %v2070_v14, %v2018_v0  ;;  %v2067_v14 = vadd.f32 %v4367_v12, %v2014_v53  ;;  %v2130_v12 = vadd.f32 %v4389_v33, %v2077_v9 }
 0x1c2   :  { %v4424_v57 = vpop.f32.mrf.mxu0 }
 0x1c3   :  { %v4426_v58 = vpop.f32.mrf.mxu1 }
 0x1c4   :  { %4508 = vst [vmem:[#allocation4_spill] sm:$0xff] %v4426_v58  ;;  %v2327_v61 = vpop.f32.mrf.mxu0  ;;  %v2012_v58 = vadd.f32 %v4359_v7, %v346_v59 }
 0x1c5   :  { %v4428_v62 = vpop.f32.mrf.mxu1 }
 0x1c6   :  { %4509 = vst [vmem:[#allocation5_spill] sm:$0xff] %v4428_v62  ;;  %v4430_v2 = vpop.f32.mrf.mxu0  ;;  %v2124_v62 = vadd.f32 %v2123_v27, %v2071_v56  ;;  %v2065_v6 = vadd.f32 %v4365_v10, %v2012_v58  ;;  %v2128_v27 = vadd.f32 %v4385_v31, %v2075_v8  ;;  %v2273_v31 = vadd.f32 %v4397_v37, %v2220_v18 }
 0x1c7   :  { %4510 = vst [vmem:[#allocation6_spill] sm:$0xff] %v4430_v2  ;;  %v4432_v47 = vpop.f32.mrf.mxu1  ;;  %v2116_v2 = vadd.f32 %v2115_v21, %v2063_v51  ;;  %v2120_v21 = vadd.f32 %v4379_v25, %v2067_v14  ;;  %v2183_v25 = vadd.f32 %v4395_v36, %v2130_v12 }
 0x1c8   :  { %4511 = vst [vmem:[#allocation7_spill] sm:$0xff] %v4432_v47  ;;  %v4438_v55 = vpop.f32.mrf.mxu0  ;;  %v2126_v47 = vadd.f32 %v2125_v29, %v2073_v4  ;;  %v2177_v16 = vadd.f32 %v2176_v30, %v2124_v62  ;;  %v2118_v19 = vadd.f32 %v4375_v23, %v2065_v6  ;;  %v2181_v23 = vadd.f32 %v4391_v34, %v2128_v27  ;;  %v2452_v34 = vld [vmem:[%s4504_s3 + $0x10] sm:$0xff]  ;;  %v4512_v62 = vld [vmem:[#allocation2_spill] sm:$0xff] }
 0x1c9   :  { %v4440_v13 = vpop.f32.mrf.mxu1  ;;  %v2169_v17 = vadd.f32 %v4377_v24, %v2116_v2  ;;  %v2173_v24 = vadd.f32 %v4383_v28, %v2120_v21  ;;  %v2450_v28 = vld [vmem:[%s4504_s3] sm:$0xff]  ;;  %v2236_v37 = vadd.f32 %v4417_v52, %v2183_v25  ;;  %v2458_v58 = vunpack.c.l.bf16 %v2452_v34 }
 0x1ca   :  { %v2335_v7 = vpop.f32.mrf.mxu0  ;;  %v2179_v10 = vadd.f32 %v4387_v32, %v2126_v47  ;;  %v2230_v29 = vadd.f32 %v2229_v44, %v2177_v16  ;;  %v2171_v30 = vadd.f32 %v4381_v26, %v2118_v19  ;;  %v2234_v44 = vadd.f32 %v4413_v49, %v2181_v23  ;;  %v4513_v47 = vld [vmem:[#allocation3_spill] sm:$0xff] }
 0x1cb   :  { %v2388_v63 = vpop.f32.mrf.mxu1  ;;  %v2222_v51 = vadd.f32 %v2221_v38, %v2169_v17  ;;  %v2226_v38 = vadd.f32 %v4405_v42, %v2173_v24  ;;  %v2454_v49 = vunpack.c.l.bf16 %v2450_v28  ;;  %v2455_v3 = vunpack.c.h.bf16 %v2450_v28  ;;  %v4514_v50 = vld [vmem:[#allocation4_spill] sm:$0xff] }
 0x1cc   :  { %v2337_v20 = vpop.f32.mrf.mxu0  ;;  %v2232_v22 = vadd.f32 %v2231_v46, %v2179_v10  ;;  %v2283_v32 = vadd.f32 %v4409_v45, %v2230_v29  ;;  %v2224_v35 = vadd.f32 %v4401_v40, %v2171_v30  ;;  %v2287_v0 = vadd.f32 %v4512_v62, %v2234_v44 }
 0x1cd   :  { %v2390_v56 = vpop.f32.mrf.mxu1  ;;  %v2275_v33 = vadd.f32 %v4399_v39, %v2222_v51  ;;  %v2326_v39 = vadd.f32 %v4424_v57, %v2273_v31  ;;  %v2279_v60 = vadd.f32 %v4407_v43, %v2226_v38  ;;  %v2459_v57 = vunpack.c.h.bf16 %v2452_v34  ;;  %v4515_v43 = vld [vmem:[#allocation5_spill] sm:$0xff] }
 0x1ce   :  { %v2339_v46 = vpop.f32.mrf.mxu0  ;;  %v2285_v36 = vadd.f32 %v4411_v48, %v2232_v22  ;;  %v2336_v40 = vadd.f32 %v2335_v7, %v2283_v32  ;;  %v2277_v59 = vadd.f32 %v4403_v41, %v2224_v35  ;;  %v2289_v48 = vadd.f32 %v4513_v47, %v2236_v37  ;;  %v2453_v41 = vld [vmem:[%s4504_s3 + $0x18] sm:$0xff]  ;;  %v4516_v4 = vld [vmem:[#allocation6_spill] sm:$0xff] }
 0x1cf   :  { %v2392_v26 = vpop.f32.mrf.mxu1  ;;  %v2328_v42 = vadd.f32 %v2327_v61, %v2275_v33  ;;  %v2379_v52 = vadd.f32 %v4514_v50, %v2326_v39  ;;  %v2451_v61 = vld [vmem:[%s4504_s3 + $0x8] sm:$0xff]  ;;  %v2332_v5 = vadd.f32 %v4438_v55, %v2279_v60  ;;  %v2340_v6 = vadd.f32 %v2339_v46, %v2287_v0 }
 0x1d0   :  { %v2338_v45 = vadd.f32 %v2337_v20, %v2285_v36  ;;  %v2341_v1 = vpop.f32.mrf.mxu0  ;;  %v2389_v53 = vadd.f32 %v2388_v63, %v2336_v40  ;;  %v2330_v11 = vadd.f32 %v4516_v4, %v2277_v59  ;;  %v2456_v19 = vunpack.c.l.bf16 %v2451_v61  ;;  %v4517_v29 = vld [vmem:[#allocation7_spill] sm:$0xff] }
 0x1d1   :  { %v2394_v2 = vpop.f32.mrf.mxu1  ;;  %v2381_v54 = vadd.f32 %v4515_v43, %v2328_v42  ;;  %v2342_v63 = vadd.f32 %v2341_v1, %v2289_v48  ;;  %v2460_v21 = vunpack.c.l.bf16 %v2453_v41  ;;  %v2393_v20 = vadd.f32 %v2392_v26, %v2340_v6 }
 0x1d2   :  { %v2391_v7 = vadd.f32 %v2390_v56, %v2338_v45  ;;  %v2383_v51 = vadd.f32 %v4517_v29, %v2330_v11  ;;  %v2457_v30 = vunpack.c.h.bf16 %v2451_v61  ;;  %v2461_v24 = vunpack.c.h.bf16 %v2453_v41 }
 0x1d3   :  { %v2385_v56 = vadd.f32 %v4440_v13, %v2332_v5  ;;  %v2395_v23 = vadd.f32 %v2394_v2, %v2342_v63 }
 0x202   :  { %v2431_v14 = vpop.f32.mrf.mxu0 }
 0x203   :  { %v2441_v8 = vpop.f32.mrf.mxu1  ;;  %v2432_v9 = vadd.f32 %v2431_v14, %v2379_v52 }
 0x204   :  { %v2442_v15 = vadd.f32 %v2441_v8, %v2389_v53  ;;  %v2433_v16 = vpop.f32.mrf.mxu0 }
 0x205   :  { %v2443_v17 = vpop.f32.mrf.mxu1  ;;  %v2462_v27 = vadd.f32 %v2454_v49, %v2432_v9  ;;  %v2434_v12 = vadd.f32 %v2433_v16, %v2381_v54 }
 0x206   :  { %v2466_v10 = vadd.f32 %v2458_v58, %v2442_v15  ;;  %v2444_v18 = vadd.f32 %v2443_v17, %v2391_v7  ;;  %v2435_v22 = vpop.f32.mrf.mxu0 }
 0x207   :  { %v2445_v55 = vpop.f32.mrf.mxu1  ;;  %v2463_v25 = vadd.f32 %v2455_v3, %v2434_v12  ;;  %v2470_v32 = vmax.f32 %v2462_v27, 0.0  ;;  %v2436_v35 = vadd.f32 %v2435_v22, %v2383_v51 }
 0x208   :  { %v2467_v31 = vadd.f32 %v2459_v57, %v2444_v18  ;;  %v2474_v33 = vmax.f32 %v2466_v10, 0.0  ;;  %v2446_v38 = vadd.f32 %v2445_v55, %v2393_v20  ;;  %v2437_v44 = vpop.f32.mrf.mxu0 }
 0x209   :  { %v2447_v46 = vpop.f32.mrf.mxu1  ;;  %v2471_v28 = vmax.f32 %v2463_v25, 0.0  ;;  %v2438_v36 = vadd.f32 %v2437_v44, %v2385_v56  ;;  %v2464_v26 = vadd.f32 %v2456_v19, %v2436_v35 }
 0x20a   :  { %v2475_v34 = vmax.f32 %v2467_v31, 0.0  ;;  %v2448_v37 = vadd.f32 %v2447_v46, %v2395_v23  ;;  %v2468_v39 = vadd.f32 %v2460_v21, %v2446_v38 }
 0x20b   :  { %v2838_v40 = vpack.c.bf16 %v2471_v28, %v2470_v32  ;;  %v2465_v45 = vadd.f32 %v2457_v30, %v2438_v36  ;;  %v2472_v13 = vmax.f32 %v2464_v26, 0.0 }
 0x20c   :  { %v2840_v42 = vpack.c.bf16 %v2475_v34, %v2474_v33  ;;  %v2469_v49 = vadd.f32 %v2461_v24, %v2448_v37  ;;  %v2476_v58 = vmax.f32 %v2468_v39, 0.0 }
 0x20d   :  { %2502 = vst [vmem:[%s4505_s4] sm:$0xff] %v2838_v40  ;;  %v2473_v59 = vmax.f32 %v2465_v45, 0.0 }
 0x20e   :  { %2504 = vst [vmem:[%s4505_s4 + $0x10] sm:$0xff] %v2840_v42  ;;  %v2477_v60 = vmax.f32 %v2469_v49, 0.0 }
 0x20f   :  { %v2839_v62 = vpack.c.bf16 %v2473_v59, %v2472_v13 }
 0x210   :  { %v2841_v0 = vpack.c.bf16 %v2477_v60, %v2476_v58 }
 0x211   :  { %2503 = vst [vmem:[%s4505_s4 + $0x8] sm:$0xff] %v2839_v62 }
 0x212   :  { %2505 = vst [vmem:[%s4505_s4 + $0x18] sm:$0xff] %v2841_v0 }

// kernel: _lambda_.46
= control target key start
LH: loop header
LB: loop body
LE: loop exit
PB: predicated region body
PF: predicated region fallthrough
CT: control target
= control target key end

     0   :  { %s4452_s1 = inlined_call_operand.vmem [shape: bf16[2304,256], index: 1, kind: input, shape index: {}]   ;;  %s4453_s0 = inlined_call_operand.vmem [shape: bf16[32,2304], index: 0, kind: input, shape index: {}]   ;;  %s4454_s2 = inlined_call_operand.vmem [shape: f32[1,256], index: 2, kind: input, shape index: {}]   ;;  %s4455_s3 = inlined_call_operand.vmem [shape: bf16[32,256], index: 3, kind: output, shape index: {}]  }
   0x1   :  { %v2851_v0 = vld [vmem:[%s4452_s1 + $0x74] ss:$8 sps:$4 sm:$0xff]   ;;  %v2855_v2 = vld [vmem:[%s4452_s1 + $0x70] ss:$8 sps:$4 sm:$0xff]   ;;  %v2857_v4 = vld [vmem:[%s4452_s1 + $0x64] ss:$8 sps:$4 sm:$0xff]  }
   0x2   :  { %v2853_v1 = vld [vmem:[%s4452_s1 + $0x174] ss:$8 sps:$4 sm:$0xff]   ;;  %1970 = vmatprep.subr.bf16.mxu0 %v2851_v0  ;;  %v2856_v3 = vld [vmem:[%s4452_s1 + $0x170] ss:$8 sps:$4 sm:$0xff]   ;;  %v2859_v5 = vld [vmem:[%s4452_s1 + $0x164] ss:$8 sps:$4 sm:$0xff]  }
   0x3   :  { %2023 = vmatprep.subr.bf16.mxu1 %v2853_v1  ;;  %1971 = vmatpush1.bf16.msra.mxu0 %v2855_v2  ;;  %v2861_v6 = vld [vmem:[%s4452_s1 + $0x60] ss:$8 sps:$4 sm:$0xff]   ;;  %v2863_v8 = vld [vmem:[%s4452_s1 + $0x54] ss:$8 sps:$4 sm:$0xff]   ;;  %v2867_v10 = vld [vmem:[%s4452_s1 + $0x50] ss:$8 sps:$4 sm:$0xff]  }
   0x4   :  { %2024 = vmatpush1.bf16.msra.mxu1 %v2856_v3  ;;  %1972 = vmatprep.subr.bf16.mxu0 %v2857_v4  ;;  %v2862_v7 = vld [vmem:[%s4452_s1 + $0x160] ss:$8 sps:$4 sm:$0xff]   ;;  %v2865_v9 = vld [vmem:[%s4452_s1 + $0x154] ss:$8 sps:$4 sm:$0xff]   ;;  %v2868_v11 = vld [vmem:[%s4452_s1 + $0x150] ss:$8 sps:$4 sm:$0xff]  }
   0x5   :  { %2025 = vmatprep.subr.bf16.mxu1 %v2859_v5  ;;  %v2869_v12 = vld [vmem:[%s4452_s1 + $0x44] ss:$8 sps:$4 sm:$0xff]   ;;  %v2873_v14 = vld [vmem:[%s4452_s1 + $0x40] ss:$8 sps:$4 sm:$0xff]   ;;  %v2875_v16 = vld [vmem:[%s4452_s1 + $0x34] ss:$8 sps:$4 sm:$0xff]  }
   0x6   :  { %v2871_v13 = vld [vmem:[%s4452_s1 + $0x144] ss:$8 sps:$4 sm:$0xff]   ;;  %v2874_v15 = vld [vmem:[%s4452_s1 + $0x140] ss:$8 sps:$4 sm:$0xff]   ;;  %v2877_v17 = vld [vmem:[%s4452_s1 + $0x134] ss:$8 sps:$4 sm:$0xff]  }
   0x7   :  { %1973 = vmatpush1.bf16.msra.mxu0 %v2861_v6  ;;  %v2879_v18 = vld [vmem:[%s4452_s1 + $0x30] ss:$8 sps:$4 sm:$0xff]   ;;  %v2881_v20 = vld [vmem:[%s4452_s1 + $0x24] ss:$8 sps:$4 sm:$0xff]   ;;  %v2885_v22 = vld [vmem:[%s4452_s1 + $0x20] ss:$8 sps:$4 sm:$0xff]  }
   0x8   :  { %2026 = vmatpush1.bf16.msra.mxu1 %v2862_v7  ;;  %1974 = vmatprep.subr.bf16.mxu0 %v2863_v8  ;;  %v2880_v19 = vld [vmem:[%s4452_s1 + $0x130] ss:$8 sps:$4 sm:$0xff]   ;;  %v2883_v21 = vld [vmem:[%s4452_s1 + $0x124] ss:$8 sps:$4 sm:$0xff]   ;;  %v2886_v23 = vld [vmem:[%s4452_s1 + $0x120] ss:$8 sps:$4 sm:$0xff]  }
   0x9   :  { %2027 = vmatprep.subr.bf16.mxu1 %v2865_v9  ;;  %v2887_v24 = vld [vmem:[%s4452_s1 + $0x14] ss:$8 sps:$4 sm:$0xff]   ;;  %v2891_v26 = vld [vmem:[%s4452_s1 + $0x10] ss:$8 sps:$4 sm:$0xff]   ;;  %v2893_v28 = vld [vmem:[%s4452_s1 + $0x4] ss:$8 sps:$4 sm:$0xff]  }
   0xa   :  { %v2889_v25 = vld [vmem:[%s4452_s1 + $0x114] ss:$8 sps:$4 sm:$0xff]   ;;  %v2892_v27 = vld [vmem:[%s4452_s1 + $0x110] ss:$8 sps:$4 sm:$0xff]   ;;  %v2895_v29 = vld [vmem:[%s4452_s1 + $0x104] ss:$8 sps:$4 sm:$0xff]  }
   0xb   :  { %1975 = vmatpush1.bf16.msra.mxu0 %v2867_v10  ;;  %v2897_v30 = vld [vmem:[%s4452_s1] ss:$8 sps:$4 sm:$0xff]   ;;  %v2899_v32 = vld [vmem:[%s4452_s1 + $0xf4] ss:$8 sps:$4 sm:$0xff]   ;;  %v2903_v34 = vld [vmem:[%s4452_s1 + $0xf0] ss:$8 sps:$4 sm:$0xff]  }
   0xc   :  { %2028 = vmatpush1.bf16.msra.mxu1 %v2868_v11  ;;  %1976 = vmatprep.subr.bf16.mxu0 %v2869_v12  ;;  %v2898_v31 = vld [vmem:[%s4452_s1 + $0x100] ss:$8 sps:$4 sm:$0xff]   ;;  %v2901_v33 = vld [vmem:[%s4452_s1 + $0x1f4] ss:$8 sps:$4 sm:$0xff]   ;;  %v2904_v35 = vld [vmem:[%s4452_s1 + $0x1f0] ss:$8 sps:$4 sm:$0xff]  }
   0xd   :  { %2029 = vmatprep.subr.bf16.mxu1 %v2871_v13  ;;  %v2905_v36 = vld [vmem:[%s4452_s1 + $0xe4] ss:$8 sps:$4 sm:$0xff]   ;;  %v2909_v38 = vld [vmem:[%s4452_s1 + $0xe0] ss:$8 sps:$4 sm:$0xff]   ;;  %v2911_v40 = vld [vmem:[%s4452_s1 + $0xd4] ss:$8 sps:$4 sm:$0xff]  }
   0xe   :  { %v2907_v37 = vld [vmem:[%s4452_s1 + $0x1e4] ss:$8 sps:$4 sm:$0xff]   ;;  %v2910_v39 = vld [vmem:[%s4452_s1 + $0x1e0] ss:$8 sps:$4 sm:$0xff]   ;;  %v2913_v41 = vld [vmem:[%s4452_s1 + $0x1d4] ss:$8 sps:$4 sm:$0xff]  }
   0xf   :  { %1977 = vmatpush1.bf16.msra.mxu0 %v2873_v14  ;;  %v2915_v42 = vld [vmem:[%s4452_s1 + $0xd0] ss:$8 sps:$4 sm:$0xff]   ;;  %v2917_v44 = vld [vmem:[%s4452_s1 + $0xc4] ss:$8 sps:$4 sm:$0xff]   ;;  %v2921_v46 = vld [vmem:[%s4452_s1 + $0xc0] ss:$8 sps:$4 sm:$0xff]  }
  0x10   :  { %2030 = vmatpush1.bf16.msra.mxu1 %v2874_v15  ;;  %1978 = vmatprep.subr.bf16.mxu0 %v2875_v16  ;;  %v2916_v43 = vld [vmem:[%s4452_s1 + $0x1d0] ss:$8 sps:$4 sm:$0xff]   ;;  %v2919_v45 = vld [vmem:[%s4452_s1 + $0x1c4] ss:$8 sps:$4 sm:$0xff]   ;;  %v2922_v47 = vld [vmem:[%s4452_s1 + $0x1c0] ss:$8 sps:$4 sm:$0xff]  }
  0x11   :  { %2031 = vmatprep.subr.bf16.mxu1 %v2877_v17  ;;  %v2923_v48 = vld [vmem:[%s4452_s1 + $0xb4] ss:$8 sps:$4 sm:$0xff]   ;;  %v2949_v49 = vld [vmem:[%s4453_s0 + $0x4] ss:$72 sps:$4 sm:$0xff]   ;;  %v2927_v52 = vld [vmem:[%s4452_s1 + $0xb0] ss:$8 sps:$4 sm:$0xff]  }
  0x12   :  { %v2925_v50 = vld [vmem:[%s4452_s1 + $0x1b4] ss:$8 sps:$4 sm:$0xff]   ;;  %2002 = vmatprep.mubr.bf16.mxu0 %v2949_v49  ;;  %v2928_v53 = vld [vmem:[%s4452_s1 + $0x1b0] ss:$8 sps:$4 sm:$0xff]   ;;  %v2929_v54 = vld [vmem:[%s4452_s1 + $0xa4] ss:$8 sps:$4 sm:$0xff]  }
  0x13   :  { %1979 = vmatpush1.bf16.msra.mxu0 %v2879_v18  ;;  %v2952_v51 = vld [vmem:[%s4453_s0 + $0xc] ss:$72 sps:$4 sm:$0xff]   ;;  %v2933_v56 = vld [vmem:[%s4452_s1 + $0xa0] ss:$8 sps:$4 sm:$0xff]   ;;  %v2939_v60 = vld [vmem:[%s4452_s1 + $0x90] ss:$8 sps:$4 sm:$0xff]  }
  0x14   :  { %2032 = vmatpush1.bf16.msra.mxu1 %v2880_v19  ;;  %1980 = vmatprep.subr.bf16.mxu0 %v2881_v20  ;;  %v2931_v55 = vld [vmem:[%s4452_s1 + $0x1a4] ss:$8 sps:$4 sm:$0xff]   ;;  %v2934_v57 = vld [vmem:[%s4452_s1 + $0x1a0] ss:$8 sps:$4 sm:$0xff]   ;;  %v2935_v58 = vld [vmem:[%s4452_s1 + $0x94] ss:$8 sps:$4 sm:$0xff]  }
  0x15   :  { %2033 = vmatprep.subr.bf16.mxu1 %v2883_v21  ;;  %2055 = vmatprep.mubr.bf16.mxu1 %v2952_v51  ;;  %v2937_v59 = vld [vmem:[%s4452_s1 + $0x194] ss:$8 sps:$4 sm:$0xff]   ;;  %v2940_v61 = vld [vmem:[%s4452_s1 + $0x190] ss:$8 sps:$4 sm:$0xff]   ;;  %v2941_v62 = vld [vmem:[%s4452_s1 + $0x84] ss:$8 sps:$4 sm:$0xff]  }
  0x16   :  { %v2943_v63 = vld [vmem:[%s4452_s1 + $0x184] ss:$8 sps:$4 sm:$0xff]   ;;  %v2945_v0 = vld [vmem:[%s4452_s1 + $0x80] ss:$8 sps:$4 sm:$0xff]   ;;  %v2955_v2 = vld [vmem:[%s4452_s1 + $0x274] ss:$8 sps:$4 sm:$0xff]  }
  0x17   :  { %1981 = vmatpush1.bf16.msra.mxu0 %v2885_v22  ;;  %v2946_v1 = vld [vmem:[%s4452_s1 + $0x180] ss:$8 sps:$4 sm:$0xff]   ;;  %v2958_v3 = vld [vmem:[%s4452_s1 + $0x374] ss:$8 sps:$4 sm:$0xff]   ;;  %v2953_v6 = vld [vmem:[%s4452_s1 + $0x270] ss:$8 sps:$4 sm:$0xff]  }
  0x18   :  { %2034 = vmatpush1.bf16.msra.mxu1 %v2886_v23  ;;  %1982 = vmatprep.subr.bf16.mxu0 %v2887_v24  ;;  %v2947_v4 = vld [vmem:[%s4453_s0] ss:$72 sps:$4 sm:$0xff]   ;;  %v2956_v7 = vld [vmem:[%s4452_s1 + $0x370] ss:$8 sps:$4 sm:$0xff]   ;;  %v2961_v8 = vld [vmem:[%s4452_s1 + $0x264] ss:$8 sps:$4 sm:$0xff]  }
  0x19   :  { %2035 = vmatprep.subr.bf16.mxu1 %v2889_v25  ;;  %v2950_v5 = vld [vmem:[%s4453_s0 + $0x8] ss:$72 sps:$4 sm:$0xff]   ;;  %v2964_v9 = vld [vmem:[%s4452_s1 + $0x364] ss:$8 sps:$4 sm:$0xff]   ;;  %v2967_v12 = vld [vmem:[%s4452_s1 + $0x254] ss:$8 sps:$4 sm:$0xff]  }
  0x1a   :  { %v2959_v10 = vld [vmem:[%s4452_s1 + $0x260] ss:$8 sps:$4 sm:$0xff]   ;;  %v2970_v13 = vld [vmem:[%s4452_s1 + $0x354] ss:$8 sps:$4 sm:$0xff]   ;;  %v2965_v14 = vld [vmem:[%s4452_s1 + $0x250] ss:$8 sps:$4 sm:$0xff]  }
  0x1b   :  { %1983 = vmatpush1.bf16.msra.mxu0 %v2891_v26  ;;  %v2962_v11 = vld [vmem:[%s4452_s1 + $0x360] ss:$8 sps:$4 sm:$0xff]   ;;  %v2968_v15 = vld [vmem:[%s4452_s1 + $0x350] ss:$8 sps:$4 sm:$0xff]   ;;  %v2973_v16 = vld [vmem:[%s4452_s1 + $0x244] ss:$8 sps:$4 sm:$0xff]  }
  0x1c   :  { %2036 = vmatpush1.bf16.msra.mxu1 %v2892_v27  ;;  %1984 = vmatprep.subr.bf16.mxu0 %v2893_v28  ;;  %v2976_v17 = vld [vmem:[%s4452_s1 + $0x344] ss:$8 sps:$4 sm:$0xff]   ;;  %v2971_v18 = vld [vmem:[%s4452_s1 + $0x240] ss:$8 sps:$4 sm:$0xff]   ;;  %v2979_v20 = vld [vmem:[%s4452_s1 + $0x234] ss:$8 sps:$4 sm:$0xff]  }
  0x1d   :  { %2037 = vmatprep.subr.bf16.mxu1 %v2895_v29  ;;  %v2974_v19 = vld [vmem:[%s4452_s1 + $0x340] ss:$8 sps:$4 sm:$0xff]   ;;  %v2982_v21 = vld [vmem:[%s4452_s1 + $0x334] ss:$8 sps:$4 sm:$0xff]   ;;  %v2977_v23 = vld [vmem:[%s4452_s1 + $0x230] ss:$8 sps:$4 sm:$0xff]  }
  0x1e   :  { %v3025_v22 = vld [vmem:[%s4453_s0 + $0x94] ss:$72 sps:$4 sm:$0xff]   ;;  %v2980_v24 = vld [vmem:[%s4452_s1 + $0x330] ss:$8 sps:$4 sm:$0xff]   ;;  %v2985_v25 = vld [vmem:[%s4452_s1 + $0x224] ss:$8 sps:$4 sm:$0xff]  }
  0x1f   :  { %1985 = vmatpush1.bf16.msra.mxu0 %v2897_v30  ;;  %v2988_v26 = vld [vmem:[%s4452_s1 + $0x324] ss:$8 sps:$4 sm:$0xff]   ;;  %v3033_v27 = vld [vmem:[%s4453_s0 + $0x90] ss:$72 sps:$4 sm:$0xff]   ;;  %v2983_v28 = vld [vmem:[%s4452_s1 + $0x220] ss:$8 sps:$4 sm:$0xff]  }
  0x20   :  { %2038 = vmatpush1.bf16.msra.mxu1 %v2898_v31  ;;  %1986 = vmatprep.subr.bf16.mxu0 %v2899_v32  ;;  %v3034_v29 = vld [vmem:[%s4453_s0 + $0x9c] ss:$72 sps:$4 sm:$0xff]   ;;  %v2986_v30 = vld [vmem:[%s4452_s1 + $0x320] ss:$8 sps:$4 sm:$0xff]  }
  0x21   :  { %2039 = vmatprep.subr.bf16.mxu1 %v2901_v33  ;;  %v3036_v31 = vld [vmem:[%s4453_s0 + $0x98] ss:$72 sps:$4 sm:$0xff]   ;;  %v2991_v32 = vld [vmem:[%s4452_s1 + $0x214] ss:$8 sps:$4 sm:$0xff]  }
  0x22   :  { %v2994_v33 = vld [vmem:[%s4452_s1 + $0x314] ss:$8 sps:$4 sm:$0xff]   ;;  %v3010_v49 = vld [vmem:[%s4452_s1 + $0x3e0] ss:$8 sps:$4 sm:$0xff]  }
  0x23   :  { %1987 = vmatpush2.bf16.msra.mxu0 %v2903_v34  ;;  %v2989_v34 = vld [vmem:[%s4452_s1 + $0x210] ss:$8 sps:$4 sm:$0xff]   ;;  %v3018_v51 = vld [vmem:[%s4452_s1 + $0x3d4] ss:$8 sps:$4 sm:$0xff]  }
  0x24   :  { %2040 = vmatpush2.bf16.msra.mxu1 %v2904_v35  ;;  %1988 = vmatprep.subr.bf16.mxu0 %v2905_v36  ;;  %v2992_v35 = vld [vmem:[%s4452_s1 + $0x310] ss:$8 sps:$4 sm:$0xff]   ;;  %v2997_v36 = vld [vmem:[%s4452_s1 + $0x204] ss:$8 sps:$4 sm:$0xff]  }
  0x25   :  { %2041 = vmatprep.subr.bf16.mxu1 %v2907_v37  ;;  %v3000_v37 = vld [vmem:[%s4452_s1 + $0x304] ss:$8 sps:$4 sm:$0xff]  }
  0x27   :  { %1989 = vmatpush2.bf16.msra.mxu0 %v2909_v38  ;;  %v2995_v38 = vld [vmem:[%s4452_s1 + $0x200] ss:$8 sps:$4 sm:$0xff]  }
  0x28   :  { %2042 = vmatpush2.bf16.msra.mxu1 %v2910_v39  ;;  %1990 = vmatprep.subr.bf16.mxu0 %v2911_v40  ;;  %v2998_v39 = vld [vmem:[%s4452_s1 + $0x300] ss:$8 sps:$4 sm:$0xff]   ;;  %v3003_v40 = vld [vmem:[%s4452_s1 + $0x2f4] ss:$8 sps:$4 sm:$0xff]  }
  0x29   :  { %2043 = vmatprep.subr.bf16.mxu1 %v2913_v41  ;;  %v3057_v41 = vld [vmem:[%s4453_s0 + $0x14] ss:$72 sps:$4 sm:$0xff]  }
  0x2b   :  { %1991 = vmatpush2.bf16.msra.mxu0 %v2915_v42  ;;  %v3006_v42 = vld [vmem:[%s4452_s1 + $0x3f4] ss:$8 sps:$4 sm:$0xff]  }
  0x2c   :  { %2044 = vmatpush2.bf16.msra.mxu1 %v2916_v43  ;;  %1992 = vmatprep.subr.bf16.mxu0 %v2917_v44  ;;  %v3060_v43 = vld [vmem:[%s4453_s0 + $0x1c] ss:$72 sps:$4 sm:$0xff]   ;;  %v3001_v44 = vld [vmem:[%s4452_s1 + $0x2f0] ss:$8 sps:$4 sm:$0xff]  }
  0x2d   :  { %2045 = vmatprep.subr.bf16.mxu1 %v2919_v45  ;;  %v3004_v45 = vld [vmem:[%s4452_s1 + $0x3f0] ss:$8 sps:$4 sm:$0xff]  }
  0x2f   :  { %1993 = vmatpush2.bf16.msra.mxu0 %v2921_v46  ;;  %v3009_v46 = vld [vmem:[%s4452_s1 + $0x2e4] ss:$8 sps:$4 sm:$0xff]  }
  0x30   :  { %2046 = vmatpush2.bf16.msra.mxu1 %v2922_v47  ;;  %1994 = vmatprep.subr.bf16.mxu0 %v2923_v48  ;;  %v3012_v47 = vld [vmem:[%s4452_s1 + $0x3e4] ss:$8 sps:$4 sm:$0xff]   ;;  %v3007_v48 = vld [vmem:[%s4452_s1 + $0x2e0] ss:$8 sps:$4 sm:$0xff]  }
  0x31   :  { %2047 = vmatprep.subr.bf16.mxu1 %v2925_v50  ;;  %v3015_v50 = vld [vmem:[%s4452_s1 + $0x2d4] ss:$8 sps:$4 sm:$0xff]  }
  0x33   :  { %1995 = vmatpush2.bf16.msra.mxu0 %v2927_v52  ;;  %v3013_v52 = vld [vmem:[%s4452_s1 + $0x2d0] ss:$8 sps:$4 sm:$0xff]  }
  0x34   :  { %2048 = vmatpush2.bf16.msra.mxu1 %v2928_v53  ;;  %1996 = vmatprep.subr.bf16.mxu0 %v2929_v54  ;;  %v3016_v53 = vld [vmem:[%s4452_s1 + $0x3d0] ss:$8 sps:$4 sm:$0xff]   ;;  %v3021_v54 = vld [vmem:[%s4452_s1 + $0x2c4] ss:$8 sps:$4 sm:$0xff]  }
  0x35   :  { %2049 = vmatprep.subr.bf16.mxu1 %v2931_v55  ;;  %v3024_v55 = vld [vmem:[%s4452_s1 + $0x3c4] ss:$8 sps:$4 sm:$0xff]  }
  0x37   :  { %1997 = vmatpush2.bf16.msra.mxu0 %v2933_v56  ;;  %v3019_v56 = vld [vmem:[%s4452_s1 + $0x2c0] ss:$8 sps:$4 sm:$0xff]  }
  0x38   :  { %2050 = vmatpush2.bf16.msra.mxu1 %v2934_v57  ;;  %1998 = vmatprep.subr.bf16.mxu0 %v2935_v58  ;;  %v3022_v57 = vld [vmem:[%s4452_s1 + $0x3c0] ss:$8 sps:$4 sm:$0xff]   ;;  %v3029_v58 = vld [vmem:[%s4452_s1 + $0x2b4] ss:$8 sps:$4 sm:$0xff]  }
  0x39   :  { %2051 = vmatprep.subr.bf16.mxu1 %v2937_v59  ;;  %v3032_v59 = vld [vmem:[%s4452_s1 + $0x3b4] ss:$8 sps:$4 sm:$0xff]  }
  0x3b   :  { %1999 = vmatpush2.bf16.msra.mxu0 %v2939_v60  ;;  %v3027_v60 = vld [vmem:[%s4452_s1 + $0x2b0] ss:$8 sps:$4 sm:$0xff]  }
  0x3c   :  { %2052 = vmatpush2.bf16.msra.mxu1 %v2940_v61  ;;  %2000 = vmatprep.subr.bf16.mxu0 %v2941_v62  ;;  %v3030_v61 = vld [vmem:[%s4452_s1 + $0x3b0] ss:$8 sps:$4 sm:$0xff]   ;;  %v3039_v62 = vld [vmem:[%s4452_s1 + $0x2a4] ss:$8 sps:$4 sm:$0xff]  }
  0x3d   :  { %2053 = vmatprep.subr.bf16.mxu1 %v2943_v63  ;;  %v3042_v63 = vld [vmem:[%s4452_s1 + $0x3a4] ss:$8 sps:$4 sm:$0xff]  }
  0x3f   :  { %2001 = vmatpush2.bf16.msra.mxu0 %v2945_v0  ;;  %v3037_v0 = vld [vmem:[%s4452_s1 + $0x2a0] ss:$8 sps:$4 sm:$0xff]  }
  0x40   :  { %2054 = vmatpush2.bf16.msra.mxu1 %v2946_v1  ;;  %2076 = vmatprep.subr.bf16.mxu0 %v2955_v2  ;;  %v3040_v1 = vld [vmem:[%s4452_s1 + $0x3a0] ss:$8 sps:$4 sm:$0xff]   ;;  %v3045_v2 = vld [vmem:[%s4452_s1 + $0x294] ss:$8 sps:$4 sm:$0xff]  }
  0x41   :  { %2129 = vmatprep.subr.bf16.mxu1 %v2958_v3  ;;  %v3048_v3 = vld [vmem:[%s4452_s1 + $0x394] ss:$8 sps:$4 sm:$0xff]  }
  0x42   :  { %2003 = vmatmul.mubr.bf16.vlgmr.msra.gmra.mxu0 %v2947_v4  ;;  %v3043_v4 = vld [vmem:[%s4452_s1 + $0x290] ss:$8 sps:$4 sm:$0xff]  }
  0x43   :  { %2056 = vmatmul.mubr.bf16.vlgmr.msra.gmra.mxu1 %v2950_v5  ;;  %2077 = vmatpush1.bf16.msra.mxu0 %v2953_v6  ;;  %v3046_v5 = vld [vmem:[%s4452_s1 + $0x390] ss:$8 sps:$4 sm:$0xff]   ;;  %v3051_v6 = vld [vmem:[%s4452_s1 + $0x284] ss:$8 sps:$4 sm:$0xff]  }
  0x44   :  { %2130 = vmatpush1.bf16.msra.mxu1 %v2956_v7  ;;  %2078 = vmatprep.subr.bf16.mxu0 %v2961_v8  ;;  %v3054_v7 = vld [vmem:[%s4452_s1 + $0x384] ss:$8 sps:$4 sm:$0xff]   ;;  %v3049_v8 = vld [vmem:[%s4452_s1 + $0x280] ss:$8 sps:$4 sm:$0xff]  }
  0x45   :  { %2131 = vmatprep.subr.bf16.mxu1 %v2964_v9  ;;  %2012 = vmatprep.mubr.bf16.mxu0 %v3025_v22  ;;  %v3052_v9 = vld [vmem:[%s4452_s1 + $0x380] ss:$8 sps:$4 sm:$0xff]   ;;  %v3078_v22 = vld [vmem:[%s4452_s1 + $0x454] ss:$8 sps:$4 sm:$0xff]  }
  0x46   :  { %2065 = vmatprep.mubr.bf16.mxu1 %v3034_v29  ;;  %v3090_v29 = vld [vmem:[%s4452_s1 + $0x544] ss:$8 sps:$4 sm:$0xff]  }
  0x47   :  { %2079 = vmatpush1.bf16.msra.mxu0 %v2959_v10  ;;  %v3063_v10 = vld [vmem:[%s4452_s1 + $0x474] ss:$8 sps:$4 sm:$0xff]  }
  0x48   :  { %2132 = vmatpush1.bf16.msra.mxu1 %v2962_v11  ;;  %2080 = vmatprep.subr.bf16.mxu0 %v2967_v12  ;;  %v3066_v11 = vld [vmem:[%s4452_s1 + $0x574] ss:$8 sps:$4 sm:$0xff]   ;;  %v3055_v12 = vld [vmem:[%s4453_s0 + $0x10] ss:$72 sps:$4 sm:$0xff]  }
  0x49   :  { %2133 = vmatprep.subr.bf16.mxu1 %v2970_v13  ;;  %v3058_v13 = vld [vmem:[%s4453_s0 + $0x18] ss:$72 sps:$4 sm:$0xff]  }
  0x4a   :  { %2013 = vmatmul.mubr.bf16.gmra.mxu0 %v3033_v27  ;;  %v3084_v27 = vld [vmem:[%s4453_s0 + $0xa8] ss:$72 sps:$4 sm:$0xff]  }
  0x4b   :  { %2081 = vmatpush1.bf16.msra.mxu0 %v2965_v14  ;;  %2066 = vmatmul.mubr.bf16.gmra.mxu1 %v3036_v31  ;;  %v3061_v14 = vld [vmem:[%s4452_s1 + $0x470] ss:$8 sps:$4 sm:$0xff]   ;;  %v3088_v31 = vld [vmem:[%s4452_s1 + $0x540] ss:$8 sps:$4 sm:$0xff]  }
  0x4c   :  { %2134 = vmatpush1.bf16.msra.mxu1 %v2968_v15  ;;  %2082 = vmatprep.subr.bf16.mxu0 %v2973_v16  ;;  %v3064_v15 = vld [vmem:[%s4452_s1 + $0x570] ss:$8 sps:$4 sm:$0xff]   ;;  %v3069_v16 = vld [vmem:[%s4452_s1 + $0x464] ss:$8 sps:$4 sm:$0xff]  }
  0x4d   :  { %2135 = vmatprep.subr.bf16.mxu1 %v2976_v17  ;;  %2108 = vmatprep.mubr.bf16.mxu0 %v3057_v41  ;;  %v3072_v17 = vld [vmem:[%s4452_s1 + $0x564] ss:$8 sps:$4 sm:$0xff]   ;;  %v3100_v41 = vld [vmem:[%s4452_s1 + $0x520] ss:$8 sps:$4 sm:$0xff]  }
  0x4e   :  { %2161 = vmatprep.mubr.bf16.mxu1 %v3060_v43  ;;  %v3108_v43 = vld [vmem:[%s4452_s1 + $0x514] ss:$8 sps:$4 sm:$0xff]  }
  0x4f   :  { %2083 = vmatpush1.bf16.msra.mxu0 %v2971_v18  ;;  %v3073_v18 = vld [vmem:[%s4453_s0 + $0xa4] ss:$72 sps:$4 sm:$0xff]  }
  0x50   :  { %2136 = vmatpush1.bf16.msra.mxu1 %v2974_v19  ;;  %2084 = vmatprep.subr.bf16.mxu0 %v2979_v20  ;;  %v3082_v19 = vld [vmem:[%s4453_s0 + $0xac] ss:$72 sps:$4 sm:$0xff]   ;;  %v3067_v20 = vld [vmem:[%s4452_s1 + $0x460] ss:$8 sps:$4 sm:$0xff]  }
  0x51   :  { %2137 = vmatprep.subr.bf16.mxu1 %v2982_v21  ;;  %v3070_v21 = vld [vmem:[%s4452_s1 + $0x560] ss:$8 sps:$4 sm:$0xff]  }
  0x53   :  { %2085 = vmatpush1.bf16.msra.mxu0 %v2977_v23  ;;  %v3081_v23 = vld [vmem:[%s4452_s1 + $0x554] ss:$8 sps:$4 sm:$0xff]  }
  0x54   :  { %2138 = vmatpush1.bf16.msra.mxu1 %v2980_v24  ;;  %2086 = vmatprep.subr.bf16.mxu0 %v2985_v25  ;;  %v3075_v24 = vld [vmem:[%s4453_s0 + $0xa0] ss:$72 sps:$4 sm:$0xff]   ;;  %v3076_v25 = vld [vmem:[%s4452_s1 + $0x450] ss:$8 sps:$4 sm:$0xff]  }
  0x55   :  { %2139 = vmatprep.subr.bf16.mxu1 %v2988_v26  ;;  %v3079_v26 = vld [vmem:[%s4452_s1 + $0x550] ss:$8 sps:$4 sm:$0xff]  }
  0x57   :  { %2087 = vmatpush1.bf16.msra.mxu0 %v2983_v28  ;;  %v3087_v28 = vld [vmem:[%s4452_s1 + $0x444] ss:$8 sps:$4 sm:$0xff]  }
  0x58   :  { %2140 = vmatpush1.bf16.msra.mxu1 %v2986_v30  ;;  %2088 = vmatprep.subr.bf16.mxu0 %v2991_v32  ;;  %v3085_v30 = vld [vmem:[%s4452_s1 + $0x440] ss:$8 sps:$4 sm:$0xff]   ;;  %v3093_v32 = vld [vmem:[%s4452_s1 + $0x434] ss:$8 sps:$4 sm:$0xff]  }
  0x59   :  { %2141 = vmatprep.subr.bf16.mxu1 %v2994_v33  ;;  %v3165_v33 = vld [vmem:[%s4453_s0 + $0x24] ss:$72 sps:$4 sm:$0xff]  }
  0x5b   :  { %2089 = vmatpush1.bf16.msra.mxu0 %v2989_v34  ;;  %v3096_v34 = vld [vmem:[%s4452_s1 + $0x534] ss:$8 sps:$4 sm:$0xff]  }
  0x5c   :  { %2142 = vmatpush1.bf16.msra.mxu1 %v2992_v35  ;;  %2090 = vmatprep.subr.bf16.mxu0 %v2997_v36  ;;  %v3168_v35 = vld [vmem:[%s4453_s0 + $0x2c] ss:$72 sps:$4 sm:$0xff]   ;;  %v3091_v36 = vld [vmem:[%s4452_s1 + $0x430] ss:$8 sps:$4 sm:$0xff]  }
  0x5d   :  { %2143 = vmatprep.subr.bf16.mxu1 %v3000_v37  ;;  %v3094_v37 = vld [vmem:[%s4452_s1 + $0x530] ss:$8 sps:$4 sm:$0xff]  }
  0x5f   :  { %2091 = vmatpush1.bf16.msra.mxu0 %v2995_v38  ;;  %v3099_v38 = vld [vmem:[%s4452_s1 + $0x424] ss:$8 sps:$4 sm:$0xff]  }
  0x60   :  { %2144 = vmatpush1.bf16.msra.mxu1 %v2998_v39  ;;  %2092 = vmatprep.subr.bf16.mxu0 %v3003_v40  ;;  %v3102_v39 = vld [vmem:[%s4452_s1 + $0x524] ss:$8 sps:$4 sm:$0xff]   ;;  %v3097_v40 = vld [vmem:[%s4452_s1 + $0x420] ss:$8 sps:$4 sm:$0xff]  }
  0x61   :  { %2145 = vmatprep.subr.bf16.mxu1 %v3006_v42  ;;  %v3105_v42 = vld [vmem:[%s4452_s1 + $0x414] ss:$8 sps:$4 sm:$0xff]  }
  0x63   :  { %2093 = vmatpush2.bf16.msra.mxu0 %v3001_v44  ;;  %v3103_v44 = vld [vmem:[%s4452_s1 + $0x410] ss:$8 sps:$4 sm:$0xff]  }
  0x64   :  { %2146 = vmatpush2.bf16.msra.mxu1 %v3004_v45  ;;  %2094 = vmatprep.subr.bf16.mxu0 %v3009_v46  ;;  %v3106_v45 = vld [vmem:[%s4452_s1 + $0x510] ss:$8 sps:$4 sm:$0xff]   ;;  %v3111_v46 = vld [vmem:[%s4452_s1 + $0x404] ss:$8 sps:$4 sm:$0xff]  }
  0x65   :  { %2147 = vmatprep.subr.bf16.mxu1 %v3012_v47  ;;  %v3114_v47 = vld [vmem:[%s4452_s1 + $0x504] ss:$8 sps:$4 sm:$0xff]  }
  0x67   :  { %2095 = vmatpush2.bf16.msra.mxu0 %v3007_v48  ;;  %v3109_v48 = vld [vmem:[%s4452_s1 + $0x400] ss:$8 sps:$4 sm:$0xff]  }
  0x68   :  { %2148 = vmatpush2.bf16.msra.mxu1 %v3010_v49  ;;  %2096 = vmatprep.subr.bf16.mxu0 %v3015_v50  ;;  %v3112_v49 = vld [vmem:[%s4452_s1 + $0x500] ss:$8 sps:$4 sm:$0xff]   ;;  %v3117_v50 = vld [vmem:[%s4452_s1 + $0x4f4] ss:$8 sps:$4 sm:$0xff]  }
  0x69   :  { %2149 = vmatprep.subr.bf16.mxu1 %v3018_v51  ;;  %v3120_v51 = vld [vmem:[%s4452_s1 + $0x5f4] ss:$8 sps:$4 sm:$0xff]  }
  0x6b   :  { %2097 = vmatpush2.bf16.msra.mxu0 %v3013_v52  ;;  %v3115_v52 = vld [vmem:[%s4452_s1 + $0x4f0] ss:$8 sps:$4 sm:$0xff]  }
  0x6c   :  { %2150 = vmatpush2.bf16.msra.mxu1 %v3016_v53  ;;  %2098 = vmatprep.subr.bf16.mxu0 %v3021_v54  ;;  %v3118_v53 = vld [vmem:[%s4452_s1 + $0x5f0] ss:$8 sps:$4 sm:$0xff]   ;;  %v3123_v54 = vld [vmem:[%s4452_s1 + $0x4e4] ss:$8 sps:$4 sm:$0xff]  }
  0x6d   :  { %2151 = vmatprep.subr.bf16.mxu1 %v3024_v55  ;;  %v3126_v55 = vld [vmem:[%s4452_s1 + $0x5e4] ss:$8 sps:$4 sm:$0xff]  }
  0x6f   :  { %2099 = vmatpush2.bf16.msra.mxu0 %v3019_v56  ;;  %v3121_v56 = vld [vmem:[%s4452_s1 + $0x4e0] ss:$8 sps:$4 sm:$0xff]  }
  0x70   :  { %2152 = vmatpush2.bf16.msra.mxu1 %v3022_v57  ;;  %2100 = vmatprep.subr.bf16.mxu0 %v3029_v58  ;;  %v3124_v57 = vld [vmem:[%s4452_s1 + $0x5e0] ss:$8 sps:$4 sm:$0xff]   ;;  %v3129_v58 = vld [vmem:[%s4452_s1 + $0x4d4] ss:$8 sps:$4 sm:$0xff]  }
  0x71   :  { %2153 = vmatprep.subr.bf16.mxu1 %v3032_v59  ;;  %v3132_v59 = vld [vmem:[%s4452_s1 + $0x5d4] ss:$8 sps:$4 sm:$0xff]  }
  0x73   :  { %2101 = vmatpush2.bf16.msra.mxu0 %v3027_v60  ;;  %v3127_v60 = vld [vmem:[%s4452_s1 + $0x4d0] ss:$8 sps:$4 sm:$0xff]  }
  0x74   :  { %2154 = vmatpush2.bf16.msra.mxu1 %v3030_v61  ;;  %2102 = vmatprep.subr.bf16.mxu0 %v3039_v62  ;;  %v3130_v61 = vld [vmem:[%s4452_s1 + $0x5d0] ss:$8 sps:$4 sm:$0xff]   ;;  %v3135_v62 = vld [vmem:[%s4452_s1 + $0x4c4] ss:$8 sps:$4 sm:$0xff]  }
  0x75   :  { %2155 = vmatprep.subr.bf16.mxu1 %v3042_v63  ;;  %v3138_v63 = vld [vmem:[%s4452_s1 + $0x5c4] ss:$8 sps:$4 sm:$0xff]  }
  0x77   :  { %2103 = vmatpush2.bf16.msra.mxu0 %v3037_v0  ;;  %v3133_v0 = vld [vmem:[%s4452_s1 + $0x4c0] ss:$8 sps:$4 sm:$0xff]  }
  0x78   :  { %2156 = vmatpush2.bf16.msra.mxu1 %v3040_v1  ;;  %2104 = vmatprep.subr.bf16.mxu0 %v3045_v2  ;;  %v3136_v1 = vld [vmem:[%s4452_s1 + $0x5c0] ss:$8 sps:$4 sm:$0xff]   ;;  %v3141_v2 = vld [vmem:[%s4452_s1 + $0x4b4] ss:$8 sps:$4 sm:$0xff]  }
  0x79   :  { %2157 = vmatprep.subr.bf16.mxu1 %v3048_v3  ;;  %v3144_v3 = vld [vmem:[%s4452_s1 + $0x5b4] ss:$8 sps:$4 sm:$0xff]  }
  0x7b   :  { %2105 = vmatpush2.bf16.msra.mxu0 %v3043_v4  ;;  %v3139_v4 = vld [vmem:[%s4452_s1 + $0x4b0] ss:$8 sps:$4 sm:$0xff]  }
  0x7c   :  { %2158 = vmatpush2.bf16.msra.mxu1 %v3046_v5  ;;  %2106 = vmatprep.subr.bf16.mxu0 %v3051_v6  ;;  %v3142_v5 = vld [vmem:[%s4452_s1 + $0x5b0] ss:$8 sps:$4 sm:$0xff]   ;;  %v3147_v6 = vld [vmem:[%s4452_s1 + $0x4a4] ss:$8 sps:$4 sm:$0xff]  }
  0x7d   :  { %2159 = vmatprep.subr.bf16.mxu1 %v3054_v7  ;;  %v3150_v7 = vld [vmem:[%s4452_s1 + $0x5a4] ss:$8 sps:$4 sm:$0xff]  }
  0x7f   :  { %2107 = vmatpush2.bf16.msra.mxu0 %v3049_v8  ;;  %v3145_v8 = vld [vmem:[%s4452_s1 + $0x4a0] ss:$8 sps:$4 sm:$0xff]  }
  0x80   :  { %2160 = vmatpush2.bf16.msra.mxu1 %v3052_v9  ;;  %2182 = vmatprep.subr.bf16.mxu0 %v3063_v10  ;;  %v3148_v9 = vld [vmem:[%s4452_s1 + $0x5a0] ss:$8 sps:$4 sm:$0xff]   ;;  %v3153_v10 = vld [vmem:[%s4452_s1 + $0x494] ss:$8 sps:$4 sm:$0xff]  }
  0x81   :  { %2235 = vmatprep.subr.bf16.mxu1 %v3066_v11  ;;  %v3156_v11 = vld [vmem:[%s4452_s1 + $0x594] ss:$8 sps:$4 sm:$0xff]  }
  0x82   :  { %2109 = vmatmul.mubr.bf16.vlgmr.msra.gmra.mxu0 %v3055_v12  ;;  %v3151_v12 = vld [vmem:[%s4452_s1 + $0x490] ss:$8 sps:$4 sm:$0xff]  }
  0x83   :  { %2162 = vmatmul.mubr.bf16.vlgmr.msra.gmra.mxu1 %v3058_v13  ;;  %2183 = vmatpush1.bf16.msra.mxu0 %v3061_v14  ;;  %v3154_v13 = vld [vmem:[%s4452_s1 + $0x590] ss:$8 sps:$4 sm:$0xff]   ;;  %v3159_v14 = vld [vmem:[%s4452_s1 + $0x484] ss:$8 sps:$4 sm:$0xff]  }
  0x84   :  { %2236 = vmatpush1.bf16.msra.mxu1 %v3064_v15  ;;  %2184 = vmatprep.subr.bf16.mxu0 %v3069_v16  ;;  %v3162_v15 = vld [vmem:[%s4452_s1 + $0x584] ss:$8 sps:$4 sm:$0xff]   ;;  %v3157_v16 = vld [vmem:[%s4452_s1 + $0x480] ss:$8 sps:$4 sm:$0xff]  }
  0x85   :  { %2237 = vmatprep.subr.bf16.mxu1 %v3072_v17  ;;  %2118 = vmatprep.mubr.bf16.mxu0 %v3073_v18  ;;  %v3160_v17 = vld [vmem:[%s4452_s1 + $0x580] ss:$8 sps:$4 sm:$0xff]   ;;  %v3171_v18 = vld [vmem:[%s4452_s1 + $0x674] ss:$8 sps:$4 sm:$0xff]  }
  0x86   :  { %2171 = vmatprep.mubr.bf16.mxu1 %v3082_v19  ;;  %v3174_v19 = vld [vmem:[%s4452_s1 + $0x774] ss:$8 sps:$4 sm:$0xff]  }
  0x87   :  { %2185 = vmatpush1.bf16.msra.mxu0 %v3067_v20  ;;  %v3163_v20 = vld [vmem:[%s4453_s0 + $0x20] ss:$72 sps:$4 sm:$0xff]  }
  0x88   :  { %2238 = vmatpush1.bf16.msra.mxu1 %v3070_v21  ;;  %2186 = vmatprep.subr.bf16.mxu0 %v3078_v22  ;;  %v3166_v21 = vld [vmem:[%s4453_s0 + $0x28] ss:$72 sps:$4 sm:$0xff]  }
  0x89   :  { %2239 = vmatprep.subr.bf16.mxu1 %v3081_v23  ;;  %v3169_v22 = vld [vmem:[%s4452_s1 + $0x670] ss:$8 sps:$4 sm:$0xff]  }
  0x8a   :  { %2119 = vmatmul.mubr.bf16.gmra.mxu0 %v3075_v24  ;;  %v3172_v23 = vld [vmem:[%s4452_s1 + $0x770] ss:$8 sps:$4 sm:$0xff]   ;;  %v3177_v24 = vld [vmem:[%s4452_s1 + $0x664] ss:$8 sps:$4 sm:$0xff]  }
  0x8b   :  { %2172 = vmatmul.mubr.bf16.gmra.mxu1 %v3084_v27  ;;  %2187 = vmatpush1.bf16.msra.mxu0 %v3076_v25  ;;  %v3180_v25 = vld [vmem:[%s4452_s1 + $0x764] ss:$8 sps:$4 sm:$0xff]  }
  0x8c   :  { %2240 = vmatpush1.bf16.msra.mxu1 %v3079_v26  ;;  %2188 = vmatprep.subr.bf16.mxu0 %v3087_v28  ;;  %v3181_v26 = vld [vmem:[%s4453_s0 + $0xb4] ss:$72 sps:$4 sm:$0xff]   ;;  %v3175_v28 = vld [vmem:[%s4452_s1 + $0x660] ss:$8 sps:$4 sm:$0xff]  }
  0x8d   :  { %2241 = vmatprep.subr.bf16.mxu1 %v3090_v29  ;;  %2214 = vmatprep.mubr.bf16.mxu0 %v3165_v33  ;;  %v3190_v27 = vld [vmem:[%s4453_s0 + $0xbc] ss:$72 sps:$4 sm:$0xff]   ;;  %v3178_v29 = vld [vmem:[%s4452_s1 + $0x760] ss:$8 sps:$4 sm:$0xff]   ;;  %v3184_v33 = vld [vmem:[%s4452_s1 + $0x650] ss:$8 sps:$4 sm:$0xff]  }
  0x8e   :  { %2267 = vmatprep.mubr.bf16.mxu1 %v3168_v35  ;;  %v3187_v35 = vld [vmem:[%s4452_s1 + $0x750] ss:$8 sps:$4 sm:$0xff]  }
  0x8f   :  { %2189 = vmatpush1.bf16.msra.mxu0 %v3085_v30  ;;  %v3186_v30 = vld [vmem:[%s4452_s1 + $0x654] ss:$8 sps:$4 sm:$0xff]  }
  0x90   :  { %2242 = vmatpush1.bf16.msra.mxu1 %v3088_v31  ;;  %2190 = vmatprep.subr.bf16.mxu0 %v3093_v32  ;;  %v3189_v31 = vld [vmem:[%s4452_s1 + $0x754] ss:$8 sps:$4 sm:$0xff]   ;;  %v3183_v32 = vld [vmem:[%s4453_s0 + $0xb0] ss:$72 sps:$4 sm:$0xff]  }
  0x91   :  { %2243 = vmatprep.subr.bf16.mxu1 %v3096_v34  ;;  %v3192_v34 = vld [vmem:[%s4453_s0 + $0xb8] ss:$72 sps:$4 sm:$0xff]  }
  0x93   :  { %2191 = vmatpush1.bf16.msra.mxu0 %v3091_v36  ;;  %v3195_v36 = vld [vmem:[%s4452_s1 + $0x644] ss:$8 sps:$4 sm:$0xff]  }
  0x94   :  { %2244 = vmatpush1.bf16.msra.mxu1 %v3094_v37  ;;  %2192 = vmatprep.subr.bf16.mxu0 %v3099_v38  ;;  %v3198_v37 = vld [vmem:[%s4452_s1 + $0x744] ss:$8 sps:$4 sm:$0xff]   ;;  %v3273_v38 = vld [vmem:[%s4453_s0 + $0x34] ss:$72 sps:$4 sm:$0xff]  }
  0x95   :  { %2245 = vmatprep.subr.bf16.mxu1 %v3102_v39  ;;  %v3276_v39 = vld [vmem:[%s4453_s0 + $0x3c] ss:$72 sps:$4 sm:$0xff]  }
  0x97   :  { %2193 = vmatpush1.bf16.msra.mxu0 %v3097_v40  ;;  %v3193_v40 = vld [vmem:[%s4452_s1 + $0x640] ss:$8 sps:$4 sm:$0xff]  }
  0x98   :  { %2246 = vmatpush1.bf16.msra.mxu1 %v3100_v41  ;;  %2194 = vmatprep.subr.bf16.mxu0 %v3105_v42  ;;  %v3196_v41 = vld [vmem:[%s4452_s1 + $0x740] ss:$8 sps:$4 sm:$0xff]   ;;  %v3201_v42 = vld [vmem:[%s4452_s1 + $0x634] ss:$8 sps:$4 sm:$0xff]  }
  0x99   :  { %2247 = vmatprep.subr.bf16.mxu1 %v3108_v43  ;;  %v3204_v43 = vld [vmem:[%s4452_s1 + $0x734] ss:$8 sps:$4 sm:$0xff]  }
  0x9b   :  { %2195 = vmatpush1.bf16.msra.mxu0 %v3103_v44  ;;  %v3199_v44 = vld [vmem:[%s4452_s1 + $0x630] ss:$8 sps:$4 sm:$0xff]  }
  0x9c   :  { %2248 = vmatpush1.bf16.msra.mxu1 %v3106_v45  ;;  %2196 = vmatprep.subr.bf16.mxu0 %v3111_v46  ;;  %v3202_v45 = vld [vmem:[%s4452_s1 + $0x730] ss:$8 sps:$4 sm:$0xff]   ;;  %v3207_v46 = vld [vmem:[%s4452_s1 + $0x624] ss:$8 sps:$4 sm:$0xff]  }
  0x9d   :  { %2249 = vmatprep.subr.bf16.mxu1 %v3114_v47  ;;  %v3210_v47 = vld [vmem:[%s4452_s1 + $0x724] ss:$8 sps:$4 sm:$0xff]  }
  0x9f   :  { %2197 = vmatpush1.bf16.msra.mxu0 %v3109_v48  ;;  %v3205_v48 = vld [vmem:[%s4452_s1 + $0x620] ss:$8 sps:$4 sm:$0xff]  }
  0xa0   :  { %2250 = vmatpush1.bf16.msra.mxu1 %v3112_v49  ;;  %2198 = vmatprep.subr.bf16.mxu0 %v3117_v50  ;;  %v3208_v49 = vld [vmem:[%s4452_s1 + $0x720] ss:$8 sps:$4 sm:$0xff]   ;;  %v3213_v50 = vld [vmem:[%s4452_s1 + $0x614] ss:$8 sps:$4 sm:$0xff]  }
  0xa1   :  { %2251 = vmatprep.subr.bf16.mxu1 %v3120_v51  ;;  %v3216_v51 = vld [vmem:[%s4452_s1 + $0x714] ss:$8 sps:$4 sm:$0xff]  }
  0xa3   :  { %2199 = vmatpush2.bf16.msra.mxu0 %v3115_v52  ;;  %v3211_v52 = vld [vmem:[%s4452_s1 + $0x610] ss:$8 sps:$4 sm:$0xff]  }
  0xa4   :  { %2252 = vmatpush2.bf16.msra.mxu1 %v3118_v53  ;;  %2200 = vmatprep.subr.bf16.mxu0 %v3123_v54  ;;  %v3214_v53 = vld [vmem:[%s4452_s1 + $0x710] ss:$8 sps:$4 sm:$0xff]   ;;  %v3219_v54 = vld [vmem:[%s4452_s1 + $0x604] ss:$8 sps:$4 sm:$0xff]  }
  0xa5   :  { %2253 = vmatprep.subr.bf16.mxu1 %v3126_v55  ;;  %v3222_v55 = vld [vmem:[%s4452_s1 + $0x704] ss:$8 sps:$4 sm:$0xff]  }
  0xa7   :  { %2201 = vmatpush2.bf16.msra.mxu0 %v3121_v56  ;;  %v3217_v56 = vld [vmem:[%s4452_s1 + $0x600] ss:$8 sps:$4 sm:$0xff]  }
  0xa8   :  { %2254 = vmatpush2.bf16.msra.mxu1 %v3124_v57  ;;  %2202 = vmatprep.subr.bf16.mxu0 %v3129_v58  ;;  %v3220_v57 = vld [vmem:[%s4452_s1 + $0x700] ss:$8 sps:$4 sm:$0xff]   ;;  %v3225_v58 = vld [vmem:[%s4452_s1 + $0x6f4] ss:$8 sps:$4 sm:$0xff]  }
  0xa9   :  { %2255 = vmatprep.subr.bf16.mxu1 %v3132_v59  ;;  %v3228_v59 = vld [vmem:[%s4452_s1 + $0x7f4] ss:$8 sps:$4 sm:$0xff]  }
  0xab   :  { %2203 = vmatpush2.bf16.msra.mxu0 %v3127_v60  ;;  %v3223_v60 = vld [vmem:[%s4452_s1 + $0x6f0] ss:$8 sps:$4 sm:$0xff]  }
  0xac   :  { %2256 = vmatpush2.bf16.msra.mxu1 %v3130_v61  ;;  %2204 = vmatprep.subr.bf16.mxu0 %v3135_v62  ;;  %v3226_v61 = vld [vmem:[%s4452_s1 + $0x7f0] ss:$8 sps:$4 sm:$0xff]   ;;  %v3231_v62 = vld [vmem:[%s4452_s1 + $0x6e4] ss:$8 sps:$4 sm:$0xff]  }
  0xad   :  { %2257 = vmatprep.subr.bf16.mxu1 %v3138_v63  ;;  %v3234_v63 = vld [vmem:[%s4452_s1 + $0x7e4] ss:$8 sps:$4 sm:$0xff]  }
  0xaf   :  { %2205 = vmatpush2.bf16.msra.mxu0 %v3133_v0  ;;  %v3229_v0 = vld [vmem:[%s4452_s1 + $0x6e0] ss:$8 sps:$4 sm:$0xff]  }
  0xb0   :  { %2258 = vmatpush2.bf16.msra.mxu1 %v3136_v1  ;;  %2206 = vmatprep.subr.bf16.mxu0 %v3141_v2  ;;  %v3232_v1 = vld [vmem:[%s4452_s1 + $0x7e0] ss:$8 sps:$4 sm:$0xff]   ;;  %v3237_v2 = vld [vmem:[%s4452_s1 + $0x6d4] ss:$8 sps:$4 sm:$0xff]  }
  0xb1   :  { %2259 = vmatprep.subr.bf16.mxu1 %v3144_v3  ;;  %v3240_v3 = vld [vmem:[%s4452_s1 + $0x7d4] ss:$8 sps:$4 sm:$0xff]  }
  0xb3   :  { %2207 = vmatpush2.bf16.msra.mxu0 %v3139_v4  ;;  %v3235_v4 = vld [vmem:[%s4452_s1 + $0x6d0] ss:$8 sps:$4 sm:$0xff]  }
  0xb4   :  { %2260 = vmatpush2.bf16.msra.mxu1 %v3142_v5  ;;  %2208 = vmatprep.subr.bf16.mxu0 %v3147_v6  ;;  %v3238_v5 = vld [vmem:[%s4452_s1 + $0x7d0] ss:$8 sps:$4 sm:$0xff]   ;;  %v3243_v6 = vld [vmem:[%s4452_s1 + $0x6c4] ss:$8 sps:$4 sm:$0xff]  }
  0xb5   :  { %2261 = vmatprep.subr.bf16.mxu1 %v3150_v7  ;;  %v3246_v7 = vld [vmem:[%s4452_s1 + $0x7c4] ss:$8 sps:$4 sm:$0xff]  }
  0xb7   :  { %2209 = vmatpush2.bf16.msra.mxu0 %v3145_v8  ;;  %v3241_v8 = vld [vmem:[%s4452_s1 + $0x6c0] ss:$8 sps:$4 sm:$0xff]  }
  0xb8   :  { %2262 = vmatpush2.bf16.msra.mxu1 %v3148_v9  ;;  %2210 = vmatprep.subr.bf16.mxu0 %v3153_v10  ;;  %v3244_v9 = vld [vmem:[%s4452_s1 + $0x7c0] ss:$8 sps:$4 sm:$0xff]   ;;  %v3249_v10 = vld [vmem:[%s4452_s1 + $0x6b4] ss:$8 sps:$4 sm:$0xff]  }
  0xb9   :  { %2263 = vmatprep.subr.bf16.mxu1 %v3156_v11  ;;  %v3252_v11 = vld [vmem:[%s4452_s1 + $0x7b4] ss:$8 sps:$4 sm:$0xff]  }
  0xbb   :  { %2211 = vmatpush2.bf16.msra.mxu0 %v3151_v12  ;;  %v3247_v12 = vld [vmem:[%s4452_s1 + $0x6b0] ss:$8 sps:$4 sm:$0xff]  }
  0xbc   :  { %2264 = vmatpush2.bf16.msra.mxu1 %v3154_v13  ;;  %2212 = vmatprep.subr.bf16.mxu0 %v3159_v14  ;;  %v3250_v13 = vld [vmem:[%s4452_s1 + $0x7b0] ss:$8 sps:$4 sm:$0xff]   ;;  %v3255_v14 = vld [vmem:[%s4452_s1 + $0x6a4] ss:$8 sps:$4 sm:$0xff]  }
  0xbd   :  { %2265 = vmatprep.subr.bf16.mxu1 %v3162_v15  ;;  %v3258_v15 = vld [vmem:[%s4452_s1 + $0x7a4] ss:$8 sps:$4 sm:$0xff]  }
  0xbf   :  { %2213 = vmatpush2.bf16.msra.mxu0 %v3157_v16  ;;  %v3253_v16 = vld [vmem:[%s4452_s1 + $0x6a0] ss:$8 sps:$4 sm:$0xff]  }
  0xc0   :  { %2266 = vmatpush2.bf16.msra.mxu1 %v3160_v17  ;;  %2288 = vmatprep.subr.bf16.mxu0 %v3171_v18  ;;  %v3256_v17 = vld [vmem:[%s4452_s1 + $0x7a0] ss:$8 sps:$4 sm:$0xff]   ;;  %v3261_v18 = vld [vmem:[%s4452_s1 + $0x694] ss:$8 sps:$4 sm:$0xff]  }
  0xc1   :  { %2341 = vmatprep.subr.bf16.mxu1 %v3174_v19  ;;  %v3264_v19 = vld [vmem:[%s4452_s1 + $0x794] ss:$8 sps:$4 sm:$0xff]  }
  0xc2   :  { %2215 = vmatmul.mubr.bf16.vlgmr.msra.gmra.mxu0 %v3163_v20  ;;  %v3259_v20 = vld [vmem:[%s4452_s1 + $0x690] ss:$8 sps:$4 sm:$0xff]  }
  0xc3   :  { %2268 = vmatmul.mubr.bf16.vlgmr.msra.gmra.mxu1 %v3166_v21  ;;  %2289 = vmatpush1.bf16.msra.mxu0 %v3169_v22  ;;  %v3262_v21 = vld [vmem:[%s4452_s1 + $0x790] ss:$8 sps:$4 sm:$0xff]   ;;  %v3267_v22 = vld [vmem:[%s4452_s1 + $0x684] ss:$8 sps:$4 sm:$0xff]  }
  0xc4   :  { %2342 = vmatpush1.bf16.msra.mxu1 %v3172_v23  ;;  %2290 = vmatprep.subr.bf16.mxu0 %v3177_v24  ;;  %v3270_v23 = vld [vmem:[%s4452_s1 + $0x784] ss:$8 sps:$4 sm:$0xff]   ;;  %v3265_v24 = vld [vmem:[%s4452_s1 + $0x680] ss:$8 sps:$4 sm:$0xff]  }
  0xc5   :  { %2343 = vmatprep.subr.bf16.mxu1 %v3180_v25  ;;  %2224 = vmatprep.mubr.bf16.mxu0 %v3181_v26  ;;  %v3268_v25 = vld [vmem:[%s4452_s1 + $0x780] ss:$8 sps:$4 sm:$0xff]   ;;  %v3279_v26 = vld [vmem:[%s4452_s1 + $0x874] ss:$8 sps:$4 sm:$0xff]  }
  0xc6   :  { %2277 = vmatprep.mubr.bf16.mxu1 %v3190_v27  ;;  %v3271_v27 = vld [vmem:[%s4453_s0 + $0x30] ss:$72 sps:$4 sm:$0xff]  }
  0xc7   :  { %2291 = vmatpush1.bf16.msra.mxu0 %v3175_v28  ;;  %v3274_v28 = vld [vmem:[%s4453_s0 + $0x38] ss:$72 sps:$4 sm:$0xff]  }
  0xc8   :  { %2344 = vmatpush1.bf16.msra.mxu1 %v3178_v29  ;;  %2292 = vmatprep.subr.bf16.mxu0 %v3186_v30  ;;  %v3277_v29 = vld [vmem:[%s4452_s1 + $0x870] ss:$8 sps:$4 sm:$0xff]   ;;  %v3282_v30 = vld [vmem:[%s4452_s1 + $0x864] ss:$8 sps:$4 sm:$0xff]  }
  0xc9   :  { %2345 = vmatprep.subr.bf16.mxu1 %v3189_v31  ;;  %v3283_v31 = vld [vmem:[%s4453_s0 + $0xc4] ss:$72 sps:$4 sm:$0xff]  }
  0xca   :  { %2225 = vmatmul.mubr.bf16.gmra.mxu0 %v3183_v32  ;;  %v3289_v32 = vld [vmem:[%s4453_s0 + $0xcc] ss:$72 sps:$4 sm:$0xff]  }
  0xcb   :  { %2278 = vmatmul.mubr.bf16.gmra.mxu1 %v3192_v34  ;;  %2293 = vmatpush1.bf16.msra.mxu0 %v3184_v33  ;;  %v3280_v33 = vld [vmem:[%s4452_s1 + $0x860] ss:$8 sps:$4 sm:$0xff]   ;;  %v3288_v34 = vld [vmem:[%s4452_s1 + $0x854] ss:$8 sps:$4 sm:$0xff]  }
  0xcc   :  { %2346 = vmatpush1.bf16.msra.mxu1 %v3187_v35  ;;  %2294 = vmatprep.subr.bf16.mxu0 %v3195_v36  ;;  %v3285_v35 = vld [vmem:[%s4453_s0 + $0xc0] ss:$72 sps:$4 sm:$0xff]  }
  0xcd   :  { %2347 = vmatprep.subr.bf16.mxu1 %v3198_v37  ;;  %2320 = vmatprep.mubr.bf16.mxu0 %v3273_v38  ;;  %v3291_v36 = vld [vmem:[%s4453_s0 + $0xc8] ss:$72 sps:$4 sm:$0xff]   ;;  %v3294_v38 = vld [vmem:[%s4452_s1 + $0x844] ss:$8 sps:$4 sm:$0xff]  }
  0xce   :  { %2373 = vmatprep.mubr.bf16.mxu1 %v3276_v39  ;;  %v3286_v37 = vld [vmem:[%s4452_s1 + $0x850] ss:$8 sps:$4 sm:$0xff]   ;;  %v3333_v39 = vld [vmem:[%s4453_s0 + $0x44] ss:$72 sps:$4 sm:$0xff]  }
  0xcf   :  { %2295 = vmatpush1.bf16.msra.mxu0 %v3193_v40  ;;  %v3336_v40 = vld [vmem:[%s4453_s0 + $0xd4] ss:$72 sps:$4 sm:$0xff]  }
  0xd0   :  { %2348 = vmatpush1.bf16.msra.mxu1 %v3196_v41  ;;  %2296 = vmatprep.subr.bf16.mxu0 %v3201_v42  ;;  %v3292_v41 = vld [vmem:[%s4452_s1 + $0x840] ss:$8 sps:$4 sm:$0xff]   ;;  %v3297_v42 = vld [vmem:[%s4452_s1 + $0x834] ss:$8 sps:$4 sm:$0xff]  }
  0xd1   :  { %2349 = vmatprep.subr.bf16.mxu1 %v3204_v43  ;;  %v3295_v43 = vld [vmem:[%s4452_s1 + $0x830] ss:$8 sps:$4 sm:$0xff]  }
  0xd3   :  { %2297 = vmatpush1.bf16.msra.mxu0 %v3199_v44  ;;  %v3300_v44 = vld [vmem:[%s4452_s1 + $0x824] ss:$8 sps:$4 sm:$0xff]  }
  0xd4   :  { %2350 = vmatpush1.bf16.msra.mxu1 %v3202_v45  ;;  %2298 = vmatprep.subr.bf16.mxu0 %v3207_v46  ;;  %v3298_v45 = vld [vmem:[%s4452_s1 + $0x820] ss:$8 sps:$4 sm:$0xff]   ;;  %v3303_v46 = vld [vmem:[%s4452_s1 + $0x814] ss:$8 sps:$4 sm:$0xff]  }
  0xd5   :  { %2351 = vmatprep.subr.bf16.mxu1 %v3210_v47  ;;  %v3301_v47 = vld [vmem:[%s4452_s1 + $0x810] ss:$8 sps:$4 sm:$0xff]  }
  0xd7   :  { %2299 = vmatpush1.bf16.msra.mxu0 %v3205_v48  ;;  %v3306_v48 = vld [vmem:[%s4452_s1 + $0x804] ss:$8 sps:$4 sm:$0xff]  }
  0xd8   :  { %2352 = vmatpush1.bf16.msra.mxu1 %v3208_v49  ;;  %2300 = vmatprep.subr.bf16.mxu0 %v3213_v50  ;;  %v3304_v49 = vld [vmem:[%s4452_s1 + $0x800] ss:$8 sps:$4 sm:$0xff]   ;;  %v3309_v50 = vld [vmem:[%s4452_s1 + $0x8f4] ss:$8 sps:$4 sm:$0xff]  }
  0xd9   :  { %2353 = vmatprep.subr.bf16.mxu1 %v3216_v51  ;;  %v3307_v51 = vld [vmem:[%s4452_s1 + $0x8f0] ss:$8 sps:$4 sm:$0xff]  }
  0xdb   :  { %2301 = vmatpush1.bf16.msra.mxu0 %v3211_v52  ;;  %v3312_v52 = vld [vmem:[%s4452_s1 + $0x8e4] ss:$8 sps:$4 sm:$0xff]  }
  0xdc   :  { %2354 = vmatpush1.bf16.msra.mxu1 %v3214_v53  ;;  %2302 = vmatprep.subr.bf16.mxu0 %v3219_v54  ;;  %v3310_v53 = vld [vmem:[%s4452_s1 + $0x8e0] ss:$8 sps:$4 sm:$0xff]   ;;  %v3315_v54 = vld [vmem:[%s4452_s1 + $0x8d4] ss:$8 sps:$4 sm:$0xff]  }
  0xdd   :  { %2355 = vmatprep.subr.bf16.mxu1 %v3222_v55  ;;  %v3313_v55 = vld [vmem:[%s4452_s1 + $0x8d0] ss:$8 sps:$4 sm:$0xff]  }
  0xdf   :  { %2303 = vmatpush1.bf16.msra.mxu0 %v3217_v56  ;;  %v3318_v56 = vld [vmem:[%s4452_s1 + $0x8c4] ss:$8 sps:$4 sm:$0xff]  }
  0xe0   :  { %2356 = vmatpush1.bf16.msra.mxu1 %v3220_v57  ;;  %2304 = vmatprep.subr.bf16.mxu0 %v3225_v58  ;;  %v3316_v57 = vld [vmem:[%s4452_s1 + $0x8c0] ss:$8 sps:$4 sm:$0xff]   ;;  %v3321_v58 = vld [vmem:[%s4452_s1 + $0x8b4] ss:$8 sps:$4 sm:$0xff]  }
  0xe1   :  { %2357 = vmatprep.subr.bf16.mxu1 %v3228_v59  ;;  %v3319_v59 = vld [vmem:[%s4452_s1 + $0x8b0] ss:$8 sps:$4 sm:$0xff]  }
  0xe3   :  { %2305 = vmatpush2.bf16.msra.mxu0 %v3223_v60  ;;  %v3324_v60 = vld [vmem:[%s4452_s1 + $0x8a4] ss:$8 sps:$4 sm:$0xff]  }
  0xe4   :  { %2358 = vmatpush2.bf16.msra.mxu1 %v3226_v61  ;;  %2306 = vmatprep.subr.bf16.mxu0 %v3231_v62  ;;  %v3322_v61 = vld [vmem:[%s4452_s1 + $0x8a0] ss:$8 sps:$4 sm:$0xff]   ;;  %v3327_v62 = vld [vmem:[%s4452_s1 + $0x894] ss:$8 sps:$4 sm:$0xff]  }
  0xe5   :  { %2359 = vmatprep.subr.bf16.mxu1 %v3234_v63  ;;  %v3325_v63 = vld [vmem:[%s4452_s1 + $0x890] ss:$8 sps:$4 sm:$0xff]  }
  0xe7   :  { %2307 = vmatpush2.bf16.msra.mxu0 %v3229_v0  ;;  %v3330_v0 = vld [vmem:[%s4452_s1 + $0x884] ss:$8 sps:$4 sm:$0xff]  }
  0xe8   :  { %2360 = vmatpush2.bf16.msra.mxu1 %v3232_v1  ;;  %2308 = vmatprep.subr.bf16.mxu0 %v3237_v2  ;;  %v3328_v1 = vld [vmem:[%s4452_s1 + $0x880] ss:$8 sps:$4 sm:$0xff]  }
  0xe9   :  { %2361 = vmatprep.subr.bf16.mxu1 %v3240_v3  ;;  %v3331_v2 = vld [vmem:[%s4453_s0 + $0x40] ss:$72 sps:$4 sm:$0xff]   ;;  %v3334_v3 = vld [vmem:[%s4453_s0 + $0xd0] ss:$72 sps:$4 sm:$0xff]  }
  0xeb   :  { %2309 = vmatpush2.bf16.msra.mxu0 %v3235_v4 }
  0xec   :  { %2362 = vmatpush2.bf16.msra.mxu1 %v3238_v5  ;;  %2310 = vmatprep.subr.bf16.mxu0 %v3243_v6 }
  0xed   :  { %2363 = vmatprep.subr.bf16.mxu1 %v3246_v7 }
  0xef   :  { %2311 = vmatpush2.bf16.msra.mxu0 %v3241_v8 }
  0xf0   :  { %2364 = vmatpush2.bf16.msra.mxu1 %v3244_v9  ;;  %2312 = vmatprep.subr.bf16.mxu0 %v3249_v10 }
  0xf1   :  { %2365 = vmatprep.subr.bf16.mxu1 %v3252_v11 }
  0xf3   :  { %2313 = vmatpush2.bf16.msra.mxu0 %v3247_v12 }
  0xf4   :  { %2366 = vmatpush2.bf16.msra.mxu1 %v3250_v13  ;;  %2314 = vmatprep.subr.bf16.mxu0 %v3255_v14 }
  0xf5   :  { %2367 = vmatprep.subr.bf16.mxu1 %v3258_v15 }
  0xf7   :  { %2315 = vmatpush2.bf16.msra.mxu0 %v3253_v16 }
  0xf8   :  { %2368 = vmatpush2.bf16.msra.mxu1 %v3256_v17  ;;  %2316 = vmatprep.subr.bf16.mxu0 %v3261_v18 }
  0xf9   :  { %2369 = vmatprep.subr.bf16.mxu1 %v3264_v19 }
  0xfb   :  { %2317 = vmatpush2.bf16.msra.mxu0 %v3259_v20 }
  0xfc   :  { %2370 = vmatpush2.bf16.msra.mxu1 %v3262_v21  ;;  %2318 = vmatprep.subr.bf16.mxu0 %v3267_v22 }
  0xfd   :  { %2371 = vmatprep.subr.bf16.mxu1 %v3270_v23 }
  0xff   :  { %2319 = vmatpush2.bf16.msra.mxu0 %v3265_v24 }
 0x100   :  { %2372 = vmatpush2.bf16.msra.mxu1 %v3268_v25  ;;  %2394 = vmatprep.subr.bf16.mxu0 %v3279_v26 }
 0x101   :  { %2819 = vmatprep.subr.bf16.mxu1 %v3279_v26 }
 0x102   :  { %2321 = vmatmul.mubr.bf16.vlgmr.msra.gmra.mxu0 %v3271_v27  ;;  %v2004_v4 = vpop.f32.mrf.mxu0 }
 0x103   :  { %2374 = vmatmul.mubr.bf16.vlgmr.msra.gmra.mxu1 %v3274_v28  ;;  %2395 = vmatpush1.bf16.msra.mxu0 %v3277_v29  ;;  %v4329_v6 = vpop.f32.mrf.mxu1 }
 0x104   :  { %2835 = vmatpush1.bf16.msra.mxu1 %v3277_v29  ;;  %2396 = vmatprep.subr.bf16.mxu0 %v3282_v30  ;;  %v2006_v5 = vpop.f32.mrf.mxu0 }
 0x105   :  { %2820 = vmatprep.subr.bf16.mxu1 %v3282_v30  ;;  %2330 = vmatprep.mubr.bf16.mxu0 %v3283_v31  ;;  %v4333_v8 = vpop.f32.mrf.mxu1 }
 0x106   :  { %2383 = vmatprep.mubr.bf16.mxu1 %v3289_v32  ;;  %v4331_v7 = vpop.f32.mrf.mxu0 }
 0x107   :  { %2397 = vmatpush1.bf16.msra.mxu0 %v3280_v33  ;;  %v4337_v10 = vpop.f32.mrf.mxu1 }
 0x108   :  { %2836 = vmatpush1.bf16.msra.mxu1 %v3280_v33  ;;  %2398 = vmatprep.subr.bf16.mxu0 %v3288_v34  ;;  %v4335_v9 = vpop.f32.mrf.mxu0 }
 0x109   :  { %2821 = vmatprep.subr.bf16.mxu1 %v3288_v34  ;;  %v4339_v12 = vpop.f32.mrf.mxu1 }
 0x10a   :  { %2331 = vmatmul.mubr.bf16.gmra.mxu0 %v3285_v35  ;;  %v2014_v11 = vpop.f32.mrf.mxu0 }
 0x10b   :  { %2384 = vmatmul.mubr.bf16.gmra.mxu1 %v3291_v36  ;;  %2399 = vmatpush1.bf16.msra.mxu0 %v3286_v37  ;;  %v2067_v14 = vpop.f32.mrf.mxu1 }
 0x10c   :  { %2837 = vmatpush1.bf16.msra.mxu1 %v3286_v37  ;;  %2400 = vmatprep.subr.bf16.mxu0 %v3294_v38  ;;  %v2016_v13 = vpop.f32.mrf.mxu0 }
 0x10d   :  { %2822 = vmatprep.subr.bf16.mxu1 %v3294_v38  ;;  %2426 = vmatprep.mubr.bf16.mxu0 %v3333_v39  ;;  %v2069_v16 = vpop.f32.mrf.mxu1 }
 0x10e   :  { %2436 = vmatprep.mubr.bf16.mxu1 %v3336_v40  ;;  %v2018_v15 = vpop.f32.mrf.mxu0 }
 0x10f   :  { %2401 = vmatpush1.bf16.msra.mxu0 %v3292_v41  ;;  %v4343_v18 = vpop.f32.mrf.mxu1 }
 0x110   :  { %2838 = vmatpush1.bf16.msra.mxu1 %v3292_v41  ;;  %2402 = vmatprep.subr.bf16.mxu0 %v3297_v42  ;;  %v4341_v17 = vpop.f32.mrf.mxu0 }
 0x111   :  { %2823 = vmatprep.subr.bf16.mxu1 %v3297_v42  ;;  %v4345_v20 = vpop.f32.mrf.mxu1 }
 0x113   :  { %2403 = vmatpush1.bf16.msra.mxu0 %v3295_v43 }
 0x114   :  { %2839 = vmatpush1.bf16.msra.mxu1 %v3295_v43  ;;  %2404 = vmatprep.subr.bf16.mxu0 %v3300_v44 }
 0x115   :  { %2824 = vmatprep.subr.bf16.mxu1 %v3300_v44 }
 0x117   :  { %2405 = vmatpush1.bf16.msra.mxu0 %v3298_v45 }
 0x118   :  { %2840 = vmatpush1.bf16.msra.mxu1 %v3298_v45  ;;  %2406 = vmatprep.subr.bf16.mxu0 %v3303_v46 }
 0x119   :  { %2825 = vmatprep.subr.bf16.mxu1 %v3303_v46 }
 0x11b   :  { %2407 = vmatpush1.bf16.msra.mxu0 %v3301_v47 }
 0x11c   :  { %2841 = vmatpush1.bf16.msra.mxu1 %v3301_v47  ;;  %2408 = vmatprep.subr.bf16.mxu0 %v3306_v48  ;;  %v340_v47 = vlaneseq }
 0x11d   :  { %2826 = vmatprep.subr.bf16.mxu1 %v3306_v48 }
 0x11f   :  { %2409 = vmatpush1.bf16.msra.mxu0 %v3304_v49 }
 0x120   :  { %2842 = vmatpush1.bf16.msra.mxu1 %v3304_v49  ;;  %2410 = vmatprep.subr.bf16.mxu0 %v3309_v50 }
 0x121   :  { %2827 = vmatprep.subr.bf16.mxu1 %v3309_v50  ;;  %v341_v50 = vshrl.u32 %v340_v47, 7 }
 0x123   :  { %2411 = vmatpush2.bf16.msra.mxu0 %v3307_v51 }
 0x124   :  { %2843 = vmatpush2.bf16.msra.mxu1 %v3307_v51  ;;  %2412 = vmatprep.subr.bf16.mxu0 %v3312_v52 }
 0x125   :  { %2828 = vmatprep.subr.bf16.mxu1 %v3312_v52 }
 0x127   :  { %2413 = vmatpush2.bf16.msra.mxu0 %v3310_v53 }
 0x128   :  { %2844 = vmatpush2.bf16.msra.mxu1 %v3310_v53  ;;  %2414 = vmatprep.subr.bf16.mxu0 %v3315_v54  ;;  %v342_v53 = vsub.s32 0, %v341_v50 }
 0x129   :  { %2829 = vmatprep.subr.bf16.mxu1 %v3315_v54  ;;  %v338_v54 = vld [vmem:[%s4454_s2] sm:$0x3] }
 0x12b   :  { %2415 = vmatpush2.bf16.msra.mxu0 %v3313_v55 }
 0x12c   :  { %2845 = vmatpush2.bf16.msra.mxu1 %v3313_v55  ;;  %2416 = vmatprep.subr.bf16.mxu0 %v3318_v56 }
 0x12d   :  { %2830 = vmatprep.subr.bf16.mxu1 %v3318_v56 }
 0x12f   :  { %2417 = vmatpush2.bf16.msra.mxu0 %v3316_v57 }
 0x130   :  { %2846 = vmatpush2.bf16.msra.mxu1 %v3316_v57  ;;  %2418 = vmatprep.subr.bf16.mxu0 %v3321_v58  ;;  %v346_v57 = vsub.s32 1, %v341_v50 }
 0x131   :  { %2831 = vmatprep.subr.bf16.mxu1 %v3321_v58 }
 0x133   :  { %2419 = vmatpush2.bf16.msra.mxu0 %v3319_v59 }
 0x134   :  { %2847 = vmatpush2.bf16.msra.mxu1 %v3319_v59  ;;  %2420 = vmatprep.subr.bf16.mxu0 %v3324_v60  ;;  %v343_v59 = vrot.slane %v338_v54, %v342_v53 }
 0x135   :  { %2832 = vmatprep.subr.bf16.mxu1 %v3324_v60 }
 0x136   :  { %v2009_v50 = vadd.f32 %v4331_v7, %v343_v59 }
 0x137   :  { %2421 = vmatpush2.bf16.msra.mxu0 %v3322_v61 }
 0x138   :  { %2848 = vmatpush2.bf16.msra.mxu1 %v3322_v61  ;;  %2422 = vmatprep.subr.bf16.mxu0 %v3327_v62  ;;  %v347_v61 = vrot.slane %v338_v54, %v346_v57 }
 0x139   :  { %2833 = vmatprep.subr.bf16.mxu1 %v3327_v62 }
 0x13b   :  { %2423 = vmatpush2.bf16.msra.mxu0 %v3325_v63 }
 0x13c   :  { %2849 = vmatpush2.bf16.msra.mxu1 %v3325_v63  ;;  %2424 = vmatprep.subr.bf16.mxu0 %v3330_v0  ;;  %v2005_v63 = vadd.f32 %v2004_v4, %v343_v59 }
 0x13d   :  { %2834 = vmatprep.subr.bf16.mxu1 %v3330_v0  ;;  %v2015_v0 = vadd.f32 %v2014_v11, %v343_v59  ;;  %v2011_v11 = vadd.f32 %v4335_v9, %v347_v61 }
 0x13f   :  { %2425 = vmatpush2.bf16.msra.mxu0 %v3328_v1 }
 0x140   :  { %2850 = vmatpush2.bf16.msra.mxu1 %v3328_v1 }
 0x142   :  { %2427 = vmatmul.mubr.bf16.vlgmr.msra.gmra.mxu0 %v3331_v2  ;;  %v2110_v19 = vpop.f32.mrf.mxu0  ;;  %v2007_v2 = vadd.f32 %v2006_v5, %v347_v61  ;;  %v2021_v5 = vadd.f32 %v4341_v17, %v347_v61 }
 0x143   :  { %2437 = vmatmul.mubr.bf16.vlgmr.msra.gmra.mxu1 %v3334_v3  ;;  %v4347_v22 = vpop.f32.mrf.mxu1  ;;  %v2017_v3 = vadd.f32 %v2016_v13, %v347_v61 }
 0x144   :  { %v2112_v21 = vpop.f32.mrf.mxu0  ;;  %v2060_v53 = vadd.f32 %v4333_v8, %v2007_v2 }
 0x145   :  { %v4351_v24 = vpop.f32.mrf.mxu1  ;;  %v2070_v54 = vadd.f32 %v2069_v16, %v2017_v3  ;;  %v2064_v16 = vadd.f32 %v4339_v12, %v2011_v11 }
 0x146   :  { %v4349_v23 = vpop.f32.mrf.mxu0 }
 0x147   :  { %v4355_v26 = vpop.f32.mrf.mxu1 }
 0x148   :  { %v4353_v25 = vpop.f32.mrf.mxu0 }
 0x149   :  { %v4357_v28 = vpop.f32.mrf.mxu1 }
 0x14a   :  { %v2120_v27 = vpop.f32.mrf.mxu0 }
 0x14b   :  { %v2173_v30 = vpop.f32.mrf.mxu1 }
 0x14c   :  { %v2122_v29 = vpop.f32.mrf.mxu0 }
 0x14d   :  { %v4359_v32 = vpop.f32.mrf.mxu1 }
 0x14e   :  { %v2124_v31 = vpop.f32.mrf.mxu0 }
 0x14f   :  { %v4363_v34 = vpop.f32.mrf.mxu1 }
 0x150   :  { %v4361_v33 = vpop.f32.mrf.mxu0 }
 0x151   :  { %v4365_v36 = vpop.f32.mrf.mxu1 }
 0x182   :  { %v2216_v35 = vpop.f32.mrf.mxu0 }
 0x183   :  { %v4367_v37 = vpop.f32.mrf.mxu1 }
 0x184   :  { %v4369_v38 = vpop.f32.mrf.mxu0 }
 0x185   :  { %v4371_v39 = vpop.f32.mrf.mxu1 }
 0x186   :  { %v4373_v40 = vpop.f32.mrf.mxu0 }
 0x187   :  { %v4375_v41 = vpop.f32.mrf.mxu1 }
 0x188   :  { %v4377_v42 = vpop.f32.mrf.mxu0 }
 0x189   :  { %v4379_v43 = vpop.f32.mrf.mxu1 }
 0x18a   :  { %4456 = vst [vmem:[#allocation2_spill] sm:$0xff] %v4379_v43  ;;  %v2226_v44 = vpop.f32.mrf.mxu0  ;;  %v2058_v43 = vadd.f32 %v4329_v6, %v2005_v63  ;;  %v2062_v6 = vadd.f32 %v4337_v10, %v2009_v50 }
 0x18b   :  { %v2279_v45 = vpop.f32.mrf.mxu1 }
 0x18c   :  { %v2228_v46 = vpop.f32.mrf.mxu0  ;;  %v2111_v57 = vadd.f32 %v2110_v19, %v2058_v43  ;;  %v2074_v19 = vadd.f32 %v4345_v20, %v2021_v5  ;;  %v2115_v9 = vadd.f32 %v4349_v23, %v2062_v6 }
 0x18d   :  { %v4381_v48 = vpop.f32.mrf.mxu1 }
 0x18e   :  { %v2230_v49 = vpop.f32.mrf.mxu0  ;;  %v2127_v43 = vadd.f32 %v4361_v33, %v2074_v19  ;;  %v2168_v20 = vadd.f32 %v4355_v26, %v2115_v9 }
 0x18f   :  { %v4383_v51 = vpop.f32.mrf.mxu1 }
 0x190   :  { %4457 = vst [vmem:[#allocation3_spill] sm:$0xff] %v4383_v51  ;;  %v4385_v52 = vpop.f32.mrf.mxu0  ;;  %v2019_v51 = vadd.f32 %v2018_v15, %v343_v59  ;;  %v2164_v59 = vadd.f32 %v4347_v22, %v2111_v57 }
 0x191   :  { %v4390_v55 = vpop.f32.mrf.mxu1 }
 0x192   :  { %4458 = vst [vmem:[#allocation4_spill] sm:$0xff] %v4390_v55  ;;  %v2068_v55 = vadd.f32 %v2067_v14, %v2015_v0  ;;  %v2072_v7 = vadd.f32 %v4343_v18, %v2019_v51  ;;  %v2117_v18 = vadd.f32 %v4353_v25, %v2064_v16  ;;  %v2221_v25 = vadd.f32 %v4373_v40, %v2168_v20 }
 0x194   :  { %v2121_v4 = vadd.f32 %v2120_v27, %v2068_v55  ;;  %v2125_v17 = vadd.f32 %v2124_v31, %v2072_v7 }
 0x196   :  { %v2174_v8 = vadd.f32 %v2173_v30, %v2121_v4  ;;  %v2178_v23 = vadd.f32 %v4363_v34, %v2125_v17 }
 0x198   :  { %v2227_v10 = vadd.f32 %v2226_v44, %v2174_v8  ;;  %v2231_v44 = vadd.f32 %v2230_v49, %v2178_v23 }
 0x1c2   :  { %v2322_v56 = vpop.f32.mrf.mxu0 }
 0x1c3   :  { %v4392_v58 = vpop.f32.mrf.mxu1 }
 0x1c4   :  { %4459 = vst [vmem:[#allocation5_spill] sm:$0xff] %v4392_v58  ;;  %v2324_v60 = vpop.f32.mrf.mxu0 }
 0x1c5   :  { %v4394_v62 = vpop.f32.mrf.mxu1 }
 0x1c6   :  { %4460 = vst [vmem:[#allocation6_spill] sm:$0xff] %v4394_v62  ;;  %v4396_v1 = vpop.f32.mrf.mxu0  ;;  %v2123_v62 = vadd.f32 %v2122_v29, %v2070_v54  ;;  %v2217_v29 = vadd.f32 %v2216_v35, %v2164_v59  ;;  %v2180_v35 = vadd.f32 %v4365_v36, %v2127_v43  ;;  %v4462_v36 = vld [vmem:[#allocation3_spill] sm:$0xff] }
 0x1c7   :  { %v4398_v47 = vpop.f32.mrf.mxu1  ;;  %v2284_v63 = vadd.f32 %v4462_v36, %v2231_v44 }
 0x1c8   :  { %4461 = vst [vmem:[#allocation7_spill] sm:$0xff] %v4398_v47  ;;  %v4402_v58 = vpop.f32.mrf.mxu0  ;;  %v2113_v47 = vadd.f32 %v2112_v21, %v2060_v53  ;;  %v2176_v21 = vadd.f32 %v4359_v32, %v2123_v62  ;;  %v2270_v31 = vadd.f32 %v4367_v37, %v2217_v29  ;;  %v2170_v32 = vadd.f32 %v4357_v28, %v2117_v18 }
 0x1c9   :  { %v4407_v13 = vpop.f32.mrf.mxu1  ;;  %v2233_v37 = vadd.f32 %v4385_v52, %v2180_v35  ;;  %v2274_v28 = vadd.f32 %v4375_v41, %v2221_v25 }
 0x1ca   :  { %v2332_v14 = vpop.f32.mrf.mxu0  ;;  %v2166_v27 = vadd.f32 %v4351_v24, %v2113_v47  ;;  %v2229_v12 = vadd.f32 %v2228_v46, %v2176_v21  ;;  %v2280_v24 = vadd.f32 %v2279_v45, %v2227_v10  ;;  %v2323_v46 = vadd.f32 %v2322_v56, %v2270_v31 }
 0x1cb   :  { %v2385_v15 = vpop.f32.mrf.mxu1  ;;  %v2223_v34 = vadd.f32 %v4377_v42, %v2170_v32  ;;  %v4463_v0 = vld [vmem:[#allocation5_spill] sm:$0xff]  ;;  %v2327_v50 = vadd.f32 %v4396_v1, %v2274_v28 }
 0x1cc   :  { %v2334_v51 = vpop.f32.mrf.mxu0  ;;  %v2219_v30 = vadd.f32 %v4369_v38, %v2166_v27  ;;  %v2282_v38 = vadd.f32 %v4381_v48, %v2229_v12  ;;  %v2333_v26 = vadd.f32 %v2332_v14, %v2280_v24  ;;  %v2376_v2 = vadd.f32 %v4463_v0, %v2323_v46  ;;  %v4465_v48 = vld [vmem:[#allocation4_spill] sm:$0xff] }
 0x1cd   :  { %v2387_v22 = vpop.f32.mrf.mxu1  ;;  %v2286_v56 = vadd.f32 %v4465_v48, %v2233_v37 }
 0x1ce   :  { %v2336_v33 = vpop.f32.mrf.mxu0  ;;  %v2272_v61 = vadd.f32 %v4371_v39, %v2219_v30  ;;  %v2335_v62 = vadd.f32 %v2334_v51, %v2282_v38  ;;  %v2386_v3 = vadd.f32 %v2385_v15, %v2333_v26  ;;  %v4464_v39 = vld [vmem:[#allocation2_spill] sm:$0xff] }
 0x1cf   :  { %v2389_v55 = vpop.f32.mrf.mxu1  ;;  %v2276_v47 = vadd.f32 %v4464_v39, %v2223_v34  ;;  %v2337_v42 = vadd.f32 %v2336_v33, %v2284_v63  ;;  %v4467_v59 = vld [vmem:[#allocation7_spill] sm:$0xff] }
 0x1d0   :  { %v2325_v45 = vadd.f32 %v2324_v60, %v2272_v61  ;;  %v2338_v40 = vpop.f32.mrf.mxu0  ;;  %v4466_v60 = vld [vmem:[#allocation6_spill] sm:$0xff]  ;;  %v2388_v57 = vadd.f32 %v2387_v22, %v2335_v62  ;;  %v2380_v8 = vadd.f32 %v4467_v59, %v2327_v50 }
 0x1d1   :  { %v2391_v49 = vpop.f32.mrf.mxu1  ;;  %v2329_v11 = vadd.f32 %v4402_v58, %v2276_v47  ;;  %v2339_v5 = vadd.f32 %v2338_v40, %v2286_v56  ;;  %v2390_v16 = vadd.f32 %v2389_v55, %v2337_v42 }
 0x1d2   :  { %v2378_v54 = vadd.f32 %v4466_v60, %v2325_v45 }
 0x1d3   :  { %v2382_v29 = vadd.f32 %v4407_v13, %v2329_v11  ;;  %v2392_v10 = vadd.f32 %v2391_v49, %v2339_v5 }
 0x202   :  { %v2428_v53 = vpop.f32.mrf.mxu0 }
 0x203   :  { %v2438_v52 = vpop.f32.mrf.mxu1  ;;  %v2429_v41 = vadd.f32 %v2428_v53, %v2376_v2 }
 0x204   :  { %v2439_v4 = vadd.f32 %v2438_v52, %v2386_v3  ;;  %v2430_v6 = vpop.f32.mrf.mxu0 }
 0x205   :  { %v2440_v7 = vpop.f32.mrf.mxu1  ;;  %v2431_v14 = vadd.f32 %v2430_v6, %v2378_v54  ;;  %v2447_v9 = vmax.f32 %v2429_v41, 0.0 }
 0x206   :  { %v2441_v15 = vadd.f32 %v2440_v7, %v2388_v57  ;;  %v2432_v19 = vpop.f32.mrf.mxu0  ;;  %v2451_v17 = vmax.f32 %v2439_v4, 0.0 }
 0x207   :  { %v2442_v1 = vpop.f32.mrf.mxu1  ;;  %v2448_v27 = vmax.f32 %v2431_v14, 0.0  ;;  %v2433_v18 = vadd.f32 %v2432_v19, %v2380_v8 }
 0x208   :  { %v2452_v21 = vmax.f32 %v2441_v15, 0.0  ;;  %v2443_v43 = vadd.f32 %v2442_v1, %v2390_v16  ;;  %v2434_v58 = vpop.f32.mrf.mxu0 }
 0x209   :  { %v2444_v51 = vpop.f32.mrf.mxu1  ;;  %v2815_v22 = vpack.c.bf16 %v2448_v27, %v2447_v9  ;;  %v2435_v12 = vadd.f32 %v2434_v58, %v2382_v29  ;;  %v2449_v23 = vmax.f32 %v2433_v18, 0.0 }
 0x20a   :  { %v2817_v30 = vpack.c.bf16 %v2452_v21, %v2451_v17  ;;  %v2445_v20 = vadd.f32 %v2444_v51, %v2392_v10  ;;  %v2453_v31 = vmax.f32 %v2443_v43, 0.0 }
 0x20b   :  { %2479 = vst [vmem:[%s4455_s3] sm:$0xff] %v2815_v22  ;;  %v2450_v13 = vmax.f32 %v2435_v12, 0.0 }
 0x20c   :  { %2481 = vst [vmem:[%s4455_s3 + $0x10] sm:$0xff] %v2817_v30  ;;  %v2454_v24 = vmax.f32 %v2445_v20, 0.0 }
 0x20d   :  { %v2816_v32 = vpack.c.bf16 %v2450_v13, %v2449_v23 }
 0x20e   :  { %v2818_v35 = vpack.c.bf16 %v2454_v24, %v2453_v31 }
 0x20f   :  { %2480 = vst [vmem:[%s4455_s3 + $0x8] sm:$0xff] %v2816_v32 }
 0x210   :  { %2482 = vst [vmem:[%s4455_s3 + $0x18] sm:$0xff] %v2818_v35 }

</bundles_post_ra>
